<compile_context>
chip_gen: v5e
topology: v5e:2x2
jax: 0.10.0
libtpu: 0.0.40
codegen_flags: <defaults>
</compile_context>

<pallas_src>
import math

import jax
import jax.numpy as jnp
from jax.experimental import pallas as pl
from jax.experimental.pallas import tpu as pltpu


def rwkv_cell_kernel(x_ref, st_ref, wrkv_ref, wo_ref, wuw_ref,
                     out_ref, nst_ref):
    H = wuw_ref.shape[1]

    state = st_ref[...]                      # (bm, 3H) f32, packed [n | d | scale]
    frac_n = state[:, :H]
    frac_d = state[:, H:2 * H]
    scale = state[:, 2 * H:]

    wuw = wuw_ref[...]                       # (2, H) f32
    w_u = wuw[0:1, :]                        # (1, H) -> broadcasts over batch
    w_w = wuw[1:2, :]

    # Fused r/k/v projection: in-kernel f32->bf16 cast, one bf16 MXU matmul,
    # f32 accumulation.
    x_bf16 = x_ref[...].astype(jnp.bfloat16)
    rkv = jnp.dot(x_bf16, wrkv_ref[...],
                  preferred_element_type=jnp.float32)        # (bm, 3H) f32
    r_t = jax.nn.sigmoid(rkv[:, :H])
    k_t = rkv[:, H:2 * H]
    v_t = rkv[:, 2 * H:]

    # Numerically-stabilized WKV recurrence (current step includes bonus w_u).
    u_plus_k = w_u + k_t                                     # computed once (CSE)
    softmax_scale = jnp.maximum(scale, u_plus_k)
    cell_mult = jnp.exp(scale - softmax_scale)
    attn_mult = jnp.exp(u_plus_k - softmax_scale)
    frac_n_t = cell_mult * frac_n + attn_mult * v_t
    frac_d_t = cell_mult * frac_d + attn_mult

    # Next-state update (decay w_w, no bonus) -> packed (bm, 3H) store.
    scale_decayed = scale + w_w                              # computed once (CSE)
    next_scale = jnp.maximum(scale_decayed, k_t)
    next_cell_mult = jnp.exp(scale_decayed - next_scale)
    next_attn_mult = jnp.exp(k_t - next_scale)
    nst_ref[:, :H] = next_cell_mult * frac_n + next_attn_mult * v_t
    nst_ref[:, H:2 * H] = next_cell_mult * frac_d + next_attn_mult
    nst_ref[:, 2 * H:] = next_scale

    # Gate + output projection (approx reciprocal -> EUP, bf16 MXU matmul).
    gated = r_t * frac_n_t * pl.reciprocal(frac_d_t, approx=True)
    out_ref[...] = jnp.dot(gated.astype(wo_ref.dtype), wo_ref[...],
                           preferred_element_type=jnp.float32)


def pack_rwkv_params(params):
    """One-time parameter prep (do NOT call per timestep inside a scan)."""
    w_rkv = jnp.concatenate(
        [params["w_r"], params["w_k"], params["w_v"]], axis=0).T   # (D, 3H)
    return {
        "w_rkv": w_rkv.astype(jnp.bfloat16),                       # (D, 3H) bf16
        "w_o_t": params["w_o"].T.astype(jnp.bfloat16),             # (H, D)  bf16, H == D
        "w_uw": jnp.stack([params["w_u"], params["w_w"]],
                          axis=0).astype(jnp.float32),             # (2, H)  f32
    }


def _default_bm(B):
    """Batch tile: one tile per TensorCore (2 on v7x, 1 on v5e/v6e)."""
    kind = jax.devices()[0].device_kind.lower()
    two_tensorcores = "v7" in kind or "7x" in kind
    if two_tensorcores and B % 2 == 0 and (B // 2) % 8 == 0:
        return B // 2
    return B


def rwkv_cell_pallas(inputs, state, packed, *, bm=None):
    """One RWKV step.

    Args:
      inputs: (B, D) f32 activations (cast to bf16 inside the kernel).
      state:  (B, 3H) f32 packed [frac_n | frac_d | scale].  This buffer is
              donated (aliased to next_state); do not reuse it after the call.
      packed: output of pack_rwkv_params.
    Returns:
      output (B, D) f32, next_state (B, 3H) f32 (same packing).
    """
    B, D = inputs.shape
    H = packed["w_uw"].shape[1]
    assert state.shape == (B, 3 * H)
    if bm is None:
        bm = _default_bm(B)
    assert B % bm == 0, "batch must be a multiple of the batch tile"

    grid = (B // bm,)
    batch_blk = lambda cols: pl.BlockSpec((bm, cols), lambda i: (i, 0))
    resident = lambda shape: pl.BlockSpec(shape, lambda i: (0, 0))

    out_shape = (
        jax.ShapeDtypeStruct((B, D), jnp.float32),       # output
        jax.ShapeDtypeStruct((B, 3 * H), jnp.float32),   # packed next state
    )
    return pl.pallas_call(
        rwkv_cell_kernel,
        out_shape=out_shape,
        grid=grid,
        in_specs=[
            batch_blk(D),                # x (f32, cast in-kernel)
            batch_blk(3 * H),            # packed state
            resident((D, 3 * H)),        # fused rkv weight, VMEM-resident
            resident((H, D)),            # output weight, VMEM-resident
            resident((2, H)),            # [w_u ; w_w]
        ],
        out_specs=(batch_blk(D), batch_blk(3 * H)),
        # In-place state update: packed state -> packed next state.
        input_output_aliases={1: 1},
        compiler_params=pltpu.CompilerParams(
            dimension_semantics=("parallel",)),
    )(inputs, state, packed["w_rkv"], packed["w_o_t"], packed["w_uw"])


def rwkv_cell_ref(inputs, frac_n, frac_d, scale, params):
    """Pure-JAX reference mirroring the PyTorch forward."""
    w_u = params["w_u"][None, :]
    w_w = params["w_w"][None, :]
    r_t = jax.nn.sigmoid(inputs @ params["w_r"].T)
    k_t = inputs @ params["w_k"].T
    v_t = inputs @ params["w_v"].T
    softmax_scale = jnp.maximum(scale, w_u + k_t)
    cell_mult = jnp.exp(scale - softmax_scale)
    attn_mult = jnp.exp(w_u + k_t - softmax_scale)
    frac_n_t = cell_mult * frac_n + attn_mult * v_t
    frac_d_t = cell_mult * frac_d + attn_mult
    next_scale = jnp.maximum(scale + w_w, k_t)
    next_cell_mult = jnp.exp(scale + w_w - next_scale)
    next_attn_mult = jnp.exp(k_t - next_scale)
    next_frac_n = next_cell_mult * frac_n + next_attn_mult * v_t
    next_frac_d = next_cell_mult * frac_d + next_attn_mult
    output = (r_t * (frac_n_t / frac_d_t)) @ params["w_o"].T
    return output, next_frac_n, next_frac_d, next_scale


def init_params(key, input_size, hidden_size):
    stdv = 1.0 / math.sqrt(hidden_size) if hidden_size > 0 else 0.0
    kr, kk, kv, ko = jax.random.split(key, 4)
    uni = lambda k, shape: jax.random.uniform(
        k, shape, dtype=jnp.float32, minval=-stdv, maxval=stdv)
    return {
        "w_r": uni(kr, (hidden_size, input_size)),
        "w_k": uni(kk, (hidden_size, input_size)),
        "w_v": uni(kv, (hidden_size, input_size)),
        "w_o": uni(ko, (input_size, input_size)),
        "w_u": jnp.ones((hidden_size,), jnp.float32),
        "w_w": jnp.ones((hidden_size,), jnp.float32),
    }


if __name__ == "__main__":
    B = 256   # batch rows (M dim of the GEMMs)
    D = 256   # input_size  (lane-dense: multiple of 128)
    H = 256   # hidden_size (== input_size, required by the w_o projection)

    key = jax.random.PRNGKey(0)
    pkey, xkey = jax.random.split(key)
    params = init_params(pkey, D, H)
    packed = pack_rwkv_params(params)     # one-time weight packing

    inputs = jax.random.normal(xkey, (B, D), dtype=jnp.float32)
    frac_n = jnp.zeros((B, H), jnp.float32)       # numerator state (zeros at t=0)
    frac_d = jnp.zeros((B, H), jnp.float32)       # denominator state (zeros at t=0)
    scale = jnp.full((B, H), -1e20, jnp.float32)  # running max (very small at t=0)
    state0 = jnp.concatenate([frac_n, frac_d, scale], axis=1)   # (B, 3H) packed

    # Reference computed in f32 on the same bf16-quantized weights the kernel
    # consumes, so the comparison isolates kernel correctness from bf16
    # quantization of the weights/inputs.
    q = lambda a: a.astype(jnp.bfloat16).astype(jnp.float32)
    ref_params = {k: (q(v) if v.ndim == 2 else v) for k, v in params.items()}
    ref_out, ref_nfn, ref_nfd, ref_nsc = jax.block_until_ready(
        rwkv_cell_ref(q(inputs), frac_n, frac_d, scale, ref_params))

    out, next_state = jax.block_until_ready(
        rwkv_cell_pallas(inputs, state0, packed))
    # NOTE: state0 is donated (aliased) -- not used after this point.

    nfn, nfd, nsc = next_state[:, :H], next_state[:, H:2 * H], next_state[:, 2 * H:]
    checks = [(out, ref_out), (nfn, ref_nfn), (nfd, ref_nfd), (nsc, ref_nsc)]
    for o, r in checks:
        assert o.shape == r.shape and o.dtype == r.dtype
        # 5e-3 tolerance covers the approx-reciprocal gate and bf16 matmul
        # rounding of the gated activations.
        assert jnp.allclose(o, r, rtol=5e-3, atol=5e-3), "mismatch vs reference"

    print("KERNEL_OK")
</pallas_src>

<mosaic_0001>
module attributes {stable_mosaic.version = 11 : i64} {
  func.func @rwkv_cell_kernel(%arg0: i32, %arg1: memref<256x256xf32, #tpu.memory_space<vmem>>, %arg2: memref<256x768xf32, #tpu.memory_space<vmem>>, %arg3: memref<256x768xbf16, #tpu.memory_space<vmem>>, %arg4: memref<256x256xbf16, #tpu.memory_space<vmem>>, %arg5: memref<2x256xf32, #tpu.memory_space<vmem>>, %arg6: memref<256x256xf32, #tpu.memory_space<vmem>>, %arg7: memref<256x768xf32, #tpu.memory_space<vmem>>) attributes {dimension_semantics = [#tpu.dimension_semantics<parallel>], iteration_bounds = array<i64: 1>, scalar_prefetch = 0 : i64, scratch_operands = 0 : i64, tpu.core_type = #tpu.core_type<tc>, window_params = [{transform_indices = @transform_0, window_bounds = array<i64: 256, 256>}, {transform_indices = @transform_1, window_bounds = array<i64: 256, 768>}, {pipeline_mode = #tpu.pipeline_mode<synchronous>, transform_indices = @transform_2, window_bounds = array<i64: 256, 768>}, {pipeline_mode = #tpu.pipeline_mode<synchronous>, transform_indices = @transform_3, window_bounds = array<i64: 256, 256>}, {pipeline_mode = #tpu.pipeline_mode<synchronous>, transform_indices = @transform_4, window_bounds = array<i64: 2, 256>}, {transform_indices = @transform_5, window_bounds = array<i64: 256, 256>}, {transform_indices = @transform_6, window_bounds = array<i64: 256, 768>}]} {
    %c0 = arith.constant 0 : index
    %c0_0 = arith.constant 0 : index
    %0 = vector.load %arg2[%c0, %c0_0] : memref<256x768xf32, #tpu.memory_space<vmem>>, vector<256x768xf32>
    %1 = vector.extract_strided_slice %0 {offsets = [0, 0], sizes = [256, 256], strides = [1, 1]} : vector<256x768xf32> to vector<256x256xf32>
    %2 = vector.extract_strided_slice %0 {offsets = [0, 256], sizes = [256, 256], strides = [1, 1]} : vector<256x768xf32> to vector<256x256xf32>
    %3 = vector.extract_strided_slice %0 {offsets = [0, 512], sizes = [256, 256], strides = [1, 1]} : vector<256x768xf32> to vector<256x256xf32>
    %c0_1 = arith.constant 0 : index
    %c0_2 = arith.constant 0 : index
    %4 = vector.load %arg5[%c0_1, %c0_2] : memref<2x256xf32, #tpu.memory_space<vmem>>, vector<2x256xf32>
    %5 = vector.extract_strided_slice %4 {offsets = [0, 0], sizes = [1, 256], strides = [1, 1]} : vector<2x256xf32> to vector<1x256xf32>
    %6 = vector.extract_strided_slice %4 {offsets = [1, 0], sizes = [1, 256], strides = [1, 1]} : vector<2x256xf32> to vector<1x256xf32>
    %c0_3 = arith.constant 0 : index
    %c0_4 = arith.constant 0 : index
    %7 = vector.load %arg1[%c0_3, %c0_4] : memref<256x256xf32, #tpu.memory_space<vmem>>, vector<256x256xf32>
    %8 = arith.truncf %7 : vector<256x256xf32> to vector<256x256xbf16>
    %c0_5 = arith.constant 0 : index
    %c0_6 = arith.constant 0 : index
    %9 = vector.load %arg3[%c0_5, %c0_6] : memref<256x768xbf16, #tpu.memory_space<vmem>>, vector<256x768xbf16>
    %cst = arith.constant dense<0.000000e+00> : vector<256x768xf32>
    %10 = tpu.matmul %8, %9, %cst {dimension_numbers = #tpu.dot_dimension_numbers<[1], [0], [0], [1], [0, 0, 1, 1], [], []>} : vector<256x256xbf16>, vector<256x768xbf16>, vector<256x768xf32> -> vector<256x768xf32>
    %11 = vector.extract_strided_slice %10 {offsets = [0, 0], sizes = [256, 256], strides = [1, 1]} : vector<256x768xf32> to vector<256x256xf32>
    %12 = arith.negf %11 : vector<256x256xf32>
    %13 = math.exp %12 : vector<256x256xf32>
    %cst_7 = arith.constant 1.000000e+00 : f32
    %14 = vector.broadcast %cst_7 : f32 to vector<256x256xf32>
    %15 = arith.addf %14, %13 : vector<256x256xf32>
    %16 = arith.divf %14, %15 : vector<256x256xf32>
    %17 = vector.extract_strided_slice %10 {offsets = [0, 256], sizes = [256, 256], strides = [1, 1]} : vector<256x768xf32> to vector<256x256xf32>
    %18 = vector.extract_strided_slice %10 {offsets = [0, 512], sizes = [256, 256], strides = [1, 1]} : vector<256x768xf32> to vector<256x256xf32>
    %19 = vector.broadcast %5 : vector<1x256xf32> to vector<256x256xf32>
    %20 = arith.addf %19, %17 : vector<256x256xf32>
    %21 = arith.maximumf %3, %20 : vector<256x256xf32>
    %22 = arith.subf %3, %21 : vector<256x256xf32>
    %23 = math.exp %22 : vector<256x256xf32>
    %24 = arith.subf %20, %21 : vector<256x256xf32>
    %25 = math.exp %24 : vector<256x256xf32>
    %26 = arith.mulf %23, %1 : vector<256x256xf32>
    %27 = arith.mulf %25, %18 : vector<256x256xf32>
    %28 = arith.addf %26, %27 : vector<256x256xf32>
    %29 = arith.mulf %23, %2 : vector<256x256xf32>
    %30 = arith.addf %29, %25 : vector<256x256xf32>
    %31 = vector.broadcast %6 : vector<1x256xf32> to vector<256x256xf32>
    %32 = arith.addf %3, %31 : vector<256x256xf32>
    %33 = arith.maximumf %32, %17 : vector<256x256xf32>
    %34 = arith.subf %32, %33 : vector<256x256xf32>
    %35 = math.exp %34 : vector<256x256xf32>
    %36 = arith.subf %17, %33 : vector<256x256xf32>
    %37 = math.exp %36 : vector<256x256xf32>
    %38 = arith.mulf %35, %1 : vector<256x256xf32>
    %39 = arith.mulf %37, %18 : vector<256x256xf32>
    %40 = arith.addf %38, %39 : vector<256x256xf32>
    %c0_8 = arith.constant 0 : index
    %c0_9 = arith.constant 0 : index
    %41 = vector.load %arg7[%c0_8, %c0_9] : memref<256x768xf32, #tpu.memory_space<vmem>>, vector<256x256xf32>
    tpu.vector_store %arg7[%c0_8, %c0_9], %40 {strides = array<i32>} : memref<256x768xf32, #tpu.memory_space<vmem>>, vector<256x256xf32>,
    %42 = arith.mulf %35, %2 : vector<256x256xf32>
    %43 = arith.addf %42, %37 : vector<256x256xf32>
    %c0_10 = arith.constant 0 : index
    %c256 = arith.constant 256 : index
    %44 = vector.load %arg7[%c0_10, %c256] : memref<256x768xf32, #tpu.memory_space<vmem>>, vector<256x256xf32>
    tpu.vector_store %arg7[%c0_10, %c256], %43 {strides = array<i32>} : memref<256x768xf32, #tpu.memory_space<vmem>>, vector<256x256xf32>,
    %c0_11 = arith.constant 0 : index
    %c512 = arith.constant 512 : index
    %45 = vector.load %arg7[%c0_11, %c512] : memref<256x768xf32, #tpu.memory_space<vmem>>, vector<256x256xf32>
    tpu.vector_store %arg7[%c0_11, %c512], %33 {strides = array<i32>} : memref<256x768xf32, #tpu.memory_space<vmem>>, vector<256x256xf32>,
    %46 = arith.mulf %16, %28 : vector<256x256xf32>
    %47 = tpu.reciprocal %30 {approx = true} : vector<256x256xf32> -> vector<256x256xf32>
    %48 = arith.mulf %46, %47 : vector<256x256xf32>
    %49 = arith.truncf %48 : vector<256x256xf32> to vector<256x256xbf16>
    %c0_12 = arith.constant 0 : index
    %c0_13 = arith.constant 0 : index
    %50 = vector.load %arg4[%c0_12, %c0_13] : memref<256x256xbf16, #tpu.memory_space<vmem>>, vector<256x256xbf16>
    %cst_14 = arith.constant dense<0.000000e+00> : vector<256x256xf32>
    %51 = tpu.matmul %49, %50, %cst_14 {dimension_numbers = #tpu.dot_dimension_numbers<[1], [0], [0], [1], [0, 0, 1, 1], [], []>} : vector<256x256xbf16>, vector<256x256xbf16>, vector<256x256xf32> -> vector<256x256xf32>
    %c0_15 = arith.constant 0 : index
    %c0_16 = arith.constant 0 : index
    %52 = vector.load %arg6[%c0_15, %c0_16] : memref<256x256xf32, #tpu.memory_space<vmem>>, vector<256x256xf32>
    tpu.vector_store %arg6[%c0_15, %c0_16], %51 {strides = array<i32>} : memref<256x256xf32, #tpu.memory_space<vmem>>, vector<256x256xf32>,
    return
  }
  func.func @transform_0(%arg0: i32) -> (i32, i32) {
    %c0_i32 = arith.constant 0 : i32
    %c0_i32_0 = arith.constant 0 : i32
    return %arg0, %c0_i32 : i32, i32
  }
  func.func @transform_1(%arg0: i32) -> (i32, i32) {
    %c0_i32 = arith.constant 0 : i32
    %c0_i32_0 = arith.constant 0 : i32
    return %arg0, %c0_i32 : i32, i32
  }
  func.func @transform_2(%arg0: i32) -> (i32, i32) {
    %c0_i32 = arith.constant 0 : i32
    %c0_i32_0 = arith.constant 0 : i32
    %c0_i32_1 = arith.constant 0 : i32
    return %c0_i32, %c0_i32_0 : i32, i32
  }
  func.func @transform_3(%arg0: i32) -> (i32, i32) {
    %c0_i32 = arith.constant 0 : i32
    %c0_i32_0 = arith.constant 0 : i32
    %c0_i32_1 = arith.constant 0 : i32
    return %c0_i32, %c0_i32_0 : i32, i32
  }
  func.func @transform_4(%arg0: i32) -> (i32, i32) {
    %c0_i32 = arith.constant 0 : i32
    %c0_i32_0 = arith.constant 0 : i32
    %c0_i32_1 = arith.constant 0 : i32
    return %c0_i32, %c0_i32_0 : i32, i32
  }
  func.func @transform_5(%arg0: i32) -> (i32, i32) {
    %c0_i32 = arith.constant 0 : i32
    %c0_i32_0 = arith.constant 0 : i32
    return %arg0, %c0_i32 : i32, i32
  }
  func.func @transform_6(%arg0: i32) -> (i32, i32) {
    %c0_i32 = arith.constant 0 : i32
    %c0_i32_0 = arith.constant 0 : i32
    return %arg0, %c0_i32 : i32, i32
  }
}

</mosaic_0001>

<bundles_post_ra>
// kernel: tpu_custom_call.1
= control target key start
LH: loop header
LB: loop body
LE: loop exit
PB: predicated region body
PF: predicated region fallthrough
CT: control target
= control target key end

     0   :  { %12 = vsyncpa [#allocation3], 0  ;;  %s12972_s0 = inlined_call_operand.vmem [shape: f32[256,256], index: 0, kind: input, shape index: {}]   ;;  %s12973_s1 = inlined_call_operand.hbm [shape: f32[256,768], index: 1, kind: input, shape index: {}, may-alias: {1,6}]   ;;  %s12974_s2 = inlined_call_operand.vmem [shape: bf16[256,768], index: 2, kind: input, shape index: {}]   ;;  %s12975_s3 = inlined_call_operand.vmem [shape: bf16[256,256], index: 3, kind: input, shape index: {}]   ;;  %s12976_s4 = inlined_call_operand.vmem [shape: f32[2,256], index: 4, kind: input, shape index: {}]   ;;  %s12977_s5 = inlined_call_operand.hbm [shape: f32[256,256], index: 5, kind: output, shape index: {0}]   ;;  %s12978_s6 = inlined_call_operand.hbm [shape: f32[256,768], index: 6, kind: output, shape index: {1}, may-alias: {1,6}]  }
   0x1   :  { %13 = vsyncpa [#allocation4], 0 }
   0x2   :  { %14 = vsyncpa [#allocation7], 0  ;;  %s21_s23 = sshll.u32 %s12973_s1, 4  ;;  %s7676_s24 = smov [#allocation2]   ;;  %s22_s23 = int_to_ptr.hbm [resolvable:$true] %s21_s23 }
   0x3   :  { %s23_s25 = sshll.u32 %s7676_s24, 4  ;;  %s7677_s26 = smov 768   ;;  %s24_s25 = int_to_ptr.vmem [resolvable:$true] %s23_s25 }
   0x4   :  { %s7678_s27 = smov 48  }
   0x5   :  { %29 = dma.hbm_to_vmem [thread:$0]  %s22_s23, 24576, %s24_s25, [#allocation3], %s7677_s26, %s7677_s26, %s7678_s27  }
   0x6   :  { %7670 = dma.done.wait [#allocation3], 24576  }
   0x7   :  { %7671 = vsyncadd [#allocation3], 4294942720  ;;  %v6101_v0 = vld [vmem:[%s12974_s2 + $0x150] sm:$0xf]  ;;  %v6552_v1 = vld [vmem:[%s12974_s2 + $0x164] sm:$0xf0] }
   0x8   :  { %v6293_v2 = vld [vmem:[%s12974_s2 + $0x2d0] sm:$0xf]  ;;  %v6102_v3 = vor.u32 %v6552_v1, %v6101_v0  ;;  %v6600_v4 = vld [vmem:[%s12974_s2 + $0x2e4] sm:$0xf0]  ;;  %v6549_v5 = vld [vmem:[%s12974_s2 + $0x154] sm:$0xf] }
   0x9   :  { %v6103_v6 = vld [vmem:[%s12974_s2 + $0x168] sm:$0xf0]  ;;  %v6294_v7 = vor.u32 %v6600_v4, %v6293_v2  ;;  %v6597_v9 = vld [vmem:[%s12974_s2 + $0x2d4] sm:$0xf]  ;;  %v6077_v11 = vld [vmem:[%s12974_s2 + $0x120] sm:$0xf] }
   0xa   :  { %v6106_v8 = vor.u32 %v6549_v5, %v6103_v6  ;;  %v6295_v10 = vld [vmem:[%s12974_s2 + $0x2e8] sm:$0xf0]  ;;  %905 = vmatpush.bf16.msra.mxu0 %v6102_v3  ;;  %v6546_v13 = vld [vmem:[%s12974_s2 + $0x134] sm:$0xf0]  ;;  %v6269_v14 = vld [vmem:[%s12974_s2 + $0x2a0] sm:$0xf] }
   0xb   :  { %v6298_v12 = vor.u32 %v6597_v9, %v6295_v10  ;;  %v6594_v15 = vld [vmem:[%s12974_s2 + $0x2b4] sm:$0xf0]  ;;  %994 = vmatpush.bf16.msra.mxu1 %v6294_v7  ;;  %v6078_v16 = vor.u32 %v6546_v13, %v6077_v11  ;;  %v6543_v18 = vld [vmem:[%s12974_s2 + $0x124] sm:$0xf]  ;;  %v6079_v19 = vld [vmem:[%s12974_s2 + $0x138] sm:$0xf0] }
   0xc   :  { %1083 = vmatpush.bf16.msra.mxu2 %v6106_v8  ;;  %v6270_v17 = vor.u32 %v6594_v15, %v6269_v14  ;;  %v6591_v20 = vld [vmem:[%s12974_s2 + $0x2a4] sm:$0xf]  ;;  %v6082_v21 = vor.u32 %v6543_v18, %v6079_v19  ;;  %v6271_v22 = vld [vmem:[%s12974_s2 + $0x2b8] sm:$0xf0]  ;;  %v6053_v23 = vld [vmem:[%s12974_s2 + $0xf0] sm:$0xf] }
   0xd   :  { %1172 = vmatpush.bf16.msra.mxu3 %v6298_v12  ;;  %v6540_v24 = vld [vmem:[%s12974_s2 + $0x104] sm:$0xf0]  ;;  %v6274_v25 = vor.u32 %v6591_v20, %v6271_v22  ;;  %v6245_v26 = vld [vmem:[%s12974_s2 + $0x270] sm:$0xf]  ;;  %v6537_v28 = vld [vmem:[%s12974_s2 + $0xf4] sm:$0xf] }
   0xe   :  { %v6588_v27 = vld [vmem:[%s12974_s2 + $0x284] sm:$0xf0]  ;;  %906 = vmatpush.bf16.msra.mxu0 %v6078_v16  ;;  %v6054_v29 = vor.u32 %v6540_v24, %v6053_v23  ;;  %v6055_v30 = vld [vmem:[%s12974_s2 + $0x108] sm:$0xf0]  ;;  %v6585_v31 = vld [vmem:[%s12974_s2 + $0x274] sm:$0xf] }
   0xf   :  { %v6247_v32 = vld [vmem:[%s12974_s2 + $0x288] sm:$0xf0]  ;;  %995 = vmatpush.bf16.msra.mxu1 %v6270_v17  ;;  %v6246_v33 = vor.u32 %v6588_v27, %v6245_v26  ;;  %v6058_v34 = vor.u32 %v6537_v28, %v6055_v30  ;;  %v6029_v35 = vld [vmem:[%s12974_s2 + $0xc0] sm:$0xf]  ;;  %v6534_v36 = vld [vmem:[%s12974_s2 + $0xd4] sm:$0xf0] }
  0x10   :  { %1084 = vmatpush.bf16.msra.mxu2 %v6082_v21  ;;  %v6221_v37 = vld [vmem:[%s12974_s2 + $0x240] sm:$0xf]  ;;  %v6250_v38 = vor.u32 %v6585_v31, %v6247_v32  ;;  %v6582_v39 = vld [vmem:[%s12974_s2 + $0x254] sm:$0xf0]  ;;  %v6531_v40 = vld [vmem:[%s12974_s2 + $0xc4] sm:$0xf]  ;;  %v6030_v44 = vor.u32 %v6534_v36, %v6029_v35 }
  0x11   :  { %1173 = vmatpush.bf16.msra.mxu3 %v6274_v25  ;;  %v6031_v41 = vld [vmem:[%s12974_s2 + $0xd8] sm:$0xf0]  ;;  %v6579_v42 = vld [vmem:[%s12974_s2 + $0x244] sm:$0xf]  ;;  %v6222_v45 = vor.u32 %v6582_v39, %v6221_v37  ;;  %v6005_v47 = vld [vmem:[%s12974_s2 + $0x90] sm:$0xf] }
  0x12   :  { %v6223_v43 = vld [vmem:[%s12974_s2 + $0x258] sm:$0xf0]  ;;  %907 = vmatpush.bf16.msra.mxu0 %v6054_v29  ;;  %v6034_v46 = vor.u32 %v6531_v40, %v6031_v41  ;;  %v6528_v48 = vld [vmem:[%s12974_s2 + $0xa4] sm:$0xf0]  ;;  %v6197_v49 = vld [vmem:[%s12974_s2 + $0x210] sm:$0xf] }
  0x13   :  { %996 = vmatpush.bf16.msra.mxu1 %v6246_v33  ;;  %v6226_v50 = vor.u32 %v6579_v42, %v6223_v43  ;;  %v6576_v51 = vld [vmem:[%s12974_s2 + $0x224] sm:$0xf0]  ;;  %v6525_v52 = vld [vmem:[%s12974_s2 + $0x94] sm:$0xf]  ;;  %v6007_v53 = vld [vmem:[%s12974_s2 + $0xa8] sm:$0xf0]  ;;  %v6006_v56 = vor.u32 %v6528_v48, %v6005_v47 }
  0x14   :  { %1085 = vmatpush.bf16.msra.mxu2 %v6058_v34  ;;  %v6573_v54 = vld [vmem:[%s12974_s2 + $0x214] sm:$0xf]  ;;  %v6199_v55 = vld [vmem:[%s12974_s2 + $0x228] sm:$0xf0]  ;;  %v6198_v57 = vor.u32 %v6576_v51, %v6197_v49  ;;  %v6010_v58 = vor.u32 %v6525_v52, %v6007_v53  ;;  %v5981_v59 = vld [vmem:[%s12974_s2 + $0x60] sm:$0xf] }
  0x15   :  { %1174 = vmatpush.bf16.msra.mxu3 %v6250_v38  ;;  %v6522_v60 = vld [vmem:[%s12974_s2 + $0x74] sm:$0xf0]  ;;  %v6173_v61 = vld [vmem:[%s12974_s2 + $0x1e0] sm:$0xf]  ;;  %v6202_v62 = vor.u32 %v6573_v54, %v6199_v55  ;;  %v6519_v0 = vld [vmem:[%s12974_s2 + $0x64] sm:$0xf] }
  0x16   :  { %908 = vmatpush.bf16.msra.mxu0 %v6030_v44  ;;  %v6570_v63 = vld [vmem:[%s12974_s2 + $0x1f4] sm:$0xf0]  ;;  %v5983_v1 = vld [vmem:[%s12974_s2 + $0x78] sm:$0xf0]  ;;  %v6567_v2 = vld [vmem:[%s12974_s2 + $0x1e4] sm:$0xf]  ;;  %v5982_v4 = vor.u32 %v6522_v60, %v5981_v59 }
  0x17   :  { %997 = vmatpush.bf16.msra.mxu1 %v6222_v45  ;;  %v6175_v3 = vld [vmem:[%s12974_s2 + $0x1f8] sm:$0xf0]  ;;  %v6174_v5 = vor.u32 %v6570_v63, %v6173_v61  ;;  %v5986_v6 = vor.u32 %v6519_v0, %v5983_v1  ;;  %v5957_v7 = vld [vmem:[%s12974_s2 + $0x30] sm:$0xf]  ;;  %v6516_v8 = vld [vmem:[%s12974_s2 + $0x44] sm:$0xf0] }
  0x18   :  { %1086 = vmatpush.bf16.msra.mxu2 %v6034_v46  ;;  %v6149_v9 = vld [vmem:[%s12974_s2 + $0x1b0] sm:$0xf]  ;;  %v6178_v10 = vor.u32 %v6567_v2, %v6175_v3  ;;  %v6564_v11 = vld [vmem:[%s12974_s2 + $0x1c4] sm:$0xf0]  ;;  %v6513_v12 = vld [vmem:[%s12974_s2 + $0x34] sm:$0xf]  ;;  %v5958_v16 = vor.u32 %v6516_v8, %v5957_v7 }
  0x19   :  { %1175 = vmatpush.bf16.msra.mxu3 %v6226_v50  ;;  %v5959_v13 = vld [vmem:[%s12974_s2 + $0x48] sm:$0xf0]  ;;  %v6561_v14 = vld [vmem:[%s12974_s2 + $0x1b4] sm:$0xf]  ;;  %v5933_v17 = vld [vmem:[%s12974_s2] sm:$0xf]  ;;  %v6150_v19 = vor.u32 %v6564_v11, %v6149_v9 }
  0x1a   :  { %909 = vmatpush.bf16.msra.mxu0 %v6006_v56  ;;  %v6151_v15 = vld [vmem:[%s12974_s2 + $0x1c8] sm:$0xf0]  ;;  %v6510_v18 = vld [vmem:[%s12974_s2 + $0x14] sm:$0xf0]  ;;  %v5962_v20 = vor.u32 %v6513_v12, %v5959_v13  ;;  %v6125_v21 = vld [vmem:[%s12974_s2 + $0x180] sm:$0xf] }
  0x1b   :  { %998 = vmatpush.bf16.msra.mxu1 %v6198_v57  ;;  %v6558_v22 = vld [vmem:[%s12974_s2 + $0x194] sm:$0xf0]  ;;  %v6507_v23 = vld [vmem:[%s12974_s2 + $0x4] sm:$0xf]  ;;  %v6154_v24 = vor.u32 %v6561_v14, %v6151_v15  ;;  %v5935_v25 = vld [vmem:[%s12974_s2 + $0x18] sm:$0xf0]  ;;  %v5934_v31 = vor.u32 %v6510_v18, %v5933_v17 }
  0x1c   :  { %1087 = vmatpush.bf16.msra.mxu2 %v6010_v58  ;;  %v6555_v26 = vld [vmem:[%s12974_s2 + $0x184] sm:$0xf]  ;;  %v6127_v27 = vld [vmem:[%s12974_s2 + $0x198] sm:$0xf0]  ;;  %v6111_v30 = vld [vmem:[%s12974_s2 + $0x170] sm:$0xf0]  ;;  %v6126_v35 = vor.u32 %v6558_v22, %v6125_v21  ;;  %v5938_v36 = vor.u32 %v6507_v23, %v5935_v25 }
  0x1d   :  { %1176 = vmatpush.bf16.msra.mxu3 %v6202_v62  ;;  %v233_v28 = vld [vmem:[%s12972_s0] sm:$0xff]  ;;  %v6550_v29 = vld [vmem:[%s12974_s2 + $0x15c] sm:$0xf]  ;;  %v235_v32 = vld [vmem:[%s12972_s0 + $0x10] sm:$0xff]  ;;  %v6130_v39 = vor.u32 %v6555_v26, %v6127_v27  ;;  %s5913_s25 = sshll.u32 %s12978_s6, 4  ;;  %s7680_s6 = smov [#allocation5]   ;;  %s5914_s25 = int_to_ptr.hbm [resolvable:$true] %s5913_s25 }
  0x1e   :  { %910 = vmatpush.bf16.msra.mxu0 %v5982_v4  ;;  %v6598_v33 = vld [vmem:[%s12974_s2 + $0x2dc] sm:$0xf]  ;;  %v6303_v34 = vld [vmem:[%s12974_s2 + $0x2f0] sm:$0xf0]  ;;  %v234_v37 = vld [vmem:[%s12972_s0 + $0x8] sm:$0xff]  ;;  %v6114_v40 = vor.u32 %v6550_v29, %v6111_v30  ;;  %v7946_v43 = vpack.c.bf16 %v235_v32, %v233_v28  ;;  %s5900_s29 = sshll.u32 %s12977_s5, 4  ;;  %s5901_s29 = int_to_ptr.hbm [resolvable:$true] %s5900_s29 }
  0x1f   :  { %999 = vmatpush.bf16.msra.mxu1 %v6174_v5  ;;  %v236_v38 = vld [vmem:[%s12972_s0 + $0x18] sm:$0xff]  ;;  %v6553_v42 = vld [vmem:[%s12974_s2 + $0x16c] sm:$0xf0]  ;;  %v6306_v44 = vor.u32 %v6598_v33, %v6303_v34  ;;  %v6544_v50 = vld [vmem:[%s12974_s2 + $0x12c] sm:$0xf]  ;;  %s7681_s30 = smov 256  }
  0x20   :  { %1088 = vmatpush.bf16.msra.mxu2 %v5986_v6  ;;  %v6109_v41 = vld [vmem:[%s12974_s2 + $0x158] sm:$0xf]  ;;  %13609 = vst [vmem:[#allocation11_spill] sm:$0xff] %v7946_v43  ;;  %v6601_v46 = vld [vmem:[%s12974_s2 + $0x2ec] sm:$0xf0]  ;;  %v7954_v47 = vpack.c.bf16 %v236_v38, %v234_v37  ;;  %v237_v62 = vld [vmem:[%s12972_s0 + $0x20] sm:$0xff] }
  0x21   :  { %1177 = vmatpush.bf16.msra.mxu3 %v6178_v10  ;;  %v6301_v45 = vld [vmem:[%s12974_s2 + $0x2d8] sm:$0xf]  ;;  %v6110_v48 = vor.u32 %v6553_v42, %v6109_v41  ;;  %v6087_v51 = vld [vmem:[%s12974_s2 + $0x140] sm:$0xf0]  ;;  %v6592_v52 = vld [vmem:[%s12974_s2 + $0x2ac] sm:$0xf] }
  0x22   :  { %911 = vmatpush.bf16.msra.mxu0 %v5958_v16  ;;  %13610 = vst [vmem:[#allocation12_spill] sm:$0xff] %v7954_v47  ;;  %v6302_v49 = vor.u32 %v6601_v46, %v6301_v45  ;;  %v6090_v53 = vor.u32 %v6544_v50, %v6087_v51  ;;  %v6279_v54 = vld [vmem:[%s12974_s2 + $0x2c0] sm:$0xf0]  ;;  %v6085_v55 = vld [vmem:[%s12974_s2 + $0x128] sm:$0xf]  ;;  %v239_v63 = vld [vmem:[%s12972_s0 + $0x30] sm:$0xff] }
  0x23   :  { %1000 = vmatpush.bf16.msra.mxu1 %v6150_v19  ;;  %v6547_v56 = vld [vmem:[%s12974_s2 + $0x13c] sm:$0xf0]  ;;  %v6282_v57 = vor.u32 %v6592_v52, %v6279_v54  ;;  %v6277_v59 = vld [vmem:[%s12974_s2 + $0x2a8] sm:$0xf]  ;;  %v240_v1 = vld [vmem:[%s12972_s0 + $0x38] sm:$0xff]  ;;  %v7996_v2 = vpack.c.bf16 %v239_v63, %v237_v62  ;;  %s7682_s7 = smov 16  }
  0x24   :  { %1089 = vmatpush.bf16.msra.mxu2 %v5962_v20  ;;  %v6086_v58 = vor.u32 %v6547_v56, %v6085_v55  ;;  %v6595_v60 = vld [vmem:[%s12974_s2 + $0x2bc] sm:$0xf0]  ;;  %v238_v0 = vld [vmem:[%s12972_s0 + $0x28] sm:$0xff]  ;;  %v243_v5 = vld [vmem:[%s12972_s0 + $0x50] sm:$0xff] }
  0x25   :  { %1178 = vmatpush.bf16.msra.mxu3 %v6154_v24  ;;  %v6278_v61 = vor.u32 %v6595_v60, %v6277_v59  ;;  %13611 = vst [vmem:[#allocation13_spill] sm:$0xff] %v7996_v2  ;;  %v7998_v3 = vpack.c.bf16 %v240_v1, %v238_v0  ;;  %v241_v4 = vld [vmem:[%s12972_s0 + $0x40] sm:$0xff]  ;;  %v242_v6 = vld [vmem:[%s12972_s0 + $0x48] sm:$0xff]  ;;  %v244_v7 = vld [vmem:[%s12972_s0 + $0x58] sm:$0xff] }
  0x26   :  { %912 = vmatpush.bf16.msra.mxu0 %v5934_v31  ;;  %v8016_v8 = vpack.c.bf16 %v243_v5, %v241_v4  ;;  %v8018_v9 = vpack.c.bf16 %v244_v7, %v242_v6  ;;  %v6538_v10 = vld [vmem:[%s12974_s2 + $0xfc] sm:$0xf]  ;;  %v6063_v11 = vld [vmem:[%s12974_s2 + $0x110] sm:$0xf0]  ;;  %v6061_v15 = vld [vmem:[%s12974_s2 + $0xf8] sm:$0xf] }
  0x27   :  { %1001 = vmatpush.bf16.msra.mxu1 %v6126_v35  ;;  %13612 = vst [vmem:[#allocation14_spill] sm:$0xff] %v7998_v3  ;;  %v6586_v12 = vld [vmem:[%s12974_s2 + $0x27c] sm:$0xf]  ;;  %v6066_v13 = vor.u32 %v6538_v10, %v6063_v11  ;;  %v6255_v14 = vld [vmem:[%s12974_s2 + $0x290] sm:$0xf0]  ;;  %v245_v22 = vld [vmem:[%s12972_s0 + $0x60] sm:$0xff] }
  0x28   :  { %1090 = vmatpush.bf16.msra.mxu2 %v5938_v36  ;;  %13613 = vst [vmem:[#allocation15_spill] sm:$0xff] %v8016_v8  ;;  %v6541_v16 = vld [vmem:[%s12974_s2 + $0x10c] sm:$0xf0]  ;;  %v6258_v17 = vor.u32 %v6586_v12, %v6255_v14  ;;  %v6253_v19 = vld [vmem:[%s12974_s2 + $0x278] sm:$0xf]  ;;  %v246_v24 = vld [vmem:[%s12972_s0 + $0x68] sm:$0xff] }
  0x29   :  { %1179 = vmatpush.bf16.msra.mxu3 %v6130_v39  ;;  %913 = vmatmul.bf16.vlgmr.msra.gmra.mxu0 %v7946_v43  ;;  %13614 = vst [vmem:[#allocation16_spill] sm:$0xff] %v8018_v9  ;;  %v6062_v18 = vor.u32 %v6541_v16, %v6061_v15  ;;  %v6589_v20 = vld [vmem:[%s12974_s2 + $0x28c] sm:$0xf0]  ;;  %v248_v25 = vld [vmem:[%s12972_s0 + $0x78] sm:$0xff]  ;;  %v249_v28 = vld [vmem:[%s12972_s0 + $0x80] sm:$0xff] }
  0x2a   :  { %1002 = vmatmul.bf16.vlgmr.msra.gmra.mxu1 %v7954_v47  ;;  %1261 = vmatpush.bf16.msrb.mxu0 %v6110_v48  ;;  %v6254_v21 = vor.u32 %v6589_v20, %v6253_v19  ;;  %v247_v23 = vld [vmem:[%s12972_s0 + $0x70] sm:$0xff]  ;;  %v8062_v27 = vpack.c.bf16 %v248_v25, %v246_v24  ;;  %v250_v30 = vld [vmem:[%s12972_s0 + $0x88] sm:$0xff]  ;;  %v252_v31 = vld [vmem:[%s12972_s0 + $0x98] sm:$0xff] }
  0x2b   :  { %1091 = vmatmul.bf16.vlgmr.msra.gmra.mxu2 %v7946_v43  ;;  %1350 = vmatpush.bf16.msrb.mxu1 %v6302_v49  ;;  %v8060_v26 = vpack.c.bf16 %v247_v23, %v245_v22  ;;  %v251_v29 = vld [vmem:[%s12972_s0 + $0x90] sm:$0xff]  ;;  %v8082_v33 = vpack.c.bf16 %v252_v31, %v250_v30  ;;  %v6532_v34 = vld [vmem:[%s12974_s2 + $0xcc] sm:$0xf]  ;;  %v6039_v35 = vld [vmem:[%s12974_s2 + $0xe0] sm:$0xf0] }
  0x2c   :  { %1439 = vmatpush.bf16.msrb.mxu2 %v6114_v40  ;;  %1180 = vmatmul.bf16.vlgmr.msra.gmra.mxu3 %v7954_v47  ;;  %13616 = vst [vmem:[#allocation18_spill] sm:$0xff] %v8062_v27  ;;  %v8080_v32 = vpack.c.bf16 %v251_v29, %v249_v28  ;;  %v6580_v36 = vld [vmem:[%s12974_s2 + $0x24c] sm:$0xf]  ;;  %v6042_v37 = vor.u32 %v6532_v34, %v6039_v35  ;;  %v6231_v38 = vld [vmem:[%s12974_s2 + $0x260] sm:$0xf0]  ;;  %v255_v49 = vld [vmem:[%s12972_s0 + $0xb0] sm:$0xff] }
  0x2d   :  { %1528 = vmatpush.bf16.msrb.mxu3 %v6306_v44  ;;  %13615 = vst [vmem:[#allocation17_spill] sm:$0xff] %v8060_v26  ;;  %v6037_v39 = vld [vmem:[%s12974_s2 + $0xc8] sm:$0xf]  ;;  %v6535_v40 = vld [vmem:[%s12974_s2 + $0xdc] sm:$0xf0]  ;;  %v6234_v41 = vor.u32 %v6580_v36, %v6231_v38  ;;  %v256_v51 = vld [vmem:[%s12972_s0 + $0xb8] sm:$0xff] }
  0x2e   :  { %1262 = vmatpush.bf16.msrb.mxu0 %v6086_v58  ;;  %13617 = vst [vmem:[#allocation19_spill] sm:$0xff] %v8080_v32  ;;  %v6038_v42 = vor.u32 %v6535_v40, %v6037_v39  ;;  %v6229_v44 = vld [vmem:[%s12974_s2 + $0x248] sm:$0xf]  ;;  %v6583_v45 = vld [vmem:[%s12974_s2 + $0x25c] sm:$0xf0]  ;;  %v259_v55 = vld [vmem:[%s12972_s0 + $0xd0] sm:$0xff] }
  0x2f   :  { %1351 = vmatpush.bf16.msrb.mxu1 %v6278_v61  ;;  %13618 = vst [vmem:[#allocation20_spill] sm:$0xff] %v8082_v33  ;;  %v6230_v46 = vor.u32 %v6583_v45, %v6229_v44  ;;  %v253_v48 = vld [vmem:[%s12972_s0 + $0xa0] sm:$0xff]  ;;  %v254_v50 = vld [vmem:[%s12972_s0 + $0xa8] sm:$0xff]  ;;  %v263_v61 = vld [vmem:[%s12972_s0 + $0xf0] sm:$0xff] }
  0x30   :  { %1440 = vmatpush.bf16.msrb.mxu2 %v6090_v53  ;;  %v8124_v52 = vpack.c.bf16 %v255_v49, %v253_v48  ;;  %v8126_v53 = vpack.c.bf16 %v256_v51, %v254_v50  ;;  %v257_v54 = vld [vmem:[%s12972_s0 + $0xc0] sm:$0xff]  ;;  %v258_v56 = vld [vmem:[%s12972_s0 + $0xc8] sm:$0xff]  ;;  %v264_v63 = vld [vmem:[%s12972_s0 + $0xf8] sm:$0xff] }
  0x31   :  { %1529 = vmatpush.bf16.msrb.mxu3 %v6282_v57  ;;  %v260_v57 = vld [vmem:[%s12972_s0 + $0xd8] sm:$0xff]  ;;  %v8144_v58 = vpack.c.bf16 %v259_v55, %v257_v54  ;;  %v261_v60 = vld [vmem:[%s12972_s0 + $0xe0] sm:$0xff]  ;;  %v262_v62 = vld [vmem:[%s12972_s0 + $0xe8] sm:$0xff] }
  0x32   :  { %1263 = vmatpush.bf16.msrb.mxu0 %v6062_v18  ;;  %13619 = vst [vmem:[#allocation21_spill] sm:$0xff] %v8124_v52  ;;  %v8146_v59 = vpack.c.bf16 %v260_v57, %v258_v56  ;;  %v8164_v0 = vpack.c.bf16 %v263_v61, %v261_v60  ;;  %v8166_v1 = vpack.c.bf16 %v264_v63, %v262_v62  ;;  %v6526_v4 = vld [vmem:[%s12974_s2 + $0x9c] sm:$0xf]  ;;  %v6015_v5 = vld [vmem:[%s12974_s2 + $0xb0] sm:$0xf0]  ;;  %v265_v12 = vld [vmem:[%s12972_s0 + $0x100] sm:$0xff] }
  0x33   :  { %1352 = vmatpush.bf16.msrb.mxu1 %v6254_v21  ;;  %13620 = vst [vmem:[#allocation22_spill] sm:$0xff] %v8126_v53  ;;  %v6574_v6 = vld [vmem:[%s12974_s2 + $0x21c] sm:$0xf]  ;;  %v6018_v7 = vor.u32 %v6526_v4, %v6015_v5  ;;  %v6207_v10 = vld [vmem:[%s12974_s2 + $0x230] sm:$0xf0]  ;;  %v266_v14 = vld [vmem:[%s12972_s0 + $0x108] sm:$0xff] }
  0x34   :  { %1441 = vmatpush.bf16.msrb.mxu2 %v6066_v13  ;;  %13621 = vst [vmem:[#allocation23_spill] sm:$0xff] %v8144_v58  ;;  %v6210_v11 = vor.u32 %v6574_v6, %v6207_v10  ;;  %v267_v13 = vld [vmem:[%s12972_s0 + $0x110] sm:$0xff]  ;;  %v268_v15 = vld [vmem:[%s12972_s0 + $0x118] sm:$0xff]  ;;  %v270_v39 = vld [vmem:[%s12972_s0 + $0x128] sm:$0xff] }
  0x35   :  { %1530 = vmatpush.bf16.msrb.mxu3 %v6258_v17  ;;  %13622 = vst [vmem:[#allocation24_spill] sm:$0xff] %v8146_v59  ;;  %v8196_v16 = vpack.c.bf16 %v267_v13, %v265_v12  ;;  %v8198_v18 = vpack.c.bf16 %v268_v15, %v266_v14  ;;  %v6013_v19 = vld [vmem:[%s12974_s2 + $0x98] sm:$0xf]  ;;  %v6529_v20 = vld [vmem:[%s12974_s2 + $0xac] sm:$0xf0] }
  0x36   :  { %1264 = vmatpush.bf16.msrb.mxu0 %v6038_v42  ;;  %13623 = vst [vmem:[#allocation25_spill] sm:$0xff] %v8164_v0  ;;  %v6205_v21 = vld [vmem:[%s12974_s2 + $0x218] sm:$0xf]  ;;  %v6014_v23 = vor.u32 %v6529_v20, %v6013_v19  ;;  %v6577_v24 = vld [vmem:[%s12974_s2 + $0x22c] sm:$0xf0] }
  0x37   :  { %1353 = vmatpush.bf16.msrb.mxu1 %v6230_v46  ;;  %13624 = vst [vmem:[#allocation26_spill] sm:$0xff] %v8166_v1  ;;  %v6206_v28 = vor.u32 %v6577_v24, %v6205_v21  ;;  %v271_v38 = vld [vmem:[%s12972_s0 + $0x130] sm:$0xff]  ;;  %v272_v40 = vld [vmem:[%s12972_s0 + $0x138] sm:$0xff]  ;;  %v6520_v60 = vld [vmem:[%s12974_s2 + $0x6c] sm:$0xf] }
  0x38   :  { %1442 = vmatpush.bf16.msrb.mxu2 %v6042_v37  ;;  %13625 = vst [vmem:[#allocation27_spill] sm:$0xff] %v8196_v16  ;;  %v269_v37 = vld [vmem:[%s12972_s0 + $0x120] sm:$0xff]  ;;  %v8236_v46 = vpack.c.bf16 %v272_v40, %v270_v39  ;;  %v6568_v62 = vld [vmem:[%s12974_s2 + $0x1ec] sm:$0xf]  ;;  %v275_v10 = vld [vmem:[%s12972_s0 + $0x150] sm:$0xff] }
  0x39   :  { %918 = vmatmul.bf16.gmra.mxu0 %v7996_v2  ;;  %1531 = vmatpush.bf16.msrb.mxu3 %v6234_v41  ;;  %13626 = vst [vmem:[#allocation28_spill] sm:$0xff] %v8198_v18  ;;  %v8234_v42 = vpack.c.bf16 %v271_v38, %v269_v37  ;;  %v5991_v61 = vld [vmem:[%s12974_s2 + $0x80] sm:$0xf0]  ;;  %v276_v12 = vld [vmem:[%s12972_s0 + $0x158] sm:$0xff]  ;;  %v6181_v24 = vld [vmem:[%s12974_s2 + $0x1e8] sm:$0xf] }
  0x3a   :  { %1007 = vmatmul.bf16.gmra.mxu1 %v7998_v3  ;;  %1265 = vmatpush.bf16.msrb.mxu0 %v6014_v23  ;;  %13628 = vst [vmem:[#allocation30_spill] sm:$0xff] %v8236_v46  ;;  %v5994_v4 = vor.u32 %v6520_v60, %v5991_v61  ;;  %v6183_v5 = vld [vmem:[%s12974_s2 + $0x200] sm:$0xf0]  ;;  %v6523_v23 = vld [vmem:[%s12974_s2 + $0x7c] sm:$0xf0] }
  0x3b   :  { %1096 = vmatmul.bf16.gmra.mxu2 %v7996_v2  ;;  %1354 = vmatpush.bf16.msrb.mxu1 %v6206_v28  ;;  %13627 = vst [vmem:[#allocation29_spill] sm:$0xff] %v8234_v42  ;;  %v6186_v6 = vor.u32 %v6568_v62, %v6183_v5 }
  0x3c   :  { %1185 = vmatmul.bf16.gmra.mxu3 %v7998_v3  ;;  %1443 = vmatpush.bf16.msrb.mxu2 %v6018_v7  ;;  %v273_v7 = vld [vmem:[%s12972_s0 + $0x140] sm:$0xff] }
  0x3d   :  { %1532 = vmatpush.bf16.msrb.mxu3 %v6210_v11  ;;  %v274_v11 = vld [vmem:[%s12972_s0 + $0x148] sm:$0xff]  ;;  %v8274_v14 = vpack.c.bf16 %v275_v10, %v273_v7 }
  0x3e   :  { %v8276_v19 = vpack.c.bf16 %v276_v12, %v274_v11 }
  0x3f   :  { %13629 = vst [vmem:[#allocation31_spill] sm:$0xff] %v8274_v14 }
  0x40   :  { %1444 = vmatpush.bf16.msrb.mxu2 %v5994_v4  ;;  %13630 = vst [vmem:[#allocation32_spill] sm:$0xff] %v8276_v19 }
  0x41   :  { %1533 = vmatpush.bf16.msrb.mxu3 %v6186_v6 }
  0x49   :  { %923 = vmatmul.bf16.gmra.mxu0 %v8016_v8 }
  0x4a   :  { %1012 = vmatmul.bf16.gmra.mxu1 %v8018_v9 }
  0x4b   :  { %1101 = vmatmul.bf16.gmra.mxu2 %v8016_v8 }
  0x4c   :  { %1190 = vmatmul.bf16.gmra.mxu3 %v8018_v9 }
  0x59   :  { %928 = vmatmul.bf16.gmra.mxu0 %v8060_v26 }
  0x5a   :  { %1017 = vmatmul.bf16.gmra.mxu1 %v8062_v27 }
  0x5b   :  { %1106 = vmatmul.bf16.gmra.mxu2 %v8060_v26 }
  0x5c   :  { %1195 = vmatmul.bf16.gmra.mxu3 %v8062_v27 }
  0x69   :  { %933 = vmatmul.bf16.gmra.mxu0 %v8080_v32 }
  0x6a   :  { %1022 = vmatmul.bf16.gmra.mxu1 %v8082_v33 }
  0x6b   :  { %1111 = vmatmul.bf16.gmra.mxu2 %v8080_v32 }
  0x6c   :  { %1200 = vmatmul.bf16.gmra.mxu3 %v8082_v33 }
  0x79   :  { %938 = vmatmul.bf16.gmra.mxu0 %v8124_v52 }
  0x7a   :  { %1027 = vmatmul.bf16.gmra.mxu1 %v8126_v53 }
  0x7b   :  { %1116 = vmatmul.bf16.gmra.mxu2 %v8124_v52 }
  0x7c   :  { %1205 = vmatmul.bf16.gmra.mxu3 %v8126_v53 }
  0x89   :  { %943 = vmatmul.bf16.gmra.mxu0 %v8144_v58 }
  0x8a   :  { %1032 = vmatmul.bf16.gmra.mxu1 %v8146_v59 }
  0x8b   :  { %1121 = vmatmul.bf16.gmra.mxu2 %v8144_v58 }
  0x8c   :  { %1210 = vmatmul.bf16.gmra.mxu3 %v8146_v59 }
  0x99   :  { %948 = vmatmul.bf16.gmra.mxu0 %v8164_v0 }
  0x9a   :  { %1037 = vmatmul.bf16.gmra.mxu1 %v8166_v1 }
  0x9b   :  { %1126 = vmatmul.bf16.gmra.mxu2 %v8164_v0 }
  0x9c   :  { %1215 = vmatmul.bf16.gmra.mxu3 %v8166_v1 }
  0xa6   :  { %v914_v17 = vpop.f32.mrf.mxu0 }
  0xa7   :  { %v1003_v22 = vpop.f32.mrf.mxu1 }
  0xa8   :  { %v8212_v25 = vadd.f32 %v1003_v22, %v914_v17  ;;  %v5989_v22 = vld [vmem:[%s12974_s2 + $0x68] sm:$0xf] }
  0xa9   :  { %953 = vmatmul.bf16.gmra.mxu0 %v8196_v16 }
  0xaa   :  { %1042 = vmatmul.bf16.gmra.mxu1 %v8198_v18 }
  0xab   :  { %1131 = vmatmul.bf16.gmra.mxu2 %v8196_v16 }
  0xac   :  { %1220 = vmatmul.bf16.gmra.mxu3 %v8198_v18 }
  0xae   :  { %v1092_v29 = vpop.f32.mrf.mxu2  ;;  %v916_v31 = vpop.f32.mrf.mxu0 }
  0xaf   :  { %v1181_v30 = vpop.f32.mrf.mxu3  ;;  %v1005_v35 = vpop.f32.mrf.mxu1 }
  0xb0   :  { %v8218_v34 = vadd.f32 %v1181_v30, %v1092_v29  ;;  %v8220_v36 = vadd.f32 %v1005_v35, %v916_v31  ;;  %v5990_v29 = vor.u32 %v6523_v23, %v5989_v22  ;;  %v6571_v30 = vld [vmem:[%s12974_s2 + $0x1fc] sm:$0xf0]  ;;  %v6562_v22 = vld [vmem:[%s12974_s2 + $0x1bc] sm:$0xf]  ;;  %v6159_v23 = vld [vmem:[%s12974_s2 + $0x1d0] sm:$0xf0] }
  0xb1   :  { %v6182_v31 = vor.u32 %v6571_v30, %v6181_v24  ;;  %v6162_v24 = vor.u32 %v6562_v22, %v6159_v23  ;;  %v283_v30 = vld [vmem:[%s12972_s0 + $0x190] sm:$0xff] }
  0xb2   :  { %1266 = vmatpush.bf16.msrb.mxu0 %v5990_v29  ;;  %v281_v29 = vld [vmem:[%s12972_s0 + $0x180] sm:$0xff] }
  0xb3   :  { %1355 = vmatpush.bf16.msrb.mxu1 %v6182_v31  ;;  %v282_v31 = vld [vmem:[%s12972_s0 + $0x188] sm:$0xff]  ;;  %1534 = vmatpush.bf16.msrb.mxu3 %v6162_v24  ;;  %v285_v24 = vld [vmem:[%s12972_s0 + $0x1a0] sm:$0xff] }
  0xb6   :  { %v1094_v41 = vpop.f32.mrf.mxu2  ;;  %v919_v45 = vpop.f32.mrf.mxu0 }
  0xb7   :  { %v1183_v44 = vpop.f32.mrf.mxu3  ;;  %v1008_v49 = vpop.f32.mrf.mxu1 }
  0xb8   :  { %v8238_v48 = vadd.f32 %v1183_v44, %v1094_v41  ;;  %v8240_v50 = vadd.f32 %v1008_v49, %v919_v45  ;;  %v277_v44 = vld [vmem:[%s12972_s0 + $0x160] sm:$0xff]  ;;  %v279_v45 = vld [vmem:[%s12972_s0 + $0x170] sm:$0xff]  ;;  %v278_v49 = vld [vmem:[%s12972_s0 + $0x168] sm:$0xff] }
  0xb9   :  { %958 = vmatmul.bf16.gmra.mxu0 %v8234_v42 }
  0xba   :  { %1047 = vmatmul.bf16.gmra.mxu1 %v8236_v46 }
  0xbb   :  { %1136 = vmatmul.bf16.gmra.mxu2 %v8234_v42 }
  0xbc   :  { %1225 = vmatmul.bf16.gmra.mxu3 %v8236_v46 }
  0xbe   :  { %v1097_v51 = vpop.f32.mrf.mxu2  ;;  %v921_v55 = vpop.f32.mrf.mxu0 }
  0xbf   :  { %v1186_v54 = vpop.f32.mrf.mxu3  ;;  %v1010_v57 = vpop.f32.mrf.mxu1 }
  0xc0   :  { %v8246_v56 = vadd.f32 %v1186_v54, %v1097_v51  ;;  %v8257_v63 = vadd.f32 %v1010_v57, %v921_v55  ;;  %v280_v51 = vld [vmem:[%s12972_s0 + $0x178] sm:$0xff]  ;;  %v8314_v55 = vpack.c.bf16 %v279_v45, %v277_v44 }
  0xc1   :  { %v8316_v61 = vpack.c.bf16 %v280_v51, %v278_v49 }
  0xc2   :  { %13631 = vst [vmem:[#allocation33_spill] sm:$0xff] %v8314_v55 }
  0xc3   :  { %13632 = vst [vmem:[#allocation34_spill] sm:$0xff] %v8316_v61 }
  0xc6   :  { %v1099_v13 = vpop.f32.mrf.mxu2  ;;  %v924_v17 = vpop.f32.mrf.mxu0 }
  0xc7   :  { %v1188_v15 = vpop.f32.mrf.mxu3  ;;  %v1013_v21 = vpop.f32.mrf.mxu1 }
  0xc8   :  { %v8278_v20 = vadd.f32 %v1188_v15, %v1099_v13  ;;  %v8289_v28 = vadd.f32 %v1013_v21, %v924_v17  ;;  %v6514_v13 = vld [vmem:[%s12974_s2 + $0x3c] sm:$0xf]  ;;  %v5967_v15 = vld [vmem:[%s12974_s2 + $0x50] sm:$0xf0] }
  0xc9   :  { %963 = vmatmul.bf16.gmra.mxu0 %v8274_v14  ;;  %v5970_v21 = vor.u32 %v6514_v13, %v5967_v15 }
  0xca   :  { %1052 = vmatmul.bf16.gmra.mxu1 %v8276_v19 }
  0xcb   :  { %1141 = vmatmul.bf16.gmra.mxu2 %v8274_v14 }
  0xcc   :  { %1230 = vmatmul.bf16.gmra.mxu3 %v8276_v19  ;;  %1445 = vmatpush.bf16.msrb.mxu2 %v5970_v21 }
  0xce   :  { %v1102_v35 = vpop.f32.mrf.mxu2  ;;  %v926_v38 = vpop.f32.mrf.mxu0 }
  0xcf   :  { %v1191_v37 = vpop.f32.mrf.mxu3  ;;  %v1015_v40 = vpop.f32.mrf.mxu1 }
  0xd0   :  { %v8298_v39 = vadd.f32 %v1191_v37, %v1102_v35  ;;  %v8300_v41 = vadd.f32 %v1015_v40, %v926_v38  ;;  %v284_v35 = vld [vmem:[%s12972_s0 + $0x198] sm:$0xff]  ;;  %v8354_v38 = vpack.c.bf16 %v283_v30, %v281_v29  ;;  %v287_v29 = vld [vmem:[%s12972_s0 + $0x1b0] sm:$0xff]  ;;  %v286_v30 = vld [vmem:[%s12972_s0 + $0x1a8] sm:$0xff] }
  0xd1   :  { %v8356_v45 = vpack.c.bf16 %v284_v35, %v282_v31  ;;  %v288_v31 = vld [vmem:[%s12972_s0 + $0x1b8] sm:$0xff] }
  0xd2   :  { %13633 = vst [vmem:[#allocation35_spill] sm:$0xff] %v8354_v38 }
  0xd3   :  { %13634 = vst [vmem:[#allocation36_spill] sm:$0xff] %v8356_v45 }
  0xd6   :  { %v1104_v54 = vpop.f32.mrf.mxu2  ;;  %v929_v60 = vpop.f32.mrf.mxu0 }
  0xd7   :  { %v1193_v57 = vpop.f32.mrf.mxu3  ;;  %v1018_v4 = vpop.f32.mrf.mxu1 }
  0xd8   :  { %v8318_v62 = vadd.f32 %v1193_v57, %v1104_v54  ;;  %v8320_v5 = vadd.f32 %v1018_v4, %v929_v60  ;;  %v5965_v54 = vld [vmem:[%s12974_s2 + $0x38] sm:$0xf]  ;;  %v6517_v57 = vld [vmem:[%s12974_s2 + $0x4c] sm:$0xf0] }
  0xd9   :  { %968 = vmatmul.bf16.gmra.mxu0 %v8314_v55  ;;  %v5966_v4 = vor.u32 %v6517_v57, %v5965_v54 }
  0xda   :  { %1057 = vmatmul.bf16.gmra.mxu1 %v8316_v61 }
  0xdb   :  { %1146 = vmatmul.bf16.gmra.mxu2 %v8314_v55  ;;  %1267 = vmatpush.bf16.msrb.mxu0 %v5966_v4 }
  0xdc   :  { %1235 = vmatmul.bf16.gmra.mxu3 %v8316_v61 }
  0xde   :  { %v1107_v6 = vpop.f32.mrf.mxu2  ;;  %v931_v10 = vpop.f32.mrf.mxu0 }
  0xdf   :  { %v1196_v7 = vpop.f32.mrf.mxu3  ;;  %v1020_v12 = vpop.f32.mrf.mxu1 }
  0xe0   :  { %v8326_v11 = vadd.f32 %v1196_v7, %v1107_v6  ;;  %v8334_v17 = vadd.f32 %v1020_v12, %v931_v10  ;;  %v6157_v6 = vld [vmem:[%s12974_s2 + $0x1b8] sm:$0xf]  ;;  %v6565_v7 = vld [vmem:[%s12974_s2 + $0x1cc] sm:$0xf0] }
  0xe1   :  { %v6158_v10 = vor.u32 %v6565_v7, %v6157_v6 }
  0xe3   :  { %1356 = vmatpush.bf16.msrb.mxu1 %v6158_v10 }
  0xe6   :  { %v1109_v37 = vpop.f32.mrf.mxu2  ;;  %v934_v44 = vpop.f32.mrf.mxu0 }
  0xe7   :  { %v1198_v40 = vpop.f32.mrf.mxu3  ;;  %v1023_v51 = vpop.f32.mrf.mxu1 }
  0xe8   :  { %v8358_v49 = vadd.f32 %v1198_v40, %v1109_v37  ;;  %v8366_v60 = vadd.f32 %v1023_v51, %v934_v44  ;;  %v8394_v37 = vpack.c.bf16 %v287_v29, %v285_v24  ;;  %v8396_v51 = vpack.c.bf16 %v288_v31, %v286_v30  ;;  %v6556_v30 = vld [vmem:[%s12974_s2 + $0x18c] sm:$0xf]  ;;  %v6135_v31 = vld [vmem:[%s12974_s2 + $0x1a0] sm:$0xf0] }
  0xe9   :  { %973 = vmatmul.bf16.gmra.mxu0 %v8354_v38 }
  0xea   :  { %1062 = vmatmul.bf16.gmra.mxu1 %v8356_v45  ;;  %13635 = vst [vmem:[#allocation37_spill] sm:$0xff] %v8394_v37 }
  0xeb   :  { %1151 = vmatmul.bf16.gmra.mxu2 %v8354_v38  ;;  %13636 = vst [vmem:[#allocation38_spill] sm:$0xff] %v8396_v51  ;;  %v6316_v38 = vmul.f32 -1.442695, %v8218_v34 }
  0xec   :  { %1240 = vmatmul.bf16.gmra.mxu3 %v8356_v45 }
  0xee   :  { %v1112_v12 = vpop.f32.mrf.mxu2  ;;  %v936_v15 = vpop.f32.mrf.mxu0 }
  0xef   :  { %v1201_v13 = vpop.f32.mrf.mxu3  ;;  %v1025_v22 = vpop.f32.mrf.mxu1 }
  0xf0   :  { %v8378_v21 = vadd.f32 %v1201_v13, %v1112_v12  ;;  %v8380_v23 = vadd.f32 %v1025_v22, %v936_v15  ;;  %v6508_v15 = vld [vmem:[%s12974_s2 + $0xc] sm:$0xf]  ;;  %v5943_v22 = vld [vmem:[%s12974_s2 + $0x20] sm:$0xf0] }
  0xf1   :  { %v5946_v29 = vor.u32 %v6508_v15, %v5943_v22 }
  0xf2   :  { %v6333_v18 = vmul.f32 -1.442695, %v8380_v23 }
  0xf3   :  { %1446 = vmatpush.bf16.msrb.mxu2 %v5946_v29  ;;  %v5941_v29 = vld [vmem:[%s12974_s2 + $0x8] sm:$0xf] }
  0xf6   :  { %v1114_v35 = vpop.f32.mrf.mxu2  ;;  %v939_v44 = vpop.f32.mrf.mxu0 }
  0xf7   :  { %v1203_v40 = vpop.f32.mrf.mxu3  ;;  %v1028_v57 = vpop.f32.mrf.mxu1 }
  0xf8   :  { %v8398_v54 = vadd.f32 %v1203_v40, %v1114_v35  ;;  %v8400_v4 = vadd.f32 %v1028_v57, %v939_v44  ;;  %v6138_v35 = vor.u32 %v6556_v30, %v6135_v31  ;;  %v289_v40 = vld [vmem:[%s12972_s0 + $0x1c0] sm:$0xff]  ;;  %v291_v44 = vld [vmem:[%s12972_s0 + $0x1d0] sm:$0xff]  ;;  %v290_v57 = vld [vmem:[%s12972_s0 + $0x1c8] sm:$0xff] }
  0xf9   :  { %978 = vmatmul.bf16.gmra.mxu0 %v8394_v37  ;;  %v6511_v30 = vld [vmem:[%s12974_s2 + $0x1c] sm:$0xf0]  ;;  %v6133_v31 = vld [vmem:[%s12974_s2 + $0x188] sm:$0xf] }
  0xfa   :  { %1067 = vmatmul.bf16.gmra.mxu1 %v8396_v51  ;;  %1535 = vmatpush.bf16.msrb.mxu3 %v6138_v35 }
  0xfb   :  { %1156 = vmatmul.bf16.gmra.mxu2 %v8394_v37 }
  0xfc   :  { %1245 = vmatmul.bf16.gmra.mxu3 %v8396_v51 }
  0xfe   :  { %v1117_v6 = vpop.f32.mrf.mxu2  ;;  %v941_v10 = vpop.f32.mrf.mxu0 }
  0xff   :  { %v1206_v7 = vpop.f32.mrf.mxu3  ;;  %v1030_v13 = vpop.f32.mrf.mxu1 }
 0x100   :  { %v8406_v12 = vadd.f32 %v1206_v7, %v1117_v6  ;;  %v8414_v24 = vadd.f32 %v1030_v13, %v941_v10  ;;  %v292_v6 = vld [vmem:[%s12972_s0 + $0x1d8] sm:$0xff]  ;;  %v8434_v10 = vpack.c.bf16 %v291_v44, %v289_v40  ;;  %v5942_v44 = vor.u32 %v6511_v30, %v5941_v29 }
 0x101   :  { %v8436_v22 = vpack.c.bf16 %v292_v6, %v290_v57  ;;  %v6559_v57 = vld [vmem:[%s12974_s2 + $0x19c] sm:$0xf0] }
 0x102   :  { %13637 = vst [vmem:[#allocation39_spill] sm:$0xff] %v8434_v10  ;;  %v6134_v51 = vor.u32 %v6559_v57, %v6133_v31  ;;  %1268 = vmatpush.bf16.msrb.mxu0 %v5942_v44  ;;  %v295_v31 = vld [vmem:[%s12972_s0 + $0x1f0] sm:$0xff] }
 0x103   :  { %13638 = vst [vmem:[#allocation40_spill] sm:$0xff] %v8436_v22 }
 0x104   :  { %1357 = vmatpush.bf16.msrb.mxu1 %v6134_v51  ;;  %v294_v51 = vld [vmem:[%s12972_s0 + $0x1e8] sm:$0xff] }
 0x106   :  { %v1119_v7 = vpop.f32.mrf.mxu2  ;;  %v944_v15 = vpop.f32.mrf.mxu0 }
 0x107   :  { %v1208_v13 = vpop.f32.mrf.mxu3  ;;  %v1033_v40 = vpop.f32.mrf.mxu1 }
 0x108   :  { %v8447_v35 = vadd.f32 %v1208_v13, %v1119_v7  ;;  %v8452_v6 = vadd.f32 %v1033_v40, %v944_v15  ;;  %v293_v15 = vld [vmem:[%s12972_s0 + $0x1e0] sm:$0xff]  ;;  %v296_v40 = vld [vmem:[%s12972_s0 + $0x1f8] sm:$0xff] }
 0x109   :  { %983 = vmatmul.bf16.gmra.mxu0 %v8434_v10  ;;  %v8474_v57 = vpack.c.bf16 %v295_v31, %v293_v15  ;;  %v6315_v15 = vmul.f32 -1.442695, %v8212_v25  ;;  %v6318_v25 = vmul.f32 -1.442695, %v8238_v48 }
 0x10a   :  { %1072 = vmatmul.bf16.gmra.mxu1 %v8436_v22 }
 0x10b   :  { %1161 = vmatmul.bf16.gmra.mxu2 %v8434_v10  ;;  %13639 = vst [vmem:[#allocation41_spill] sm:$0xff] %v8474_v57  ;;  %6642 = vpow2.f32 %v6315_v15 }
 0x10c   :  { %1250 = vmatmul.bf16.gmra.mxu3 %v8436_v22  ;;  %6644 = vpow2.f32 %v6316_v38  ;;  %v6554_v38 = vld [vmem:[%s12974_s2 + $0x174] sm:$0xf0] }
 0x10e   :  { %v1122_v7 = vpop.f32.mrf.mxu2  ;;  %v946_v29 = vpop.f32.mrf.mxu0 }
 0x10f   :  { %v1211_v13 = vpop.f32.mrf.mxu3  ;;  %v1035_v37 = vpop.f32.mrf.mxu1 }
 0x110   :  { %v8458_v30 = vadd.f32 %v1211_v13, %v1122_v7  ;;  %v8460_v45 = vadd.f32 %v1035_v37, %v946_v29  ;;  %v8476_v13 = vpack.c.bf16 %v296_v40, %v294_v51 }
 0x112   :  { %13640 = vst [vmem:[#allocation42_spill] sm:$0xff] %v8476_v13 }
 0x116   :  { %v1124_v44 = vpop.f32.mrf.mxu2  ;;  %v949_v7 = vpop.f32.mrf.mxu0 }
 0x117   :  { %v1213_v37 = vpop.f32.mrf.mxu3  ;;  %v1038_v22 = vpop.f32.mrf.mxu1 }
 0x118   :  { %v8478_v29 = vadd.f32 %v1213_v37, %v1124_v44  ;;  %v8480_v10 = vadd.f32 %v1038_v22, %v949_v7  ;;  %v6317_v44 = vmul.f32 -1.442695, %v8220_v36  ;;  %v6551_v7 = vld [vmem:[%s12974_s2 + $0x164] sm:$0xf] }
 0x119   :  { %988 = vmatmul.bf16.gmra.mxu0 %v8474_v57  ;;  %v6599_v36 = vld [vmem:[%s12974_s2 + $0x2e4] sm:$0xf] }
 0x11a   :  { %1077 = vmatmul.bf16.gmra.mxu1 %v8476_v13  ;;  %6646 = vpow2.f32 %v6317_v44 }
 0x11b   :  { %1166 = vmatmul.bf16.gmra.mxu2 %v8474_v57  ;;  %6648 = vpow2.f32 %v6318_v25  ;;  %v6309_v25 = vld [vmem:[%s12974_s2 + $0x2e0] sm:$0xf] }
 0x11c   :  { %1255 = vmatmul.bf16.gmra.mxu3 %v8476_v13  ;;  %v6119_v13 = vld [vmem:[%s12974_s2 + $0x178] sm:$0xf0] }
 0x11d   :  { %v6122_v34 = vor.u32 %v6551_v7, %v6119_v13  ;;  %v6320_v7 = vmul.f32 -1.442695, %v8246_v56  ;;  %v6602_v56 = vld [vmem:[%s12974_s2 + $0x2f4] sm:$0xf0] }
 0x11e   :  { %v1127_v31 = vpop.f32.mrf.mxu2  ;;  %v951_v40 = vpop.f32.mrf.mxu0 }
 0x11f   :  { %v1216_v51 = vpop.f32.mrf.mxu3  ;;  %v1040_v22 = vpop.f32.mrf.mxu1  ;;  %1795 = vmatpush.bf16.msra.mxu2 %v6122_v34 }
 0x120   :  { %v8489_v37 = vadd.f32 %v1216_v51, %v1127_v31  ;;  %v8498_v57 = vadd.f32 %v1040_v22, %v951_v40  ;;  %v6311_v31 = vld [vmem:[%s12974_s2 + $0x2f8] sm:$0xf0]  ;;  %v6319_v51 = vmul.f32 -1.442695, %v8240_v50  ;;  %v6643_v22 = vpop.eup %6642  ;;  %v6117_v50 = vld [vmem:[%s12974_s2 + $0x160] sm:$0xf] }
 0x121   :  { %v6314_v61 = vor.u32 %v6599_v36, %v6311_v31  ;;  %v6118_v44 = vor.u32 %v6554_v38, %v6117_v50  ;;  %v6321_v36 = vmul.f32 -1.442695, %v8257_v63  ;;  %v6310_v31 = vor.u32 %v6602_v56, %v6309_v25 }
 0x122   :  { %6650 = vpow2.f32 %v6319_v51  ;;  %v6323_v56 = vmul.f32 -1.442695, %v8289_v28 }
 0x123   :  { %1884 = vmatpush.bf16.msra.mxu3 %v6314_v61  ;;  %v6645_v61 = vpop.eup %6644  ;;  %6652 = vpow2.f32 %v6320_v7  ;;  %1617 = vmatpush.bf16.msra.mxu0 %v6118_v44  ;;  %v6322_v7 = vmul.f32 -1.442695, %v8278_v20  ;;  %v6326_v20 = vmul.f32 -1.442695, %v8318_v62  ;;  %v6328_v62 = vmul.f32 -1.442695, %v8326_v11 }
 0x124   :  { %v6647_v34 = vpop.eup %6646  ;;  %1706 = vmatpush.bf16.msra.mxu1 %v6310_v31  ;;  %6654 = vpow2.f32 %v6321_v36  ;;  %v6324_v31 = vmul.f32 -1.442695, %v8298_v39  ;;  %v6331_v11 = vmul.f32 -1.442695, %v8366_v60 }
 0x125   :  { %v6649_v51 = vpop.eup %6648 }
 0x126   :  { %v1129_v48 = vpop.f32.mrf.mxu2  ;;  %v954_v40 = vpop.f32.mrf.mxu0  ;;  %v8535_v63 = vadd.f32 1.0, %v6649_v51  ;;  %v6325_v51 = vmul.f32 -1.442695, %v8300_v41 }
 0x127   :  { %v1218_v13 = vpop.f32.mrf.mxu3  ;;  %v1043_v19 = vpop.f32.mrf.mxu1 }
 0x128   :  { %v8508_v55 = vadd.f32 %v1218_v13, %v1129_v48  ;;  %v8516_v15 = vadd.f32 %v1043_v19, %v954_v40  ;;  %v8526_v48 = vadd.f32 1.0, %v6643_v22  ;;  %v6651_v19 = vpop.eup %6650  ;;  %v8530_v13 = vadd.f32 1.0, %v6645_v61  ;;  %13643 = vst [vmem:[#allocation45_spill] sm:$0xff] %v8535_v63 }
 0x129   :  { %1269 = vmatmul.bf16.vlgmr.msrb.gmra.mxu0 %v7946_v43  ;;  %v8533_v40 = vadd.f32 1.0, %v6647_v34  ;;  %v8538_v22 = vadd.f32 1.0, %v6651_v19  ;;  %v6653_v36 = vpop.eup %6652 }
 0x12a   :  { %1358 = vmatmul.bf16.vlgmr.msrb.gmra.mxu1 %v7954_v47  ;;  %13641 = vst [vmem:[#allocation43_spill] sm:$0xff] %v8530_v13  ;;  %6656 = vrcp.f32 %v8526_v48  ;;  %v6655_v19 = vpop.eup %6654  ;;  %vm2234_vm0 = vweird.f32 %v8526_v48 }
 0x12b   :  { %1447 = vmatmul.bf16.vlgmr.msrb.gmra.mxu2 %v7946_v43  ;;  %13642 = vst [vmem:[#allocation44_spill] sm:$0xff] %v8533_v40  ;;  %6658 = vrcp.f32 %v8530_v13 }
 0x12c   :  { %1536 = vmatmul.bf16.vlgmr.msrb.gmra.mxu3 %v7954_v47  ;;  %13644 = vst [vmem:[#allocation46_spill] sm:$0xff] %v8538_v22  ;;  %6660 = vrcp.f32 %v8533_v40  ;;  %v8562_v47 = vadd.f32 1.0, %v6655_v19 }
 0x12d   :  { %6662 = vrcp.f32 %v8535_v63 }
 0x12e   :  { %v1132_v50 = vpop.f32.mrf.mxu2  ;;  %v956_v25 = vpop.f32.mrf.mxu0  ;;  %6664 = vrcp.f32 %v8538_v22  ;;  %13648 = vst [vmem:[#allocation50_spill] sm:$0xff] %v8562_v47 }
 0x12f   :  { %v1221_v38 = vpop.f32.mrf.mxu3  ;;  %v1045_v44 = vpop.f32.mrf.mxu1  ;;  %6666 = vpow2.f32 %v6322_v7 }
 0x130   :  { %v8542_v61 = vadd.f32 %v1221_v38, %v1132_v50  ;;  %v8546_v34 = vadd.f32 %v1045_v44, %v956_v25  ;;  %v8553_v50 = vpop.eup %6656  ;;  %v8555_v38 = vadd.f32 1.0, %v6653_v36  ;;  %6668 = vpow2.f32 %v6323_v56 }
 0x131   :  { %v8557_v28 = vpop.eup %6658  ;;  %6670 = vpow2.f32 %v6324_v31  ;;  %v6327_v25 = vmul.f32 -1.442695, %v8320_v5  ;;  %v6329_v5 = vmul.f32 -1.442695, %v8334_v17  ;;  %v6332_v17 = vmul.f32 -1.442695, %v8378_v21 }
 0x132   :  { %13645 = vst [vmem:[#allocation47_spill] sm:$0xff] %v8555_v38  ;;  %v8560_v39 = vpop.eup %6660  ;;  %6672 = vpow2.f32 %v6325_v51  ;;  %v6330_v51 = vmul.f32 -1.442695, %v8358_v49  ;;  %vm2235_vm1 = vweird.f32 %v8553_v50 }
 0x133   :  { %13646 = vst [vmem:[#allocation48_spill] sm:$0xff] %v8557_v28  ;;  %v8564_v43 = vpop.eup %6662  ;;  %6674 = vpow2.f32 %v6326_v20  ;;  %vm8902_vm2 = vmor %vm2234_vm0, %vm2235_vm1 }
 0x134   :  { %13647 = vst [vmem:[#allocation49_spill] sm:$0xff] %v8560_v39  ;;  %v8569_v14 = vpop.eup %6664  ;;  %6676 = vrcp.f32 %v8555_v38 }
 0x135   :  { %13649 = vst [vmem:[#allocation51_spill] sm:$0xff] %v8564_v43  ;;  %v6667_v19 = vpop.eup %6666  ;;  %6678 = vpow2.f32 %v6327_v25 }
 0x136   :  { %v1134_v44 = vpop.f32.mrf.mxu2  ;;  %v959_v7 = vpop.f32.mrf.mxu0  ;;  %13650 = vst [vmem:[#allocation52_spill] sm:$0xff] %v8569_v14  ;;  %6680 = vrcp.f32 %v8562_v47 }
 0x137   :  { %v1223_v41 = vpop.f32.mrf.mxu3  ;;  %v1048_v56 = vpop.f32.mrf.mxu1  ;;  %6682 = vpow2.f32 %v6328_v62 }
 0x138   :  { %v8567_v36 = vadd.f32 %v1223_v41, %v1134_v44  ;;  %v8573_v31 = vadd.f32 %v1048_v56, %v959_v7  ;;  %v6669_v20 = vpop.eup %6668  ;;  %v8583_v41 = vadd.f32 1.0, %v6667_v19  ;;  %6684 = vpow2.f32 %v6329_v5  ;;  %v6545_v5 = vld [vmem:[%s12974_s2 + $0x134] sm:$0xf] }
 0x139   :  { %1274 = vmatmul.bf16.gmra.mxu0 %v7996_v2  ;;  %v6671_v44 = vpop.eup %6670  ;;  %v8585_v7 = vadd.f32 1.0, %v6669_v20  ;;  %6686 = vpow2.f32 %v6330_v51  ;;  %v6095_v51 = vld [vmem:[%s12974_s2 + $0x148] sm:$0xf0] }
 0x13a   :  { %1363 = vmatmul.bf16.gmra.mxu1 %v7998_v3  ;;  %v6673_v25 = vpop.eup %6672  ;;  %13651 = vst [vmem:[#allocation53_spill] sm:$0xff] %v8583_v41  ;;  %v8589_v46 = vadd.f32 1.0, %v6671_v44  ;;  %6688 = vpow2.f32 %v6331_v11 }
 0x13b   :  { %1452 = vmatmul.bf16.gmra.mxu2 %v7996_v2  ;;  %v6675_v49 = vpop.eup %6674  ;;  %13652 = vst [vmem:[#allocation54_spill] sm:$0xff] %v8585_v7  ;;  %v8591_v21 = vadd.f32 1.0, %v6673_v25  ;;  %6690 = vpow2.f32 %v6332_v17  ;;  %v6098_v17 = vor.u32 %v6545_v5, %v6095_v51  ;;  %v6287_v25 = vld [vmem:[%s12974_s2 + $0x2c8] sm:$0xf0] }
 0x13c   :  { %1541 = vmatmul.bf16.gmra.mxu3 %v7998_v3  ;;  %v8587_v60 = vpop.eup %6676  ;;  %13654 = vst [vmem:[#allocation56_spill] sm:$0xff] %v8589_v46  ;;  %6692 = vrcp.f32 %v8583_v41  ;;  %v8604_v11 = vadd.f32 1.0, %v6675_v49 }
 0x13d   :  { %13653 = vst [vmem:[#allocation55_spill] sm:$0xff] %v8587_v60  ;;  %v6679_v42 = vpop.eup %6678  ;;  %6694 = vrcp.f32 %v8585_v7  ;;  %1796 = vmatpush.bf16.msra.mxu2 %v6098_v17 }
 0x13e   :  { %v1137_v56 = vpop.f32.mrf.mxu2  ;;  %v961_v62 = vpop.f32.mrf.mxu0  ;;  %13655 = vst [vmem:[#allocation57_spill] sm:$0xff] %v8591_v21  ;;  %6696 = vrcp.f32 %v8589_v46  ;;  %v8617_v49 = vadd.f32 1.0, %v6679_v42 }
 0x13f   :  { %v1226_v2 = vpop.f32.mrf.mxu3  ;;  %v1050_v19 = vpop.f32.mrf.mxu1  ;;  %13657 = vst [vmem:[#allocation59_spill] sm:$0xff] %v8604_v11  ;;  %6698 = vrcp.f32 %v8591_v21 }
 0x140   :  { %v8593_v3 = vadd.f32 %v1226_v2, %v1137_v56  ;;  %v8601_v20 = vpop.eup %6680  ;;  %v8606_v44 = vadd.f32 %v1050_v19, %v961_v62  ;;  %v6593_v2 = vld [vmem:[%s12974_s2 + $0x2b4] sm:$0xf]  ;;  %13658 = vst [vmem:[#allocation60_spill] sm:$0xff] %v8617_v49  ;;  %v6334_v19 = vmul.f32 -1.442695, %v8398_v54  ;;  %6700 = vrcp.f32 %v8604_v11 }
 0x141   :  { %13656 = vst [vmem:[#allocation58_spill] sm:$0xff] %v8601_v20  ;;  %v6683_v56 = vpop.eup %6682  ;;  %v6290_v16 = vor.u32 %v6593_v2, %v6287_v25  ;;  %6702 = vpow2.f32 %v6333_v18  ;;  %v6548_v18 = vld [vmem:[%s12974_s2 + $0x144] sm:$0xf0] }
 0x142   :  { %v6685_v1 = vpop.eup %6684  ;;  %v8622_v51 = vadd.f32 1.0, %v6683_v56  ;;  %6704 = vrcp.f32 %v8617_v49  ;;  %v6335_v49 = vmul.f32 -1.442695, %v8400_v4 }
 0x143   :  { %v6687_v62 = vpop.eup %6686  ;;  %1885 = vmatpush.bf16.msra.mxu3 %v6290_v16  ;;  %v8624_v23 = vadd.f32 1.0, %v6685_v1  ;;  %6706 = vpow2.f32 %v6334_v19  ;;  %v6093_v1 = vld [vmem:[%s12974_s2 + $0x130] sm:$0xf] }
 0x144   :  { %v6689_v5 = vpop.eup %6688  ;;  %13659 = vst [vmem:[#allocation61_spill] sm:$0xff] %v8622_v51  ;;  %v8629_v42 = vadd.f32 1.0, %v6687_v62  ;;  %6708 = vrcp.f32 %v8622_v51  ;;  %v6094_v19 = vor.u32 %v6548_v18, %v6093_v1  ;;  %v6337_v18 = vmul.f32 -1.442695, %v8414_v24 }
 0x145   :  { %v6691_v0 = vpop.eup %6690  ;;  %13660 = vst [vmem:[#allocation62_spill] sm:$0xff] %v8624_v23  ;;  %v8633_v16 = vadd.f32 1.0, %v6689_v5  ;;  %6710 = vrcp.f32 %v8624_v23 }
 0x146   :  { %v1139_v2 = vpop.f32.mrf.mxu2  ;;  %v8626_v25 = vpop.eup %6692  ;;  %13662 = vst [vmem:[#allocation64_spill] sm:$0xff] %v8629_v42  ;;  %v8646_v53 = vadd.f32 1.0, %v6691_v0  ;;  %6712 = vrcp.f32 %v8629_v42  ;;  %1618 = vmatpush.bf16.msra.mxu0 %v6094_v19 }
 0x147   :  { %13661 = vst [vmem:[#allocation63_spill] sm:$0xff] %v8626_v25  ;;  %v1228_v17 = vpop.f32.mrf.mxu3  ;;  %v964_v59 = vpop.f32.mrf.mxu0  ;;  %6714 = vrcp.f32 %v8633_v16 }
 0x148   :  { %v8631_v54 = vpop.eup %6694  ;;  %13664 = vst [vmem:[#allocation66_spill] sm:$0xff] %v8633_v16  ;;  %v8635_v56 = vadd.f32 %v1228_v17, %v1139_v2  ;;  %v1053_v58 = vpop.f32.mrf.mxu1  ;;  %v6285_v2 = vld [vmem:[%s12974_s2 + $0x2b0] sm:$0xf]  ;;  %v6596_v17 = vld [vmem:[%s12974_s2 + $0x2c4] sm:$0xf0]  ;;  %6716 = vrcp.f32 %v8646_v53 }
 0x149   :  { %13663 = vst [vmem:[#allocation65_spill] sm:$0xff] %v8631_v54  ;;  %v8643_v62 = vpop.eup %6696  ;;  %v8648_v5 = vadd.f32 %v1053_v58, %v964_v59  ;;  %1279 = vmatmul.bf16.gmra.mxu0 %v8016_v8  ;;  %v6286_v0 = vor.u32 %v6596_v17, %v6285_v2  ;;  %v6336_v59 = vmul.f32 -1.442695, %v8406_v12  ;;  %v6338_v2 = vmul.f32 -1.442695, %v8447_v35 }
 0x14a   :  { %13665 = vst [vmem:[#allocation67_spill] sm:$0xff] %v8643_v62  ;;  %v8656_v52 = vpop.eup %6698  ;;  %1368 = vmatmul.bf16.gmra.mxu1 %v8018_v9  ;;  %6718 = vpow2.f32 %v6335_v49  ;;  %v6339_v17 = vmul.f32 -1.442695, %v8452_v6 }
 0x14b   :  { %13666 = vst [vmem:[#allocation68_spill] sm:$0xff] %v8646_v53  ;;  %v8661_v58 = vpop.eup %6700  ;;  %1457 = vmatmul.bf16.gmra.mxu2 %v8016_v8  ;;  %1707 = vmatpush.bf16.msra.mxu1 %v6286_v0  ;;  %6720 = vpow2.f32 %v6336_v59  ;;  %v6340_v53 = vmul.f32 -1.442695, %v8458_v30  ;;  %v6341_v59 = vmul.f32 -1.442695, %v8460_v45 }
 0x14c   :  { %13667 = vst [vmem:[#allocation69_spill] sm:$0xff] %v8656_v52  ;;  %v6703_v1 = vpop.eup %6702  ;;  %1546 = vmatmul.bf16.gmra.mxu3 %v8018_v9  ;;  %6722 = vpow2.f32 %v6337_v18  ;;  %v6343_v18 = vmul.f32 -1.442695, %v8480_v10 }
 0x14d   :  { %13668 = vst [vmem:[#allocation70_spill] sm:$0xff] %v8661_v58  ;;  %v8670_v4 = vpop.eup %6704  ;;  %v8677_v16 = vadd.f32 1.0, %v6703_v1  ;;  %6724 = vpow2.f32 %v6338_v2 }
 0x14e   :  { %13669 = vst [vmem:[#allocation71_spill] sm:$0xff] %v8670_v4  ;;  %v6707_v12 = vpop.eup %6706  ;;  %v1142_v8 = vpop.f32.mrf.mxu2  ;;  %6726 = vpow2.f32 %v6339_v17  ;;  %v6345_v17 = vmul.f32 -1.442695, %v8498_v57 }
 0x14f   :  { %v8675_v42 = vpop.eup %6708  ;;  %13671 = vst [vmem:[#allocation73_spill] sm:$0xff] %v8677_v16  ;;  %v1231_v24 = vpop.f32.mrf.mxu3  ;;  %v8686_v49 = vadd.f32 1.0, %v6707_v12  ;;  %6728 = vrcp.f32 %v8677_v16 }
 0x150   :  { %13670 = vst [vmem:[#allocation72_spill] sm:$0xff] %v8675_v42  ;;  %v966_v9 = vpop.f32.mrf.mxu0  ;;  %v8679_v19 = vpop.eup %6710  ;;  %v8682_v23 = vadd.f32 %v1231_v24, %v1142_v8  ;;  %v6342_v8 = vmul.f32 -1.442695, %v8478_v29  ;;  %6730 = vpow2.f32 %v6340_v53 }
 0x151   :  { %13672 = vst [vmem:[#allocation74_spill] sm:$0xff] %v8679_v19  ;;  %v1055_v35 = vpop.f32.mrf.mxu1  ;;  %v8684_v0 = vpop.eup %6712  ;;  %6732 = vrcp.f32 %v8686_v49 }
 0x152   :  { %13673 = vst [vmem:[#allocation75_spill] sm:$0xff] %v8684_v0  ;;  %v8688_v6 = vadd.f32 %v1055_v35, %v966_v9  ;;  %v8690_v1 = vpop.eup %6714  ;;  %v6344_v9 = vmul.f32 -1.442695, %v8489_v37  ;;  %6734 = vpow2.f32 %v6341_v59 }
 0x153   :  { %13674 = vst [vmem:[#allocation76_spill] sm:$0xff] %v8686_v49  ;;  %v8693_v42 = vpop.eup %6716  ;;  %6736 = vpow2.f32 %v6342_v8 }
 0x154   :  { %13675 = vst [vmem:[#allocation77_spill] sm:$0xff] %v8690_v1  ;;  %v6719_v30 = vpop.eup %6718  ;;  %6738 = vpow2.f32 %v6343_v18 }
 0x155   :  { %13676 = vst [vmem:[#allocation78_spill] sm:$0xff] %v8693_v42  ;;  %v6721_v12 = vpop.eup %6720  ;;  %v8701_v35 = vadd.f32 1.0, %v6719_v30  ;;  %6740 = vpow2.f32 %v6344_v9 }
 0x156   :  { %v6723_v2 = vpop.eup %6722  ;;  %v1144_v45 = vpop.f32.mrf.mxu2  ;;  %v8703_v53 = vadd.f32 1.0, %v6721_v12  ;;  %6742 = vpow2.f32 %v6345_v17  ;;  %v6347_v17 = vmul.f32 -1.442695, %v8516_v15  ;;  %v8748_v15 = vmul.f32 %v8564_v43, %v8535_v63 }
 0x157   :  { %v6725_v24 = vpop.eup %6724  ;;  %13677 = vst [vmem:[#allocation79_spill] sm:$0xff] %v8701_v35  ;;  %v1233_v16 = vpop.f32.mrf.mxu3  ;;  %v8709_v37 = vadd.f32 1.0, %v6723_v2  ;;  %6744 = vrcp.f32 %v8701_v35 }
 0x158   :  { %v969_v29 = vpop.f32.mrf.mxu0  ;;  %v6727_v42 = vpop.eup %6726  ;;  %13678 = vst [vmem:[#allocation80_spill] sm:$0xff] %v8703_v53  ;;  %v8705_v10 = vadd.f32 %v1233_v16, %v1144_v45  ;;  %v8713_v30 = vadd.f32 1.0, %v6725_v24  ;;  %6746 = vrcp.f32 %v8703_v53 }
 0x159   :  { %v1058_v49 = vpop.f32.mrf.mxu1  ;;  %v8707_v1 = vpop.eup %6728  ;;  %13680 = vst [vmem:[#allocation82_spill] sm:$0xff] %v8709_v37  ;;  %1284 = vmatmul.bf16.gmra.mxu0 %v8060_v26  ;;  %v8719_v16 = vadd.f32 1.0, %v6727_v42  ;;  %6748 = vrcp.f32 %v8709_v37  ;;  %v8731_v42 = vmul.f32 %v8553_v50, %v8526_v48 }
 0x15a   :  { %13679 = vst [vmem:[#allocation81_spill] sm:$0xff] %v8707_v1  ;;  %v8711_v57 = vadd.f32 %v1058_v49, %v969_v29  ;;  %v6731_v59 = vpop.eup %6730  ;;  %1373 = vmatmul.bf16.gmra.mxu1 %v8062_v27  ;;  %v6346_v49 = vmul.f32 -1.442695, %v8508_v55  ;;  %6750 = vrcp.f32 %v8713_v30  ;;  %v8737_v55 = vmul.f32 %v8557_v28, %v8530_v13 }
 0x15b   :  { %13681 = vst [vmem:[#allocation83_spill] sm:$0xff] %v8713_v30  ;;  %v8716_v8 = vpop.eup %6732  ;;  %1462 = vmatmul.bf16.gmra.mxu2 %v8060_v26  ;;  %v8727_v9 = vadd.f32 1.0, %v6731_v59  ;;  %v8741_v29 = vmul.f32 %v8560_v39, %v8533_v40  ;;  %6752 = vrcp.f32 %v8719_v16  ;;  %v6539_v40 = vld [vmem:[%s12974_s2 + $0x104] sm:$0xf] }
 0x15c   :  { %13682 = vst [vmem:[#allocation84_spill] sm:$0xff] %v8716_v8  ;;  %v6735_v18 = vpop.eup %6734  ;;  %1551 = vmatmul.bf16.gmra.mxu3 %v8062_v27  ;;  %6754 = vpow2.f32 %v6346_v49 }
 0x15d   :  { %13683 = vst [vmem:[#allocation85_spill] sm:$0xff] %v8719_v16  ;;  %v6737_v12 = vpop.eup %6736  ;;  %v8744_v59 = vadd.f32 1.0, %v6735_v18  ;;  %v6071_v18 = vld [vmem:[%s12974_s2 + $0x118] sm:$0xf0]  ;;  %6756 = vrcp.f32 %v8727_v9  ;;  %v8777_v16 = vmul.f32 %v8569_v14, %v8538_v22  ;;  %v2231_v22 = vsub.f32 1.0, %v8731_v42 }
 0x15e   :  { %13684 = vst [vmem:[#allocation86_spill] sm:$0xff] %v8727_v9  ;;  %v6739_v2 = vpop.eup %6738  ;;  %v1147_v45 = vpop.f32.mrf.mxu2  ;;  %v8750_v30 = vadd.f32 1.0, %v6737_v12  ;;  %v6074_v49 = vor.u32 %v6539_v40, %v6071_v18  ;;  %6758 = vpow2.f32 %v6347_v17  ;;  %v8785_v40 = vmul.f32 %v8587_v60, %v8555_v38 }
 0x15f   :  { %v6741_v24 = vpop.eup %6740  ;;  %13685 = vst [vmem:[#allocation87_spill] sm:$0xff] %v8737_v55  ;;  %v1236_v27 = vpop.f32.mrf.mxu3  ;;  %v8763_v63 = vadd.f32 1.0, %v6739_v2  ;;  %6760 = vrcp.f32 %v8744_v59  ;;  %v6348_v17 = vmul.f32 -1.442695, %v8542_v61  ;;  %v6350_v61 = vmul.f32 -1.442695, %v8567_v36 }
 0x160   :  { %13686 = vst [vmem:[#allocation88_spill] sm:$0xff] %v8741_v29  ;;  %v971_v26 = vpop.f32.mrf.mxu0  ;;  %v6743_v37 = vpop.eup %6742  ;;  %v8752_v28 = vadd.f32 %v1236_v27, %v1147_v45  ;;  %v6587_v27 = vld [vmem:[%s12974_s2 + $0x284] sm:$0xf]  ;;  %v6263_v45 = vld [vmem:[%s12974_s2 + $0x298] sm:$0xf0]  ;;  %v8779_v9 = vadd.f32 1.0, %v6741_v24  ;;  %1797 = vmatpush.bf16.msra.mxu2 %v6074_v49  ;;  %6762 = vrcp.f32 %v8750_v30 }
 0x161   :  { %13687 = vst [vmem:[#allocation89_spill] sm:$0xff] %v8744_v59  ;;  %v1060_v13 = vpop.f32.mrf.mxu1  ;;  %v8760_v39 = vpop.eup %6744  ;;  %v8788_v2 = vadd.f32 1.0, %v6743_v37  ;;  %6764 = vrcp.f32 %v8763_v63  ;;  %v6349_v37 = vmul.f32 -1.442695, %v8546_v34  ;;  %v6351_v34 = vmul.f32 -1.442695, %v8573_v31 }
 0x162   :  { %13688 = vst [vmem:[#allocation90_spill] sm:$0xff] %v8748_v15  ;;  %v8765_v12 = vadd.f32 %v1060_v13, %v971_v26  ;;  %v8773_v43 = vpop.eup %6746  ;;  %v6266_v26 = vor.u32 %v6587_v27, %v6263_v45  ;;  %6766 = vrcp.f32 %v8779_v9  ;;  %v8810_v45 = vmul.f32 %v8601_v20, %v8562_v47  ;;  %v6069_v27 = vld [vmem:[%s12974_s2 + $0x100] sm:$0xf]  ;;  %v6542_v47 = vld [vmem:[%s12974_s2 + $0x114] sm:$0xf0] }
 0x163   :  { %13689 = vst [vmem:[#allocation91_spill] sm:$0xff] %v8750_v30  ;;  %v8781_v13 = vpop.eup %6748  ;;  %6768 = vrcp.f32 %v8788_v2  ;;  %v6353_v29 = vmul.f32 -1.442695, %v8606_v44  ;;  %v6354_v44 = vmul.f32 -1.442695, %v8635_v56  ;;  %v2240_v56 = vand.u32 2147483648, %v8526_v48 }
 0x164   :  { %13690 = vst [vmem:[#allocation92_spill] sm:$0xff] %v8760_v39  ;;  %v8790_v18 = vpop.eup %6750  ;;  %1886 = vmatpush.bf16.msra.mxu3 %v6266_v26  ;;  %6770 = vpow2.f32 %v6348_v17  ;;  %v6070_v17 = vor.u32 %v6542_v47, %v6069_v27  ;;  %v13729_v55 = vld [vmem:[#allocation62_spill] sm:$0xff] }
 0x165   :  { %13691 = vst [vmem:[#allocation93_spill] sm:$0xff] %v8763_v63  ;;  %v8795_v24 = vpop.eup %6752  ;;  %6772 = vpow2.f32 %v6349_v37 }
 0x166   :  { %13692 = vst [vmem:[#allocation94_spill] sm:$0xff] %v8773_v43  ;;  %v6755_v49 = vpop.eup %6754  ;;  %v1149_v26 = vpop.f32.mrf.mxu2  ;;  %6774 = vpow2.f32 %v6350_v61  ;;  %1619 = vmatpush.bf16.msra.mxu0 %v6070_v17  ;;  %v8858_v61 = vmul.f32 %v8626_v25, %v8583_v41  ;;  %v8865_v17 = vmul.f32 %v8631_v54, %v8585_v7  ;;  %v8873_v41 = vmul.f32 %v8643_v62, %v8589_v46 }
 0x167   :  { %13693 = vst [vmem:[#allocation95_spill] sm:$0xff] %v8777_v16  ;;  %v8805_v60 = vpop.eup %6756  ;;  %v1238_v38 = vpop.f32.mrf.mxu3  ;;  %v6352_v16 = vmul.f32 -1.442695, %v8593_v3  ;;  %v8825_v31 = vadd.f32 1.0, %v6755_v49  ;;  %v6261_v3 = vld [vmem:[%s12974_s2 + $0x280] sm:$0xf]  ;;  %6776 = vpow2.f32 %v6351_v34 }
 0x168   :  { %13694 = vst [vmem:[#allocation96_spill] sm:$0xff] %v8779_v9  ;;  %v974_v14 = vpop.f32.mrf.mxu0  ;;  %v6759_v42 = vpop.eup %6758  ;;  %v8815_v36 = vadd.f32 %v1238_v38, %v1149_v26  ;;  %v6590_v38 = vld [vmem:[%s12974_s2 + $0x294] sm:$0xf0]  ;;  %v6355_v34 = vmul.f32 -1.442695, %v8648_v5  ;;  %v8877_v5 = vmul.f32 %v8656_v52, %v8591_v21 }
 0x169   :  { %13695 = vst [vmem:[#allocation97_spill] sm:$0xff] %v8781_v13  ;;  %v1063_v15 = vpop.f32.mrf.mxu1  ;;  %v8823_v20 = vpop.eup %6760  ;;  %1289 = vmatmul.bf16.gmra.mxu0 %v8080_v32  ;;  %v6262_v49 = vor.u32 %v6590_v38, %v6261_v3  ;;  %v8843_v27 = vadd.f32 1.0, %v6759_v42  ;;  %6778 = vpow2.f32 %v6352_v16  ;;  %v6356_v3 = vmul.f32 -1.442695, %v8682_v23 }
 0x16a   :  { %13696 = vst [vmem:[#allocation98_spill] sm:$0xff] %v8785_v40  ;;  %v8827_v40 = vadd.f32 %v1063_v15, %v974_v14  ;;  %v8835_v26 = vpop.eup %6762  ;;  %v2232_v14 = vmul.f32 %v8553_v50, %v2231_v22  ;;  %1378 = vmatmul.bf16.gmra.mxu1 %v8082_v33  ;;  %6780 = vrcp.f32 %v8825_v31  ;;  %v6358_v54 = vmul.f32 -1.442695, %v8705_v10 }
 0x16b   :  { %13697 = vst [vmem:[#allocation99_spill] sm:$0xff] %v8788_v2  ;;  %v8840_v15 = vpop.eup %6764  ;;  %1467 = vmatmul.bf16.gmra.mxu2 %v8080_v32  ;;  %1708 = vmatpush.bf16.msra.mxu1 %v6262_v49  ;;  %6782 = vpow2.f32 %v6353_v29  ;;  %v6357_v49 = vmul.f32 -1.442695, %v8688_v6  ;;  %v8892_v6 = vor.u32 1.1754944e-38, %v2240_v56 }
 0x16c   :  { %13698 = vst [vmem:[#allocation100_spill] sm:$0xff] %v8790_v18  ;;  %v8848_v37 = vpop.eup %6766  ;;  %1556 = vmatmul.bf16.gmra.mxu3 %v8082_v33  ;;  %v8869_v47 = vadd.f32 %v8553_v50, %v2232_v14  ;;  %6784 = vrcp.f32 %v8843_v27  ;;  %v8883_v14 = vmul.f32 %v8661_v58, %v8604_v11 }
 0x16d   :  { %13699 = vst [vmem:[#allocation101_spill] sm:$0xff] %v8795_v24  ;;  %v8854_v42 = vpop.eup %6768  ;;  %6786 = vpow2.f32 %v6354_v44 }
 0x16e   :  { %13700 = vst [vmem:[#allocation102_spill] sm:$0xff] %v8805_v60  ;;  %v6771_v16 = vpop.eup %6770  ;;  %v1152_v38 = vpop.f32.mrf.mxu2  ;;  %6788 = vpow2.f32 %v6355_v34 }
 0x16f   :  { %13701 = vst [vmem:[#allocation103_spill] sm:$0xff] %v8810_v45  ;;  %v6773_v22 = vpop.eup %6772  ;;  %v1241_v29 = vpop.f32.mrf.mxu3  ;;  %v8888_v21 = vadd.f32 1.0, %v6771_v16  ;;  %6790 = vpow2.f32 %v6356_v3 }
 0x170   :  { %13702 = vst [vmem:[#allocation104_spill] sm:$0xff] %v8823_v20  ;;  %v976_v7 = vpop.f32.mrf.mxu0  ;;  %v6775_v23 = vpop.eup %6774  ;;  %v8886_v46 = vadd.f32 %v1241_v29, %v1152_v38  ;;  %v8896_v58 = vadd.f32 1.0, %v6773_v22  ;;  %6792 = vpow2.f32 %v6357_v49  ;;  %v13724_v29 = vld [vmem:[#allocation60_spill] sm:$0xff]  ;;  %v6359_v22 = vmul.f32 -1.442695, %v8711_v57 }
 0x171   :  { %13703 = vst [vmem:[#allocation105_spill] sm:$0xff] %v8825_v31  ;;  %v1065_v62 = vpop.f32.mrf.mxu1  ;;  %v6777_v25 = vpop.eup %6776  ;;  %v8909_v44 = vadd.f32 1.0, %v6775_v23  ;;  %6794 = vpow2.f32 %v6358_v54  ;;  %v8923_v23 = vmul.f32 %v8670_v4, %v13724_v29  ;;  %v13726_v49 = vld [vmem:[#allocation72_spill] sm:$0xff]  ;;  %v13734_v4 = vld [vmem:[#allocation77_spill] sm:$0xff] }
 0x172   :  { %13704 = vst [vmem:[#allocation106_spill] sm:$0xff] %v8835_v26  ;;  %v8890_v52 = vadd.f32 %v1065_v62, %v976_v7  ;;  %v6779_v45 = vpop.eup %6778  ;;  %v8917_v3 = vadd.f32 1.0, %v6777_v25  ;;  %v8927_v62 = vmul.f32 %v13726_v49, %v8622_v51  ;;  %6796 = vrcp.f32 %v8888_v21  ;;  %v13731_v54 = vld [vmem:[#allocation64_spill] sm:$0xff]  ;;  %v13733_v49 = vld [vmem:[#allocation66_spill] sm:$0xff] }
 0x173   :  { %13705 = vst [vmem:[#allocation107_spill] sm:$0xff] %v8840_v15  ;;  %v8906_v7 = vpop.eup %6780  ;;  %v8930_v11 = vadd.f32 1.0, %v6779_v45  ;;  %v8934_v25 = vmul.f32 %v8679_v19, %v13729_v55  ;;  %v8938_v16 = vmul.f32 %v8684_v0, %v13731_v54  ;;  %6798 = vrcp.f32 %v8896_v58  ;;  %v13736_v45 = vld [vmem:[#allocation68_spill] sm:$0xff] }
 0x174   :  { %13706 = vst [vmem:[#allocation108_spill] sm:$0xff] %v8843_v27  ;;  %v6783_v34 = vpop.eup %6782  ;;  %6800 = vrcp.f32 %v8909_v44 }
 0x175   :  { %13707 = vst [vmem:[#allocation109_spill] sm:$0xff] %v8848_v37  ;;  %v8919_v38 = vpop.eup %6784  ;;  %v8951_v55 = vadd.f32 1.0, %v6783_v34  ;;  %6802 = vrcp.f32 %v8917_v3 }
 0x176   :  { %13708 = vst [vmem:[#allocation110_spill] sm:$0xff] %v8854_v42  ;;  %v6787_v56 = vpop.eup %6786  ;;  %v1154_v29 = vpop.f32.mrf.mxu2  ;;  %6804 = vrcp.f32 %v8930_v11 }
 0x177   :  { %13709 = vst [vmem:[#allocation111_spill] sm:$0xff] %v8858_v61  ;;  %v6789_v51 = vpop.eup %6788  ;;  %v1243_v54 = vpop.f32.mrf.mxu3  ;;  %v8963_v34 = vadd.f32 1.0, %v6787_v56  ;;  %6806 = vpow2.f32 %v6359_v22 }
 0x178   :  { %13710 = vst [vmem:[#allocation112_spill] sm:$0xff] %v8865_v17  ;;  %v979_v0 = vpop.f32.mrf.mxu0  ;;  %v6791_v19 = vpop.eup %6790  ;;  %v13740_v17 = vld [vmem:[#allocation73_spill] sm:$0xff]  ;;  %6808 = vrcp.f32 %v8951_v55 }
 0x179   :  { %13711 = vst [vmem:[#allocation113_spill] sm:$0xff] %v8869_v47  ;;  %v8955_v57 = vmul.f32 %v8707_v1, %v13740_v17  ;;  %v1068_v61 = vpop.f32.mrf.mxu1  ;;  %v8996_v17 = vmul.f32 %v8760_v39, %v8701_v35 }
 0x17a   :  { %13712 = vst [vmem:[#allocation114_spill] sm:$0xff] %v8873_v41  ;;  %v8965_v33 = vadd.f32 %v1068_v61, %v979_v0  ;;  %v8977_v0 = vadd.f32 1.0, %v6791_v19  ;;  %v13747_v61 = vld [vmem:[#allocation22_spill] sm:$0xff] }
 0x17b   :  { %13713 = vst [vmem:[#allocation115_spill] sm:$0xff] %v8877_v5  ;;  %v13737_v5 = vld [vmem:[#allocation78_spill] sm:$0xff]  ;;  %1383 = vmatmul.bf16.gmra.mxu1 %v13747_v61 }
 0x17c   :  { %13714 = vst [vmem:[#allocation116_spill] sm:$0xff] %v8883_v14  ;;  %v8944_v14 = vmul.f32 %v13734_v4, %v13733_v49  ;;  %v8948_v41 = vmul.f32 %v13737_v5, %v13736_v45  ;;  %v6360_v49 = vmul.f32 -1.442695, %v8752_v28  ;;  %v8959_v4 = vadd.f32 %v1243_v54, %v1154_v29  ;;  %v6793_v45 = vpop.eup %6792  ;;  %v13744_v28 = vld [vmem:[#allocation21_spill] sm:$0xff]  ;;  %1561 = vmatmul.bf16.gmra.mxu3 %v13747_v61  ;;  %v13751_v54 = vld [vmem:[#allocation76_spill] sm:$0xff] }
 0x17d   :  { %13715 = vst [vmem:[#allocation117_spill] sm:$0xff] %v8888_v21  ;;  %v6795_v32 = vpop.eup %6794  ;;  %1294 = vmatmul.bf16.gmra.mxu0 %v13744_v28  ;;  %1472 = vmatmul.bf16.gmra.mxu2 %v13744_v28  ;;  %v8985_v1 = vadd.f32 1.0, %v6793_v45  ;;  %v8992_v19 = vmul.f32 %v8716_v8, %v13751_v54  ;;  %v13757_v45 = vld [vmem:[#allocation82_spill] sm:$0xff]  ;;  %v6361_v54 = vmul.f32 -1.442695, %v8765_v12  ;;  %v13760_v8 = vld [vmem:[#allocation83_spill] sm:$0xff] }
 0x17e   :  { %13716 = vst [vmem:[#allocation118_spill] sm:$0xff] %v8892_v6  ;;  %v8969_v6 = vadd.f32 1.0, %v6789_v51  ;;  %v8972_v29 = vpop.eup %6796  ;;  %6810 = vpow2.f32 %v6360_v49  ;;  %v8999_v51 = vadd.f32 1.0, %v6795_v32  ;;  %v9005_v49 = vmul.f32 %v8773_v43, %v8703_v53  ;;  %v1157_v35 = vpop.f32.mrf.mxu2 }
 0x17f   :  { %13717 = vst [vmem:[#allocation119_spill] sm:$0xff] %v8896_v58  ;;  %v8981_v56 = vpop.eup %6798  ;;  %6812 = vrcp.f32 %v8963_v34  ;;  %v9017_v32 = vmul.f32 %v8790_v18, %v13760_v8  ;;  %v6363_v8 = vmul.f32 -1.442695, %v8827_v40  ;;  %v6365_v61 = vmul.f32 -1.442695, %v8890_v52 }
 0x180   :  { %13720 = vst [vmem:[#allocation120_spill] sm:$0xff] %v8906_v7  ;;  %v8988_v5 = vpop.eup %6800  ;;  %6814 = vrcp.f32 %v8969_v6  ;;  %v981_v53 = vpop.f32.mrf.mxu0  ;;  %v6366_v52 = vmul.f32 -1.442695, %v8959_v4  ;;  %v6367_v4 = vmul.f32 -1.442695, %v8965_v33  ;;  %v9090_v33 = vmul.f32 %v8854_v42, %v8788_v2 }
 0x181   :  { %13721 = vst [vmem:[#allocation121_spill] sm:$0xff] %v8909_v44  ;;  %v9001_v22 = vpop.eup %6802  ;;  %6816 = vrcp.f32 %v8977_v0 }
 0x182   :  { %13722 = vst [vmem:[#allocation122_spill] sm:$0xff] %v8917_v3  ;;  %v9013_v39 = vpop.eup %6804  ;;  %6818 = vrcp.f32 %v8985_v1 }
 0x183   :  { %13723 = vst [vmem:[#allocation123_spill] sm:$0xff] %v8919_v38  ;;  %v6807_v43 = vpop.eup %6806  ;;  %6820 = vrcp.f32 %v8999_v51 }
 0x184   :  { %13725 = vst [vmem:[#allocation124_spill] sm:$0xff] %v8923_v23  ;;  %6822 = vpow2.f32 %v6361_v54 }
 0x185   :  { %13727 = vst [vmem:[#allocation125_spill] sm:$0xff] %v8927_v62 }
 0x186   :  { %13728 = vst [vmem:[#allocation126_spill] sm:$0xff] %v8930_v11 }
 0x187   :  { %13730 = vst [vmem:[#allocation127_spill] sm:$0xff] %v8934_v25  ;;  %v1070_v25 = vpop.f32.mrf.mxu1 }
 0x188   :  { %13732 = vst [vmem:[#allocation128_spill] sm:$0xff] %v8938_v16  ;;  %v13764_v16 = vld [vmem:[#allocation86_spill] sm:$0xff] }
 0x189   :  { %13735 = vst [vmem:[#allocation129_spill] sm:$0xff] %v8944_v14  ;;  %v9027_v12 = vmul.f32 %v8805_v60, %v13764_v16  ;;  %v6364_v16 = vmul.f32 -1.442695, %v8886_v46  ;;  %v1071_v60 = vadd.f32 %v1070_v25, %v981_v53  ;;  %v9053_v53 = vadd.f32 1.0, %v6807_v43 }
 0x18a   :  { %13738 = vst [vmem:[#allocation130_spill] sm:$0xff] %v8948_v41  ;;  %v13762_v41 = vld [vmem:[#allocation85_spill] sm:$0xff] }
 0x18b   :  { %13739 = vst [vmem:[#allocation131_spill] sm:$0xff] %v8951_v55  ;;  %v9021_v14 = vmul.f32 %v8795_v24, %v13762_v41  ;;  %v6533_v41 = vld [vmem:[%s12974_s2 + $0xd4] sm:$0xf]  ;;  %v9037_v24 = vpop.eup %6808 }
 0x18c   :  { %13741 = vst [vmem:[#allocation132_spill] sm:$0xff] %v8955_v57  ;;  %v9009_v57 = vmul.f32 %v8781_v13, %v13757_v45  ;;  %v6362_v45 = vmul.f32 -1.442695, %v8815_v36  ;;  %v1246_v13 = vpop.f32.mrf.mxu3  ;;  %v6047_v36 = vld [vmem:[%s12974_s2 + $0xe8] sm:$0xf0]  ;;  %v6811_v40 = vpop.eup %6810 }
 0x18d   :  { %13742 = vst [vmem:[#allocation133_spill] sm:$0xff] %v8963_v34  ;;  %v1247_v18 = vadd.f32 %v1246_v13, %v1157_v35  ;;  %v6050_v62 = vor.u32 %v6533_v41, %v6047_v36  ;;  %v6581_v35 = vld [vmem:[%s12974_s2 + $0x254] sm:$0xf]  ;;  %v6239_v13 = vld [vmem:[%s12974_s2 + $0x268] sm:$0xf0]  ;;  %v9049_v47 = vpop.eup %6812  ;;  %v9064_v43 = vadd.f32 1.0, %v6811_v40  ;;  %v9081_v40 = vmul.f32 %v8840_v15, %v8763_v63  ;;  %v984_v36 = vpop.f32.mrf.mxu0 }
 0x18e   :  { %13743 = vst [vmem:[#allocation134_spill] sm:$0xff] %v8969_v6  ;;  %v6242_v28 = vor.u32 %v6581_v35, %v6239_v13  ;;  %6824 = vpow2.f32 %v6362_v45  ;;  %v9055_v25 = vpop.eup %6814  ;;  %v9070_v45 = vmul.f32 %v8823_v20, %v8744_v59  ;;  %v6045_v63 = vld [vmem:[%s12974_s2 + $0xd0] sm:$0xf] }
 0x18f   :  { %13745 = vst [vmem:[#allocation135_spill] sm:$0xff] %v8972_v29  ;;  %1798 = vmatpush.bf16.msra.mxu2 %v6050_v62  ;;  %6826 = vpow2.f32 %v6363_v8  ;;  %v9060_v54 = vpop.eup %6816  ;;  %v9074_v8 = vmul.f32 %v8835_v26, %v8750_v30  ;;  %v6368_v13 = vmul.f32 -1.442695, %v1247_v18  ;;  %v1073_v30 = vpop.f32.mrf.mxu1  ;;  %v13780_v26 = vld [vmem:[#allocation23_spill] sm:$0xff] }
 0x190   :  { %13746 = vst [vmem:[#allocation136_spill] sm:$0xff] %v8977_v0  ;;  %1887 = vmatpush.bf16.msra.mxu3 %v6242_v28  ;;  %6828 = vpow2.f32 %v6364_v16  ;;  %v9066_v62 = vpop.eup %6818  ;;  %v1159_v28 = vpop.f32.mrf.mxu2  ;;  %v9085_v16 = vmul.f32 %v8848_v37, %v8779_v9  ;;  %v6536_v9 = vld [vmem:[%s12974_s2 + $0xe4] sm:$0xf0]  ;;  %v9100_v37 = vmul.f32 %v8906_v7, %v8825_v31  ;;  %v1074_v2 = vadd.f32 %v1073_v30, %v984_v36 }
 0x191   :  { %13748 = vst [vmem:[#allocation137_spill] sm:$0xff] %v8981_v56  ;;  %6830 = vpow2.f32 %v6365_v61  ;;  %v9077_v35 = vpop.eup %6820  ;;  %v6369_v61 = vmul.f32 -1.442695, %v1071_v60  ;;  %v6237_v60 = vld [vmem:[%s12974_s2 + $0x250] sm:$0xf]  ;;  %1299 = vmatmul.bf16.gmra.mxu0 %v13780_v26  ;;  %v13782_v36 = vld [vmem:[#allocation24_spill] sm:$0xff]  ;;  %1477 = vmatmul.bf16.gmra.mxu2 %v13780_v26  ;;  %v9156_v30 = vmul.f32 %v9013_v39, %v8930_v11 }
 0x192   :  { %13749 = vst [vmem:[#allocation138_spill] sm:$0xff] %v8985_v1  ;;  %6832 = vrcp.f32 %v9053_v53  ;;  %v6823_v41 = vpop.eup %6822  ;;  %1388 = vmatmul.bf16.gmra.mxu1 %v13782_v36  ;;  %1566 = vmatmul.bf16.gmra.mxu3 %v13782_v36 }
 0x193   :  { %13750 = vst [vmem:[#allocation139_spill] sm:$0xff] %v8988_v5  ;;  %6834 = vpow2.f32 %v6366_v52  ;;  %v6046_v52 = vor.u32 %v6536_v9, %v6045_v63  ;;  %v9112_v63 = vadd.f32 1.0, %v6823_v41  ;;  %v6371_v9 = vmul.f32 -1.442695, %v1074_v2 }
 0x194   :  { %13752 = vst [vmem:[#allocation140_spill] sm:$0xff] %v8992_v19  ;;  %v1248_v23 = vpop.f32.mrf.mxu3  ;;  %v6825_v18 = vpop.eup %6824  ;;  %6836 = vrcp.f32 %v9064_v43 }
 0x195   :  { %13753 = vst [vmem:[#allocation141_spill] sm:$0xff] %v8996_v17  ;;  %v1249_v46 = vadd.f32 %v1248_v23, %v1159_v28  ;;  %v6584_v23 = vld [vmem:[%s12974_s2 + $0x264] sm:$0xf0]  ;;  %v6827_v28 = vpop.eup %6826  ;;  %6838 = vpow2.f32 %v6367_v4  ;;  %1620 = vmatpush.bf16.msra.mxu0 %v6046_v52  ;;  %v9129_v4 = vmul.f32 %v8919_v38, %v8843_v27  ;;  %v986_v20 = vpop.f32.mrf.mxu0  ;;  %v13861_v38 = vld [vmem:[#allocation30_spill] sm:$0xff]  ;;  %v13872_v17 = vld [vmem:[#allocation31_spill] sm:$0xff] }
 0x196   :  { %13754 = vst [vmem:[#allocation142_spill] sm:$0xff] %v8999_v51  ;;  %v6238_v31 = vor.u32 %v6584_v23, %v6237_v60  ;;  %v6829_v7 = vpop.eup %6828  ;;  %6840 = vpow2.f32 %v6368_v13  ;;  %v9125_v13 = vadd.f32 1.0, %v6827_v28  ;;  %v9141_v28 = vmul.f32 %v8981_v56, %v8896_v58 }
 0x197   :  { %13755 = vst [vmem:[#allocation143_spill] sm:$0xff] %v9001_v22  ;;  %v6370_v15 = vmul.f32 -1.442695, %v1249_v46  ;;  %v6831_v59 = vpop.eup %6830  ;;  %v9118_v46 = vadd.f32 1.0, %v6825_v18  ;;  %6842 = vpow2.f32 %v6369_v61  ;;  %v9133_v61 = vmul.f32 %v8972_v29, %v8888_v21  ;;  %v9451_v29 = vld [vmem:[#allocation2 + $0xb0] sm:$0xff] }
 0x198   :  { %13756 = vst [vmem:[#allocation144_spill] sm:$0xff] %v9005_v49  ;;  %v9121_v60 = vpop.eup %6832  ;;  %1709 = vmatpush.bf16.msra.mxu1 %v6238_v31  ;;  %v9135_v18 = vadd.f32 1.0, %v6829_v7  ;;  %v1162_v52 = vpop.f32.mrf.mxu2  ;;  %v9145_v31 = vmul.f32 %v8988_v5, %v8909_v44 }
 0x199   :  { %13758 = vst [vmem:[#allocation145_spill] sm:$0xff] %v9009_v57  ;;  %6844 = vpow2.f32 %v6370_v15  ;;  %v6835_v23 = vpop.eup %6834  ;;  %v9148_v15 = vadd.f32 1.0, %v6831_v59  ;;  %v1075_v44 = vpop.f32.mrf.mxu1  ;;  %v9161_v59 = vmul.f32 %v9037_v24, %v8951_v55  ;;  %v48_v57 = vld [vmem:[#allocation2 + $0x40] sm:$0xff] }
 0x19a   :  { %13759 = vst [vmem:[#allocation146_spill] sm:$0xff] %v9013_v39  ;;  %6846 = vpow2.f32 %v6371_v9  ;;  %v9137_v41 = vpop.eup %6836  ;;  %v9152_v9 = vmul.f32 %v9001_v22, %v8917_v3  ;;  %v9164_v58 = vadd.f32 1.0, %v6835_v23  ;;  %v1076_v56 = vadd.f32 %v1075_v44, %v986_v20 }
 0x19b   :  { %13761 = vst [vmem:[#allocation147_spill] sm:$0xff] %v9017_v32  ;;  %6848 = vrcp.f32 %v9112_v63  ;;  %v6839_v7 = vpop.eup %6838  ;;  %v13805_v22 = vand.u32 2147483647, %v8526_v48  ;;  %v9206_v23 = vmul.f32 %v9060_v54, %v8977_v0  ;;  %v9223_v0 = vmul.f32 %v9121_v60, %v9053_v53 }
 0x19c   :  { %13763 = vst [vmem:[#allocation148_spill] sm:$0xff] %v9021_v14  ;;  %v1251_v2 = vpop.f32.mrf.mxu3  ;;  %6850 = vrcp.f32 %v9118_v46  ;;  %v6841_v5 = vpop.eup %6840  ;;  %v9171_v55 = vadd.f32 1.0, %v6839_v7 }
 0x19d   :  { %13765 = vst [vmem:[#allocation149_spill] sm:$0xff] %v9027_v12  ;;  %v1252_v42 = vadd.f32 %v1251_v2, %v1162_v52  ;;  %6852 = vrcp.f32 %v9125_v13  ;;  %v6843_v3 = vpop.eup %6842  ;;  %v9175_v44 = vadd.f32 1.0, %v6841_v5  ;;  %v9192_v5 = vmul.f32 %v9055_v25, %v8969_v6  ;;  %v989_v48 = vpop.f32.mrf.mxu0 }
 0x19e   :  { %13766 = vst [vmem:[#allocation150_spill] sm:$0xff] %v9037_v24  ;;  %6854 = vrcp.f32 %v9135_v18  ;;  %v6373_v24 = vmul.f32 -1.442695, %v1076_v56  ;;  %v9182_v52 = vadd.f32 1.0, %v6843_v3  ;;  %v9188_v56 = vmul.f32 %v9049_v47, %v8963_v34 }
 0x19f   :  { %13767 = vst [vmem:[#allocation151_spill] sm:$0xff] %v9049_v47  ;;  %v6372_v39 = vmul.f32 -1.442695, %v1252_v42  ;;  %v6845_v2 = vpop.eup %6844  ;;  %6856 = vrcp.f32 %v9148_v15  ;;  %vm9198_vm3 = vcmp.eq.f32.partialorder %v13805_v22, 8.507059e+37  ;;  %v9210_v6 = vmul.f32 %v9066_v62, %v8985_v1 }
 0x1a0   :  { %13768 = vst [vmem:[#allocation152_spill] sm:$0xff] %v9053_v53  ;;  %v6847_v21 = vpop.eup %6846  ;;  %v1164_v42 = vpop.f32.mrf.mxu2  ;;  %v13819_v53 = vld [vmem:[#allocation25_spill] sm:$0xff] }
 0x1a1   :  { %13769 = vst [vmem:[#allocation153_spill] sm:$0xff] %v9055_v25  ;;  %6858 = vpow2.f32 %v6372_v39  ;;  %v9177_v11 = vpop.eup %6848  ;;  %v9194_v39 = vadd.f32 1.0, %v6845_v2  ;;  %v9219_v25 = vmul.f32 %v9077_v35, %v8999_v51  ;;  %1304 = vmatmul.bf16.gmra.mxu0 %v13819_v53  ;;  %1482 = vmatmul.bf16.gmra.mxu2 %v13819_v53 }
 0x1a2   :  { %13770 = vst [vmem:[#allocation154_spill] sm:$0xff] %v9060_v54  ;;  %6860 = vrcp.f32 %v9164_v58  ;;  %v9184_v7 = vpop.eup %6850  ;;  %v9234_v34 = vmul.f32 %v9177_v11, %v9112_v63 }
 0x1a3   :  { %13771 = vst [vmem:[#allocation155_spill] sm:$0xff] %v9064_v43  ;;  %6862 = vpow2.f32 %v6373_v24  ;;  %v9202_v3 = vpop.eup %6852  ;;  %v9213_v24 = vadd.f32 1.0, %v6847_v21  ;;  %v9230_v21 = vmul.f32 %v9137_v41, %v9064_v43 }
 0x1a4   :  { %13772 = vst [vmem:[#allocation156_spill] sm:$0xff] %v9066_v62  ;;  %6864 = vrcp.f32 %v9171_v55  ;;  %v1253_v2 = vpop.f32.mrf.mxu3  ;;  %v9215_v22 = vpop.eup %6854 }
 0x1a5   :  { %13773 = vst [vmem:[#allocation157_spill] sm:$0xff] %v9070_v45  ;;  %6866 = vrcp.f32 %v9175_v44  ;;  %v1254_v1 = vadd.f32 %v1253_v2, %v1164_v42  ;;  %v1078_v62 = vpop.f32.mrf.mxu1  ;;  %v9226_v54 = vpop.eup %6856  ;;  %v9240_v42 = vmul.f32 %v9184_v7, %v9118_v46 }
 0x1a6   :  { %13774 = vst [vmem:[#allocation158_spill] sm:$0xff] %v9074_v8  ;;  %6868 = vrcp.f32 %v9182_v52  ;;  %v1079_v51 = vadd.f32 %v1078_v62, %v989_v48  ;;  %v13822_v48 = vld [vmem:[#allocation26_spill] sm:$0xff] }
 0x1a7   :  { %13775 = vst [vmem:[#allocation159_spill] sm:$0xff] %v9077_v35  ;;  %v6859_v35 = vpop.eup %6858  ;;  %6870 = vrcp.f32 %v9194_v39  ;;  %v6374_v2 = vmul.f32 -1.442695, %v1254_v1  ;;  %1393 = vmatmul.bf16.gmra.mxu1 %v13822_v48  ;;  %v9257_v1 = vld [vmem:[%s12976_s4] sm:$0xf]  ;;  %1571 = vmatmul.bf16.gmra.mxu3 %v13822_v48 }
 0x1a8   :  { %13776 = vst [vmem:[#allocation160_spill] sm:$0xff] %v9081_v40  ;;  %v9244_v43 = vpop.eup %6860  ;;  %6872 = vrcp.f32 %v9213_v24  ;;  %v6375_v62 = vmul.f32 -1.442695, %v1079_v51 }
 0x1a9   :  { %13777 = vst [vmem:[#allocation161_spill] sm:$0xff] %v9085_v16  ;;  %6874 = vpow2.f32 %v6374_v2  ;;  %v4028_v2 = vperm.slane %v9257_v1, 1 }
 0x1aa   :  { %13778 = vst [vmem:[#allocation162_spill] sm:$0xff] %v9090_v33  ;;  %6876 = vpow2.f32 %v6375_v62 }
 0x1ab   :  { %13779 = vst [vmem:[#allocation163_spill] sm:$0xff] %v9100_v37 }
 0x1ac   :  { %13781 = vst [vmem:[#allocation23_spill] sm:$0xff] %v9112_v63  ;;  %v1167_v63 = vpop.f32.mrf.mxu2 }
 0x1ad   :  { %13783 = vst [vmem:[#allocation24_spill] sm:$0xff] %v9118_v46  ;;  %v991_v46 = vpop.f32.mrf.mxu0 }
 0x1ae   :  { %13784 = vst [vmem:[#allocation164_spill] sm:$0xff] %v9121_v60  ;;  %v6863_v60 = vpop.eup %6862 }
 0x1af   :  { %13785 = vst [vmem:[#allocation165_spill] sm:$0xff] %v9125_v13  ;;  %v9263_v51 = vpop.eup %6864 }
 0x1b0   :  { %13786 = vst [vmem:[#allocation166_spill] sm:$0xff] %v9129_v4  ;;  %v9270_v47 = vpop.eup %6866 }
 0x1b1   :  { %13787 = vst [vmem:[#allocation167_spill] sm:$0xff] %v9133_v61 }
 0x1b2   :  { %13788 = vst [vmem:[#allocation168_spill] sm:$0xff] %v9135_v18 }
 0x1b3   :  { %13789 = vst [vmem:[#allocation169_spill] sm:$0xff] %v9137_v41  ;;  %v9283_v41 = vadd.f32 1.0, %v6863_v60 }
 0x1b4   :  { %13790 = vst [vmem:[#allocation170_spill] sm:$0xff] %v9141_v28 }
 0x1b5   :  { %13791 = vst [vmem:[#allocation171_spill] sm:$0xff] %v9145_v31 }
 0x1b6   :  { %13792 = vst [vmem:[#allocation172_spill] sm:$0xff] %v9148_v15 }
 0x1b7   :  { %13793 = vst [vmem:[#allocation173_spill] sm:$0xff] %v9152_v9 }
 0x1b8   :  { %13794 = vst [vmem:[#allocation174_spill] sm:$0xff] %v9156_v30 }
 0x1b9   :  { %13795 = vst [vmem:[#allocation175_spill] sm:$0xff] %v9161_v59 }
 0x1ba   :  { %13796 = vst [vmem:[#allocation176_spill] sm:$0xff] %v9164_v58 }
 0x1bb   :  { %13797 = vst [vmem:[#allocation177_spill] sm:$0xff] %v9171_v55 }
 0x1bc   :  { %13798 = vst [vmem:[#allocation178_spill] sm:$0xff] %v9175_v44 }
 0x1bd   :  { %13799 = vst [vmem:[#allocation179_spill] sm:$0xff] %v9177_v11  ;;  %v9249_v11 = vmul.f32 %v9202_v3, %v9125_v13  ;;  %v6527_v13 = vld [vmem:[%s12974_s2 + $0xa4] sm:$0xf] }
 0x1be   :  { %13800 = vst [vmem:[#allocation180_spill] sm:$0xff] %v9182_v52 }
 0x1bf   :  { %13801 = vst [vmem:[#allocation181_spill] sm:$0xff] %v9184_v7  ;;  %v6023_v7 = vld [vmem:[%s12974_s2 + $0xb8] sm:$0xf0] }
 0x1c0   :  { %13802 = vst [vmem:[#allocation182_spill] sm:$0xff] %v9188_v56  ;;  %v6026_v62 = vor.u32 %v6527_v13, %v6023_v7  ;;  %v9305_v13 = vmul.f32 %v9215_v22, %v9135_v18  ;;  %v4029_v56 = vperm.slane %v9257_v1, 3 }
 0x1c1   :  { %13803 = vst [vmem:[#allocation183_spill] sm:$0xff] %v9192_v5  ;;  %v9268_v5 = vadd.f32 1.0, %v6859_v35 }
 0x1c2   :  { %13804 = vst [vmem:[#allocation184_spill] sm:$0xff] %v9194_v39  ;;  %1799 = vmatpush.bf16.msra.mxu2 %v6026_v62 }
 0x1c3   :  { %13808 = vst [vmem:[#allocation185_spill] sm:$0xff] %v9202_v3  ;;  %v9280_v3 = vpop.eup %6868  ;;  %6878 = vrcp.f32 %v9268_v5 }
 0x1c4   :  { %13809 = vst [vmem:[#allocation186_spill] sm:$0xff] %v9206_v23  ;;  %v9301_v35 = vpop.eup %6870  ;;  %6880 = vrcp.f32 %v9283_v41 }
 0x1c5   :  { %13810 = vst [vmem:[#allocation187_spill] sm:$0xff] %v9210_v6  ;;  %v13830_v6 = vld [vmem:[#allocation118_spill] sm:$0xff]  ;;  %v9308_v10 = vpop.eup %6872 }
 0x1c6   :  { %13811 = vst [vmem:[#allocation188_spill] sm:$0xff] %v9213_v24 }
 0x1c7   :  { %13812 = vst [vmem:[#allocation189_spill] sm:$0xff] %v9215_v22 }
 0x1c8   :  { %13813 = vst [vmem:[#allocation190_spill] sm:$0xff] %v9219_v25 }
 0x1c9   :  { %13814 = vst [vmem:[#allocation191_spill] sm:$0xff] %v9223_v0  ;;  %v13828_v0 = vld [vmem:[#allocation113_spill] sm:$0xff] }
 0x1ca   :  { %13815 = vst [vmem:[#allocation192_spill] sm:$0xff] %v9226_v54  ;;  %v13829_v25 = vsel %vm8902_vm2, %v8553_v50, %v13828_v0  ;;  %v9312_v50 = vmul.f32 %v9226_v54, %v9148_v15  ;;  %v3190_v0 = vperm.slane %v9257_v1, 0  ;;  %v9382_v54 = vld [vmem:[#allocation2 + $0x80] sm:$0xff] }
 0x1cb   :  { %13816 = vst [vmem:[#allocation193_spill] sm:$0xff] %v9230_v21  ;;  %v6215_v21 = vld [vmem:[%s12974_s2 + $0x238] sm:$0xf0]  ;;  %v9299_v60 = vsel %vm9198_vm3, %v13830_v6, %v13829_v25  ;;  %v6875_v25 = vpop.eup %6874 }
 0x1cc   :  { %13817 = vst [vmem:[#allocation194_spill] sm:$0xff] %v9234_v34  ;;  %v1256_v34 = vpop.f32.mrf.mxu3  ;;  %v6877_v62 = vpop.eup %6876 }
 0x1cd   :  { %13818 = vst [vmem:[#allocation195_spill] sm:$0xff] %v9240_v42  ;;  %v6575_v42 = vld [vmem:[%s12974_s2 + $0x224] sm:$0xf]  ;;  %v1257_v7 = vadd.f32 %v1256_v34, %v1167_v63  ;;  %v9318_v34 = vmul.f32 %v9244_v43, %v9164_v58  ;;  %v9322_v63 = vmul.f32 %v9263_v51, %v9171_v55  ;;  %v9332_v58 = vmul.f32 %v9270_v47, %v9175_v44 }
 0x1ce   :  { %13820 = vst [vmem:[#allocation25_spill] sm:$0xff] %v9244_v43  ;;  %v6218_v23 = vor.u32 %v6575_v42, %v6215_v21  ;;  %v9324_v21 = vperm.slane %v4028_v2, 1  ;;  %v9327_v42 = vadd.f32 1.0, %v6875_v25  ;;  %v9338_v2 = vld [vmem:[#allocation2 + $0x20] sm:$0xff]  ;;  %v9353_v25 = vld [vmem:[#allocation2 + $0x28] sm:$0xff] }
 0x1cf   :  { %13821 = vst [vmem:[#allocation196_spill] sm:$0xff] %v9249_v11  ;;  %v1080_v11 = vpop.f32.mrf.mxu1  ;;  %v6376_v20 = vmul.f32 -1.442695, %v1257_v7  ;;  %v9344_v7 = vmul.f32 %v9301_v35, %v9194_v39  ;;  %v9359_v39 = vpop.eup %6878  ;;  %v6021_v43 = vld [vmem:[%s12974_s2 + $0xa0] sm:$0xf] }
 0x1d0   :  { %13823 = vst [vmem:[#allocation26_spill] sm:$0xff] %v9263_v51  ;;  %v1081_v6 = vadd.f32 %v1080_v11, %v991_v46  ;;  %1888 = vmatpush.bf16.msra.mxu3 %v6218_v23  ;;  %v3191_v46 = vperm.slane %v9257_v1, 2  ;;  %v9336_v51 = vmul.f32 %v9280_v3, %v9182_v52  ;;  %v9340_v23 = vperm.slane %v4029_v56, 1  ;;  %v1169_v56 = vpop.f32.mrf.mxu2  ;;  %v9368_v52 = vld [vmem:[#allocation2 + $0x58] sm:$0xff] }
 0x1d1   :  { %13824 = vst [vmem:[#allocation197_spill] sm:$0xff] %v9268_v5  ;;  %6882 = vpow2.f32 %v6376_v20  ;;  %v9348_v1 = vmul.f32 %v9308_v10, %v9213_v24  ;;  %v4034_v44 = vadd.f32 %v9324_v21, %v9338_v2  ;;  %v9366_v20 = vld [vmem:[#allocation2 + $0x50] sm:$0xff] }
 0x1d2   :  { %13825 = vst [vmem:[#allocation198_spill] sm:$0xff] %v9270_v47  ;;  %v6377_v11 = vmul.f32 -1.442695, %v1081_v6  ;;  %6884 = vrcp.f32 %v9327_v42  ;;  %v9351_v6 = vadd.f32 1.0, %v6877_v62  ;;  %v9371_v55 = vperm.slane %v3191_v46, 0 }
 0x1d3   :  { %13826 = vst [vmem:[#allocation199_spill] sm:$0xff] %v9280_v3  ;;  %v9357_v3 = vperm.slane %v3190_v0, 0  ;;  %v9375_v24 = vadd.f32 %v9340_v23, %v9353_v25  ;;  %v9386_v46 = vmul.f32 %v9359_v39, %v9268_v5 }
 0x1d4   :  { %13827 = vst [vmem:[#allocation200_spill] sm:$0xff] %v9283_v41  ;;  %6886 = vpow2.f32 %v6377_v11  ;;  %v1258_v62 = vpop.f32.mrf.mxu3 }
 0x1d5   :  { %13831 = vst [vmem:[#allocation113_spill] sm:$0xff] %v9301_v35  ;;  %6888 = vrcp.f32 %v9351_v6  ;;  %v1259_v11 = vadd.f32 %v1258_v62, %v1169_v56  ;;  %v9377_v35 = vpop.eup %6880  ;;  %v13846_v62 = vld [vmem:[#allocation27_spill] sm:$0xff] }
 0x1d6   :  { %13832 = vst [vmem:[#allocation118_spill] sm:$0xff] %v9305_v13  ;;  %1309 = vmatmul.bf16.gmra.mxu0 %v13846_v62  ;;  %1487 = vmatmul.bf16.gmra.mxu2 %v13846_v62  ;;  %v9420_v18 = vmul.f32 %v9377_v35, %v9283_v41 }
 0x1d7   :  { %13833 = vst [vmem:[#allocation201_spill] sm:$0xff] %v9308_v10  ;;  %v1270_v10 = vpop.f32.mrf.mxu0  ;;  %v1359_v47 = vpop.f32.mrf.mxu1  ;;  %v6378_v56 = vmul.f32 -1.442695, %v1259_v11 }
 0x1d8   :  { %13834 = vst [vmem:[#allocation202_spill] sm:$0xff] %v9312_v50  ;;  %v1360_v15 = vadd.f32 %v1359_v47, %v1270_v10  ;;  %v6883_v0 = vpop.eup %6882  ;;  %v6530_v47 = vld [vmem:[%s12974_s2 + $0xb4] sm:$0xf0]  ;;  %v9401_v10 = vadd.f32 %v9340_v23, %v9368_v52  ;;  %v9416_v50 = vld [vmem:[#allocation2 + $0x88] sm:$0xff]  ;;  %v1448_v41 = vpop.f32.mrf.mxu2 }
 0x1d9   :  { %13835 = vst [vmem:[#allocation203_spill] sm:$0xff] %v9318_v34  ;;  %v9403_v34 = vpop.eup %6884  ;;  %v9405_v11 = vadd.f32 1.0, %v6883_v0  ;;  %6890 = vpow2.f32 %v6378_v56 }
 0x1da   :  { %13836 = vst [vmem:[#allocation204_spill] sm:$0xff] %v9322_v63  ;;  %v3196_v63 = vadd.f32 %v9357_v3, %v1360_v15  ;;  %v4098_v5 = vmax.f32 %v4034_v44, %v1360_v15  ;;  %v6887_v0 = vpop.eup %6886 }
 0x1db   :  { %13837 = vst [vmem:[#allocation205_spill] sm:$0xff] %v9327_v42  ;;  %6892 = vrcp.f32 %v9405_v11  ;;  %v9430_v13 = vadd.f32 1.0, %v6887_v0 }
 0x1dc   :  { %13838 = vst [vmem:[#allocation206_spill] sm:$0xff] %v9332_v58  ;;  %v9391_v58 = vadd.f32 %v9324_v21, %v9366_v20  ;;  %v3260_v59 = vmax.f32 %v9338_v2, %v3196_v63  ;;  %v4162_v30 = vsub.f32 %v4034_v44, %v4098_v5 }
 0x1dd   :  { %13839 = vst [vmem:[#allocation207_spill] sm:$0xff] %v9336_v51  ;;  %v6578_v51 = vld [vmem:[%s12974_s2 + $0x234] sm:$0xf0]  ;;  %6894 = vrcp.f32 %v9430_v13 }
 0x1de   :  { %13840 = vst [vmem:[#allocation208_spill] sm:$0xff] %v9344_v7  ;;  %v6213_v7 = vld [vmem:[%s12974_s2 + $0x220] sm:$0xf]  ;;  %v3324_v0 = vsub.f32 %v9338_v2, %v3260_v59  ;;  %v3516_v44 = vsub.f32 %v3196_v63, %v3260_v59  ;;  %v4226_v9 = vmul.f32 1.442695, %v4162_v30 }
 0x1df   :  { %13841 = vst [vmem:[#allocation209_spill] sm:$0xff] %v9348_v1  ;;  %v6022_v1 = vor.u32 %v6530_v47, %v6021_v43  ;;  %v6214_v22 = vor.u32 %v6578_v51, %v6213_v7  ;;  %v9425_v43 = vadd.f32 %v9324_v21, %v9382_v54  ;;  %v9427_v47 = vpop.eup %6888  ;;  %v9436_v51 = vmul.f32 %v9403_v34, %v9327_v42  ;;  %v1272_v31 = vpop.f32.mrf.mxu0 }
 0x1e0   :  { %13842 = vst [vmem:[#allocation210_spill] sm:$0xff] %v9351_v6  ;;  %v4354_v7 = vsub.f32 %v1360_v15, %v4098_v5  ;;  %v9447_v42 = vmul.f32 %v9427_v47, %v9351_v6  ;;  %6896 = vpow2.f32 %v4226_v9  ;;  %v6891_v59 = vpop.eup %6890  ;;  %v1450_v6 = vpop.f32.mrf.mxu2 }
 0x1e1   :  { %13843 = vst [vmem:[#allocation211_spill] sm:$0xff] %v9359_v39  ;;  %v13849_v39 = vld [vmem:[#allocation28_spill] sm:$0xff]  ;;  %1621 = vmatpush.bf16.msra.mxu0 %v6022_v1  ;;  %1710 = vmatpush.bf16.msra.mxu1 %v6214_v22  ;;  %v1537_v1 = vpop.f32.mrf.mxu3  ;;  %v1361_v22 = vpop.f32.mrf.mxu1 }
 0x1e2   :  { %13844 = vst [vmem:[#allocation212_spill] sm:$0xff] %v9377_v35  ;;  %1398 = vmatmul.bf16.gmra.mxu1 %v13849_v39  ;;  %1576 = vmatmul.bf16.gmra.mxu3 %v13849_v39  ;;  %v9440_v35 = vadd.f32 %v9340_v23, %v9416_v50  ;;  %v4418_v15 = vmul.f32 1.442695, %v4354_v7  ;;  %v9449_v28 = vadd.f32 %v1361_v22, %v1272_v31  ;;  %v9456_v56 = vpop.eup %6892  ;;  %v9458_v7 = vadd.f32 1.0, %v6891_v59  ;;  %v42_v22 = vld [vmem:[#allocation2 + $0x10] sm:$0xff] }
 0x1e3   :  { %13845 = vst [vmem:[#allocation213_spill] sm:$0xff] %v9386_v46  ;;  %v3580_v46 = vmul.f32 1.442695, %v3516_v44  ;;  %v9468_v44 = vadd.f32 %v9324_v21, %v9451_v29 }
 0x1e4   :  { %13847 = vst [vmem:[#allocation27_spill] sm:$0xff] %v9403_v34  ;;  %v3388_v34 = vmul.f32 1.442695, %v3324_v0  ;;  %6898 = vpow2.f32 %v4418_v15  ;;  %v4100_v31 = vmax.f32 %v9391_v58, %v9449_v28  ;;  %v9475_v15 = vmul.f32 %v9456_v56, %v9405_v11 }
 0x1e5   :  { %13848 = vst [vmem:[#allocation214_spill] sm:$0xff] %v9405_v11 }
 0x1e6   :  { %13850 = vst [vmem:[#allocation28_spill] sm:$0xff] %v9420_v18  ;;  %6900 = vpow2.f32 %v3388_v34 }
 0x1e7   :  { %13851 = vst [vmem:[#allocation215_spill] sm:$0xff] %v9427_v47  ;;  %6902 = vpow2.f32 %v3580_v46  ;;  %v4164_v47 = vsub.f32 %v9391_v58, %v4100_v31 }
 0x1e8   :  { %13852 = vst [vmem:[#allocation216_spill] sm:$0xff] %v9430_v13  ;;  %6904 = vrcp.f32 %v9458_v7 }
 0x1e9   :  { %4994 = vst [vmem:[#allocation6 + $0x20] sm:$0xff] %v4098_v5  ;;  %v1538_v5 = vadd.f32 %v1537_v1, %v1448_v41  ;;  %v3198_v41 = vadd.f32 %v9357_v3, %v9449_v28  ;;  %v9470_v1 = vpop.eup %6894  ;;  %v1364_v61 = vpop.f32.mrf.mxu1 }
 0x1ea   :  { %13853 = vst [vmem:[#allocation217_spill] sm:$0xff] %v9436_v51  ;;  %v9481_v51 = vpop.eup %6896  ;;  %v9485_v34 = vmul.f32 %v9470_v1, %v9430_v13 }
 0x1eb   :  { %13854 = vst [vmem:[#allocation218_spill] sm:$0xff] %v9447_v42  ;;  %v3197_v63 = vadd.f32 %v9371_v55, %v1538_v5  ;;  %v4099_v2 = vmax.f32 %v9375_v24, %v1538_v5  ;;  %v3262_v46 = vmax.f32 %v9366_v20, %v3198_v41  ;;  %v1275_v42 = vpop.f32.mrf.mxu0  ;;  %v9488_v18 = vpop.eup %6898 }
 0x1ec   :  { %13855 = vst [vmem:[#allocation219_spill] sm:$0xff] %v9456_v56  ;;  %v1539_v56 = vpop.f32.mrf.mxu3  ;;  %v9491_v27 = vpop.eup %6900  ;;  %v9500_v4 = vadd.f32 %v1364_v61, %v1275_v42  ;;  %v43_v61 = vld [vmem:[#allocation2 + $0x18] sm:$0xff] }
 0x1ed   :  { %13856 = vst [vmem:[#allocation220_spill] sm:$0xff] %v9458_v7  ;;  %v3261_v9 = vmax.f32 %v9353_v25, %v3197_v63  ;;  %v4163_v0 = vsub.f32 %v9375_v24, %v4099_v2  ;;  %v4355_v59 = vsub.f32 %v1538_v5, %v4099_v2  ;;  %v3326_v5 = vsub.f32 %v9366_v20, %v3262_v46 }
 0x1ee   :  { %4995 = vst [vmem:[#allocation6 + $0x28] sm:$0xff] %v4099_v2  ;;  %v3518_v2 = vsub.f32 %v3198_v41, %v3262_v46  ;;  %v3900_v20 = vmul.f32 %v9491_v27, %v42_v22  ;;  %v4356_v46 = vsub.f32 %v9449_v28, %v4100_v31 }
 0x1ef   :  { %13857 = vst [vmem:[#allocation221_spill] sm:$0xff] %v9470_v1  ;;  %v3325_v24 = vsub.f32 %v9353_v25, %v3261_v9  ;;  %v3517_v30 = vsub.f32 %v3197_v63, %v3261_v9  ;;  %v4228_v11 = vmul.f32 1.442695, %v4163_v0  ;;  %v4802_v25 = vmul.f32 %v9481_v51, %v42_v22  ;;  %v9494_v1 = vpop.eup %6902 }
 0x1f0   :  { %13858 = vst [vmem:[#allocation222_spill] sm:$0xff] %v9475_v15  ;;  %v4420_v58 = vmul.f32 1.442695, %v4355_v59  ;;  %v3392_v13 = vmul.f32 1.442695, %v3326_v5  ;;  %v1540_v59 = vadd.f32 %v1539_v56, %v1450_v6  ;;  %v9506_v5 = vld [vmem:[#allocation2 + $0xe0] sm:$0xff]  ;;  %v9508_v22 = vpop.eup %6904  ;;  %v9512_v28 = vadd.f32 %v9494_v1, %v3900_v20 }
 0x1f1   :  { %4996 = vst [vmem:[#allocation6 + $0x50] sm:$0xff] %v4100_v31  ;;  %v3390_v63 = vmul.f32 1.442695, %v3325_v24  ;;  %v3582_v9 = vmul.f32 1.442695, %v3517_v30  ;;  %6906 = vpow2.f32 %v4228_v11  ;;  %v4866_v41 = vadd.f32 %v9488_v18, %v4802_v25  ;;  %v13860_v24 = vld [vmem:[#allocation29_spill] sm:$0xff]  ;;  %v1453_v25 = vpop.f32.mrf.mxu2  ;;  %v1366_v33 = vpop.f32.mrf.mxu1 }
 0x1f2   :  { %13859 = vst [vmem:[#allocation223_spill] sm:$0xff] %v9485_v34  ;;  %v3584_v0 = vmul.f32 1.442695, %v3518_v2  ;;  %1314 = vmatmul.bf16.gmra.mxu0 %v13860_v24  ;;  %v4230_v30 = vmul.f32 1.442695, %v4164_v47  ;;  %1403 = vmatmul.bf16.gmra.mxu1 %v13861_v38  ;;  %v9504_v11 = vld [vmem:[#allocation2 + $0xb8] sm:$0xff]  ;;  %v3199_v42 = vadd.f32 %v9371_v55, %v1540_v59  ;;  %v4101_v47 = vmax.f32 %v9401_v10, %v1540_v59 }
 0x1f3   :  { %6908 = vpow2.f32 %v3390_v63  ;;  %1492 = vmatmul.bf16.gmra.mxu2 %v13860_v24  ;;  %13862 = vst [vmem:[#allocation29_spill] sm:$0xff] %v9508_v22  ;;  %v4422_v6 = vmul.f32 1.442695, %v4356_v46  ;;  %1581 = vmatmul.bf16.gmra.mxu3 %v13861_v38  ;;  %v3200_v56 = vadd.f32 %v9357_v3, %v9500_v4  ;;  %v4102_v31 = vmax.f32 %v9425_v43, %v9500_v4  ;;  %v1277_v46 = vpop.f32.mrf.mxu0 }
 0x1f4   :  { %6910 = vpow2.f32 %v3582_v9  ;;  %4930 = vst [vmem:[#allocation6 + $0x10] sm:$0xff] %v4866_v41  ;;  %v9523_v63 = vadd.f32 %v9340_v23, %v9504_v11  ;;  %v9527_v9 = vadd.f32 %v9324_v21, %v9506_v5  ;;  %v4165_v20 = vsub.f32 %v9401_v10, %v4101_v47  ;;  %v1542_v41 = vpop.f32.mrf.mxu3 }
 0x1f5   :  { %6912 = vpow2.f32 %v4420_v58  ;;  %v3263_v58 = vmax.f32 %v9368_v52, %v3199_v42  ;;  %4997 = vst [vmem:[#allocation6 + $0x58] sm:$0xff] %v4101_v47  ;;  %v3264_v15 = vmax.f32 %v9382_v54, %v3200_v56  ;;  %v4166_v37 = vsub.f32 %v9425_v43, %v4102_v31 }
 0x1f6   :  { %6914 = vpow2.f32 %v3392_v13  ;;  %4998 = vst [vmem:[#allocation6 + $0x80] sm:$0xff] %v4102_v31 }
 0x1f7   :  { %6916 = vpow2.f32 %v3584_v0  ;;  %v9529_v13 = vpop.eup %6906  ;;  %v4357_v0 = vsub.f32 %v1540_v59, %v4101_v47  ;;  %v3327_v10 = vsub.f32 %v9368_v52, %v3263_v58  ;;  %v3519_v59 = vsub.f32 %v3199_v42, %v3263_v58  ;;  %v9551_v52 = vld [vmem:[#allocation2 + $0xe8] sm:$0xff] }
 0x1f8   :  { %13863 = vst [vmem:[#allocation30_spill] sm:$0xff] %v9529_v13  ;;  %6918 = vpow2.f32 %v4230_v30  ;;  %v4803_v34 = vmul.f32 %v9529_v13, %v43_v61  ;;  %v4232_v47 = vmul.f32 1.442695, %v4165_v20  ;;  %v3328_v45 = vsub.f32 %v9382_v54, %v3264_v15 }
 0x1f9   :  { %v9533_v2 = vpop.eup %6908  ;;  %6920 = vpow2.f32 %v4422_v6  ;;  %v4424_v8 = vmul.f32 1.442695, %v4357_v0  ;;  %v3520_v6 = vsub.f32 %v3200_v56, %v3264_v15  ;;  %v4234_v12 = vmul.f32 1.442695, %v4166_v37 }
 0x1fa   :  { %v9538_v30 = vpop.eup %6910  ;;  %v3901_v16 = vmul.f32 %v9533_v2, %v43_v61  ;;  %v3394_v61 = vmul.f32 1.442695, %v3327_v10  ;;  %v3586_v49 = vmul.f32 1.442695, %v3519_v59  ;;  %6922 = vpow2.f32 %v4232_v47  ;;  %v1455_v59 = vpop.f32.mrf.mxu2 }
 0x1fb   :  { %v9542_v40 = vpop.eup %6912  ;;  %v3396_v54 = vmul.f32 1.442695, %v3328_v45  ;;  %v3588_v15 = vmul.f32 1.442695, %v3520_v6  ;;  %v1543_v56 = vadd.f32 %v1542_v41, %v1453_v25  ;;  %v9569_v45 = vadd.f32 %v9340_v23, %v9551_v52  ;;  %v1280_v25 = vpop.f32.mrf.mxu0 }
 0x1fc   :  { %13864 = vst [vmem:[#allocation224_spill] sm:$0xff] %v9542_v40  ;;  %v9545_v14 = vpop.eup %6914  ;;  %v9548_v43 = vadd.f32 %v9538_v30, %v3901_v16  ;;  %v4867_v32 = vadd.f32 %v9542_v40, %v4803_v34  ;;  %6924 = vpow2.f32 %v3394_v61  ;;  %v4358_v16 = vsub.f32 %v9500_v4, %v4102_v31  ;;  %v1544_v31 = vpop.f32.mrf.mxu3 }
 0x1fd   :  { %13865 = vst [vmem:[#allocation225_spill] sm:$0xff] %v9545_v14  ;;  %v9553_v42 = vpop.eup %6916  ;;  %v3902_v58 = vmul.f32 %v9545_v14, %v48_v57  ;;  %v9559_v34 = vadd.f32 %v1366_v33, %v1277_v46  ;;  %6926 = vpow2.f32 %v3586_v49  ;;  %v3201_v4 = vadd.f32 %v9371_v55, %v1543_v56  ;;  %v49_v46 = vld [vmem:[#allocation2 + $0x48] sm:$0xff]  ;;  %v1369_v47 = vpop.f32.mrf.mxu1 }
 0x1fe   :  { %13866 = vst [vmem:[#allocation226_spill] sm:$0xff] %v9548_v43  ;;  %v9556_v37 = vpop.eup %6918  ;;  %6928 = vpow2.f32 %v4424_v8  ;;  %v4103_v33 = vmax.f32 %v9440_v35, %v1543_v56 }
 0x1ff   :  { %13867 = vst [vmem:[#allocation227_spill] sm:$0xff] %v9553_v42  ;;  %v9561_v20 = vpop.eup %6920  ;;  %v9564_v0 = vadd.f32 %v9553_v42, %v3902_v58  ;;  %v4804_v10 = vmul.f32 %v9556_v37, %v48_v57  ;;  %6930 = vpow2.f32 %v3396_v54  ;;  %v3202_v57 = vadd.f32 %v9357_v3, %v9559_v34 }
 0x200   :  { %13868 = vst [vmem:[#allocation228_spill] sm:$0xff] %v9556_v37  ;;  %v4104_v49 = vmax.f32 %v9468_v44, %v9559_v34  ;;  %6932 = vpow2.f32 %v3588_v15  ;;  %v3265_v8 = vmax.f32 %v9416_v50, %v3201_v4  ;;  %v4167_v6 = vsub.f32 %v9440_v35, %v4103_v33  ;;  %v9580_v58 = vpop.eup %6922 }
 0x201   :  { %4931 = vst [vmem:[#allocation6 + $0x18] sm:$0xff] %v4867_v32  ;;  %v4426_v32 = vmul.f32 1.442695, %v4358_v16  ;;  %v4868_v41 = vadd.f32 %v9561_v20, %v4804_v10  ;;  %v4359_v61 = vsub.f32 %v1543_v56, %v4103_v33  ;;  %6934 = vpow2.f32 %v4234_v12  ;;  %v6521_v12 = vld [vmem:[%s12974_s2 + $0x74] sm:$0xf] }
 0x202   :  { %13869 = vst [vmem:[#allocation229_spill] sm:$0xff] %v9561_v20  ;;  %v3266_v54 = vmax.f32 %v9451_v29, %v3202_v57  ;;  %v4168_v16 = vsub.f32 %v9468_v44, %v4104_v49  ;;  %v4360_v10 = vsub.f32 %v9559_v34, %v4104_v49  ;;  %1319 = vmatmul.bf16.gmra.mxu0 %v13872_v17  ;;  %v9586_v19 = vpop.eup %6924  ;;  %v5999_v44 = vld [vmem:[%s12974_s2 + $0x88] sm:$0xf0]  ;;  %v6569_v34 = vld [vmem:[%s12974_s2 + $0x1f4] sm:$0xf] }
 0x203   :  { %13870 = vst [vmem:[#allocation230_spill] sm:$0xff] %v9564_v0  ;;  %v4805_v15 = vmul.f32 %v9580_v58, %v49_v46  ;;  %6936 = vpow2.f32 %v4426_v32  ;;  %v3329_v35 = vsub.f32 %v9416_v50, %v3265_v8  ;;  %v3521_v56 = vsub.f32 %v3201_v4, %v3265_v8  ;;  %1497 = vmatmul.bf16.gmra.mxu2 %v13872_v17  ;;  %v6191_v8 = vld [vmem:[%s12974_s2 + $0x208] sm:$0xf0] }
 0x204   :  { %4999 = vst [vmem:[#allocation6 + $0x88] sm:$0xff] %v4103_v33  ;;  %v13874_v33 = vld [vmem:[#allocation32_spill] sm:$0xff]  ;;  %v3903_v50 = vmul.f32 %v9586_v19, %v49_v46  ;;  %v4236_v32 = vmul.f32 1.442695, %v4167_v6  ;;  %v4428_v4 = vmul.f32 1.442695, %v4359_v61  ;;  %v3522_v37 = vsub.f32 %v3202_v57, %v3266_v54  ;;  %v9619_v57 = vpop.f32.mrf.mxu0 }
 0x205   :  { %13871 = vst [vmem:[#allocation231_spill] sm:$0xff] %v9580_v58  ;;  %1408 = vmatmul.bf16.gmra.mxu1 %v13874_v33  ;;  %1586 = vmatmul.bf16.gmra.mxu3 %v13874_v33  ;;  %v3398_v0 = vmul.f32 1.442695, %v3329_v35  ;;  %v3590_v20 = vmul.f32 1.442695, %v3521_v56  ;;  %v54_v6 = vld [vmem:[#allocation2 + $0x70] sm:$0xff]  ;;  %v1545_v35 = vadd.f32 %v1544_v31, %v1455_v59  ;;  %v1547_v56 = vpop.f32.mrf.mxu3 }
 0x206   :  { %4932 = vst [vmem:[#allocation6 + $0x40] sm:$0xff] %v4868_v41  ;;  %v9600_v41 = vpop.eup %6926  ;;  %v4238_v42 = vmul.f32 1.442695, %v4168_v16  ;;  %6938 = vpow2.f32 %v4236_v32  ;;  %v3592_v40 = vmul.f32 1.442695, %v3522_v37  ;;  %v1370_v16 = vadd.f32 %v1369_v47, %v1280_v25  ;;  %v55_v59 = vld [vmem:[#allocation2 + $0x78] sm:$0xff] }
 0x207   :  { %13873 = vst [vmem:[#allocation31_spill] sm:$0xff] %v9586_v19  ;;  %v9609_v58 = vpop.eup %6928  ;;  %v9614_v46 = vadd.f32 %v9600_v41, %v3903_v50  ;;  %v1458_v19 = vpop.f32.mrf.mxu2  ;;  %6940 = vpow2.f32 %v3398_v0  ;;  %v4430_v13 = vmul.f32 1.442695, %v4360_v10  ;;  %v6002_v50 = vor.u32 %v6521_v12, %v5999_v44 }
 0x208   :  { %5000 = vst [vmem:[#allocation6 + $0xb0] sm:$0xff] %v4104_v49  ;;  %v3330_v49 = vsub.f32 %v9451_v29, %v3266_v54  ;;  %v9611_v14 = vpop.eup %6930  ;;  %v4869_v29 = vadd.f32 %v9609_v58, %v4805_v15  ;;  %6942 = vpow2.f32 %v3590_v20  ;;  %v6194_v15 = vor.u32 %v6569_v34, %v6191_v8 }
 0x209   :  { %13875 = vst [vmem:[#allocation32_spill] sm:$0xff] %v9600_v41  ;;  %v9617_v43 = vpop.eup %6932  ;;  %6944 = vpow2.f32 %v4428_v4  ;;  %v3203_v37 = vadd.f32 %v9371_v55, %v1545_v35  ;;  %v4105_v0 = vmax.f32 %v9523_v63, %v1545_v35  ;;  %v3204_v31 = vadd.f32 %v9357_v3, %v1370_v16  ;;  %1800 = vmatpush.bf16.msra.mxu2 %v6002_v50 }
 0x20a   :  { %13876 = vst [vmem:[#allocation232_spill] sm:$0xff] %v9609_v58  ;;  %v3400_v61 = vmul.f32 1.442695, %v3330_v49  ;;  %v9621_v54 = vpop.eup %6934  ;;  %v4106_v10 = vmax.f32 %v9527_v9, %v1370_v16  ;;  %1889 = vmatpush.bf16.msra.mxu3 %v6194_v15  ;;  %v9630_v20 = vadd.f32 %v1547_v56, %v1458_v19 }
 0x20b   :  { %13877 = vst [vmem:[#allocation233_spill] sm:$0xff] %v9611_v14  ;;  %v1371_v14 = vpop.f32.mrf.mxu1  ;;  %v9623_v32 = vpop.eup %6936  ;;  %v4806_v49 = vmul.f32 %v9621_v54, %v54_v6  ;;  %v3267_v47 = vmax.f32 %v9504_v11, %v3203_v37  ;;  %v4169_v12 = vsub.f32 %v9523_v63, %v4105_v0  ;;  %v4361_v34 = vsub.f32 %v1545_v35, %v4105_v0  ;;  %v9643_v63 = vld [vmem:[#allocation2 + $0x110] sm:$0xff] }
 0x20c   :  { %13878 = vst [vmem:[#allocation234_spill] sm:$0xff] %v9614_v46  ;;  %6946 = vpow2.f32 %v3400_v61  ;;  %v9635_v44 = vpop.eup %6938  ;;  %v3268_v4 = vmax.f32 %v9506_v5, %v3204_v31  ;;  %v4170_v8 = vsub.f32 %v9527_v9, %v4106_v10  ;;  %v9853_v46 = vld [vmem:[#allocation2 + $0x1a8] sm:$0xff] }
 0x20d   :  { %13879 = vst [vmem:[#allocation235_spill] sm:$0xff] %v9617_v43  ;;  %v4870_v25 = vadd.f32 %v9623_v32, %v4806_v49  ;;  %6948 = vpow2.f32 %v3592_v40  ;;  %v4807_v19 = vmul.f32 %v9635_v44, %v55_v59  ;;  %v3331_v40 = vsub.f32 %v9504_v11, %v3267_v47 }
 0x20e   :  { %13880 = vst [vmem:[#allocation236_spill] sm:$0xff] %v9621_v54  ;;  %6950 = vpow2.f32 %v4238_v42  ;;  %v3523_v6 = vsub.f32 %v3203_v37, %v3267_v47  ;;  %v5997_v42 = vld [vmem:[%s12974_s2 + $0x70] sm:$0xf]  ;;  %v4240_v35 = vmul.f32 1.442695, %v4169_v12  ;;  %v3332_v56 = vsub.f32 %v9506_v5, %v3268_v4  ;;  %v9660_v47 = vpop.f32.mrf.mxu0 }
 0x20f   :  { %4933 = vst [vmem:[#allocation6 + $0x48] sm:$0xff] %v4869_v29  ;;  %v9639_v29 = vpop.eup %6940  ;;  %6952 = vpow2.f32 %v4430_v13  ;;  %v4432_v9 = vmul.f32 1.442695, %v4361_v34  ;;  %v3524_v50 = vsub.f32 %v3204_v31, %v3268_v4  ;;  %v6524_v13 = vld [vmem:[%s12974_s2 + $0x84] sm:$0xf0]  ;;  %v9654_v15 = vpop.f32.mrf.mxu2  ;;  %v4362_v59 = vsub.f32 %v1370_v16, %v4106_v10  ;;  %v60_v31 = vld [vmem:[#allocation2 + $0xa0] sm:$0xff] }
 0x210   :  { %13881 = vst [vmem:[#allocation237_spill] sm:$0xff] %v9623_v32  ;;  %v9648_v61 = vpop.eup %6942  ;;  %v3402_v49 = vmul.f32 1.442695, %v3331_v40  ;;  %v3594_v37 = vmul.f32 1.442695, %v3523_v6  ;;  %6954 = vpow2.f32 %v4240_v35  ;;  %v3205_v16 = vadd.f32 %v9371_v55, %v9630_v20 }
 0x211   :  { %5001 = vst [vmem:[#allocation6 + $0xb8] sm:$0xff] %v4105_v0  ;;  %v9656_v11 = vpop.eup %6944  ;;  %v4242_v0 = vmul.f32 1.442695, %v4170_v8  ;;  %v3404_v34 = vmul.f32 1.442695, %v3332_v56  ;;  %v4044_v6 = vadd.f32 %v9324_v21, %v9643_v63  ;;  %v5998_v35 = vor.u32 %v6524_v13, %v5997_v42  ;;  %v13889_v56 = vld [vmem:[#allocation33_spill] sm:$0xff] }
 0x212   :  { %13882 = vst [vmem:[#allocation238_spill] sm:$0xff] %v9635_v44  ;;  %v9662_v12 = vpop.eup %6946  ;;  %v4871_v5 = vadd.f32 %v9656_v11, %v4807_v19  ;;  %v3596_v4 = vmul.f32 1.442695, %v3524_v50  ;;  %6956 = vpow2.f32 %v3402_v49  ;;  %v4434_v40 = vmul.f32 1.442695, %v4362_v59  ;;  %1324 = vmatmul.bf16.gmra.mxu0 %v13889_v56 }
 0x213   :  { %5002 = vst [vmem:[#allocation6 + $0xe0] sm:$0xff] %v4106_v10  ;;  %v9665_v44 = vpop.f32.mrf.mxu1  ;;  %v4107_v10 = vmax.f32 %v9569_v45, %v9630_v20  ;;  %6958 = vpow2.f32 %v3594_v37  ;;  %v1372_v19 = vadd.f32 %v1371_v14, %v9619_v57  ;;  %v3269_v59 = vmax.f32 %v9551_v52, %v3205_v16  ;;  %v61_v37 = vld [vmem:[#allocation2 + $0xa8] sm:$0xff]  ;;  %1622 = vmatpush.bf16.msra.mxu0 %v5998_v35 }
 0x214   :  { %13883 = vst [vmem:[#allocation239_spill] sm:$0xff] %v9639_v29  ;;  %6960 = vpow2.f32 %v4432_v9  ;;  %1502 = vmatmul.bf16.gmra.mxu2 %v13889_v56 }
 0x215   :  { %4934 = vst [vmem:[#allocation6 + $0x70] sm:$0xff] %v4870_v25  ;;  %v9658_v25 = vpop.f32.mrf.mxu3  ;;  %6962 = vpow2.f32 %v3404_v34  ;;  %v4363_v14 = vsub.f32 %v9630_v20, %v4107_v10  ;;  %v3206_v57 = vadd.f32 %v9357_v3, %v1372_v19  ;;  %v4108_v42 = vmax.f32 %v4044_v6, %v1372_v19  ;;  %v6572_v20 = vld [vmem:[%s12974_s2 + $0x204] sm:$0xf0] }
 0x216   :  { %13884 = vst [vmem:[#allocation240_spill] sm:$0xff] %v9648_v61  ;;  %v9667_v61 = vpop.eup %6948  ;;  %6964 = vpow2.f32 %v3596_v4  ;;  %v3333_v9 = vsub.f32 %v9551_v52, %v3269_v59 }
 0x217   :  { %13885 = vst [vmem:[#allocation241_spill] sm:$0xff] %v9656_v11  ;;  %v9673_v8 = vpop.eup %6950  ;;  %6966 = vpow2.f32 %v4242_v0  ;;  %v4436_v35 = vmul.f32 1.442695, %v4363_v14  ;;  %v3270_v4 = vmax.f32 %v9643_v63, %v3206_v57  ;;  %v1463_v52 = vpop.f32.mrf.mxu2  ;;  %v4172_v14 = vsub.f32 %v4044_v6, %v4108_v42 }
 0x218   :  { %13886 = vst [vmem:[#allocation242_spill] sm:$0xff] %v9662_v12  ;;  %v9679_v50 = vpop.eup %6952  ;;  %v4808_v49 = vmul.f32 %v9673_v8, %v60_v31  ;;  %v3525_v31 = vsub.f32 %v3205_v16, %v3269_v59  ;;  %6968 = vpow2.f32 %v4434_v40  ;;  %v3406_v59 = vmul.f32 1.442695, %v3333_v9  ;;  %v9703_v12 = vpop.f32.mrf.mxu0  ;;  %v75_v40 = vld [vmem:[#allocation2 + $0x118] sm:$0xff] }
 0x219   :  { %13887 = vst [vmem:[#allocation243_spill] sm:$0xff] %v9667_v61  ;;  %v4171_v61 = vsub.f32 %v9569_v45, %v4107_v10  ;;  %v6189_v45 = vld [vmem:[%s12974_s2 + $0x1f0] sm:$0xf]  ;;  %v9697_v34 = vpop.eup %6954  ;;  %v3526_v0 = vsub.f32 %v3206_v57, %v3270_v4  ;;  %v1550_v9 = vadd.f32 %v9658_v25, %v9654_v15  ;;  %v67_v15 = vld [vmem:[#allocation2 + $0xd8] sm:$0xff]  ;;  %v4045_v25 = vadd.f32 %v9340_v23, %v75_v40 }
 0x21a   :  { %13888 = vst [vmem:[#allocation244_spill] sm:$0xff] %v9673_v8  ;;  %v4872_v13 = vadd.f32 %v9679_v50, %v4808_v49  ;;  %v9700_v16 = vpop.eup %6956  ;;  %v4809_v49 = vmul.f32 %v9697_v34, %v61_v37  ;;  %v6190_v37 = vor.u32 %v6572_v20, %v6189_v45 }
 0x21b   :  { %4935 = vst [vmem:[#allocation6 + $0x78] sm:$0xff] %v4871_v5  ;;  %v13891_v5 = vld [vmem:[#allocation34_spill] sm:$0xff]  ;;  %v9705_v11 = vpop.eup %6958  ;;  %v9708_v29 = vpop.f32.mrf.mxu1  ;;  %v3600_v57 = vmul.f32 1.442695, %v3526_v0 }
 0x21c   :  { %13890 = vst [vmem:[#allocation33_spill] sm:$0xff] %v9679_v50  ;;  %1413 = vmatmul.bf16.gmra.mxu1 %v13891_v5  ;;  %1591 = vmatmul.bf16.gmra.mxu3 %v13891_v5  ;;  %v3598_v50 = vmul.f32 1.442695, %v3525_v31  ;;  %v9710_v32 = vpop.eup %6960  ;;  %v9714_v31 = vld [vmem:[#allocation2 + $0x140] sm:$0xff] }
 0x21d   :  { %5003 = vst [vmem:[#allocation6 + $0xe8] sm:$0xff] %v4107_v10  ;;  %v4244_v10 = vmul.f32 1.442695, %v4171_v61  ;;  %v1552_v8 = vpop.f32.mrf.mxu3  ;;  %v3334_v61 = vsub.f32 %v9643_v63, %v3270_v4  ;;  %v66_v63 = vld [vmem:[#allocation2 + $0xd0] sm:$0xff]  ;;  %1711 = vmatpush.bf16.msra.mxu1 %v6190_v37  ;;  %v4046_v20 = vadd.f32 %v9324_v21, %v9714_v31 }
 0x21e   :  { %13892 = vst [vmem:[#allocation34_spill] sm:$0xff] %v9697_v34  ;;  %v9716_v34 = vpop.eup %6962  ;;  %v9732_v0 = vadd.f32 %v1552_v8, %v1463_v52 }
 0x21f   :  { %5004 = vst [vmem:[#allocation6 + $0x110] sm:$0xff] %v4108_v42  ;;  %6970 = vpow2.f32 %v4244_v10  ;;  %v4873_v10 = vadd.f32 %v9710_v32, %v4809_v49  ;;  %v3408_v6 = vmul.f32 1.442695, %v3334_v61  ;;  %v9719_v4 = vpop.eup %6964 }
 0x220   :  { %13893 = vst [vmem:[#allocation245_spill] sm:$0xff] %v9700_v16  ;;  %6972 = vpow2.f32 %v3406_v59  ;;  %v4246_v59 = vmul.f32 1.442695, %v4172_v14  ;;  %v9722_v45 = vpop.eup %6966  ;;  %v9745_v8 = vpop.f32.mrf.mxu0 }
 0x221   :  { %4936 = vst [vmem:[#allocation6 + $0xa0] sm:$0xff] %v4872_v13  ;;  %v4364_v13 = vsub.f32 %v1372_v19, %v4108_v42  ;;  %6974 = vpow2.f32 %v3598_v50  ;;  %v3207_v42 = vadd.f32 %v9371_v55, %v1550_v9  ;;  %v1375_v50 = vadd.f32 %v9665_v44, %v9660_v47  ;;  %v9729_v49 = vpop.eup %6968 }
 0x222   :  { %13894 = vst [vmem:[#allocation246_spill] sm:$0xff] %v9705_v11  ;;  %6976 = vpow2.f32 %v4436_v35  ;;  %v4810_v35 = vmul.f32 %v9722_v45, %v66_v63 }
 0x223   :  { %13895 = vst [vmem:[#allocation247_spill] sm:$0xff] %v9710_v32  ;;  %v4438_v19 = vmul.f32 1.442695, %v4364_v13  ;;  %6978 = vpow2.f32 %v3408_v6  ;;  %v3271_v61 = vmax.f32 %v75_v40, %v3207_v42  ;;  %v4109_v13 = vmax.f32 %v4045_v25, %v1550_v9  ;;  %v9737_v6 = vpop.f32.mrf.mxu2  ;;  %v9750_v11 = vpop.f32.mrf.mxu1 }
 0x224   :  { %13896 = vst [vmem:[#allocation248_spill] sm:$0xff] %v9716_v34  ;;  %6980 = vpow2.f32 %v3600_v57  ;;  %v3208_v37 = vadd.f32 %v9357_v3, %v1375_v50  ;;  %v4874_v47 = vadd.f32 %v9729_v49, %v4810_v35 }
 0x225   :  { %13897 = vst [vmem:[#allocation249_spill] sm:$0xff] %v9719_v4  ;;  %v9734_v14 = vpop.eup %6970  ;;  %6982 = vpow2.f32 %v4246_v59  ;;  %v3335_v63 = vsub.f32 %v75_v40, %v3271_v61  ;;  %v9743_v57 = vpop.f32.mrf.mxu3  ;;  %v3527_v59 = vsub.f32 %v3207_v42, %v3271_v61  ;;  %v4365_v34 = vsub.f32 %v1550_v9, %v4109_v13 }
 0x226   :  { %13898 = vst [vmem:[#allocation250_spill] sm:$0xff] %v9722_v45  ;;  %v9739_v44 = vpop.eup %6972  ;;  %v4811_v4 = vmul.f32 %v9734_v14, %v67_v15  ;;  %6984 = vpow2.f32 %v4438_v19  ;;  %v4173_v45 = vsub.f32 %v4045_v25, %v4109_v13  ;;  %v3272_v32 = vmax.f32 %v9714_v31, %v3208_v37  ;;  %v72_v15 = vld [vmem:[#allocation2 + $0x100] sm:$0xff] }
 0x227   :  { %4937 = vst [vmem:[#allocation6 + $0xa8] sm:$0xff] %v4873_v10  ;;  %v4110_v10 = vmax.f32 %v4046_v20, %v1375_v50  ;;  %v9747_v52 = vpop.eup %6974  ;;  %v3410_v19 = vmul.f32 1.442695, %v3335_v63  ;;  %v3602_v42 = vmul.f32 1.442695, %v3527_v59  ;;  %v13907_v63 = vld [vmem:[#allocation36_spill] sm:$0xff] }
 0x228   :  { %13899 = vst [vmem:[#allocation251_spill] sm:$0xff] %v9729_v49  ;;  %v3209_v49 = vadd.f32 %v9371_v55, %v9732_v0  ;;  %v4248_v25 = vmul.f32 1.442695, %v4173_v45  ;;  %v4440_v61 = vmul.f32 1.442695, %v4365_v34  ;;  %v86_v45 = vld [vmem:[#allocation2 + $0x170] sm:$0xff] }
 0x229   :  { %13900 = vst [vmem:[#allocation252_spill] sm:$0xff] %v9734_v14  ;;  %v4174_v40 = vsub.f32 %v4046_v20, %v4110_v10  ;;  %v4366_v35 = vsub.f32 %v1375_v50, %v4110_v10  ;;  %v81_v14 = vld [vmem:[#allocation2 + $0x148] sm:$0xff]  ;;  %6986 = vpow2.f32 %v3410_v19  ;;  %v3528_v20 = vsub.f32 %v3208_v37, %v3272_v32 }
 0x22a   :  { %13901 = vst [vmem:[#allocation253_spill] sm:$0xff] %v9739_v44  ;;  %v9752_v44 = vpop.eup %6976  ;;  %6988 = vpow2.f32 %v3602_v42  ;;  %v3273_v59 = vmax.f32 %v81_v14, %v3209_v49  ;;  %v4047_v34 = vadd.f32 %v9340_v23, %v81_v14  ;;  %v1377_v42 = vadd.f32 %v9708_v29, %v9703_v12 }
 0x22b   :  { %13902 = vst [vmem:[#allocation254_spill] sm:$0xff] %v9747_v52  ;;  %v9756_v52 = vpop.eup %6978  ;;  %v4875_v9 = vadd.f32 %v9752_v44, %v4811_v4  ;;  %v4250_v50 = vmul.f32 1.442695, %v4174_v40  ;;  %v4442_v4 = vmul.f32 1.442695, %v4366_v35  ;;  %6990 = vpow2.f32 %v4248_v25  ;;  %v9773_v35 = vpop.f32.mrf.mxu2  ;;  %v9779_v25 = vld [vmem:[#allocation2 + $0x178] sm:$0xff] }
 0x22c   :  { %5005 = vst [vmem:[#allocation6 + $0x118] sm:$0xff] %v4109_v13  ;;  %v13905_v13 = vld [vmem:[#allocation35_spill] sm:$0xff]  ;;  %v9760_v16 = vpop.eup %6980  ;;  %1418 = vmatmul.bf16.gmra.mxu1 %v13907_v63  ;;  %v3604_v37 = vmul.f32 1.442695, %v3528_v20  ;;  %1596 = vmatmul.bf16.gmra.mxu3 %v13907_v63  ;;  %6992 = vpow2.f32 %v4440_v61  ;;  %v3529_v19 = vsub.f32 %v3209_v49, %v3273_v59  ;;  %v4111_v40 = vmax.f32 %v4047_v34, %v9732_v0  ;;  %v9783_v20 = vpop.f32.mrf.mxu0 }
 0x22d   :  { %13903 = vst [vmem:[#allocation255_spill] sm:$0xff] %v9752_v44  ;;  %1329 = vmatmul.bf16.gmra.mxu0 %v13905_v13  ;;  %v9764_v54 = vpop.eup %6982  ;;  %1507 = vmatmul.bf16.gmra.mxu2 %v13905_v13  ;;  %v3210_v12 = vadd.f32 %v9357_v3, %v1377_v42 }
 0x22e   :  { %4938 = vst [vmem:[#allocation6 + $0xd0] sm:$0xff] %v4874_v47  ;;  %v3336_v47 = vsub.f32 %v9714_v31, %v3272_v32  ;;  %v4812_v31 = vmul.f32 %v9764_v54, %v72_v15  ;;  %v4048_v15 = vadd.f32 %v9324_v21, %v86_v45  ;;  %v4175_v61 = vsub.f32 %v4047_v34, %v4111_v40 }
 0x22f   :  { %13904 = vst [vmem:[#allocation256_spill] sm:$0xff] %v9756_v52  ;;  %v4367_v29 = vsub.f32 %v9732_v0, %v4111_v40  ;;  %v1555_v34 = vadd.f32 %v9743_v57, %v9737_v6  ;;  %v78_v6 = vld [vmem:[#allocation2 + $0x130] sm:$0xff] }
 0x230   :  { %13906 = vst [vmem:[#allocation35_spill] sm:$0xff] %v9760_v16  ;;  %v9768_v16 = vpop.eup %6984  ;;  %v3412_v32 = vmul.f32 1.442695, %v3336_v47  ;;  %v9781_v47 = vpop.f32.mrf.mxu3 }
 0x231   :  { %5006 = vst [vmem:[#allocation6 + $0x140] sm:$0xff] %v4110_v10  ;;  %v3337_v10 = vsub.f32 %v81_v14, %v3273_v59  ;;  %v3606_v14 = vmul.f32 1.442695, %v3529_v19  ;;  %v9785_v59 = vpop.f32.mrf.mxu1  ;;  %v1558_v58 = vadd.f32 %v9781_v47, %v9773_v35 }
 0x232   :  { %13908 = vst [vmem:[#allocation36_spill] sm:$0xff] %v9764_v54  ;;  %6994 = vpow2.f32 %v3412_v32  ;;  %v73_v32 = vld [vmem:[#allocation2 + $0x108] sm:$0xff] }
 0x233   :  { %4939 = vst [vmem:[#allocation6 + $0xd8] sm:$0xff] %v4875_v9  ;;  %v4876_v9 = vadd.f32 %v9768_v16, %v4812_v31  ;;  %6996 = vpow2.f32 %v3604_v37  ;;  %v3414_v49 = vmul.f32 1.442695, %v3337_v10  ;;  %v9787_v31 = vpop.eup %6986  ;;  %v4252_v37 = vmul.f32 1.442695, %v4175_v61 }
 0x234   :  { %13909 = vst [vmem:[#allocation257_spill] sm:$0xff] %v9768_v16  ;;  %6998 = vpow2.f32 %v4250_v50  ;;  %v4112_v16 = vmax.f32 %v4048_v15, %v1377_v42  ;;  %v9791_v54 = vpop.eup %6988  ;;  %v4049_v10 = vadd.f32 %v9340_v23, %v9779_v25  ;;  %v3274_v50 = vmax.f32 %v86_v45, %v3210_v12 }
 0x235   :  { %5007 = vst [vmem:[#allocation6 + $0x148] sm:$0xff] %v4111_v40  ;;  %7000 = vpow2.f32 %v4442_v4  ;;  %v9797_v19 = vpop.eup %6990  ;;  %v3211_v61 = vadd.f32 %v9371_v55, %v1555_v34 }
 0x236   :  { %13910 = vst [vmem:[#allocation258_spill] sm:$0xff] %v9787_v31  ;;  %7002 = vpow2.f32 %v3414_v49  ;;  %v4176_v31 = vsub.f32 %v4048_v15, %v4112_v16  ;;  %v9799_v0 = vpop.eup %6992  ;;  %v4813_v40 = vmul.f32 %v9797_v19, %v73_v32  ;;  %v4368_v4 = vsub.f32 %v1377_v42, %v4112_v16  ;;  %v9809_v32 = vpop.f32.mrf.mxu2 }
 0x237   :  { %4940 = vst [vmem:[#allocation6 + $0x100] sm:$0xff] %v4876_v9  ;;  %v4444_v9 = vmul.f32 1.442695, %v4367_v29  ;;  %7004 = vpow2.f32 %v3606_v14  ;;  %v3338_v57 = vsub.f32 %v86_v45, %v3274_v50  ;;  %v3530_v52 = vsub.f32 %v3210_v12, %v3274_v50  ;;  %v9819_v50 = vld [vmem:[#allocation2 + $0x1a0] sm:$0xff] }
 0x238   :  { %13911 = vst [vmem:[#allocation259_spill] sm:$0xff] %v9791_v54  ;;  %v9803_v54 = vpop.eup %6994  ;;  %7006 = vpow2.f32 %v4252_v37  ;;  %v4254_v44 = vmul.f32 1.442695, %v4176_v31  ;;  %v4877_v15 = vadd.f32 %v9799_v0, %v4813_v40  ;;  %v4446_v29 = vmul.f32 1.442695, %v4368_v4  ;;  %v9813_v37 = vpop.f32.mrf.mxu3  ;;  %v79_v4 = vld [vmem:[#allocation2 + $0x138] sm:$0xff] }
 0x239   :  { %13912 = vst [vmem:[#allocation260_spill] sm:$0xff] %v9797_v19  ;;  %v9805_v49 = vpop.eup %6996  ;;  %7008 = vpow2.f32 %v4444_v9  ;;  %v3275_v43 = vmax.f32 %v9779_v25, %v3211_v61  ;;  %v3416_v42 = vmul.f32 1.442695, %v3338_v57  ;;  %v3608_v14 = vmul.f32 1.442695, %v3530_v52 }
 0x23a   :  { %5008 = vst [vmem:[#allocation6 + $0x170] sm:$0xff] %v4112_v16  ;;  %v9811_v16 = vpop.eup %6998  ;;  %7010 = vpow2.f32 %v4254_v44  ;;  %v6515_v40 = vld [vmem:[%s12974_s2 + $0x44] sm:$0xf]  ;;  %v5975_v44 = vld [vmem:[%s12974_s2 + $0x58] sm:$0xf0]  ;;  %v4050_v19 = vadd.f32 %v9324_v21, %v9819_v50 }
 0x23b   :  { %13913 = vst [vmem:[#allocation261_spill] sm:$0xff] %v9799_v0  ;;  %v9815_v45 = vpop.eup %7000  ;;  %v4814_v31 = vmul.f32 %v9811_v16, %v78_v6  ;;  %7012 = vpow2.f32 %v4446_v29  ;;  %v3339_v12 = vsub.f32 %v9779_v25, %v3275_v43  ;;  %v3531_v9 = vsub.f32 %v3211_v61, %v3275_v43  ;;  %v6563_v25 = vld [vmem:[%s12974_s2 + $0x1c4] sm:$0xf]  ;;  %v6167_v61 = vld [vmem:[%s12974_s2 + $0x1d8] sm:$0xf0]  ;;  %v9841_v29 = vpop.f32.mrf.mxu1 }
 0x23c   :  { %13914 = vst [vmem:[#allocation262_spill] sm:$0xff] %v9803_v54  ;;  %v4113_v54 = vmax.f32 %v4049_v10, %v1555_v34  ;;  %v9827_v52 = vpop.eup %7002  ;;  %7014 = vpow2.f32 %v3416_v42  ;;  %v9831_v43 = vadd.f32 %v9750_v11, %v9745_v8  ;;  %v13920_v8 = vld [vmem:[#allocation37_spill] sm:$0xff] }
 0x23d   :  { %13915 = vst [vmem:[#allocation263_spill] sm:$0xff] %v9805_v49  ;;  %v9843_v42 = vpop.eup %7004  ;;  %7016 = vpow2.f32 %v3608_v14  ;;  %v3610_v11 = vmul.f32 1.442695, %v3531_v9  ;;  %1334 = vmatmul.bf16.gmra.mxu0 %v13920_v8  ;;  %v6170_v9 = vor.u32 %v6563_v25, %v6167_v61  ;;  %1512 = vmatmul.bf16.gmra.mxu2 %v13920_v8  ;;  %v10067_v8 = vld [vmem:[#allocation2 + $0x268] sm:$0xff] }
 0x23e   :  { %13916 = vst [vmem:[#allocation264_spill] sm:$0xff] %v9811_v16  ;;  %v4177_v57 = vsub.f32 %v4049_v10, %v4113_v54  ;;  %v4369_v6 = vsub.f32 %v1555_v34, %v4113_v54  ;;  %v3418_v34 = vmul.f32 1.442695, %v3339_v12  ;;  %v9847_v10 = vpop.eup %7006  ;;  %v3212_v0 = vadd.f32 %v9357_v3, %v9831_v43  ;;  %v9873_v25 = vpop.f32.mrf.mxu2 }
 0x23f   :  { %13917 = vst [vmem:[#allocation265_spill] sm:$0xff] %v9815_v45  ;;  %v9856_v14 = vpop.eup %7008  ;;  %v5978_v12 = vor.u32 %v6515_v40, %v5975_v44  ;;  %1890 = vmatpush.bf16.msra.mxu3 %v6170_v9  ;;  %v4051_v44 = vadd.f32 %v9340_v23, %v9853_v46 }
 0x240   :  { %4941 = vst [vmem:[#allocation6 + $0x108] sm:$0xff] %v4877_v15  ;;  %v9839_v15 = vpop.f32.mrf.mxu0  ;;  %v4256_v16 = vmul.f32 1.442695, %v4177_v57  ;;  %v4448_v49 = vmul.f32 1.442695, %v4369_v6  ;;  %7018 = vpow2.f32 %v3418_v34  ;;  %v9860_v57 = vpop.eup %7010  ;;  %v3276_v6 = vmax.f32 %v9819_v50, %v3212_v0 }
 0x241   :  { %13918 = vst [vmem:[#allocation266_spill] sm:$0xff] %v9827_v52  ;;  %v84_v52 = vld [vmem:[#allocation2 + $0x160] sm:$0xff]  ;;  %7020 = vpow2.f32 %v3610_v11  ;;  %1801 = vmatpush.bf16.msra.mxu2 %v5978_v12  ;;  %v9878_v11 = vpop.f32.mrf.mxu3  ;;  %v3213_v12 = vadd.f32 %v9371_v55, %v1558_v58  ;;  %v4115_v9 = vmax.f32 %v4051_v44, %v1558_v58 }
 0x242   :  { %5009 = vst [vmem:[#allocation6 + $0x178] sm:$0xff] %v4113_v54  ;;  %v4878_v54 = vadd.f32 %v9815_v45, %v4814_v31  ;;  %v4815_v31 = vmul.f32 %v9847_v10, %v79_v4  ;;  %v4114_v45 = vmax.f32 %v4050_v19, %v9831_v43  ;;  %v4816_v40 = vmul.f32 %v9860_v57, %v84_v52 }
 0x243   :  { %13919 = vst [vmem:[#allocation267_spill] sm:$0xff] %v9843_v42  ;;  %v13922_v42 = vld [vmem:[#allocation38_spill] sm:$0xff]  ;;  %7022 = vpow2.f32 %v4256_v16  ;;  %v3340_v35 = vsub.f32 %v9819_v50, %v3276_v6  ;;  %v3532_v47 = vsub.f32 %v3212_v0, %v3276_v6 }
 0x244   :  { %13921 = vst [vmem:[#allocation268_spill] sm:$0xff] %v9847_v10  ;;  %1423 = vmatmul.bf16.gmra.mxu1 %v13922_v42  ;;  %1601 = vmatmul.bf16.gmra.mxu3 %v13922_v42  ;;  %v4879_v4 = vadd.f32 %v9856_v14, %v4815_v31  ;;  %7024 = vpow2.f32 %v4448_v49  ;;  %v4178_v34 = vsub.f32 %v4050_v19, %v4114_v45  ;;  %v5973_v49 = vld [vmem:[%s12974_s2 + $0x40] sm:$0xf]  ;;  %v6518_v19 = vld [vmem:[%s12974_s2 + $0x54] sm:$0xf0] }
 0x245   :  { %13923 = vst [vmem:[#allocation269_spill] sm:$0xff] %v9856_v14  ;;  %v4370_v52 = vsub.f32 %v9831_v43, %v4114_v45  ;;  %v3420_v0 = vmul.f32 1.442695, %v3340_v35  ;;  %v3612_v50 = vmul.f32 1.442695, %v3532_v47 }
 0x246   :  { %4942 = vst [vmem:[#allocation6 + $0x130] sm:$0xff] %v4878_v54  ;;  %v9867_v54 = vpop.eup %7012  ;;  %v4258_v6 = vmul.f32 1.442695, %v4178_v34  ;;  %v5974_v34 = vor.u32 %v6518_v19, %v5973_v49  ;;  %v6165_v49 = vld [vmem:[%s12974_s2 + $0x1c0] sm:$0xf] }
 0x247   :  { %13924 = vst [vmem:[#allocation270_spill] sm:$0xff] %v9860_v57  ;;  %v9875_v61 = vpop.eup %7014  ;;  %v4880_v16 = vadd.f32 %v9867_v54, %v4816_v40  ;;  %v98_v57 = vld [vmem:[#allocation2 + $0x1d0] sm:$0xff]  ;;  %v4450_v43 = vmul.f32 1.442695, %v4370_v52  ;;  %7026 = vpow2.f32 %v3420_v0  ;;  %v6566_v19 = vld [vmem:[%s12974_s2 + $0x1d4] sm:$0xf0] }
 0x248   :  { %13925 = vst [vmem:[#allocation271_spill] sm:$0xff] %v9867_v54  ;;  %v9880_v31 = vpop.eup %7016  ;;  %v3277_v54 = vmax.f32 %v9853_v46, %v3213_v12  ;;  %v4052_v47 = vadd.f32 %v9324_v21, %v98_v57  ;;  %v9900_v10 = vpop.f32.mrf.mxu0  ;;  %7028 = vpow2.f32 %v3612_v50  ;;  %1623 = vmatpush.bf16.msra.mxu0 %v5974_v34  ;;  %v6166_v42 = vor.u32 %v6566_v19, %v6165_v49  ;;  %v13934_v49 = vld [vmem:[#allocation39_spill] sm:$0xff] }
 0x249   :  { %13926 = vst [vmem:[#allocation272_spill] sm:$0xff] %v9875_v61  ;;  %v9893_v40 = vpop.eup %7018  ;;  %v4371_v61 = vsub.f32 %v1558_v58, %v4115_v9  ;;  %7030 = vpow2.f32 %v4258_v6  ;;  %v9921_v34 = vpop.f32.mrf.mxu3 }
 0x24a   :  { %5010 = vst [vmem:[#allocation6 + $0x1a0] sm:$0xff] %v4114_v45  ;;  %v85_v45 = vld [vmem:[#allocation2 + $0x168] sm:$0xff]  ;;  %v9896_v14 = vpop.eup %7020  ;;  %7032 = vpow2.f32 %v4450_v43  ;;  %v9923_v43 = vld [vmem:[#allocation2 + $0x200] sm:$0xff]  ;;  %1712 = vmatpush.bf16.msra.mxu1 %v6166_v42 }
 0x24b   :  { %13927 = vst [vmem:[#allocation273_spill] sm:$0xff] %v9880_v31  ;;  %v4179_v31 = vsub.f32 %v4051_v44, %v4115_v9  ;;  %v3533_v44 = vsub.f32 %v3213_v12, %v3277_v54  ;;  %v4452_v0 = vmul.f32 1.442695, %v4371_v61  ;;  %v9916_v12 = vpop.f32.mrf.mxu2 }
 0x24c   :  { %4943 = vst [vmem:[#allocation6 + $0x138] sm:$0xff] %v4879_v4  ;;  %v1382_v4 = vadd.f32 %v9785_v59, %v9783_v20  ;;  %v9902_v20 = vpop.f32.mrf.mxu1  ;;  %v9904_v59 = vpop.eup %7022 }
 0x24d   :  { %13928 = vst [vmem:[#allocation274_spill] sm:$0xff] %v9893_v40  ;;  %v4260_v58 = vmul.f32 1.442695, %v4179_v31  ;;  %v9907_v52 = vpop.eup %7024  ;;  %1339 = vmatmul.bf16.gmra.mxu0 %v13934_v49  ;;  %1517 = vmatmul.bf16.gmra.mxu2 %v13934_v49 }
 0x24e   :  { %4944 = vst [vmem:[#allocation6 + $0x160] sm:$0xff] %v4880_v16  ;;  %v3214_v35 = vadd.f32 %v9357_v3, %v1382_v4  ;;  %v3341_v16 = vsub.f32 %v9853_v46, %v3277_v54  ;;  %v3614_v54 = vmul.f32 1.442695, %v3533_v44  ;;  %v4116_v31 = vmax.f32 %v4052_v47, %v1382_v4  ;;  %v90_v44 = vld [vmem:[#allocation2 + $0x190] sm:$0xff] }
 0x24f   :  { %13929 = vst [vmem:[#allocation275_spill] sm:$0xff] %v9896_v14  ;;  %7034 = vpow2.f32 %v4260_v58 }
 0x250   :  { %5011 = vst [vmem:[#allocation6 + $0x1a8] sm:$0xff] %v4115_v9  ;;  %v4817_v9 = vmul.f32 %v9904_v59, %v85_v45  ;;  %v3278_v14 = vmax.f32 %v98_v57, %v3214_v35  ;;  %v3422_v46 = vmul.f32 1.442695, %v3341_v16  ;;  %v9919_v45 = vld [vmem:[#allocation2 + $0x1d8] sm:$0xff]  ;;  %v4372_v40 = vsub.f32 %v1382_v4, %v4116_v31  ;;  %v9925_v16 = vpop.eup %7026 }
 0x251   :  { %13930 = vst [vmem:[#allocation276_spill] sm:$0xff] %v9904_v59  ;;  %v4180_v59 = vsub.f32 %v4052_v47, %v4116_v31  ;;  %v4053_v4 = vadd.f32 %v9340_v23, %v9919_v45 }
 0x252   :  { %13931 = vst [vmem:[#allocation277_spill] sm:$0xff] %v9907_v52  ;;  %v4881_v50 = vadd.f32 %v9907_v52, %v4817_v9  ;;  %v3342_v61 = vsub.f32 %v98_v57, %v3278_v14  ;;  %v3534_v6 = vsub.f32 %v3214_v35, %v3278_v14  ;;  %7036 = vpow2.f32 %v3422_v46  ;;  %v9929_v57 = vpop.eup %7028  ;;  %v91_v46 = vld [vmem:[#allocation2 + $0x198] sm:$0xff] }
 0x253   :  { %5012 = vst [vmem:[#allocation6 + $0x1d0] sm:$0xff] %v4116_v31  ;;  %7038 = vpow2.f32 %v3614_v54  ;;  %v1560_v14 = vadd.f32 %v9813_v37, %v9809_v32  ;;  %v4262_v35 = vmul.f32 1.442695, %v4180_v59  ;;  %v4454_v47 = vmul.f32 1.442695, %v4372_v40  ;;  %v9934_v19 = vpop.eup %7030  ;;  %v13936_v59 = vld [vmem:[#allocation40_spill] sm:$0xff] }
 0x254   :  { %13932 = vst [vmem:[#allocation278_spill] sm:$0xff] %v9925_v16  ;;  %v3424_v9 = vmul.f32 1.442695, %v3342_v61  ;;  %v3616_v58 = vmul.f32 1.442695, %v3534_v6  ;;  %7040 = vpow2.f32 %v4452_v0  ;;  %v1385_v32 = vadd.f32 %v9841_v29, %v9839_v15  ;;  %1428 = vmatmul.bf16.gmra.mxu1 %v13936_v59  ;;  %v9942_v42 = vpop.eup %7032  ;;  %v9954_v6 = vpop.f32.mrf.mxu0  ;;  %1606 = vmatmul.bf16.gmra.mxu3 %v13936_v59 }
 0x255   :  { %4945 = vst [vmem:[#allocation6 + $0x168] sm:$0xff] %v4881_v50  ;;  %v3215_v54 = vadd.f32 %v9371_v55, %v1560_v14  ;;  %v4054_v37 = vadd.f32 %v9324_v21, %v9923_v43  ;;  %v4818_v40 = vmul.f32 %v9934_v19, %v90_v44  ;;  %v4117_v0 = vmax.f32 %v4053_v4, %v1560_v14  ;;  %v9950_v50 = vpop.eup %7034 }
 0x256   :  { %13933 = vst [vmem:[#allocation279_spill] sm:$0xff] %v9929_v57  ;;  %7042 = vpow2.f32 %v3424_v9  ;;  %v9947_v31 = vadd.f32 %v9878_v11, %v9873_v25  ;;  %v3216_v29 = vadd.f32 %v9357_v3, %v1385_v32  ;;  %v9956_v9 = vpop.f32.mrf.mxu1  ;;  %v4819_v11 = vmul.f32 %v9950_v50, %v91_v46  ;;  %v105_v46 = vld [vmem:[#allocation2 + $0x208] sm:$0xff] }
 0x257   :  { %13935 = vst [vmem:[#allocation280_spill] sm:$0xff] %v9934_v19  ;;  %7044 = vpow2.f32 %v3616_v58  ;;  %v3279_v15 = vmax.f32 %v9919_v45, %v3215_v54  ;;  %v4118_v61 = vmax.f32 %v4054_v37, %v1385_v32  ;;  %v4882_v25 = vadd.f32 %v9942_v42, %v4818_v40 }
 0x258   :  { %13937 = vst [vmem:[#allocation281_spill] sm:$0xff] %v9942_v42  ;;  %7046 = vpow2.f32 %v4262_v35  ;;  %v9959_v44 = vpop.eup %7036  ;;  %v4181_v58 = vsub.f32 %v4053_v4, %v4117_v0  ;;  %v4373_v16 = vsub.f32 %v1560_v14, %v4117_v0  ;;  %v3280_v52 = vmax.f32 %v9923_v43, %v3216_v29  ;;  %v9971_v4 = vpop.f32.mrf.mxu2 }
 0x259   :  { %13938 = vst [vmem:[#allocation282_spill] sm:$0xff] %v9950_v50  ;;  %7048 = vpow2.f32 %v4454_v47  ;;  %v9963_v35 = vpop.eup %7038  ;;  %v3343_v19 = vsub.f32 %v9919_v45, %v3279_v15  ;;  %v3535_v57 = vsub.f32 %v3215_v54, %v3279_v15  ;;  %v4182_v40 = vsub.f32 %v4054_v37, %v4118_v61  ;;  %v9976_v15 = vpop.f32.mrf.mxu3 }
 0x25a   :  { %13939 = vst [vmem:[#allocation283_spill] sm:$0xff] %v9959_v44  ;;  %v9967_v49 = vpop.eup %7040  ;;  %v96_v44 = vld [vmem:[#allocation2 + $0x1c0] sm:$0xff]  ;;  %v4264_v59 = vmul.f32 1.442695, %v4181_v58  ;;  %v4374_v42 = vsub.f32 %v1385_v32, %v4118_v61  ;;  %v3217_v47 = vadd.f32 %v9371_v55, %v9947_v31  ;;  %v3344_v32 = vsub.f32 %v9923_v43, %v3280_v52 }
 0x25b   :  { %5013 = vst [vmem:[#allocation6 + $0x1d8] sm:$0xff] %v4117_v0  ;;  %v4883_v45 = vadd.f32 %v9967_v49, %v4819_v11  ;;  %v3426_v14 = vmul.f32 1.442695, %v3343_v19  ;;  %v3618_v54 = vmul.f32 1.442695, %v3535_v57  ;;  %v3536_v37 = vsub.f32 %v3216_v29, %v3280_v52  ;;  %v9984_v19 = vld [vmem:[#allocation2 + $0x230] sm:$0xff] }
 0x25c   :  { %13940 = vst [vmem:[#allocation284_spill] sm:$0xff] %v9963_v35  ;;  %v9973_v50 = vpop.eup %7042  ;;  %v4456_v0 = vmul.f32 1.442695, %v4373_v16  ;;  %7050 = vpow2.f32 %v4264_v59  ;;  %v4458_v35 = vmul.f32 1.442695, %v4374_v42  ;;  %v4055_v11 = vadd.f32 %v9340_v23, %v105_v46  ;;  %v97_v42 = vld [vmem:[#allocation2 + $0x1c8] sm:$0xff] }
 0x25d   :  { %5014 = vst [vmem:[#allocation6 + $0x200] sm:$0xff] %v4118_v61  ;;  %v4266_v61 = vmul.f32 1.442695, %v4182_v40  ;;  %7052 = vpow2.f32 %v3426_v14  ;;  %v3428_v59 = vmul.f32 1.442695, %v3344_v32  ;;  %v4056_v14 = vadd.f32 %v9324_v21, %v9984_v19 }
 0x25e   :  { %13941 = vst [vmem:[#allocation285_spill] sm:$0xff] %v9967_v49  ;;  %7054 = vpow2.f32 %v3618_v54  ;;  %v4119_v29 = vmax.f32 %v4055_v11, %v9947_v31 }
 0x25f   :  { %4946 = vst [vmem:[#allocation6 + $0x190] sm:$0xff] %v4882_v25  ;;  %v9978_v25 = vpop.eup %7044  ;;  %7056 = vpow2.f32 %v4456_v0  ;;  %v9995_v0 = vpop.f32.mrf.mxu0 }
 0x260   :  { %13942 = vst [vmem:[#allocation286_spill] sm:$0xff] %v9973_v50  ;;  %v9981_v58 = vpop.eup %7046  ;;  %v3281_v50 = vmax.f32 %v105_v46, %v3217_v47  ;;  %7058 = vpow2.f32 %v3428_v59  ;;  %v4183_v32 = vsub.f32 %v4055_v11, %v4119_v29  ;;  %v1565_v59 = vadd.f32 %v9921_v34, %v9916_v12 }
 0x261   :  { %13943 = vst [vmem:[#allocation287_spill] sm:$0xff] %v9978_v25  ;;  %v9986_v16 = vpop.eup %7048  ;;  %v4820_v57 = vmul.f32 %v9981_v58, %v96_v44  ;;  %v3620_v25 = vmul.f32 1.442695, %v3536_v37  ;;  %v111_v37 = vld [vmem:[#allocation2 + $0x238] sm:$0xff]  ;;  %v10018_v34 = vpop.f32.mrf.mxu3 }
 0x262   :  { %13944 = vst [vmem:[#allocation288_spill] sm:$0xff] %v9981_v58  ;;  %v3345_v52 = vsub.f32 %v105_v46, %v3281_v50  ;;  %v3537_v43 = vsub.f32 %v3217_v47, %v3281_v50  ;;  %v9997_v50 = vpop.f32.mrf.mxu1  ;;  %v9999_v46 = vpop.eup %7050  ;;  %v4375_v47 = vsub.f32 %v9947_v31, %v4119_v29  ;;  %v4268_v11 = vmul.f32 1.442695, %v4183_v32 }
 0x263   :  { %4947 = vst [vmem:[#allocation6 + $0x198] sm:$0xff] %v4883_v45  ;;  %v4884_v40 = vadd.f32 %v9986_v16, %v4820_v57  ;;  %v1387_v45 = vadd.f32 %v9902_v20, %v9900_v10  ;;  %7060 = vpow2.f32 %v3620_v25  ;;  %v10003_v57 = vpop.eup %7052  ;;  %v4821_v25 = vmul.f32 %v9999_v46, %v97_v42 }
 0x264   :  { %13945 = vst [vmem:[#allocation289_spill] sm:$0xff] %v9986_v16  ;;  %v3430_v44 = vmul.f32 1.442695, %v3345_v52  ;;  %v3622_v54 = vmul.f32 1.442695, %v3537_v43  ;;  %7062 = vpow2.f32 %v4266_v61  ;;  %v10008_v52 = vpop.eup %7054  ;;  %v3219_v42 = vadd.f32 %v9371_v55, %v1565_v59 }
 0x265   :  { %5015 = vst [vmem:[#allocation6 + $0x208] sm:$0xff] %v4119_v29  ;;  %v3218_v10 = vadd.f32 %v9357_v3, %v1387_v45  ;;  %v4120_v20 = vmax.f32 %v4056_v14, %v1387_v45  ;;  %7064 = vpow2.f32 %v4458_v35  ;;  %v4460_v43 = vmul.f32 1.442695, %v4375_v47  ;;  %v10011_v29 = vpop.f32.mrf.mxu2  ;;  %v102_v47 = vld [vmem:[#allocation2 + $0x1f0] sm:$0xff] }
 0x266   :  { %13946 = vst [vmem:[#allocation290_spill] sm:$0xff] %v9999_v46  ;;  %7066 = vpow2.f32 %v3430_v44  ;;  %v4057_v12 = vadd.f32 %v9340_v23, %v111_v37  ;;  %v13951_v44 = vld [vmem:[#allocation42_spill] sm:$0xff]  ;;  %v3283_v16 = vmax.f32 %v111_v37, %v3219_v42 }
 0x267   :  { %4948 = vst [vmem:[#allocation6 + $0x1c0] sm:$0xff] %v4884_v40  ;;  %v3282_v61 = vmax.f32 %v9984_v19, %v3218_v10  ;;  %v4184_v31 = vsub.f32 %v4056_v14, %v4120_v20  ;;  %v13949_v40 = vld [vmem:[#allocation41_spill] sm:$0xff]  ;;  %7068 = vpow2.f32 %v3622_v54  ;;  %v4376_v35 = vsub.f32 %v1387_v45, %v4120_v20  ;;  %1433 = vmatmul.bf16.gmra.mxu1 %v13951_v44 }
 0x268   :  { %13947 = vst [vmem:[#allocation291_spill] sm:$0xff] %v10003_v57  ;;  %1344 = vmatmul.bf16.gmra.mxu0 %v13949_v40  ;;  %v10014_v57 = vpop.eup %7056  ;;  %7070 = vpow2.f32 %v4268_v11  ;;  %1522 = vmatmul.bf16.gmra.mxu2 %v13949_v40 }
 0x269   :  { %13948 = vst [vmem:[#allocation292_spill] sm:$0xff] %v10008_v52  ;;  %v10021_v32 = vpop.eup %7058  ;;  %v4885_v14 = vadd.f32 %v10014_v57, %v4821_v25  ;;  %v3346_v46 = vsub.f32 %v9984_v19, %v3282_v61  ;;  %v3538_v52 = vsub.f32 %v3218_v10, %v3282_v61  ;;  %7072 = vpow2.f32 %v4460_v43  ;;  %1611 = vmatmul.bf16.gmra.mxu3 %v13951_v44  ;;  %v103_v43 = vld [vmem:[#allocation2 + $0x1f8] sm:$0xff] }
 0x26a   :  { %5016 = vst [vmem:[#allocation6 + $0x230] sm:$0xff] %v4120_v20  ;;  %v10026_v45 = vpop.eup %7060  ;;  %v4270_v54 = vmul.f32 1.442695, %v4184_v31  ;;  %v4462_v20 = vmul.f32 1.442695, %v4376_v35  ;;  %v10033_v19 = vadd.f32 %v9956_v9, %v9954_v6  ;;  %v3347_v61 = vsub.f32 %v111_v37, %v3283_v16  ;;  %v116_v6 = vld [vmem:[#allocation2 + $0x260] sm:$0xff] }
 0x26b   :  { %13950 = vst [vmem:[#allocation293_spill] sm:$0xff] %v10014_v57  ;;  %v10029_v58 = vpop.eup %7062  ;;  %v3624_v25 = vmul.f32 1.442695, %v3538_v52  ;;  %v4121_v57 = vmax.f32 %v4057_v12, %v1565_v59  ;;  %v3539_v31 = vsub.f32 %v3219_v42, %v3283_v16  ;;  %v6509_v35 = vld [vmem:[%s12974_s2 + $0x14] sm:$0xf] }
 0x26c   :  { %13952 = vst [vmem:[#allocation294_spill] sm:$0xff] %v10021_v32  ;;  %v3432_v32 = vmul.f32 1.442695, %v3346_v46  ;;  %v10035_v10 = vpop.eup %7064  ;;  %v4822_v11 = vmul.f32 %v10029_v58, %v102_v47  ;;  %7074 = vpow2.f32 %v4270_v54  ;;  %v3220_v9 = vadd.f32 %v9357_v3, %v10033_v19  ;;  %v5951_v47 = vld [vmem:[%s12974_s2 + $0x28] sm:$0xf0]  ;;  %v10059_v54 = vpop.f32.mrf.mxu1 }
 0x26d   :  { %13953 = vst [vmem:[#allocation295_spill] sm:$0xff] %v10026_v45  ;;  %v4185_v46 = vsub.f32 %v4057_v12, %v4121_v57  ;;  %v4377_v52 = vsub.f32 %v1565_v59, %v4121_v57  ;;  %v6557_v16 = vld [vmem:[%s12974_s2 + $0x194] sm:$0xf]  ;;  %v3434_v12 = vmul.f32 1.442695, %v3347_v61  ;;  %v4058_v61 = vadd.f32 %v9324_v21, %v116_v6 }
 0x26e   :  { %13954 = vst [vmem:[#allocation296_spill] sm:$0xff] %v10029_v58  ;;  %7076 = vpow2.f32 %v3432_v32  ;;  %v4886_v42 = vadd.f32 %v10035_v10, %v4822_v11  ;;  %v3626_v59 = vmul.f32 1.442695, %v3539_v31  ;;  %v10057_v32 = vpop.f32.mrf.mxu0  ;;  %v3284_v49 = vmax.f32 %v116_v6, %v3220_v9  ;;  %v108_v11 = vld [vmem:[#allocation2 + $0x220] sm:$0xff] }
 0x26f   :  { %4949 = vst [vmem:[#allocation6 + $0x1c8] sm:$0xff] %v4885_v14  ;;  %v10041_v14 = vpop.eup %7066  ;;  %7078 = vpow2.f32 %v3624_v25  ;;  %v4272_v58 = vmul.f32 1.442695, %v4185_v46  ;;  %v4464_v45 = vmul.f32 1.442695, %v4377_v52  ;;  %v5954_v31 = vor.u32 %v6509_v35, %v5951_v47  ;;  %v10079_v35 = vld [vmem:[#allocation2 + $0x290] sm:$0xff] }
 0x270   :  { %13955 = vst [vmem:[#allocation297_spill] sm:$0xff] %v10035_v10  ;;  %v10051_v37 = vpop.eup %7068  ;;  %7080 = vpow2.f32 %v4462_v20  ;;  %v3348_v10 = vsub.f32 %v116_v6, %v3284_v49  ;;  %v3540_v44 = vsub.f32 %v3220_v9, %v3284_v49  ;;  %v10069_v20 = vpop.f32.mrf.mxu2  ;;  %v5949_v49 = vld [vmem:[%s12974_s2 + $0x10] sm:$0xf]  ;;  %v6512_v6 = vld [vmem:[%s12974_s2 + $0x24] sm:$0xf0] }
 0x271   :  { %13956 = vst [vmem:[#allocation298_spill] sm:$0xff] %v10041_v14  ;;  %v10061_v14 = vpop.eup %7070  ;;  %7082 = vpow2.f32 %v3434_v12  ;;  %1802 = vmatpush.bf16.msra.mxu2 %v5954_v31  ;;  %v10087_v9 = vpop.f32.mrf.mxu3 }
 0x272   :  { %5017 = vst [vmem:[#allocation6 + $0x238] sm:$0xff] %v4121_v57  ;;  %v6143_v57 = vld [vmem:[%s12974_s2 + $0x1a8] sm:$0xf0]  ;;  %v4823_v25 = vmul.f32 %v10061_v14, %v103_v43  ;;  %7084 = vpow2.f32 %v3626_v59  ;;  %v4122_v43 = vmax.f32 %v4058_v61, %v10033_v19 }
 0x273   :  { %13957 = vst [vmem:[#allocation299_spill] sm:$0xff] %v10051_v37  ;;  %v10063_v37 = vpop.eup %7072  ;;  %v6146_v40 = vor.u32 %v6557_v16, %v6143_v57  ;;  %7086 = vpow2.f32 %v4272_v58  ;;  %v3436_v16 = vmul.f32 1.442695, %v3348_v10  ;;  %v6560_v10 = vld [vmem:[%s12974_s2 + $0x1a4] sm:$0xf0] }
 0x274   :  { %13958 = vst [vmem:[#allocation300_spill] sm:$0xff] %v10061_v14  ;;  %v10071_v46 = vpop.eup %7074  ;;  %v4887_v52 = vadd.f32 %v10063_v37, %v4823_v25  ;;  %7088 = vpow2.f32 %v4464_v45  ;;  %v4186_v12 = vsub.f32 %v4058_v61, %v4122_v43  ;;  %v4378_v59 = vsub.f32 %v10033_v19, %v4122_v43  ;;  %v6141_v19 = vld [vmem:[%s12974_s2 + $0x190] sm:$0xf] }
 0x275   :  { %13959 = vst [vmem:[#allocation301_spill] sm:$0xff] %v10063_v37  ;;  %v10089_v58 = vpop.eup %7076  ;;  %v4824_v47 = vmul.f32 %v10071_v46, %v108_v11  ;;  %1891 = vmatpush.bf16.msra.mxu3 %v6146_v40  ;;  %v4059_v25 = vadd.f32 %v9340_v23, %v10067_v8  ;;  %7090 = vpow2.f32 %v3436_v16  ;;  %v4060_v40 = vadd.f32 %v9324_v21, %v10079_v35  ;;  %v10111_v11 = vld [vmem:[#allocation2 + $0x298] sm:$0xff] }
 0x276   :  { %4950 = vst [vmem:[#allocation6 + $0x1f0] sm:$0xff] %v4886_v42  ;;  %v10077_v42 = vadd.f32 %v9976_v15, %v9971_v4  ;;  %v3628_v4 = vmul.f32 1.442695, %v3540_v44  ;;  %v10092_v15 = vpop.eup %7078  ;;  %v1392_v44 = vadd.f32 %v9997_v50, %v9995_v0  ;;  %v5950_v45 = vor.u32 %v6512_v6, %v5949_v49 }
 0x277   :  { %13960 = vst [vmem:[#allocation302_spill] sm:$0xff] %v10071_v46  ;;  %v10099_v31 = vpop.eup %7080  ;;  %v4274_v0 = vmul.f32 1.442695, %v4186_v12  ;;  %v4466_v50 = vmul.f32 1.442695, %v4378_v59  ;;  %v10127_v12 = vpop.f32.mrf.mxu0 }
 0x278   :  { %13961 = vst [vmem:[#allocation303_spill] sm:$0xff] %v10089_v58  ;;  %v3221_v57 = vadd.f32 %v9371_v55, %v10077_v42  ;;  %v10113_v61 = vpop.eup %7082  ;;  %7092 = vpow2.f32 %v3628_v4  ;;  %v4123_v6 = vmax.f32 %v4059_v25, %v10077_v42  ;;  %v3222_v46 = vadd.f32 %v9357_v3, %v1392_v44  ;;  %1624 = vmatpush.bf16.msra.mxu0 %v5950_v45  ;;  %v10129_v59 = vpop.f32.mrf.mxu1 }
 0x279   :  { %13962 = vst [vmem:[#allocation304_spill] sm:$0xff] %v10092_v15  ;;  %v10116_v16 = vpop.eup %7084  ;;  %v4124_v15 = vmax.f32 %v4060_v40, %v1392_v44  ;;  %7094 = vpow2.f32 %v4274_v0  ;;  %v4061_v4 = vadd.f32 %v9340_v23, %v10111_v11 }
 0x27a   :  { %4951 = vst [vmem:[#allocation6 + $0x1f8] sm:$0xff] %v4887_v52  ;;  %v4888_v52 = vadd.f32 %v10099_v31, %v4824_v47  ;;  %v3285_v49 = vmax.f32 %v10067_v8, %v3221_v57  ;;  %v10121_v58 = vpop.eup %7086  ;;  %v1570_v47 = vadd.f32 %v10018_v34, %v10011_v29  ;;  %7096 = vpow2.f32 %v4466_v50 }
 0x27b   :  { %13963 = vst [vmem:[#allocation305_spill] sm:$0xff] %v10099_v31  ;;  %v4379_v29 = vsub.f32 %v10077_v42, %v4123_v6  ;;  %v3286_v34 = vmax.f32 %v10079_v35, %v3222_v46  ;;  %v4188_v0 = vsub.f32 %v4060_v40, %v4124_v15  ;;  %v4380_v50 = vsub.f32 %v1392_v44, %v4124_v15 }
 0x27c   :  { %5018 = vst [vmem:[#allocation6 + $0x260] sm:$0xff] %v4122_v43  ;;  %v109_v43 = vld [vmem:[#allocation2 + $0x228] sm:$0xff]  ;;  %v3349_v45 = vsub.f32 %v10067_v8, %v3285_v49  ;;  %v10141_v8 = vpop.f32.mrf.mxu2  ;;  %v3223_v44 = vadd.f32 %v9371_v55, %v1570_v47 }
 0x27d   :  { %13964 = vst [vmem:[#allocation306_spill] sm:$0xff] %v10113_v61  ;;  %v6142_v61 = vor.u32 %v6560_v10, %v6141_v19  ;;  %v4825_v31 = vmul.f32 %v10121_v58, %v109_v43  ;;  %v13968_v19 = vld [vmem:[#allocation11_spill] sm:$0xff]  ;;  %v4187_v10 = vsub.f32 %v4059_v25, %v4123_v6  ;;  %v114_v25 = vld [vmem:[#allocation2 + $0x250] sm:$0xff]  ;;  %v3350_v40 = vsub.f32 %v10079_v35, %v3286_v34 }
 0x27e   :  { %13965 = vst [vmem:[#allocation307_spill] sm:$0xff] %v10116_v16  ;;  %v10131_v16 = vpop.eup %7088  ;;  %1803 = vmatmul.bf16.vlgmr.msra.gmra.mxu2 %v13968_v19  ;;  %v3438_v41 = vmul.f32 1.442695, %v3349_v45  ;;  %1625 = vmatmul.bf16.vlgmr.msra.gmra.mxu0 %v13968_v19 }
 0x27f   :  { %13966 = vst [vmem:[#allocation308_spill] sm:$0xff] %v10121_v58  ;;  %v10138_v37 = vpop.eup %7090  ;;  %v4889_v14 = vadd.f32 %v10131_v16, %v4825_v31  ;;  %1713 = vmatpush.bf16.msra.mxu1 %v6142_v61  ;;  %v4276_v42 = vmul.f32 1.442695, %v4187_v10  ;;  %v10147_v58 = vpop.f32.mrf.mxu3  ;;  %v4470_v31 = vmul.f32 1.442695, %v4380_v50  ;;  %v10151_v61 = vld [vmem:[#allocation2 + $0x2c0] sm:$0xff]  ;;  %v4125_v10 = vmax.f32 %v4061_v4, %v1570_v47 }
 0x280   :  { %4952 = vst [vmem:[#allocation6 + $0x220] sm:$0xff] %v4888_v52  ;;  %v3541_v52 = vsub.f32 %v3221_v57, %v3285_v49  ;;  %v10144_v57 = vpop.eup %7092  ;;  %v4468_v49 = vmul.f32 1.442695, %v4379_v29  ;;  %7098 = vpow2.f32 %v3438_v41  ;;  %v3287_v41 = vmax.f32 %v10111_v11, %v3223_v44 }
 0x281   :  { %13967 = vst [vmem:[#allocation309_spill] sm:$0xff] %v10131_v16  ;;  %v10153_v45 = vpop.eup %7094  ;;  %v4189_v29 = vsub.f32 %v4061_v4, %v4125_v10 }
 0x282   :  { %5019 = vst [vmem:[#allocation6 + $0x268] sm:$0xff] %v4123_v6  ;;  %v3630_v43 = vmul.f32 1.442695, %v3541_v52  ;;  %v3542_v6 = vsub.f32 %v3222_v46, %v3286_v34  ;;  %v3440_v52 = vmul.f32 1.442695, %v3350_v40  ;;  %v10156_v46 = vpop.eup %7096  ;;  %v4826_v35 = vmul.f32 %v10153_v45, %v114_v25  ;;  %v10166_v25 = vld [vmem:[#allocation2 + $0x2c8] sm:$0xff] }
 0x283   :  { %5020 = vst [vmem:[#allocation6 + $0x290] sm:$0xff] %v4124_v15  ;;  %v4278_v15 = vmul.f32 1.442695, %v4188_v0  ;;  %v4381_v34 = vsub.f32 %v1570_v47, %v4125_v10  ;;  %v4062_v0 = vadd.f32 %v9324_v21, %v10151_v61  ;;  %v3543_v50 = vsub.f32 %v3223_v44, %v3287_v41  ;;  %v10171_v47 = vpop.f32.mrf.mxu1 }
 0x284   :  { %13969 = vst [vmem:[#allocation11_spill] sm:$0xff] %v10138_v37  ;;  %v13971_v37 = vld [vmem:[#allocation12_spill] sm:$0xff]  ;;  %7100 = vpow2.f32 %v3630_v43  ;;  %v3632_v19 = vmul.f32 1.442695, %v3542_v6  ;;  %v4890_v43 = vadd.f32 %v10156_v46, %v4826_v35  ;;  %v4063_v35 = vadd.f32 %v9340_v23, %v10166_v25 }
 0x285   :  { %13970 = vst [vmem:[#allocation310_spill] sm:$0xff] %v10144_v57  ;;  %1892 = vmatmul.bf16.vlgmr.msra.gmra.mxu3 %v13971_v37  ;;  %1714 = vmatmul.bf16.vlgmr.msra.gmra.mxu1 %v13971_v37  ;;  %7102 = vpow2.f32 %v4276_v42  ;;  %v3351_v37 = vsub.f32 %v10111_v11, %v3287_v41  ;;  %v4280_v42 = vmul.f32 1.442695, %v4189_v29  ;;  %v4472_v40 = vmul.f32 1.442695, %v4381_v34 }
 0x286   :  { %4953 = vst [vmem:[#allocation6 + $0x228] sm:$0xff] %v4889_v14  ;;  %v1395_v14 = vadd.f32 %v10059_v54, %v10057_v32  ;;  %7104 = vpow2.f32 %v4468_v49  ;;  %v10169_v54 = vpop.f32.mrf.mxu0  ;;  %v10173_v4 = vpop.eup %7098  ;;  %v115_v49 = vld [vmem:[#allocation2 + $0x258] sm:$0xff]  ;;  %v10188_v34 = vadd.f32 %v10129_v59, %v10127_v12  ;;  %v134_v59 = vld [vmem:[#allocation2 + $0x2f0] sm:$0xff] }
 0x287   :  { %13972 = vst [vmem:[#allocation12_spill] sm:$0xff] %v10153_v45  ;;  %7106 = vpow2.f32 %v3440_v52  ;;  %v3442_v6 = vmul.f32 1.442695, %v3351_v37  ;;  %v3634_v52 = vmul.f32 1.442695, %v3543_v50  ;;  %v10196_v50 = vpop.f32.mrf.mxu3 }
 0x288   :  { %13973 = vst [vmem:[#allocation311_spill] sm:$0xff] %v10156_v46  ;;  %7108 = vpow2.f32 %v3632_v19  ;;  %v3224_v32 = vadd.f32 %v9357_v3, %v1395_v14  ;;  %v4126_v11 = vmax.f32 %v4062_v0, %v1395_v14  ;;  %v10245_v46 = vld [vmem:[#allocation2 + $0x320] sm:$0xff] }
 0x289   :  { %5021 = vst [vmem:[#allocation6 + $0x298] sm:$0xff] %v4125_v10  ;;  %7110 = vpow2.f32 %v4278_v15  ;;  %v10180_v10 = vadd.f32 %v10087_v9, %v10069_v20 }
 0x28a   :  { %13974 = vst [vmem:[#allocation312_spill] sm:$0xff] %v10173_v4  ;;  %v10175_v44 = vpop.eup %7100  ;;  %7112 = vpow2.f32 %v4470_v31  ;;  %v3288_v19 = vmax.f32 %v10151_v61, %v3224_v32  ;;  %v4190_v29 = vsub.f32 %v4062_v0, %v4126_v11  ;;  %v4382_v15 = vsub.f32 %v1395_v14, %v4126_v11  ;;  %v10190_v31 = vpop.f32.mrf.mxu2  ;;  %v120_v14 = vld [vmem:[#allocation2 + $0x280] sm:$0xff] }
 0x28b   :  { %4954 = vst [vmem:[#allocation6 + $0x250] sm:$0xff] %v4890_v43  ;;  %v10184_v41 = vpop.eup %7102  ;;  %7114 = vpow2.f32 %v3442_v6  ;;  %v3225_v12 = vadd.f32 %v9371_v55, %v10180_v10 }
 0x28c   :  { %13975 = vst [vmem:[#allocation313_spill] sm:$0xff] %v10175_v44  ;;  %v10192_v43 = vpop.eup %7104  ;;  %v4827_v20 = vmul.f32 %v10184_v41, %v115_v49  ;;  %7116 = vpow2.f32 %v3634_v52  ;;  %v3352_v9 = vsub.f32 %v10151_v61, %v3288_v19  ;;  %v3544_v37 = vsub.f32 %v3224_v32, %v3288_v19 }
 0x28d   :  { %13976 = vst [vmem:[#allocation314_spill] sm:$0xff] %v10184_v41  ;;  %v10198_v6 = vpop.eup %7106  ;;  %7118 = vpow2.f32 %v4280_v42  ;;  %v4282_v0 = vmul.f32 1.442695, %v4190_v29  ;;  %v3289_v19 = vmax.f32 %v10166_v25, %v3225_v12  ;;  %v4127_v42 = vmax.f32 %v4063_v35, %v10180_v10 }
 0x28e   :  { %5022 = vst [vmem:[#allocation6 + $0x2c0] sm:$0xff] %v4126_v11  ;;  %v4474_v11 = vmul.f32 1.442695, %v4382_v15  ;;  %v10202_v44 = vpop.eup %7108  ;;  %v4891_v49 = vadd.f32 %v10192_v43, %v4827_v20  ;;  %7120 = vpow2.f32 %v4472_v40  ;;  %v3444_v52 = vmul.f32 1.442695, %v3352_v9  ;;  %v13981_v15 = vld [vmem:[#allocation13_spill] sm:$0xff] }
 0x28f   :  { %13977 = vst [vmem:[#allocation315_spill] sm:$0xff] %v10192_v43  ;;  %v3636_v61 = vmul.f32 1.442695, %v3544_v37  ;;  %v10205_v32 = vpop.eup %7110  ;;  %7122 = vpow2.f32 %v4282_v0  ;;  %v3226_v29 = vadd.f32 %v9357_v3, %v10188_v34  ;;  %1808 = vmatmul.bf16.gmra.mxu2 %v13981_v15  ;;  %v4064_v40 = vadd.f32 %v9324_v21, %v134_v59  ;;  %v121_v0 = vld [vmem:[#allocation2 + $0x288] sm:$0xff]  ;;  %1630 = vmatmul.bf16.gmra.mxu0 %v13981_v15 }
 0x290   :  { %13978 = vst [vmem:[#allocation316_spill] sm:$0xff] %v10198_v6  ;;  %v10212_v6 = vpop.eup %7112  ;;  %v4828_v20 = vmul.f32 %v10205_v32, %v120_v14  ;;  %7124 = vpow2.f32 %v3444_v52  ;;  %v10218_v9 = vadd.f32 %v10147_v58, %v10141_v8  ;;  %v3545_v43 = vsub.f32 %v3225_v12, %v3289_v19  ;;  %v126_v52 = vld [vmem:[#allocation2 + $0x2b0] sm:$0xff] }
 0x291   :  { %13979 = vst [vmem:[#allocation317_spill] sm:$0xff] %v10202_v44  ;;  %v10220_v37 = vpop.eup %7114  ;;  %7126 = vpow2.f32 %v3636_v61  ;;  %v3353_v44 = vsub.f32 %v10166_v25, %v3289_v19  ;;  %v4191_v41 = vsub.f32 %v4063_v35, %v4127_v42  ;;  %v4383_v58 = vsub.f32 %v10180_v10, %v4127_v42  ;;  %v13985_v61 = vld [vmem:[#allocation14_spill] sm:$0xff] }
 0x292   :  { %13980 = vst [vmem:[#allocation318_spill] sm:$0xff] %v10205_v32  ;;  %v4892_v14 = vadd.f32 %v10212_v6, %v4828_v20  ;;  %7128 = vpow2.f32 %v4474_v11  ;;  %v3290_v8 = vmax.f32 %v134_v59, %v3226_v29  ;;  %v10228_v32 = vpop.f32.mrf.mxu0  ;;  %v3638_v12 = vmul.f32 1.442695, %v3545_v43 }
 0x293   :  { %13982 = vst [vmem:[#allocation13_spill] sm:$0xff] %v10212_v6  ;;  %v3446_v35 = vmul.f32 1.442695, %v3353_v44  ;;  %v4284_v19 = vmul.f32 1.442695, %v4191_v41  ;;  %v4128_v15 = vmax.f32 %v4064_v40, %v10188_v34  ;;  %v135_v41 = vld [vmem:[#allocation2 + $0x2f8] sm:$0xff]  ;;  %v3227_v43 = vadd.f32 %v9371_v55, %v10218_v9 }
 0x294   :  { %4955 = vst [vmem:[#allocation6 + $0x258] sm:$0xff] %v4891_v49  ;;  %v10224_v49 = vpop.eup %7116  ;;  %v4476_v10 = vmul.f32 1.442695, %v4383_v58  ;;  %v3546_v20 = vsub.f32 %v3226_v29, %v3290_v8 }
 0x295   :  { %13983 = vst [vmem:[#allocation319_spill] sm:$0xff] %v10220_v37  ;;  %v10230_v37 = vpop.f32.mrf.mxu1  ;;  %1897 = vmatmul.bf16.gmra.mxu3 %v13985_v61  ;;  %v10233_v25 = vpop.eup %7118  ;;  %1719 = vmatmul.bf16.gmra.mxu1 %v13985_v61  ;;  %7130 = vpow2.f32 %v3446_v35  ;;  %v4192_v4 = vsub.f32 %v4064_v40, %v4128_v15  ;;  %v4384_v44 = vsub.f32 %v10188_v34, %v4128_v15  ;;  %v6617_v34 = vld [vmem:[%s12975_s3 + $0x74] sm:$0xf]  ;;  %v6439_v40 = vld [vmem:[%s12975_s3 + $0x78] sm:$0xf0] }
 0x296   :  { %5023 = vst [vmem:[#allocation6 + $0x2c8] sm:$0xff] %v4127_v42  ;;  %v4829_v11 = vmul.f32 %v10233_v25, %v121_v0  ;;  %v3354_v42 = vsub.f32 %v134_v59, %v3290_v8  ;;  %7132 = vpow2.f32 %v3638_v12  ;;  %v10259_v8 = vpop.f32.mrf.mxu3  ;;  %v3640_v35 = vmul.f32 1.442695, %v3546_v20 }
 0x297   :  { %13984 = vst [vmem:[#allocation320_spill] sm:$0xff] %v10224_v49  ;;  %v10236_v49 = vpop.eup %7120  ;;  %7134 = vpow2.f32 %v4284_v19  ;;  %v4065_v12 = vadd.f32 %v9340_v23, %v135_v41  ;;  %v6503_v19 = vld [vmem:[%s12975_s3 + $0xf8] sm:$0xf0]  ;;  %v6442_v20 = vor.u32 %v6617_v34, %v6439_v40 }
 0x298   :  { %13986 = vst [vmem:[#allocation14_spill] sm:$0xff] %v10233_v25  ;;  %v10240_v6 = vpop.eup %7122  ;;  %v4893_v59 = vadd.f32 %v10236_v49, %v4829_v11  ;;  %v3448_v58 = vmul.f32 1.442695, %v3354_v42  ;;  %v4478_v11 = vmul.f32 1.442695, %v4384_v44  ;;  %7136 = vpow2.f32 %v4476_v10 }
 0x299   :  { %13987 = vst [vmem:[#allocation321_spill] sm:$0xff] %v10236_v49  ;;  %v10249_v0 = vpop.eup %7124  ;;  %v4830_v29 = vmul.f32 %v10240_v6, %v126_v52  ;;  %v3291_v52 = vmax.f32 %v135_v41, %v3227_v43  ;;  %v1400_v42 = vadd.f32 %v10171_v47, %v10169_v54  ;;  %v4066_v10 = vadd.f32 %v9324_v21, %v10245_v46 }
 0x29a   :  { %4956 = vst [vmem:[#allocation6 + $0x280] sm:$0xff] %v4892_v14  ;;  %v10247_v14 = vpop.f32.mrf.mxu2  ;;  %v10261_v61 = vpop.eup %7126  ;;  %7138 = vpow2.f32 %v3448_v58  ;;  %v4129_v54 = vmax.f32 %v4065_v12, %v10218_v9  ;;  %5652 = vmatpush.bf16.msrb.mxu2 %v6442_v20 }
 0x29b   :  { %13988 = vst [vmem:[#allocation322_spill] sm:$0xff] %v10240_v6  ;;  %v6633_v6 = vld [vmem:[%s12975_s3 + $0xf4] sm:$0xf]  ;;  %7140 = vpow2.f32 %v3640_v35  ;;  %v3355_v44 = vsub.f32 %v135_v41, %v3291_v52  ;;  %v3228_v49 = vadd.f32 %v9357_v3, %v1400_v42  ;;  %v4130_v25 = vmax.f32 %v4066_v10, %v1400_v42  ;;  %v10283_v41 = vpop.f32.mrf.mxu0 }
 0x29c   :  { %5024 = vst [vmem:[#allocation6 + $0x2f0] sm:$0xff] %v4128_v15  ;;  %v4286_v15 = vmul.f32 1.442695, %v4192_v4  ;;  %v4193_v40 = vsub.f32 %v4065_v12, %v4129_v54 }
 0x29d   :  { %13989 = vst [vmem:[#allocation323_spill] sm:$0xff] %v10249_v0  ;;  %v10263_v0 = vpop.eup %7128  ;;  %v4386_v20 = vsub.f32 %v1400_v42, %v4130_v25 }
 0x29e   :  { %13990 = vst [vmem:[#allocation324_spill] sm:$0xff] %v10261_v61  ;;  %v4894_v4 = vadd.f32 %v10263_v0, %v4830_v29  ;;  %v10278_v47 = vpop.eup %7130  ;;  %v127_v61 = vld [vmem:[#allocation2 + $0x2b8] sm:$0xff]  ;;  %7142 = vpow2.f32 %v4286_v15  ;;  %v6506_v29 = vor.u32 %v6633_v6, %v6503_v19  ;;  %v4385_v15 = vsub.f32 %v10218_v9, %v4129_v54  ;;  %v132_v19 = vld [vmem:[#allocation2 + $0x2e0] sm:$0xff] }
 0x29f   :  { %13991 = vst [vmem:[#allocation325_spill] sm:$0xff] %v10263_v0  ;;  %v10281_v58 = vpop.eup %7132  ;;  %7144 = vpow2.f32 %v4478_v11  ;;  %v3450_v0 = vmul.f32 1.442695, %v3355_v44  ;;  %v4288_v12 = vmul.f32 1.442695, %v4193_v40  ;;  %v10296_v44 = vadd.f32 %v10196_v50, %v10190_v31 }
 0x2a0   :  { %4957 = vst [vmem:[#allocation6 + $0x288] sm:$0xff] %v4893_v59  ;;  %v3547_v59 = vsub.f32 %v3227_v43, %v3291_v52  ;;  %v10285_v43 = vpop.f32.mrf.mxu1  ;;  %v10287_v35 = vpop.eup %7134  ;;  %v3292_v52 = vmax.f32 %v10245_v46, %v3228_v49  ;;  %5741 = vmatpush.bf16.msrb.mxu3 %v6506_v29  ;;  %v4480_v9 = vmul.f32 1.442695, %v4385_v15  ;;  %v13997_v29 = vld [vmem:[#allocation15_spill] sm:$0xff]  ;;  %v4482_v40 = vmul.f32 1.442695, %v4386_v20 }
 0x2a1   :  { %13992 = vst [vmem:[#allocation326_spill] sm:$0xff] %v10278_v47  ;;  %v10291_v6 = vpop.eup %7136  ;;  %v4831_v11 = vmul.f32 %v10287_v35, %v127_v61  ;;  %7146 = vpow2.f32 %v3450_v0  ;;  %v6437_v0 = vld [vmem:[%s12975_s3 + $0x70] sm:$0xf]  ;;  %1813 = vmatmul.bf16.gmra.mxu2 %v13997_v29  ;;  %1635 = vmatmul.bf16.gmra.mxu0 %v13997_v29 }
 0x2a2   :  { %4958 = vst [vmem:[#allocation6 + $0x2b0] sm:$0xff] %v4894_v4  ;;  %v3642_v34 = vmul.f32 1.442695, %v3547_v59  ;;  %v4194_v4 = vsub.f32 %v4066_v10, %v4130_v25  ;;  %v10298_v59 = vpop.eup %7138  ;;  %v3356_v10 = vsub.f32 %v10245_v46, %v3292_v52  ;;  %v3548_v42 = vsub.f32 %v3228_v49, %v3292_v52  ;;  %v10306_v61 = vpop.f32.mrf.mxu2  ;;  %v6618_v46 = vld [vmem:[%s12975_s3 + $0x74] sm:$0xf0] }
 0x2a3   :  { %13993 = vst [vmem:[#allocation327_spill] sm:$0xff] %v10281_v58  ;;  %v10309_v31 = vpop.eup %7140  ;;  %v4895_v50 = vadd.f32 %v10291_v6, %v4831_v11  ;;  %v10315_v49 = vpop.f32.mrf.mxu3  ;;  %v6438_v29 = vor.u32 %v6618_v46, %v6437_v0 }
 0x2a4   :  { %5025 = vst [vmem:[#allocation6 + $0x2f8] sm:$0xff] %v4129_v54  ;;  %7148 = vpow2.f32 %v3642_v34  ;;  %v10301_v54 = vld [vmem:[#allocation2 + $0x350] sm:$0xff]  ;;  %v4290_v34 = vmul.f32 1.442695, %v4194_v4  ;;  %v10317_v15 = vpop.eup %7142  ;;  %v3452_v52 = vmul.f32 1.442695, %v3356_v10  ;;  %v10353_v45 = vpop.f32.mrf.mxu0 }
 0x2a5   :  { %13994 = vst [vmem:[#allocation328_spill] sm:$0xff] %v10287_v35  ;;  %7150 = vpow2.f32 %v4288_v12  ;;  %v3229_v35 = vadd.f32 %v9371_v55, %v10296_v44  ;;  %v10322_v11 = vpop.eup %7144  ;;  %v4832_v4 = vmul.f32 %v10317_v15, %v132_v19  ;;  %v10328_v12 = vadd.f32 %v10230_v37, %v10228_v32  ;;  %v6634_v19 = vld [vmem:[%s12975_s3 + $0xf4] sm:$0xf0]  ;;  %v133_v37 = vld [vmem:[#allocation2 + $0x2e8] sm:$0xff]  ;;  %5474 = vmatpush.bf16.msrb.mxu0 %v6438_v29 }
 0x2a6   :  { %5026 = vst [vmem:[#allocation6 + $0x320] sm:$0xff] %v4130_v25  ;;  %v141_v25 = vld [vmem:[#allocation2 + $0x328] sm:$0xff]  ;;  %7152 = vpow2.f32 %v4480_v9 }
 0x2a7   :  { %13995 = vst [vmem:[#allocation329_spill] sm:$0xff] %v10291_v6  ;;  %7154 = vpow2.f32 %v4290_v34  ;;  %v4067_v20 = vadd.f32 %v9340_v23, %v141_v25  ;;  %v14001_v9 = vld [vmem:[#allocation16_spill] sm:$0xff]  ;;  %v3293_v10 = vmax.f32 %v141_v25, %v3229_v35  ;;  %v10339_v34 = vpop.eup %7146  ;;  %v4896_v32 = vadd.f32 %v10322_v11, %v4832_v4  ;;  %v138_v4 = vld [vmem:[#allocation2 + $0x310] sm:$0xff] }
 0x2a8   :  { %13996 = vst [vmem:[#allocation330_spill] sm:$0xff] %v10298_v59  ;;  %v3644_v59 = vmul.f32 1.442695, %v3548_v42  ;;  %1902 = vmatmul.bf16.gmra.mxu3 %v14001_v9  ;;  %7156 = vpow2.f32 %v3452_v52  ;;  %v4068_v42 = vadd.f32 %v9324_v21, %v10301_v54  ;;  %1724 = vmatmul.bf16.gmra.mxu1 %v14001_v9  ;;  %v10355_v9 = vpop.f32.mrf.mxu1 }
 0x2a9   :  { %13998 = vst [vmem:[#allocation15_spill] sm:$0xff] %v10309_v31  ;;  %v4131_v52 = vmax.f32 %v4067_v20, %v10296_v44  ;;  %v3357_v46 = vsub.f32 %v141_v25, %v3293_v10  ;;  %v3549_v31 = vsub.f32 %v3229_v35, %v3293_v10 }
 0x2aa   :  { %13999 = vst [vmem:[#allocation331_spill] sm:$0xff] %v10317_v15  ;;  %7158 = vpow2.f32 %v3644_v59  ;;  %v3230_v15 = vadd.f32 %v9357_v3, %v10328_v12  ;;  %v10346_v0 = vpop.eup %7148  ;;  %v4132_v6 = vmax.f32 %v4068_v42, %v10328_v12 }
 0x2ab   :  { %14000 = vst [vmem:[#allocation332_spill] sm:$0xff] %v10322_v11  ;;  %7160 = vpow2.f32 %v4482_v40  ;;  %v4195_v59 = vsub.f32 %v4067_v20, %v4131_v52  ;;  %v4387_v11 = vsub.f32 %v10296_v44, %v4131_v52  ;;  %v3454_v25 = vmul.f32 1.442695, %v3357_v46 }
 0x2ac   :  { %4959 = vst [vmem:[#allocation6 + $0x2b8] sm:$0xff] %v4895_v50  ;;  %v6501_v50 = vld [vmem:[%s12975_s3 + $0xf0] sm:$0xf]  ;;  %v3294_v58 = vmax.f32 %v10301_v54, %v3230_v15  ;;  %v3646_v10 = vmul.f32 1.442695, %v3549_v31  ;;  %v4196_v29 = vsub.f32 %v4068_v42, %v4132_v6  ;;  %v10369_v42 = vld [vmem:[#allocation2 + $0x380] sm:$0xff] }
 0x2ad   :  { %14002 = vst [vmem:[#allocation16_spill] sm:$0xff] %v10339_v34  ;;  %v10349_v34 = vpop.eup %7150  ;;  %v6502_v47 = vor.u32 %v6634_v19, %v6501_v50  ;;  %v4292_v20 = vmul.f32 1.442695, %v4195_v59  ;;  %v10363_v50 = vld [vmem:[#allocation2 + $0x358] sm:$0xff]  ;;  %7162 = vpow2.f32 %v3454_v25  ;;  %v10386_v25 = vld [vmem:[#allocation2 + $0x388] sm:$0xff] }
 0x2ae   :  { %14003 = vst [vmem:[#allocation333_spill] sm:$0xff] %v10346_v0  ;;  %v10357_v40 = vpop.eup %7152  ;;  %v4833_v35 = vmul.f32 %v10349_v34, %v133_v37  ;;  %v4484_v0 = vmul.f32 1.442695, %v4387_v11  ;;  %v3358_v44 = vsub.f32 %v10301_v54, %v3294_v58  ;;  %v3550_v57 = vsub.f32 %v3230_v15, %v3294_v58  ;;  %v10376_v15 = vpop.f32.mrf.mxu3 }
 0x2af   :  { %4960 = vst [vmem:[#allocation6 + $0x2e0] sm:$0xff] %v4896_v32  ;;  %v10360_v32 = vpop.eup %7154  ;;  %5563 = vmatpush.bf16.msrb.mxu1 %v6502_v47  ;;  %v4294_v31 = vmul.f32 1.442695, %v4196_v29  ;;  %7164 = vpow2.f32 %v3646_v10  ;;  %v4388_v47 = vsub.f32 %v10328_v12, %v4132_v6  ;;  %v4069_v59 = vadd.f32 %v9340_v23, %v10363_v50  ;;  %v139_v29 = vld [vmem:[#allocation2 + $0x318] sm:$0xff] }
 0x2b0   :  { %14004 = vst [vmem:[#allocation334_spill] sm:$0xff] %v10357_v40  ;;  %v10365_v19 = vpop.eup %7156  ;;  %v4897_v16 = vadd.f32 %v10357_v40, %v4833_v35  ;;  %v4834_v37 = vmul.f32 %v10360_v32, %v138_v4  ;;  %v3456_v58 = vmul.f32 1.442695, %v3358_v44  ;;  %v3648_v54 = vmul.f32 1.442695, %v3550_v57 }
 0x2b1   :  { %5027 = vst [vmem:[#allocation6 + $0x328] sm:$0xff] %v4131_v52  ;;  %v10371_v52 = vpop.f32.mrf.mxu2  ;;  %v10373_v11 = vpop.eup %7158  ;;  %7166 = vpow2.f32 %v4292_v20  ;;  %v1580_v4 = vadd.f32 %v10259_v8, %v10247_v14  ;;  %v1405_v35 = vadd.f32 %v10285_v43, %v10283_v41  ;;  %v4070_v12 = vadd.f32 %v9324_v21, %v10369_v42 }
 0x2b2   :  { %14005 = vst [vmem:[#allocation335_spill] sm:$0xff] %v10360_v32  ;;  %v10378_v46 = vpop.eup %7160  ;;  %7168 = vpow2.f32 %v4484_v0  ;;  %v10395_v41 = vadd.f32 %v10315_v49, %v10306_v61  ;;  %v10399_v43 = vadd.f32 %v9340_v23, %v10386_v25 }
 0x2b3   :  { %5028 = vst [vmem:[#allocation6 + $0x350] sm:$0xff] %v4132_v6  ;;  %v4898_v57 = vadd.f32 %v10378_v46, %v4834_v37  ;;  %v4486_v6 = vmul.f32 1.442695, %v4388_v47  ;;  %7170 = vpow2.f32 %v3456_v58  ;;  %v4133_v10 = vmax.f32 %v4069_v59, %v1580_v4  ;;  %v10401_v0 = vpop.eup %7162  ;;  %v14010_v58 = vld [vmem:[#allocation17_spill] sm:$0xff] }
 0x2b4   :  { %14006 = vst [vmem:[#allocation336_spill] sm:$0xff] %v10365_v19  ;;  %v3232_v14 = vadd.f32 %v9357_v3, %v1405_v35  ;;  %7172 = vpow2.f32 %v3648_v54  ;;  %v4134_v8 = vmax.f32 %v4070_v12, %v1405_v35  ;;  %1818 = vmatmul.bf16.gmra.mxu2 %v14010_v58  ;;  %1640 = vmatmul.bf16.gmra.mxu0 %v14010_v58  ;;  %v14012_v19 = vld [vmem:[#allocation18_spill] sm:$0xff] }
 0x2b5   :  { %14007 = vst [vmem:[#allocation337_spill] sm:$0xff] %v10373_v11  ;;  %7174 = vpow2.f32 %v4294_v31  ;;  %v4197_v44 = vsub.f32 %v4069_v59, %v4133_v10  ;;  %v4389_v37 = vsub.f32 %v1580_v4, %v4133_v10  ;;  %v10405_v54 = vpop.eup %7164  ;;  %v10420_v11 = vld [vmem:[#allocation2 + $0x3b0] sm:$0xff] }
 0x2b6   :  { %14008 = vst [vmem:[#allocation338_spill] sm:$0xff] %v10378_v46  ;;  %7176 = vpow2.f32 %v4486_v6  ;;  %v3296_v61 = vmax.f32 %v10369_v42, %v3232_v14  ;;  %v4198_v49 = vsub.f32 %v4070_v12, %v4134_v8  ;;  %v4390_v47 = vsub.f32 %v1405_v35, %v4134_v8  ;;  %v144_v12 = vld [vmem:[#allocation2 + $0x340] sm:$0xff]  ;;  %v10430_v58 = vpop.f32.mrf.mxu3 }
 0x2b7   :  { %4961 = vst [vmem:[#allocation6 + $0x2e8] sm:$0xff] %v4897_v16  ;;  %v3231_v16 = vadd.f32 %v9371_v55, %v1580_v4  ;;  %v10412_v31 = vpop.eup %7166  ;;  %v4488_v46 = vmul.f32 1.442695, %v4389_v37 }
 0x2b8   :  { %4962 = vst [vmem:[#allocation6 + $0x310] sm:$0xff] %v4898_v57  ;;  %v10408_v57 = vpop.f32.mrf.mxu0  ;;  %v4835_v6 = vmul.f32 %v10412_v31, %v139_v29  ;;  %v3360_v35 = vsub.f32 %v10369_v42, %v3296_v61  ;;  %v4298_v32 = vmul.f32 1.442695, %v4198_v49  ;;  %1907 = vmatmul.bf16.gmra.mxu3 %v14012_v19  ;;  %1729 = vmatmul.bf16.gmra.mxu1 %v14012_v19 }
 0x2b9   :  { %14009 = vst [vmem:[#allocation339_spill] sm:$0xff] %v10401_v0  ;;  %v3295_v20 = vmax.f32 %v10363_v50, %v3231_v16  ;;  %v10410_v0 = vpop.f32.mrf.mxu1  ;;  %v3233_v49 = vadd.f32 %v9371_v55, %v10395_v41  ;;  %v4072_v19 = vadd.f32 %v9324_v21, %v10420_v11 }
 0x2ba   :  { %5029 = vst [vmem:[#allocation6 + $0x358] sm:$0xff] %v4133_v10  ;;  %v4296_v10 = vmul.f32 1.442695, %v4197_v44  ;;  %v10425_v44 = vpop.f32.mrf.mxu2  ;;  %v3460_v42 = vmul.f32 1.442695, %v3360_v35 }
 0x2bb   :  { %14011 = vst [vmem:[#allocation17_spill] sm:$0xff] %v10405_v54  ;;  %v3359_v59 = vsub.f32 %v10363_v50, %v3295_v20  ;;  %v3551_v4 = vsub.f32 %v3231_v16, %v3295_v20  ;;  %v10416_v54 = vpop.eup %7168  ;;  %v4490_v20 = vmul.f32 1.442695, %v4390_v47  ;;  %v4135_v47 = vmax.f32 %v10399_v43, %v10395_v41 }
 0x2bc   :  { %5030 = vst [vmem:[#allocation6 + $0x380] sm:$0xff] %v4134_v8  ;;  %v3552_v8 = vsub.f32 %v3232_v14, %v3296_v61  ;;  %v10423_v40 = vpop.eup %7170  ;;  %7178 = vpow2.f32 %v4296_v10  ;;  %v4899_v29 = vadd.f32 %v10416_v54, %v4835_v6  ;;  %v10448_v10 = vadd.f32 %v10376_v15, %v10371_v52  ;;  %v145_v6 = vld [vmem:[#allocation2 + $0x348] sm:$0xff] }
 0x2bd   :  { %14013 = vst [vmem:[#allocation18_spill] sm:$0xff] %v10423_v40  ;;  %v3458_v50 = vmul.f32 1.442695, %v3359_v59  ;;  %v3650_v16 = vmul.f32 1.442695, %v3551_v4  ;;  %v10427_v37 = vpop.eup %7172  ;;  %7180 = vpow2.f32 %v4488_v46  ;;  %v1407_v59 = vadd.f32 %v10355_v9, %v10353_v45 }
 0x2be   :  { %14014 = vst [vmem:[#allocation340_spill] sm:$0xff] %v10427_v37  ;;  %v3652_v14 = vmul.f32 1.442695, %v3552_v8  ;;  %v10433_v61 = vpop.eup %7174  ;;  %v3297_v35 = vmax.f32 %v10386_v25, %v3233_v49  ;;  %v4199_v8 = vsub.f32 %v10399_v43, %v4135_v47  ;;  %v4391_v45 = vsub.f32 %v10395_v41, %v4135_v47 }
 0x2bf   :  { %14015 = vst [vmem:[#allocation341_spill] sm:$0xff] %v10433_v61  ;;  %7182 = vpow2.f32 %v3458_v50  ;;  %v10441_v4 = vpop.eup %7176  ;;  %v4836_v46 = vmul.f32 %v10433_v61, %v144_v12  ;;  %v3234_v12 = vadd.f32 %v9357_v3, %v1407_v59  ;;  %v4136_v50 = vmax.f32 %v4072_v19, %v1407_v59 }
 0x2c0   :  { %14016 = vst [vmem:[#allocation342_spill] sm:$0xff] %v10441_v4  ;;  %7184 = vpow2.f32 %v3650_v16  ;;  %v3361_v52 = vsub.f32 %v10386_v25, %v3297_v35  ;;  %v3553_v15 = vsub.f32 %v3233_v49, %v3297_v35  ;;  %v4492_v41 = vmul.f32 1.442695, %v4391_v45  ;;  %v159_v49 = vld [vmem:[#allocation2 + $0x3b8] sm:$0xff] }
 0x2c1   :  { %4963 = vst [vmem:[#allocation6 + $0x318] sm:$0xff] %v4899_v29  ;;  %7186 = vpow2.f32 %v3460_v42  ;;  %v4900_v9 = vadd.f32 %v10441_v4, %v4836_v46  ;;  %v4300_v29 = vmul.f32 1.442695, %v4199_v8  ;;  %v10464_v46 = vpop.f32.mrf.mxu1  ;;  %v4200_v25 = vsub.f32 %v4072_v19, %v4136_v50  ;;  %v10476_v19 = vld [vmem:[#allocation2 + $0x3e0] sm:$0xff] }
 0x2c2   :  { %5031 = vst [vmem:[#allocation6 + $0x388] sm:$0xff] %v4135_v47  ;;  %7188 = vpow2.f32 %v3652_v14  ;;  %v10455_v16 = vpop.eup %7178  ;;  %v3298_v47 = vmax.f32 %v10420_v11, %v3234_v12  ;;  %v10462_v14 = vpop.f32.mrf.mxu0  ;;  %v3654_v61 = vmul.f32 1.442695, %v3553_v15 }
 0x2c3   :  { %14017 = vst [vmem:[#allocation343_spill] sm:$0xff] %v10455_v16  ;;  %7190 = vpow2.f32 %v4298_v32  ;;  %v10458_v42 = vpop.eup %7180  ;;  %v4837_v43 = vmul.f32 %v10455_v16, %v145_v6  ;;  %v3462_v32 = vmul.f32 1.442695, %v3361_v52  ;;  %v4302_v16 = vmul.f32 1.442695, %v4200_v25  ;;  %v10478_v15 = vpop.f32.mrf.mxu2 }
 0x2c4   :  { %14018 = vst [vmem:[#allocation344_spill] sm:$0xff] %v10458_v42  ;;  %7192 = vpow2.f32 %v4490_v20  ;;  %v3362_v20 = vsub.f32 %v10420_v11, %v3298_v47  ;;  %v3554_v8 = vsub.f32 %v3234_v12, %v3298_v47  ;;  %v3235_v52 = vadd.f32 %v9371_v55, %v10448_v10 }
 0x2c5   :  { %4964 = vst [vmem:[#allocation6 + $0x340] sm:$0xff] %v4900_v9  ;;  %v10466_v4 = vpop.eup %7182  ;;  %7194 = vpow2.f32 %v4300_v29  ;;  %v4901_v6 = vadd.f32 %v10458_v42, %v4837_v43  ;;  %v150_v9 = vld [vmem:[#allocation2 + $0x370] sm:$0xff]  ;;  %v4073_v12 = vadd.f32 %v9340_v23, %v159_v49  ;;  %v10489_v25 = vadd.f32 %v10410_v0, %v10408_v57  ;;  %v6615_v57 = vld [vmem:[%s12975_s3 + $0x64] sm:$0xf] }
 0x2c6   :  { %14019 = vst [vmem:[#allocation345_spill] sm:$0xff] %v10466_v4  ;;  %v10468_v35 = vpop.eup %7184  ;;  %7196 = vpow2.f32 %v4492_v41  ;;  %v4392_v4 = vsub.f32 %v1407_v59, %v4136_v50  ;;  %v3464_v43 = vmul.f32 1.442695, %v3362_v20  ;;  %v3656_v11 = vmul.f32 1.442695, %v3554_v8  ;;  %v10483_v41 = vpop.f32.mrf.mxu3  ;;  %v151_v59 = vld [vmem:[#allocation2 + $0x378] sm:$0xff] }
 0x2c7   :  { %5032 = vst [vmem:[#allocation6 + $0x3b0] sm:$0xff] %v4136_v50  ;;  %v10472_v45 = vpop.eup %7186  ;;  %7198 = vpow2.f32 %v3462_v32  ;;  %v3299_v32 = vmax.f32 %v159_v49, %v3235_v52  ;;  %v4137_v20 = vmax.f32 %v4073_v12, %v10448_v10  ;;  %v4074_v8 = vadd.f32 %v9324_v21, %v10476_v19 }
 0x2c8   :  { %14020 = vst [vmem:[#allocation346_spill] sm:$0xff] %v10468_v35  ;;  %v10480_v29 = vpop.eup %7188  ;;  %7200 = vpow2.f32 %v3654_v61  ;;  %v4494_v50 = vmul.f32 1.442695, %v4392_v4  ;;  %v3236_v0 = vadd.f32 %v9357_v3, %v10489_v25 }
 0x2c9   :  { %14021 = vst [vmem:[#allocation347_spill] sm:$0xff] %v10472_v45  ;;  %v10485_v47 = vpop.eup %7190  ;;  %7202 = vpow2.f32 %v4302_v16  ;;  %v14024_v45 = vld [vmem:[#allocation19_spill] sm:$0xff]  ;;  %v3363_v4 = vsub.f32 %v159_v49, %v3299_v32  ;;  %v3555_v16 = vsub.f32 %v3235_v52, %v3299_v32  ;;  %v14028_v32 = vld [vmem:[#allocation20_spill] sm:$0xff]  ;;  %v4393_v40 = vsub.f32 %v10448_v10, %v4137_v20 }
 0x2ca   :  { %14022 = vst [vmem:[#allocation348_spill] sm:$0xff] %v10480_v29  ;;  %1823 = vmatmul.bf16.gmra.mxu2 %v14024_v45  ;;  %v4838_v61 = vmul.f32 %v10485_v47, %v150_v9  ;;  %7204 = vpow2.f32 %v3464_v43  ;;  %v6431_v9 = vld [vmem:[%s12975_s3 + $0x68] sm:$0xf0]  ;;  %1645 = vmatmul.bf16.gmra.mxu0 %v14024_v45  ;;  %v156_v52 = vld [vmem:[#allocation2 + $0x3a0] sm:$0xff]  ;;  %v3300_v45 = vmax.f32 %v10476_v19, %v3236_v0  ;;  %v10528_v10 = vpop.f32.mrf.mxu0 }
 0x2cb   :  { %4965 = vst [vmem:[#allocation6 + $0x348] sm:$0xff] %v4901_v6  ;;  %v10492_v6 = vpop.eup %7192  ;;  %7206 = vpow2.f32 %v3656_v11  ;;  %v4201_v11 = vsub.f32 %v4073_v12, %v4137_v20  ;;  %1912 = vmatmul.bf16.gmra.mxu3 %v14028_v32  ;;  %v3466_v35 = vmul.f32 1.442695, %v3363_v4  ;;  %v3658_v37 = vmul.f32 1.442695, %v3555_v16  ;;  %1734 = vmatmul.bf16.gmra.mxu1 %v14028_v32 }
 0x2cc   :  { %14023 = vst [vmem:[#allocation349_spill] sm:$0xff] %v10485_v47  ;;  %v10498_v29 = vpop.eup %7194  ;;  %v4902_v47 = vadd.f32 %v10492_v6, %v4838_v61  ;;  %7208 = vpow2.f32 %v4494_v50  ;;  %v6631_v61 = vld [vmem:[%s12975_s3 + $0xe4] sm:$0xf]  ;;  %v4138_v50 = vmax.f32 %v4074_v8, %v10489_v25  ;;  %v6495_v4 = vld [vmem:[%s12975_s3 + $0xe8] sm:$0xf0] }
 0x2cd   :  { %14025 = vst [vmem:[#allocation19_spill] sm:$0xff] %v10492_v6  ;;  %v10509_v43 = vpop.eup %7196  ;;  %v4839_v49 = vmul.f32 %v10498_v29, %v151_v59  ;;  %v4304_v59 = vmul.f32 1.442695, %v4201_v11  ;;  %7210 = vpow2.f32 %v3466_v35  ;;  %v3556_v11 = vsub.f32 %v3236_v0, %v3300_v45  ;;  %v6493_v35 = vld [vmem:[%s12975_s3 + $0xe0] sm:$0xf] }
 0x2ce   :  { %14026 = vst [vmem:[#allocation350_spill] sm:$0xff] %v10498_v29  ;;  %v10514_v42 = vpop.eup %7198  ;;  %v6434_v29 = vor.u32 %v6615_v57, %v6431_v9  ;;  %v6429_v57 = vld [vmem:[%s12975_s3 + $0x60] sm:$0xf]  ;;  %7212 = vpow2.f32 %v3658_v37  ;;  %v4394_v32 = vsub.f32 %v10489_v25, %v4138_v50  ;;  %v10555_v0 = vmul.f32 %v9508_v22, %v9458_v7  ;;  %v170_v25 = vld [vmem:[#allocation2 + $0x410] sm:$0xff]  ;;  %v10566_v22 = vpop.f32.mrf.mxu3 }
 0x2cf   :  { %14027 = vst [vmem:[#allocation351_spill] sm:$0xff] %v10509_v43  ;;  %v10521_v6 = vpop.eup %7200  ;;  %v4903_v12 = vadd.f32 %v10509_v43, %v4839_v49  ;;  %v3364_v49 = vsub.f32 %v10476_v19, %v3300_v45  ;;  %7214 = vpow2.f32 %v4304_v59  ;;  %v1588_v7 = vadd.f32 %v10430_v58, %v10425_v44  ;;  %v157_v58 = vld [vmem:[#allocation2 + $0x3a8] sm:$0xff] }
 0x2d0   :  { %5033 = vst [vmem:[#allocation6 + $0x3b8] sm:$0xff] %v4137_v20  ;;  %v10530_v20 = vpop.f32.mrf.mxu1  ;;  %v10533_v16 = vpop.eup %7202  ;;  %5653 = vmatpush.bf16.msrb.mxu2 %v6434_v29  ;;  %v6498_v29 = vor.u32 %v6631_v61, %v6495_v4  ;;  %v4076_v4 = vadd.f32 %v9324_v21, %v170_v25 }
 0x2d1   :  { %14029 = vst [vmem:[#allocation20_spill] sm:$0xff] %v10514_v42  ;;  %v10539_v9 = vpop.eup %7204  ;;  %v4840_v43 = vmul.f32 %v10533_v16, %v156_v52  ;;  %v10543_v42 = vld [vmem:[#allocation2 + $0x3e8] sm:$0xff]  ;;  %v3468_v37 = vmul.f32 1.442695, %v3364_v49  ;;  %v10560_v52 = vpop.f32.mrf.mxu2 }
 0x2d2   :  { %14030 = vst [vmem:[#allocation352_spill] sm:$0xff] %v10521_v6  ;;  %v4202_v6 = vsub.f32 %v4074_v8, %v4138_v50  ;;  %v10551_v19 = vpop.eup %7206  ;;  %v6632_v8 = vld [vmem:[%s12975_s3 + $0xe4] sm:$0xf0]  ;;  %5742 = vmatpush.bf16.msrb.mxu3 %v6498_v29  ;;  %v4075_v61 = vadd.f32 %v9340_v23, %v10543_v42 }
 0x2d3   :  { %4966 = vst [vmem:[#allocation6 + $0x370] sm:$0xff] %v4902_v47  ;;  %v4496_v47 = vmul.f32 1.442695, %v4393_v40  ;;  %v6616_v40 = vld [vmem:[%s12975_s3 + $0x64] sm:$0xf0]  ;;  %v10562_v45 = vpop.eup %7208 }
 0x2d4   :  { %14031 = vst [vmem:[#allocation353_spill] sm:$0xff] %v10533_v16  ;;  %v4306_v16 = vmul.f32 1.442695, %v4202_v6  ;;  %v4904_v59 = vadd.f32 %v10562_v45, %v4840_v43  ;;  %v3237_v6 = vadd.f32 %v9371_v55, %v1588_v7  ;;  %v6430_v49 = vor.u32 %v6616_v40, %v6429_v57  ;;  %v10577_v44 = vpop.eup %7210 }
 0x2d5   :  { %14032 = vst [vmem:[#allocation354_spill] sm:$0xff] %v10539_v9  ;;  %7216 = vpow2.f32 %v4496_v47  ;;  %v4139_v43 = vmax.f32 %v4075_v61, %v1588_v7  ;;  %v10587_v57 = vadd.f32 %v10483_v41, %v10478_v15 }
 0x2d6   :  { %4967 = vst [vmem:[#allocation6 + $0x378] sm:$0xff] %v4903_v12  ;;  %v3660_v12 = vmul.f32 1.442695, %v3556_v11  ;;  %7218 = vpow2.f32 %v3468_v37  ;;  %v6494_v11 = vor.u32 %v6632_v8, %v6493_v35  ;;  %5475 = vmatpush.bf16.msrb.mxu0 %v6430_v49  ;;  %v10593_v49 = vpop.f32.mrf.mxu0 }
 0x2d7   :  { %14033 = vst [vmem:[#allocation355_spill] sm:$0xff] %v10551_v19  ;;  %v4498_v19 = vmul.f32 1.442695, %v4394_v32  ;;  %7220 = vpow2.f32 %v4306_v16  ;;  %v10581_v32 = vpop.eup %7212  ;;  %v4203_v16 = vsub.f32 %v4075_v61, %v4139_v43  ;;  %v4395_v37 = vsub.f32 %v1588_v7, %v4139_v43 }
 0x2d8   :  { %14034 = vst [vmem:[#allocation356_spill] sm:$0xff] %v10555_v0  ;;  %v10589_v40 = vpop.eup %7214  ;;  %5564 = vmatpush.bf16.msrb.mxu1 %v6494_v11  ;;  %v10595_v15 = vpop.f32.mrf.mxu1  ;;  %v10599_v11 = vld [vmem:[#allocation2 + $0x440] sm:$0xff] }
 0x2d9   :  { %5034 = vst [vmem:[#allocation6 + $0x3e0] sm:$0xff] %v4138_v50  ;;  %v10573_v50 = vadd.f32 %v10464_v46, %v10462_v14  ;;  %7222 = vpow2.f32 %v4498_v19  ;;  %v3301_v14 = vmax.f32 %v10543_v42, %v3237_v6  ;;  %v4841_v35 = vmul.f32 %v10589_v40, %v157_v58  ;;  %v162_v19 = vld [vmem:[#allocation2 + $0x3d0] sm:$0xff] }
 0x2da   :  { %14035 = vst [vmem:[#allocation357_spill] sm:$0xff] %v10562_v45  ;;  %7224 = vpow2.f32 %v3660_v12  ;;  %v4308_v12 = vmul.f32 1.442695, %v4203_v16  ;;  %v4500_v61 = vmul.f32 1.442695, %v4395_v37  ;;  %v14039_v58 = vld [vmem:[#allocation21_spill] sm:$0xff] }
 0x2db   :  { %14036 = vst [vmem:[#allocation358_spill] sm:$0xff] %v10577_v44  ;;  %v3238_v47 = vadd.f32 %v9357_v3, %v10573_v50  ;;  %v4140_v46 = vmax.f32 %v4076_v4, %v10573_v50  ;;  %v3365_v8 = vsub.f32 %v10543_v42, %v3301_v14  ;;  %v10597_v41 = vpop.eup %7216  ;;  %v171_v44 = vld [vmem:[#allocation2 + $0x418] sm:$0xff]  ;;  %1828 = vmatmul.bf16.gmra.mxu2 %v14039_v58 }
 0x2dc   :  { %4968 = vst [vmem:[#allocation6 + $0x3a0] sm:$0xff] %v4904_v59  ;;  %v3557_v59 = vsub.f32 %v3237_v6, %v3301_v14  ;;  %v4905_v42 = vadd.f32 %v10597_v41, %v4841_v35  ;;  %7226 = vpow2.f32 %v4308_v12  ;;  %1650 = vmatmul.bf16.gmra.mxu0 %v14039_v58  ;;  %v4077_v35 = vadd.f32 %v9340_v23, %v171_v44 }
 0x2dd   :  { %14037 = vst [vmem:[#allocation359_spill] sm:$0xff] %v10581_v32  ;;  %v3302_v29 = vmax.f32 %v170_v25, %v3238_v47  ;;  %v4204_v32 = vsub.f32 %v4076_v4, %v4140_v46  ;;  %v3470_v6 = vmul.f32 1.442695, %v3365_v8  ;;  %v10617_v8 = vpop.f32.mrf.mxu3  ;;  %v1415_v12 = vadd.f32 %v10530_v20, %v10528_v10 }
 0x2de   :  { %14038 = vst [vmem:[#allocation360_spill] sm:$0xff] %v10589_v40  ;;  %v10602_v40 = vpop.eup %7218  ;;  %v3662_v4 = vmul.f32 1.442695, %v3557_v59  ;;  %v14042_v59 = vld [vmem:[#allocation22_spill] sm:$0xff]  ;;  %v4141_v58 = vmax.f32 %v4077_v35, %v10587_v57 }
 0x2df   :  { %5035 = vst [vmem:[#allocation6 + $0x3e8] sm:$0xff] %v4139_v43  ;;  %v3366_v7 = vsub.f32 %v170_v25, %v3302_v29  ;;  %v3558_v43 = vsub.f32 %v3238_v47, %v3302_v29  ;;  %v4310_v14 = vmul.f32 1.442695, %v4204_v32  ;;  %v10605_v45 = vpop.eup %7220  ;;  %v4396_v25 = vsub.f32 %v10573_v50, %v4140_v46  ;;  %v10608_v47 = vpop.f32.mrf.mxu2  ;;  %1917 = vmatmul.bf16.gmra.mxu3 %v14042_v59 }
 0x2e0   :  { %5036 = vst [vmem:[#allocation6 + $0x410] sm:$0xff] %v4140_v46  ;;  %v10611_v37 = vpop.eup %7222  ;;  %v4842_v29 = vmul.f32 %v10605_v45, %v162_v19  ;;  %7228 = vpow2.f32 %v3470_v6  ;;  %v3239_v32 = vadd.f32 %v9371_v55, %v10587_v57  ;;  %v4078_v19 = vadd.f32 %v9324_v21, %v10599_v11  ;;  %1739 = vmatmul.bf16.gmra.mxu1 %v14042_v59 }
 0x2e1   :  { %14040 = vst [vmem:[#allocation21_spill] sm:$0xff] %v10605_v45  ;;  %v3472_v9 = vmul.f32 1.442695, %v3366_v7  ;;  %v3664_v16 = vmul.f32 1.442695, %v3558_v43  ;;  %v10620_v50 = vpop.eup %7224  ;;  %7230 = vpow2.f32 %v3662_v4  ;;  %v3240_v6 = vadd.f32 %v9357_v3, %v1415_v12 }
 0x2e2   :  { %14041 = vst [vmem:[#allocation361_spill] sm:$0xff] %v10611_v37  ;;  %v4502_v46 = vmul.f32 1.442695, %v4396_v25  ;;  %v4906_v7 = vadd.f32 %v10611_v37, %v4842_v29  ;;  %7232 = vpow2.f32 %v4500_v61  ;;  %v3303_v43 = vmax.f32 %v171_v44, %v3239_v32  ;;  %v10634_v61 = vpop.eup %7226 }
 0x2e3   :  { %4969 = vst [vmem:[#allocation6 + $0x3a8] sm:$0xff] %v4905_v42  ;;  %v163_v42 = vld [vmem:[#allocation2 + $0x3d8] sm:$0xff]  ;;  %7234 = vpow2.f32 %v3472_v9  ;;  %v4142_v4 = vmax.f32 %v4078_v19, %v1415_v12  ;;  %v10632_v25 = vadd.f32 %v10566_v22, %v10560_v52  ;;  %v4205_v29 = vsub.f32 %v4077_v35, %v4141_v58 }
 0x2e4   :  { %14043 = vst [vmem:[#allocation22_spill] sm:$0xff] %v10620_v50  ;;  %7236 = vpow2.f32 %v3664_v16  ;;  %v3367_v10 = vsub.f32 %v171_v44, %v3303_v43  ;;  %v3559_v20 = vsub.f32 %v3239_v32, %v3303_v43  ;;  %v4397_v37 = vsub.f32 %v10587_v57, %v4141_v58  ;;  %v10641_v44 = vpop.f32.mrf.mxu0  ;;  %v10643_v16 = vpop.f32.mrf.mxu1 }
 0x2e5   :  { %4970 = vst [vmem:[#allocation6 + $0x3d0] sm:$0xff] %v4906_v7  ;;  %7238 = vpow2.f32 %v4310_v14  ;;  %v3304_v9 = vmax.f32 %v10599_v11, %v3240_v6  ;;  %v4206_v59 = vsub.f32 %v4078_v19, %v4142_v4  ;;  %v4843_v50 = vmul.f32 %v10634_v61, %v163_v42  ;;  %v177_v19 = vld [vmem:[#allocation2 + $0x448] sm:$0xff] }
 0x2e6   :  { %14044 = vst [vmem:[#allocation362_spill] sm:$0xff] %v10634_v61  ;;  %v10638_v45 = vpop.eup %7228  ;;  %7240 = vpow2.f32 %v4502_v46  ;;  %v3474_v22 = vmul.f32 1.442695, %v3367_v10  ;;  %v3666_v52 = vmul.f32 1.442695, %v3559_v20  ;;  %v4398_v46 = vsub.f32 %v1415_v12, %v4142_v4  ;;  %v10652_v10 = vld [vmem:[#allocation2 + $0x470] sm:$0xff] }
 0x2e7   :  { %5037 = vst [vmem:[#allocation6 + $0x418] sm:$0xff] %v4141_v58  ;;  %v10645_v32 = vpop.eup %7230  ;;  %v4312_v14 = vmul.f32 1.442695, %v4205_v29  ;;  %v4504_v57 = vmul.f32 1.442695, %v4397_v37  ;;  %v3368_v35 = vsub.f32 %v10599_v11, %v3304_v9  ;;  %v3560_v7 = vsub.f32 %v3240_v6, %v3304_v9  ;;  %v168_v29 = vld [vmem:[#allocation2 + $0x400] sm:$0xff]  ;;  %v10657_v6 = vpop.f32.mrf.mxu2 }
 0x2e8   :  { %14045 = vst [vmem:[#allocation363_spill] sm:$0xff] %v10638_v45  ;;  %v10648_v43 = vpop.eup %7232  ;;  %7242 = vpow2.f32 %v3474_v22  ;;  %v4314_v58 = vmul.f32 1.442695, %v4206_v59  ;;  %v3241_v42 = vadd.f32 %v9371_v55, %v10632_v25  ;;  %v4506_v59 = vmul.f32 1.442695, %v4398_v46  ;;  %v10662_v22 = vpop.f32.mrf.mxu3 }
 0x2e9   :  { %5038 = vst [vmem:[#allocation6 + $0x440] sm:$0xff] %v4142_v4  ;;  %v10654_v20 = vpop.eup %7234  ;;  %v4907_v61 = vadd.f32 %v10648_v43, %v4843_v50  ;;  %7244 = vpow2.f32 %v3666_v52  ;;  %v3476_v37 = vmul.f32 1.442695, %v3368_v35  ;;  %v3668_v11 = vmul.f32 1.442695, %v3560_v7 }
 0x2ea   :  { %14046 = vst [vmem:[#allocation364_spill] sm:$0xff] %v10645_v32  ;;  %v10659_v9 = vpop.eup %7236  ;;  %7246 = vpow2.f32 %v4312_v14  ;;  %v3305_v12 = vmax.f32 %v177_v19, %v3241_v42  ;;  %v4079_v4 = vadd.f32 %v9340_v23, %v177_v19  ;;  %v1417_v50 = vadd.f32 %v10595_v15, %v10593_v49 }
 0x2eb   :  { %14047 = vst [vmem:[#allocation365_spill] sm:$0xff] %v10648_v43  ;;  %v10664_v32 = vpop.eup %7238  ;;  %7248 = vpow2.f32 %v4504_v57  ;;  %v4080_v52 = vadd.f32 %v9324_v21, %v10652_v10  ;;  %v10672_v35 = vadd.f32 %v10617_v8, %v10608_v47  ;;  %1833 = vmatmul.bf16.gmra.mxu2 %v13780_v26  ;;  %v169_v8 = vld [vmem:[#allocation2 + $0x408] sm:$0xff] }
 0x2ec   :  { %14048 = vst [vmem:[#allocation366_spill] sm:$0xff] %v10654_v20  ;;  %v10674_v14 = vpop.eup %7240  ;;  %v4844_v7 = vmul.f32 %v10664_v32, %v168_v29  ;;  %7250 = vpow2.f32 %v3476_v37  ;;  %v3369_v46 = vsub.f32 %v177_v19, %v3305_v12  ;;  %v3242_v57 = vadd.f32 %v9357_v3, %v1417_v50  ;;  %1655 = vmatmul.bf16.gmra.mxu0 %v13780_v26 }
 0x2ed   :  { %14049 = vst [vmem:[#allocation367_spill] sm:$0xff] %v10659_v9  ;;  %v3561_v9 = vsub.f32 %v3241_v42, %v3305_v12  ;;  %7252 = vpow2.f32 %v3668_v11  ;;  %v4144_v49 = vmax.f32 %v4080_v52, %v1417_v50 }
 0x2ee   :  { %14050 = vst [vmem:[#allocation368_spill] sm:$0xff] %v10664_v32  ;;  %v10680_v15 = vpop.eup %7242  ;;  %v4908_v47 = vadd.f32 %v10674_v14, %v4844_v7  ;;  %7254 = vpow2.f32 %v4314_v58  ;;  %v3478_v20 = vmul.f32 1.442695, %v3369_v46  ;;  %v3306_v37 = vmax.f32 %v10652_v10, %v3242_v57  ;;  %v183_v58 = vld [vmem:[#allocation2 + $0x478] sm:$0xff]  ;;  %v10692_v46 = vpop.f32.mrf.mxu0 }
 0x2ef   :  { %4971 = vst [vmem:[#allocation6 + $0x3d8] sm:$0xff] %v4907_v61  ;;  %v4143_v61 = vmax.f32 %v4079_v4, %v10632_v25  ;;  %v3670_v43 = vmul.f32 1.442695, %v3561_v9  ;;  %v10683_v29 = vpop.eup %7244  ;;  %7256 = vpow2.f32 %v4506_v59  ;;  %v4208_v12 = vsub.f32 %v4080_v52, %v4144_v49  ;;  %v10694_v59 = vpop.f32.mrf.mxu1  ;;  %1922 = vmatmul.bf16.gmra.mxu3 %v13782_v36 }
 0x2f0   :  { %14051 = vst [vmem:[#allocation369_spill] sm:$0xff] %v10674_v14  ;;  %v10688_v11 = vpop.eup %7246  ;;  %7258 = vpow2.f32 %v3478_v20  ;;  %v4400_v7 = vsub.f32 %v1417_v50, %v4144_v49  ;;  %v3243_v9 = vadd.f32 %v9371_v55, %v10672_v35  ;;  %v174_v50 = vld [vmem:[#allocation2 + $0x430] sm:$0xff]  ;;  %v3370_v52 = vsub.f32 %v10652_v10, %v3306_v37  ;;  %1744 = vmatmul.bf16.gmra.mxu1 %v13782_v36 }
 0x2f1   :  { %14052 = vst [vmem:[#allocation370_spill] sm:$0xff] %v10680_v15  ;;  %v4207_v19 = vsub.f32 %v4079_v4, %v4143_v61  ;;  %v4399_v42 = vsub.f32 %v10632_v25, %v4143_v61  ;;  %v10697_v25 = vpop.eup %7248  ;;  %v4845_v26 = vmul.f32 %v10688_v11, %v169_v8  ;;  %7260 = vpow2.f32 %v3670_v43 }
 0x2f2   :  { %14053 = vst [vmem:[#allocation371_spill] sm:$0xff] %v10683_v29  ;;  %v10700_v20 = vpop.eup %7250  ;;  %v4318_v29 = vmul.f32 1.442695, %v4208_v12  ;;  %v4510_v15 = vmul.f32 1.442695, %v4400_v7  ;;  %v3307_v8 = vmax.f32 %v183_v58, %v3243_v9  ;;  %v4081_v43 = vadd.f32 %v9340_v23, %v183_v58 }
 0x2f3   :  { %5039 = vst [vmem:[#allocation6 + $0x448] sm:$0xff] %v4143_v61  ;;  %v4316_v4 = vmul.f32 1.442695, %v4207_v19  ;;  %v4508_v61 = vmul.f32 1.442695, %v4399_v42  ;;  %v10704_v14 = vpop.eup %7252  ;;  %v4909_v32 = vadd.f32 %v10697_v25, %v4845_v26  ;;  %v10708_v19 = vld [vmem:[#allocation2 + $0x4a0] sm:$0xff]  ;;  %v10716_v36 = vadd.f32 %v10643_v16, %v10641_v44 }
 0x2f4   :  { %14054 = vst [vmem:[#allocation372_spill] sm:$0xff] %v10688_v11  ;;  %v10712_v42 = vpop.eup %7254  ;;  %v3480_v10 = vmul.f32 1.442695, %v3370_v52  ;;  %v3371_v26 = vsub.f32 %v183_v58, %v3307_v8  ;;  %v4145_v44 = vmax.f32 %v4081_v43, %v10672_v35  ;;  %v6629_v58 = vld [vmem:[%s12975_s3 + $0xd4] sm:$0xf]  ;;  %v180_v11 = vld [vmem:[#allocation2 + $0x460] sm:$0xff] }
 0x2f5   :  { %4972 = vst [vmem:[#allocation6 + $0x400] sm:$0xff] %v4908_v47  ;;  %v3562_v47 = vsub.f32 %v3242_v57, %v3306_v37  ;;  %7262 = vpow2.f32 %v4316_v4  ;;  %v10718_v37 = vpop.f32.mrf.mxu3  ;;  %v10720_v12 = vpop.eup %7256  ;;  %v4846_v7 = vmul.f32 %v10712_v42, %v174_v50  ;;  %v3563_v4 = vsub.f32 %v3243_v9, %v3307_v8  ;;  %v6487_v9 = vld [vmem:[%s12975_s3 + $0xd8] sm:$0xf0] }
 0x2f6   :  { %14055 = vst [vmem:[#allocation373_spill] sm:$0xff] %v10697_v25  ;;  %7264 = vpow2.f32 %v4508_v61  ;;  %v6613_v61 = vld [vmem:[%s12975_s3 + $0x54] sm:$0xf]  ;;  %v10726_v52 = vpop.eup %7258  ;;  %v3244_v16 = vadd.f32 %v9357_v3, %v10716_v36  ;;  %v175_v8 = vld [vmem:[#allocation2 + $0x438] sm:$0xff] }
 0x2f7   :  { %5040 = vst [vmem:[#allocation6 + $0x470] sm:$0xff] %v4144_v49  ;;  %v10710_v49 = vpop.f32.mrf.mxu2  ;;  %v3672_v57 = vmul.f32 1.442695, %v3562_v47  ;;  %7266 = vpow2.f32 %v4318_v29  ;;  %v6423_v29 = vld [vmem:[%s12975_s3 + $0x58] sm:$0xf0]  ;;  %v10742_v50 = vpop.eup %7260  ;;  %v4910_v47 = vadd.f32 %v10720_v12, %v4846_v7  ;;  %v6490_v7 = vor.u32 %v6629_v58, %v6487_v9  ;;  %v10761_v58 = vld [vmem:[#allocation2 + $0x4d0] sm:$0xff] }
 0x2f8   :  { %14056 = vst [vmem:[#allocation374_spill] sm:$0xff] %v10700_v20  ;;  %7268 = vpow2.f32 %v3480_v10  ;;  %v3482_v10 = vmul.f32 1.442695, %v3371_v26  ;;  %v3308_v20 = vmax.f32 %v10708_v19, %v3244_v16  ;;  %v6426_v45 = vor.u32 %v6613_v61, %v6423_v29  ;;  %v10755_v26 = vpop.f32.mrf.mxu1  ;;  %v189_v29 = vld [vmem:[#allocation2 + $0x4a8] sm:$0xff] }
 0x2f9   :  { %14057 = vst [vmem:[#allocation375_spill] sm:$0xff] %v10704_v14  ;;  %7270 = vpow2.f32 %v3672_v57  ;;  %v4401_v14 = vsub.f32 %v10672_v35, %v4145_v44  ;;  %v10753_v35 = vpop.f32.mrf.mxu0  ;;  %5743 = vmatpush.bf16.msrb.mxu3 %v6490_v7  ;;  %v4083_v7 = vadd.f32 %v9340_v23, %v189_v29 }
 0x2fa   :  { %14058 = vst [vmem:[#allocation376_spill] sm:$0xff] %v10712_v42  ;;  %7272 = vpow2.f32 %v4510_v15  ;;  %v4209_v42 = vsub.f32 %v4081_v43, %v4145_v44  ;;  %5654 = vmatpush.bf16.msrb.mxu2 %v6426_v45 }
 0x2fb   :  { %14059 = vst [vmem:[#allocation377_spill] sm:$0xff] %v10720_v12  ;;  %v10747_v25 = vpop.eup %7262  ;;  %7274 = vpow2.f32 %v3482_v10  ;;  %v4512_v43 = vmul.f32 1.442695, %v4401_v14  ;;  %1838 = vmatmul.bf16.gmra.mxu2 %v13819_v53 }
 0x2fc   :  { %4973 = vst [vmem:[#allocation6 + $0x408] sm:$0xff] %v4909_v32  ;;  %v4082_v32 = vadd.f32 %v9324_v21, %v10708_v19  ;;  %v10750_v12 = vpop.eup %7264  ;;  %v4847_v57 = vmul.f32 %v10747_v25, %v175_v8  ;;  %v4320_v15 = vmul.f32 1.442695, %v4209_v42  ;;  %1660 = vmatmul.bf16.gmra.mxu0 %v13819_v53 }
 0x2fd   :  { %14060 = vst [vmem:[#allocation378_spill] sm:$0xff] %v10726_v52  ;;  %v3674_v52 = vmul.f32 1.442695, %v3563_v4  ;;  %v10757_v4 = vpop.eup %7266 }
 0x2fe   :  { %14061 = vst [vmem:[#allocation379_spill] sm:$0xff] %v10742_v50  ;;  %v4146_v50 = vmax.f32 %v4082_v32, %v10716_v36  ;;  %v10763_v9 = vpop.eup %7268  ;;  %v4911_v14 = vadd.f32 %v10750_v12, %v4847_v57  ;;  %v4848_v42 = vmul.f32 %v10757_v4, %v180_v11  ;;  %v1422_v57 = vadd.f32 %v10694_v59, %v10692_v46  ;;  %v181_v46 = vld [vmem:[#allocation2 + $0x468] sm:$0xff] }
 0x2ff   :  { %5041 = vst [vmem:[#allocation6 + $0x478] sm:$0xff] %v4145_v44  ;;  %7276 = vpow2.f32 %v3674_v52  ;;  %v3372_v44 = vsub.f32 %v10708_v19, %v3308_v20  ;;  %v1598_v19 = vadd.f32 %v10662_v22, %v10657_v6  ;;  %v6485_v52 = vld [vmem:[%s12975_s3 + $0xd0] sm:$0xf]  ;;  %1927 = vmatmul.bf16.gmra.mxu3 %v13822_v48 }
 0x300   :  { %14062 = vst [vmem:[#allocation380_spill] sm:$0xff] %v10747_v25  ;;  %v4210_v10 = vsub.f32 %v4082_v32, %v4146_v50  ;;  %v4402_v61 = vsub.f32 %v10716_v36, %v4146_v50  ;;  %7278 = vpow2.f32 %v4320_v15  ;;  %v6614_v36 = vld [vmem:[%s12975_s3 + $0x54] sm:$0xf0]  ;;  %1749 = vmatmul.bf16.gmra.mxu1 %v13822_v48 }
 0x301   :  { %4974 = vst [vmem:[#allocation6 + $0x430] sm:$0xff] %v4910_v47  ;;  %v3564_v47 = vsub.f32 %v3244_v16, %v3308_v20  ;;  %v6421_v20 = vld [vmem:[%s12975_s3 + $0x50] sm:$0xf]  ;;  %v10778_v16 = vpop.eup %7270  ;;  %7280 = vpow2.f32 %v4512_v43  ;;  %v3484_v45 = vmul.f32 1.442695, %v3372_v44  ;;  %v3245_v8 = vadd.f32 %v9371_v55, %v1598_v19  ;;  %v10792_v43 = vpop.f32.mrf.mxu3 }
 0x302   :  { %14063 = vst [vmem:[#allocation381_spill] sm:$0xff] %v10750_v12  ;;  %v4322_v32 = vmul.f32 1.442695, %v4210_v10  ;;  %v10783_v6 = vpop.eup %7272  ;;  %v4514_v22 = vmul.f32 1.442695, %v4402_v61  ;;  %v4084_v10 = vadd.f32 %v9324_v21, %v10761_v58  ;;  %v6422_v61 = vor.u32 %v6614_v36, %v6421_v20  ;;  %v14279_v12 = vld [vmem:[#allocation62_spill] sm:$0xff] }
 0x303   :  { %14064 = vst [vmem:[#allocation382_spill] sm:$0xff] %v10757_v4  ;;  %v3676_v11 = vmul.f32 1.442695, %v3564_v47  ;;  %v6630_v15 = vld [vmem:[%s12975_s3 + $0xd4] sm:$0xf0]  ;;  %v10794_v44 = vpop.eup %7274  ;;  %v4912_v47 = vadd.f32 %v10783_v6, %v4848_v42  ;;  %7282 = vpow2.f32 %v3484_v45  ;;  %v3309_v59 = vmax.f32 %v189_v29, %v3245_v8 }
 0x304   :  { %5042 = vst [vmem:[#allocation6 + $0x4a0] sm:$0xff] %v4146_v50  ;;  %v10780_v50 = vpop.f32.mrf.mxu2  ;;  %v4147_v4 = vmax.f32 %v4083_v7, %v1598_v19  ;;  %v4148_v42 = vmax.f32 %v4084_v10, %v1422_v57  ;;  %5476 = vmatpush.bf16.msrb.mxu0 %v6422_v61  ;;  %v6486_v45 = vor.u32 %v6630_v15, %v6485_v52 }
 0x305   :  { %14065 = vst [vmem:[#allocation383_spill] sm:$0xff] %v10763_v9  ;;  %7284 = vpow2.f32 %v3676_v11  ;;  %v10806_v20 = vadd.f32 %v10718_v37, %v10710_v49  ;;  %v3373_v36 = vsub.f32 %v189_v29, %v3309_v59  ;;  %v3565_v11 = vsub.f32 %v3245_v8, %v3309_v59  ;;  %v195_v49 = vld [vmem:[#allocation2 + $0x4d8] sm:$0xff]  ;;  %v10815_v29 = vpop.f32.mrf.mxu0  ;;  %v10817_v8 = vpop.f32.mrf.mxu1 }
 0x306   :  { %14066 = vst [vmem:[#allocation384_spill] sm:$0xff] %v10778_v16  ;;  %v3246_v16 = vadd.f32 %v9357_v3, %v1422_v57  ;;  %7286 = vpow2.f32 %v4322_v32  ;;  %v4212_v15 = vsub.f32 %v4084_v10, %v4148_v42  ;;  %5565 = vmatpush.bf16.msrb.mxu1 %v6486_v45 }
 0x307   :  { %14067 = vst [vmem:[#allocation385_spill] sm:$0xff] %v10783_v6  ;;  %7288 = vpow2.f32 %v4514_v22  ;;  %v3486_v37 = vmul.f32 1.442695, %v3373_v36  ;;  %v3678_v61 = vmul.f32 1.442695, %v3565_v11  ;;  %v4404_v22 = vsub.f32 %v1422_v57, %v4148_v42 }
 0x308   :  { %4975 = vst [vmem:[#allocation6 + $0x438] sm:$0xff] %v4911_v14  ;;  %v10800_v14 = vpop.eup %7276  ;;  %v3310_v52 = vmax.f32 %v10761_v58, %v3246_v16  ;;  %v4326_v36 = vmul.f32 1.442695, %v4212_v15  ;;  %v3247_v57 = vadd.f32 %v9371_v55, %v10806_v20 }
 0x309   :  { %14068 = vst [vmem:[#allocation386_spill] sm:$0xff] %v10794_v44  ;;  %v10808_v53 = vpop.eup %7278  ;;  %7290 = vpow2.f32 %v3486_v37  ;;  %v1425_v37 = vadd.f32 %v10755_v26, %v10753_v35 }
 0x30a   :  { %14069 = vst [vmem:[#allocation387_spill] sm:$0xff] %v10800_v14  ;;  %v4211_v14 = vsub.f32 %v4083_v7, %v4147_v4  ;;  %v10811_v44 = vpop.eup %7280  ;;  %v4849_v32 = vmul.f32 %v10808_v53, %v181_v46  ;;  %v186_v46 = vld [vmem:[#allocation2 + $0x490] sm:$0xff]  ;;  %v3566_v10 = vsub.f32 %v3246_v16, %v3310_v52  ;;  %7292 = vpow2.f32 %v3678_v61 }
 0x30b   :  { %4976 = vst [vmem:[#allocation6 + $0x460] sm:$0xff] %v4912_v47  ;;  %v4403_v47 = vsub.f32 %v1598_v19, %v4147_v4  ;;  %v10819_v48 = vpop.eup %7282  ;;  %v3374_v19 = vsub.f32 %v10761_v58, %v3310_v52  ;;  %v3311_v15 = vmax.f32 %v195_v49, %v3247_v57  ;;  %v3248_v26 = vadd.f32 %v9357_v3, %v1425_v37 }
 0x30c   :  { %14070 = vst [vmem:[#allocation388_spill] sm:$0xff] %v10808_v53  ;;  %v4324_v6 = vmul.f32 1.442695, %v4211_v14  ;;  %v4913_v7 = vadd.f32 %v10811_v44, %v4849_v32  ;;  %v10823_v59 = vpop.eup %7284  ;;  %v4518_v14 = vmul.f32 1.442695, %v4404_v22  ;;  %v10832_v58 = vpop.f32.mrf.mxu2  ;;  %1843 = vmatmul.bf16.gmra.mxu2 %v13846_v62  ;;  %1665 = vmatmul.bf16.gmra.mxu0 %v13846_v62  ;;  %v14246_v53 = vld [vmem:[#allocation70_spill] sm:$0xff] }
 0x30d   :  { %5043 = vst [vmem:[#allocation6 + $0x4a8] sm:$0xff] %v4147_v4  ;;  %v4516_v4 = vmul.f32 1.442695, %v4403_v47  ;;  %v10829_v45 = vpop.eup %7286  ;;  %v3488_v11 = vmul.f32 1.442695, %v3374_v19  ;;  %v4085_v47 = vadd.f32 %v9340_v23, %v195_v49  ;;  %v10839_v22 = vpop.f32.mrf.mxu3  ;;  %v10846_v19 = vadd.f32 %v10792_v43, %v10780_v50 }
 0x30e   :  { %14071 = vst [vmem:[#allocation389_spill] sm:$0xff] %v10811_v44  ;;  %v3680_v32 = vmul.f32 1.442695, %v3566_v10  ;;  %v10834_v16 = vpop.eup %7288  ;;  %v4850_v52 = vmul.f32 %v10829_v45, %v186_v46  ;;  %7294 = vpow2.f32 %v4324_v6  ;;  %v3375_v6 = vsub.f32 %v195_v49, %v3311_v15 }
 0x30f   :  { %5044 = vst [vmem:[#allocation6 + $0x4d0] sm:$0xff] %v4148_v42  ;;  %v10827_v42 = vld [vmem:[#allocation2 + $0x500] sm:$0xff]  ;;  %7296 = vpow2.f32 %v4516_v4  ;;  %v4149_v61 = vmax.f32 %v4085_v47, %v10806_v20  ;;  %v3567_v46 = vsub.f32 %v3247_v57, %v3311_v15  ;;  %v10851_v4 = vpop.eup %7290  ;;  %v10863_v15 = vpop.f32.mrf.mxu1  ;;  %1932 = vmatmul.bf16.gmra.mxu3 %v13849_v39 }
 0x310   :  { %14072 = vst [vmem:[#allocation390_spill] sm:$0xff] %v10819_v48  ;;  %v4914_v10 = vadd.f32 %v10834_v16, %v4850_v52  ;;  %7298 = vpow2.f32 %v3488_v11  ;;  %v3490_v48 = vmul.f32 1.442695, %v3375_v6  ;;  %v10853_v44 = vpop.eup %7292  ;;  %v3312_v11 = vmax.f32 %v10827_v42, %v3248_v26  ;;  %v10861_v52 = vpop.f32.mrf.mxu0  ;;  %v201_v6 = vld [vmem:[#allocation2 + $0x508] sm:$0xff]  ;;  %1754 = vmatmul.bf16.gmra.mxu1 %v13849_v39 }
 0x311   :  { %14073 = vst [vmem:[#allocation391_spill] sm:$0xff] %v10823_v59  ;;  %7300 = vpow2.f32 %v3680_v32  ;;  %v4405_v35 = vsub.f32 %v10806_v20, %v4149_v61  ;;  %v187_v59 = vld [vmem:[#allocation2 + $0x498] sm:$0xff]  ;;  %v3682_v50 = vmul.f32 1.442695, %v3567_v46 }
 0x312   :  { %14074 = vst [vmem:[#allocation392_spill] sm:$0xff] %v10829_v45  ;;  %v4213_v45 = vsub.f32 %v4085_v47, %v4149_v61  ;;  %7302 = vpow2.f32 %v4326_v36  ;;  %v3249_v36 = vadd.f32 %v9371_v55, %v10846_v19 }
 0x313   :  { %4977 = vst [vmem:[#allocation6 + $0x468] sm:$0xff] %v4913_v7  ;;  %v4086_v7 = vadd.f32 %v9324_v21, %v10827_v42  ;;  %7304 = vpow2.f32 %v4518_v14  ;;  %v4520_v57 = vmul.f32 1.442695, %v4405_v35 }
 0x314   :  { %14075 = vst [vmem:[#allocation393_spill] sm:$0xff] %v10834_v16  ;;  %v4328_v49 = vmul.f32 1.442695, %v4213_v45  ;;  %v10857_v20 = vpop.eup %7294  ;;  %7306 = vpow2.f32 %v3490_v48  ;;  %v3313_v35 = vmax.f32 %v201_v6, %v3249_v36 }
 0x315   :  { %5045 = vst [vmem:[#allocation6 + $0x4d8] sm:$0xff] %v4149_v61  ;;  %v4150_v43 = vmax.f32 %v4086_v7, %v1425_v37  ;;  %v10865_v14 = vpop.eup %7296  ;;  %v4851_v45 = vmul.f32 %v10857_v20, %v187_v59  ;;  %7308 = vpow2.f32 %v3682_v50  ;;  %v3376_v61 = vsub.f32 %v10827_v42, %v3312_v11  ;;  %v10878_v50 = vpop.f32.mrf.mxu2 }
 0x316   :  { %14076 = vst [vmem:[#allocation394_spill] sm:$0xff] %v10851_v4  ;;  %v10870_v48 = vpop.eup %7298  ;;  %7310 = vpow2.f32 %v4328_v49  ;;  %v3377_v49 = vsub.f32 %v201_v6, %v3313_v35  ;;  %v14244_v4 = vld [vmem:[#allocation116_spill] sm:$0xff] }
 0x317   :  { %4978 = vst [vmem:[#allocation6 + $0x490] sm:$0xff] %v4914_v10  ;;  %v4214_v32 = vsub.f32 %v4086_v7, %v4150_v43  ;;  %v4406_v47 = vsub.f32 %v1425_v37, %v4150_v43  ;;  %v3568_v10 = vsub.f32 %v3248_v26, %v3312_v11  ;;  %v192_v37 = vld [vmem:[#allocation2 + $0x4c0] sm:$0xff]  ;;  %v4915_v59 = vadd.f32 %v10865_v14, %v4851_v45 }
 0x318   :  { %14077 = vst [vmem:[#allocation395_spill] sm:$0xff] %v10853_v44  ;;  %v10875_v44 = vpop.eup %7300  ;;  %7312 = vpow2.f32 %v4520_v57  ;;  %v3492_v42 = vmul.f32 1.442695, %v3376_v61  ;;  %v3569_v11 = vsub.f32 %v3249_v36, %v3313_v35  ;;  %v1427_v45 = vadd.f32 %v10817_v8, %v10815_v29 }
 0x319   :  { %14078 = vst [vmem:[#allocation396_spill] sm:$0xff] %v10857_v20  ;;  %v4330_v7 = vmul.f32 1.442695, %v4214_v32  ;;  %v4522_v46 = vmul.f32 1.442695, %v4406_v47  ;;  %v10880_v62 = vpop.eup %7302  ;;  %v4087_v32 = vadd.f32 %v9340_v23, %v201_v6  ;;  %v10883_v47 = vpop.f32.mrf.mxu3  ;;  %v193_v6 = vld [vmem:[#allocation2 + $0x4c8] sm:$0xff] }
 0x31a   :  { %5046 = vst [vmem:[#allocation6 + $0x500] sm:$0xff] %v4150_v43  ;;  %v10872_v43 = vld [vmem:[#allocation2 + $0x530] sm:$0xff]  ;;  %v3684_v26 = vmul.f32 1.442695, %v3568_v10  ;;  %v4852_v57 = vmul.f32 %v10880_v62, %v192_v37  ;;  %v71_v20 = vld [vmem:[#allocation2 + $0xf8] sm:$0xff]  ;;  %v14245_v16 = vsub.f32 1.0, %v14244_v4 }
 0x31b   :  { %14079 = vst [vmem:[#allocation397_spill] sm:$0xff] %v10865_v14  ;;  %7314 = vpow2.f32 %v4330_v7  ;;  %v4088_v61 = vadd.f32 %v9324_v21, %v10872_v43  ;;  %v3494_v7 = vmul.f32 1.442695, %v3377_v49  ;;  %v4151_v39 = vmax.f32 %v4087_v32, %v10846_v19 }
 0x31c   :  { %14080 = vst [vmem:[#allocation398_spill] sm:$0xff] %v10870_v48  ;;  %v10886_v48 = vpop.eup %7304  ;;  %7316 = vpow2.f32 %v3492_v42  ;;  %v198_v42 = vld [vmem:[#allocation2 + $0x4f0] sm:$0xff]  ;;  %1848 = vmatmul.bf16.gmra.mxu2 %v13860_v24  ;;  %1670 = vmatmul.bf16.gmra.mxu0 %v13860_v24  ;;  %v2397_v9 = vmul.f32 %v14246_v53, %v14245_v16  ;;  %v14248_v16 = vld [vmem:[#allocation258_spill] sm:$0xff] }
 0x31d   :  { %14081 = vst [vmem:[#allocation399_spill] sm:$0xff] %v10875_v44  ;;  %v10893_v10 = vpop.eup %7306  ;;  %7318 = vpow2.f32 %v3684_v26  ;;  %v4916_v37 = vadd.f32 %v10886_v48, %v4852_v57  ;;  %v4152_v29 = vmax.f32 %v4088_v61, %v1427_v45  ;;  %v4407_v36 = vsub.f32 %v10846_v19, %v4151_v39  ;;  %v207_v19 = vld [vmem:[#allocation2 + $0x538] sm:$0xff] }
 0x31e   :  { %14082 = vst [vmem:[#allocation400_spill] sm:$0xff] %v10880_v62  ;;  %v10897_v35 = vpop.eup %7308  ;;  %7320 = vpow2.f32 %v4522_v46  ;;  %v3686_v62 = vmul.f32 1.442695, %v3569_v11  ;;  %v10906_v26 = vadd.f32 %v10839_v22, %v10832_v58  ;;  %v10916_v22 = vpop.f32.mrf.mxu0  ;;  %v2398_v4 = vadd.f32 %v14246_v53, %v2397_v9  ;;  %v14254_v9 = vld [vmem:[#allocation41_spill] sm:$0xff] }
 0x31f   :  { %14083 = vst [vmem:[#allocation401_spill] sm:$0xff] %v10886_v48  ;;  %v10901_v8 = vpop.eup %7310  ;;  %7322 = vpow2.f32 %v3494_v7  ;;  %v4216_v0 = vsub.f32 %v4088_v61, %v4152_v29  ;;  %v4408_v48 = vsub.f32 %v1427_v45, %v4152_v29  ;;  %1937 = vmatmul.bf16.gmra.mxu3 %v13861_v38 }
 0x320   :  { %4979 = vst [vmem:[#allocation6 + $0x498] sm:$0xff] %v4915_v59  ;;  %v3250_v59 = vadd.f32 %v9357_v3, %v1427_v45  ;;  %v10908_v49 = vpop.eup %7312  ;;  %v4853_v46 = vmul.f32 %v10901_v8, %v193_v6  ;;  %v3251_v58 = vadd.f32 %v9371_v55, %v10906_v26  ;;  %v6611_v45 = vld [vmem:[%s12975_s3 + $0x44] sm:$0xf]  ;;  %1759 = vmatmul.bf16.gmra.mxu1 %v13861_v38 }
 0x321   :  { %14084 = vst [vmem:[#allocation402_spill] sm:$0xff] %v10893_v10  ;;  %v4215_v10 = vsub.f32 %v4087_v32, %v4151_v39  ;;  %v4524_v32 = vmul.f32 1.442695, %v4407_v36  ;;  %v10925_v36 = vld [vmem:[#allocation2 + $0x560] sm:$0xff]  ;;  %v4526_v44 = vmul.f32 1.442695, %v4408_v48 }
 0x322   :  { %14085 = vst [vmem:[#allocation403_spill] sm:$0xff] %v10897_v35  ;;  %v3314_v57 = vmax.f32 %v10872_v43, %v3250_v59  ;;  %v10912_v35 = vpop.eup %7314  ;;  %v4917_v6 = vadd.f32 %v10908_v49, %v4853_v46  ;;  %v3315_v14 = vmax.f32 %v207_v19, %v3251_v58  ;;  %v6415_v46 = vld [vmem:[%s12975_s3 + $0x48] sm:$0xf0] }
 0x323   :  { %14086 = vst [vmem:[#allocation404_spill] sm:$0xff] %v10901_v8  ;;  %v4332_v11 = vmul.f32 1.442695, %v4215_v10  ;;  %v4854_v61 = vmul.f32 %v10912_v35, %v198_v42  ;;  %v4334_v8 = vmul.f32 1.442695, %v4216_v0 }
 0x324   :  { %5047 = vst [vmem:[#allocation6 + $0x508] sm:$0xff] %v4151_v39  ;;  %v10918_v39 = vpop.f32.mrf.mxu1  ;;  %v3378_v7 = vsub.f32 %v10872_v43, %v3314_v57  ;;  %v3570_v10 = vsub.f32 %v3250_v59, %v3314_v57  ;;  %v4089_v57 = vadd.f32 %v9340_v23, %v207_v19  ;;  %v3379_v0 = vsub.f32 %v207_v19, %v3315_v14 }
 0x325   :  { %14087 = vst [vmem:[#allocation405_spill] sm:$0xff] %v10908_v49  ;;  %7324 = vpow2.f32 %v4332_v11  ;;  %v3571_v48 = vsub.f32 %v3251_v58, %v3315_v14  ;;  %v10941_v11 = vpop.f32.mrf.mxu3  ;;  %v6479_v14 = vld [vmem:[%s12975_s3 + $0xc8] sm:$0xf0]  ;;  %v6418_v58 = vor.u32 %v6611_v45, %v6415_v46  ;;  %v10995_v38 = vadd.f32 %v10918_v39, %v10916_v22 }
 0x326   :  { %4980 = vst [vmem:[#allocation6 + $0x4c0] sm:$0xff] %v4916_v37  ;;  %v10920_v37 = vpop.eup %7316  ;;  %7326 = vpow2.f32 %v4524_v32  ;;  %v3496_v43 = vmul.f32 1.442695, %v3378_v7  ;;  %v3688_v59 = vmul.f32 1.442695, %v3570_v10  ;;  %v4153_v49 = vmax.f32 %v4089_v57, %v10906_v26 }
 0x327   :  { %14088 = vst [vmem:[#allocation406_spill] sm:$0xff] %v10912_v35  ;;  %v10938_v35 = vpop.f32.mrf.mxu2  ;;  %7328 = vpow2.f32 %v4334_v8  ;;  %v1430_v32 = vadd.f32 %v10863_v15, %v10861_v52  ;;  %v3498_v8 = vmul.f32 1.442695, %v3379_v0  ;;  %v3690_v19 = vmul.f32 1.442695, %v3571_v48  ;;  %5655 = vmatpush.bf16.msrb.mxu2 %v6418_v58 }
 0x328   :  { %5048 = vst [vmem:[#allocation6 + $0x530] sm:$0xff] %v4152_v29  ;;  %v10930_v29 = vpop.eup %7318  ;;  %7330 = vpow2.f32 %v3686_v62  ;;  %v199_v62 = vld [vmem:[#allocation2 + $0x4f8] sm:$0xff]  ;;  %v4217_v52 = vsub.f32 %v4089_v57, %v4153_v49  ;;  %v4409_v15 = vsub.f32 %v10906_v26, %v4153_v49 }
 0x329   :  { %14089 = vst [vmem:[#allocation407_spill] sm:$0xff] %v10920_v37  ;;  %v10935_v42 = vpop.eup %7320  ;;  %7332 = vpow2.f32 %v3496_v43  ;;  %v3252_v7 = vadd.f32 %v9357_v3, %v1430_v32  ;;  %v10964_v43 = vadd.f32 %v10883_v47, %v10878_v50  ;;  %v213_v50 = vld [vmem:[#allocation2 + $0x568] sm:$0xff]  ;;  %v10973_v47 = vpop.f32.mrf.mxu0 }
 0x32a   :  { %14090 = vst [vmem:[#allocation408_spill] sm:$0xff] %v10930_v29  ;;  %v4918_v29 = vadd.f32 %v10935_v42, %v4854_v61  ;;  %v10943_v37 = vpop.eup %7322  ;;  %v6627_v61 = vld [vmem:[%s12975_s3 + $0xc4] sm:$0xf]  ;;  %7334 = vpow2.f32 %v4526_v44  ;;  %v4528_v24 = vmul.f32 1.442695, %v4409_v15  ;;  %v4091_v15 = vadd.f32 %v9340_v23, %v213_v50 }
 0x32b   :  { %14091 = vst [vmem:[#allocation409_spill] sm:$0xff] %v10935_v42  ;;  %v10960_v10 = vpop.eup %7324  ;;  %7336 = vpow2.f32 %v3688_v59  ;;  %v3316_v46 = vmax.f32 %v10925_v36, %v3252_v7 }
 0x32c   :  { %4981 = vst [vmem:[#allocation6 + $0x4c8] sm:$0xff] %v4917_v6  ;;  %v4090_v6 = vadd.f32 %v9324_v21, %v10925_v36  ;;  %v10967_v44 = vpop.eup %7326  ;;  %v4855_v26 = vmul.f32 %v10960_v10, %v199_v62  ;;  %7338 = vpow2.f32 %v3498_v8  ;;  %v10975_v0 = vpop.f32.mrf.mxu1  ;;  %v3253_v62 = vadd.f32 %v9371_v55, %v10964_v43  ;;  %1853 = vmatmul.bf16.gmra.mxu2 %v13872_v17 }
 0x32d   :  { %14092 = vst [vmem:[#allocation410_spill] sm:$0xff] %v10943_v37  ;;  %v204_v37 = vld [vmem:[#allocation2 + $0x520] sm:$0xff]  ;;  %v10970_v45 = vpop.eup %7328  ;;  %7340 = vpow2.f32 %v3690_v19  ;;  %1675 = vmatmul.bf16.gmra.mxu0 %v13872_v17 }
 0x32e   :  { %4982 = vst [vmem:[#allocation6 + $0x4f0] sm:$0xff] %v4918_v29  ;;  %v4154_v42 = vmax.f32 %v4090_v6, %v1430_v32  ;;  %v6482_v29 = vor.u32 %v6627_v61, %v6479_v14  ;;  %v10977_v48 = vpop.eup %7330  ;;  %v4919_v61 = vadd.f32 %v10967_v44, %v4855_v26  ;;  %v4856_v14 = vmul.f32 %v10970_v45, %v204_v37  ;;  %v6413_v19 = vld [vmem:[%s12975_s3 + $0x40] sm:$0xf] }
 0x32f   :  { %5049 = vst [vmem:[#allocation6 + $0x538] sm:$0xff] %v4153_v49  ;;  %v4336_v49 = vmul.f32 1.442695, %v4217_v52  ;;  %v3317_v52 = vmax.f32 %v213_v50, %v3253_v62  ;;  %1942 = vmatmul.bf16.gmra.mxu3 %v13874_v33 }
 0x330   :  { %14093 = vst [vmem:[#allocation411_spill] sm:$0xff] %v10960_v10  ;;  %v4218_v59 = vsub.f32 %v4090_v6, %v4154_v42  ;;  %v4410_v57 = vsub.f32 %v1430_v32, %v4154_v42  ;;  %5744 = vmatpush.bf16.msrb.mxu3 %v6482_v29  ;;  %v10984_v32 = vpop.eup %7332  ;;  %v3572_v6 = vsub.f32 %v3252_v7, %v3316_v46  ;;  %v218_v29 = vld [vmem:[#allocation2 + $0x590] sm:$0xff]  ;;  %v11000_v7 = vpop.f32.mrf.mxu2 }
 0x331   :  { %14094 = vst [vmem:[#allocation412_spill] sm:$0xff] %v10967_v44  ;;  %7342 = vpow2.f32 %v4336_v49  ;;  %v10990_v58 = vpop.eup %7334  ;;  %v3381_v22 = vsub.f32 %v213_v50, %v3317_v52  ;;  %v3573_v39 = vsub.f32 %v3253_v62, %v3317_v52  ;;  %v6628_v50 = vld [vmem:[%s12975_s3 + $0xc4] sm:$0xf0]  ;;  %1764 = vmatmul.bf16.gmra.mxu1 %v13874_v33 }
 0x332   :  { %14095 = vst [vmem:[#allocation413_spill] sm:$0xff] %v10970_v45  ;;  %7344 = vpow2.f32 %v4528_v24  ;;  %v4338_v8 = vmul.f32 1.442695, %v4218_v59  ;;  %v4530_v37 = vmul.f32 1.442695, %v4410_v57  ;;  %v11002_v26 = vpop.eup %7336  ;;  %v4920_v49 = vadd.f32 %v10990_v58, %v4856_v14  ;;  %v11005_v59 = vpop.f32.mrf.mxu3 }
 0x333   :  { %5050 = vst [vmem:[#allocation6 + $0x560] sm:$0xff] %v4154_v42  ;;  %v3380_v42 = vsub.f32 %v10925_v36, %v3316_v46  ;;  %v6612_v36 = vld [vmem:[%s12975_s3 + $0x44] sm:$0xf0]  ;;  %v3692_v46 = vmul.f32 1.442695, %v3572_v6  ;;  %v11007_v57 = vpop.eup %7338  ;;  %v4155_v45 = vmax.f32 %v4091_v15, %v10964_v43  ;;  %v3254_v14 = vadd.f32 %v9357_v3, %v10995_v38 }
 0x334   :  { %14096 = vst [vmem:[#allocation414_spill] sm:$0xff] %v10977_v48  ;;  %7346 = vpow2.f32 %v4338_v8  ;;  %v6414_v6 = vor.u32 %v6612_v36, %v6413_v19  ;;  %v6477_v8 = vld [vmem:[%s12975_s3 + $0xc0] sm:$0xf]  ;;  %v3694_v52 = vmul.f32 1.442695, %v3573_v39  ;;  %v210_v19 = vld [vmem:[#allocation2 + $0x550] sm:$0xff]  ;;  %v11060_v17 = vadd.f32 %v11005_v59, %v11000_v7 }
 0x335   :  { %14097 = vst [vmem:[#allocation415_spill] sm:$0xff] %v10984_v32  ;;  %v3500_v24 = vmul.f32 1.442695, %v3380_v42  ;;  %7348 = vpow2.f32 %v4530_v37  ;;  %v11010_v32 = vpop.eup %7340  ;;  %v4092_v42 = vadd.f32 %v9324_v21, %v218_v29  ;;  %v3502_v37 = vmul.f32 1.442695, %v3381_v22 }
 0x336   :  { %14098 = vst [vmem:[#allocation416_spill] sm:$0xff] %v10990_v58  ;;  %v4411_v36 = vsub.f32 %v10964_v43, %v4155_v45  ;;  %5477 = vmatpush.bf16.msrb.mxu0 %v6414_v6  ;;  %v6478_v44 = vor.u32 %v6628_v50, %v6477_v8  ;;  %v11033_v43 = vpop.f32.mrf.mxu0 }
 0x337   :  { %4983 = vst [vmem:[#allocation6 + $0x4f8] sm:$0xff] %v4919_v61  ;;  %v205_v61 = vld [vmem:[#allocation2 + $0x528] sm:$0xff]  ;;  %7350 = vpow2.f32 %v3500_v24  ;;  %v11021_v62 = vpop.eup %7342  ;;  %v4156_v58 = vmax.f32 %v4092_v42, %v10995_v38 }
 0x338   :  { %14099 = vst [vmem:[#allocation417_spill] sm:$0xff] %v11002_v26  ;;  %7352 = vpow2.f32 %v3692_v46  ;;  %v11023_v24 = vpop.eup %7344  ;;  %v1610_v46 = vadd.f32 %v10941_v11, %v10938_v35  ;;  %v4532_v39 = vmul.f32 1.442695, %v4411_v36  ;;  %5566 = vmatpush.bf16.msrb.mxu1 %v6478_v44 }
 0x339   :  { %14100 = vst [vmem:[#allocation418_spill] sm:$0xff] %v11007_v57  ;;  %v3318_v57 = vmax.f32 %v218_v29, %v3254_v14  ;;  %7354 = vpow2.f32 %v3502_v37  ;;  %v4220_v35 = vsub.f32 %v4092_v42, %v4156_v58 }
 0x33a   :  { %14101 = vst [vmem:[#allocation419_spill] sm:$0xff] %v11010_v32  ;;  %v4857_v32 = vmul.f32 %v11021_v62, %v205_v61  ;;  %v11030_v22 = vpop.eup %7346  ;;  %7356 = vpow2.f32 %v3694_v52  ;;  %v3255_v37 = vadd.f32 %v9371_v55, %v1610_v46  ;;  %v224_v52 = vld [vmem:[#allocation2 + $0x5c0] sm:$0xff] }
 0x33b   :  { %4984 = vst [vmem:[#allocation6 + $0x520] sm:$0xff] %v4920_v49  ;;  %v4219_v49 = vsub.f32 %v4091_v15, %v4155_v45  ;;  %v3382_v61 = vsub.f32 %v218_v29, %v3318_v57  ;;  %v11037_v6 = vpop.eup %7348  ;;  %v4858_v8 = vmul.f32 %v11030_v22, %v210_v19  ;;  %v3574_v50 = vsub.f32 %v3254_v14, %v3318_v57  ;;  %v11049_v14 = vpop.f32.mrf.mxu2 }
 0x33c   :  { %14102 = vst [vmem:[#allocation420_spill] sm:$0xff] %v11021_v62  ;;  %v4921_v15 = vadd.f32 %v11023_v24, %v4857_v32  ;;  %v219_v62 = vld [vmem:[#allocation2 + $0x598] sm:$0xff]  ;;  %v4412_v29 = vsub.f32 %v10995_v38, %v4156_v58  ;;  %v4342_v57 = vmul.f32 1.442695, %v4220_v35  ;;  %v1614_v38 = vpop.f32.mrf.mxu3  ;;  %1858 = vmatmul.bf16.gmra.mxu2 %v13889_v56 }
 0x33d   :  { %5051 = vst [vmem:[#allocation6 + $0x568] sm:$0xff] %v4155_v45  ;;  %v4340_v26 = vmul.f32 1.442695, %v4219_v49  ;;  %v11035_v45 = vpop.f32.mrf.mxu1  ;;  %v11041_v11 = vpop.eup %7350  ;;  %v3504_v32 = vmul.f32 1.442695, %v3382_v61  ;;  %v4922_v19 = vadd.f32 %v11037_v6, %v4858_v8  ;;  %v4093_v44 = vadd.f32 %v9340_v23, %v219_v62  ;;  %1680 = vmatmul.bf16.gmra.mxu0 %v13889_v56 }
 0x33e   :  { %14103 = vst [vmem:[#allocation421_spill] sm:$0xff] %v11023_v24  ;;  %v11045_v49 = vpop.eup %7352  ;;  %v4534_v42 = vmul.f32 1.442695, %v4412_v29  ;;  %v3319_v36 = vmax.f32 %v219_v62, %v3255_v37  ;;  %v4094_v8 = vadd.f32 %v9324_v21, %v224_v52 }
 0x33f   :  { %14104 = vst [vmem:[#allocation422_spill] sm:$0xff] %v11030_v22  ;;  %7358 = vpow2.f32 %v4340_v26  ;;  %v3696_v26 = vmul.f32 1.442695, %v3574_v50  ;;  %v4157_v61 = vmax.f32 %v4093_v44, %v1610_v46  ;;  %v225_v22 = vld [vmem:[#allocation2 + $0x5c8] sm:$0xff]  ;;  %1947 = vmatmul.bf16.gmra.mxu3 %v13891_v5 }
 0x340   :  { %5052 = vst [vmem:[#allocation6 + $0x590] sm:$0xff] %v4156_v58  ;;  %7360 = vpow2.f32 %v4532_v39  ;;  %v1435_v58 = vadd.f32 %v10975_v0, %v10973_v47  ;;  %v211_v39 = vld [vmem:[#allocation2 + $0x558] sm:$0xff]  ;;  %v3383_v35 = vsub.f32 %v219_v62, %v3319_v36  ;;  %v3575_v47 = vsub.f32 %v3255_v37, %v3319_v36 }
 0x341   :  { %14105 = vst [vmem:[#allocation423_spill] sm:$0xff] %v11037_v6  ;;  %7362 = vpow2.f32 %v3504_v32  ;;  %v4221_v29 = vsub.f32 %v4093_v44, %v4157_v61  ;;  %v216_v44 = vld [vmem:[#allocation2 + $0x580] sm:$0xff]  ;;  %1769 = vmatmul.bf16.gmra.mxu1 %v13891_v5 }
 0x342   :  { %14106 = vst [vmem:[#allocation424_spill] sm:$0xff] %v11041_v11  ;;  %7364 = vpow2.f32 %v3696_v26  ;;  %v3256_v0 = vadd.f32 %v9357_v3, %v1435_v58  ;;  %v4158_v26 = vmax.f32 %v4094_v8, %v1435_v58  ;;  %v3506_v59 = vmul.f32 1.442695, %v3383_v35  ;;  %v14223_v11 = vld [vmem:[#allocation114_spill] sm:$0xff] }
 0x343   :  { %4985 = vst [vmem:[#allocation6 + $0x528] sm:$0xff] %v4921_v15  ;;  %v11055_v15 = vpop.eup %7354  ;;  %7366 = vpow2.f32 %v4342_v57  ;;  %v4344_v62 = vmul.f32 1.442695, %v4221_v29  ;;  %v11082_v29 = vld [vmem:[#allocation2 + $0x5f0] sm:$0xff]  ;;  %v14224_v24 = vsub.f32 1.0, %v14223_v11 }
 0x344   :  { %14107 = vst [vmem:[#allocation425_spill] sm:$0xff] %v11045_v49  ;;  %v11062_v50 = vpop.eup %7356  ;;  %7368 = vpow2.f32 %v4534_v42  ;;  %v3320_v57 = vmax.f32 %v224_v52, %v3256_v0  ;;  %v4222_v36 = vsub.f32 %v4094_v8, %v4158_v26  ;;  %v4414_v6 = vsub.f32 %v1435_v58, %v4158_v26  ;;  %v11074_v49 = vpop.f32.mrf.mxu0 }
 0x345   :  { %14108 = vst [vmem:[#allocation426_spill] sm:$0xff] %v11055_v15  ;;  %v11065_v32 = vpop.eup %7358  ;;  %7370 = vpow2.f32 %v3506_v59  ;;  %v3257_v58 = vadd.f32 %v9371_v55, %v11060_v17 }
 0x346   :  { %4986 = vst [vmem:[#allocation6 + $0x550] sm:$0xff] %v4922_v19  ;;  %v4413_v19 = vsub.f32 %v1610_v46, %v4157_v61  ;;  %v11068_v15 = vpop.eup %7360  ;;  %v4859_v7 = vmul.f32 %v11065_v32, %v211_v39  ;;  %v3384_v33 = vsub.f32 %v224_v52, %v3320_v57  ;;  %v11076_v39 = vpop.f32.mrf.mxu1  ;;  %v4538_v8 = vmul.f32 1.442695, %v4414_v6 }
 0x347   :  { %14109 = vst [vmem:[#allocation427_spill] sm:$0xff] %v11062_v50  ;;  %v3698_v50 = vmul.f32 1.442695, %v3575_v47  ;;  %v11071_v42 = vpop.eup %7362  ;;  %v4346_v47 = vmul.f32 1.442695, %v4222_v36  ;;  %v1437_v6 = vadd.f32 %v11035_v45, %v11033_v43  ;;  %v217_v43 = vld [vmem:[#allocation2 + $0x588] sm:$0xff] }
 0x348   :  { %14110 = vst [vmem:[#allocation428_spill] sm:$0xff] %v11065_v32  ;;  %v4536_v37 = vmul.f32 1.442695, %v4413_v19  ;;  %v4923_v46 = vadd.f32 %v11068_v15, %v4859_v7  ;;  %v11078_v35 = vpop.eup %7364  ;;  %v3508_v52 = vmul.f32 1.442695, %v3384_v33  ;;  %v11100_v33 = vpop.f32.mrf.mxu3 }
 0x349   :  { %5053 = vst [vmem:[#allocation6 + $0x598] sm:$0xff] %v4157_v61  ;;  %v3576_v61 = vsub.f32 %v3256_v0, %v3320_v57  ;;  %7372 = vpow2.f32 %v3698_v50  ;;  %v11084_v19 = vpop.eup %7366  ;;  %v3321_v50 = vmax.f32 %v225_v22, %v3257_v58  ;;  %v11092_v57 = vpop.f32.mrf.mxu2 }
 0x34a   :  { %14111 = vst [vmem:[#allocation429_spill] sm:$0xff] %v11068_v15  ;;  %7374 = vpow2.f32 %v4344_v62  ;;  %v11087_v7 = vpop.eup %7368  ;;  %v4860_v59 = vmul.f32 %v11084_v19, %v216_v44  ;;  %v4096_v62 = vadd.f32 %v9324_v21, %v11082_v29  ;;  %v3258_v21 = vadd.f32 %v9357_v3, %v1437_v6  ;;  %v65_v15 = vld [vmem:[#allocation2 + $0xc8] sm:$0xff] }
 0x34b   :  { %5054 = vst [vmem:[#allocation6 + $0x5c0] sm:$0xff] %v4158_v26  ;;  %v3700_v0 = vmul.f32 1.442695, %v3576_v61  ;;  %v4095_v26 = vadd.f32 %v9340_v23, %v225_v22  ;;  %7376 = vpow2.f32 %v4536_v37  ;;  %v3385_v37 = vsub.f32 %v225_v22, %v3321_v50 }
 0x34c   :  { %14112 = vst [vmem:[#allocation430_spill] sm:$0xff] %v11071_v42  ;;  %7378 = vpow2.f32 %v3508_v52  ;;  %v4924_v44 = vadd.f32 %v11087_v7, %v4860_v59  ;;  %v3577_v61 = vsub.f32 %v3257_v58, %v3321_v50  ;;  %v4160_v59 = vmax.f32 %v4096_v62, %v1437_v6 }
 0x34d   :  { %14113 = vst [vmem:[#allocation431_spill] sm:$0xff] %v11078_v35  ;;  %v4159_v36 = vmax.f32 %v4095_v26, %v11060_v17  ;;  %7380 = vpow2.f32 %v3700_v0 }
 0x34e   :  { %14114 = vst [vmem:[#allocation432_spill] sm:$0xff] %v11084_v19  ;;  %v11103_v19 = vpop.eup %7370  ;;  %7382 = vpow2.f32 %v4346_v47  ;;  %v3322_v47 = vmax.f32 %v11082_v29, %v3258_v21  ;;  %v4416_v50 = vsub.f32 %v1437_v6, %v4160_v59 }
 0x34f   :  { %4987 = vst [vmem:[#allocation6 + $0x558] sm:$0xff] %v4923_v46  ;;  %v11098_v46 = vadd.f32 %v1614_v38, %v11049_v14  ;;  %v4223_v45 = vsub.f32 %v4095_v26, %v4159_v36  ;;  %v4415_v52 = vsub.f32 %v11060_v17, %v4159_v36  ;;  %v11107_v35 = vpop.eup %7372  ;;  %7384 = vpow2.f32 %v4538_v8 }
 0x350   :  { %14115 = vst [vmem:[#allocation433_spill] sm:$0xff] %v11087_v7  ;;  %v3510_v14 = vmul.f32 1.442695, %v3385_v37  ;;  %v3702_v38 = vmul.f32 1.442695, %v3577_v61  ;;  %v11110_v22 = vpop.eup %7374  ;;  %v4224_v8 = vsub.f32 %v4096_v62, %v4160_v59  ;;  %v222_v37 = vld [vmem:[#allocation2 + $0x5b0] sm:$0xff]  ;;  %v3386_v61 = vsub.f32 %v11082_v29, %v3322_v47 }
 0x351   :  { %14116 = vst [vmem:[#allocation434_spill] sm:$0xff] %v11103_v19  ;;  %v4348_v58 = vmul.f32 1.442695, %v4223_v45  ;;  %v4540_v0 = vmul.f32 1.442695, %v4415_v52  ;;  %v3259_v17 = vadd.f32 %v9371_v55, %v11098_v46  ;;  %v11115_v26 = vpop.eup %7376  ;;  %v4861_v3 = vmul.f32 %v11110_v22, %v217_v43  ;;  %v11122_v55 = vpop.f32.mrf.mxu0  ;;  %1685 = vmatmul.bf16.gmra.mxu0 %v13905_v13  ;;  %v14222_v19 = vld [vmem:[#allocation40_spill] sm:$0xff] }
 0x352   :  { %5055 = vst [vmem:[#allocation6 + $0x5c8] sm:$0xff] %v4159_v36  ;;  %7386 = vpow2.f32 %v3510_v14  ;;  %v231_v36 = vld [vmem:[#allocation2 + $0x5f8] sm:$0xff]  ;;  %v3578_v45 = vsub.f32 %v3258_v21, %v3322_v47  ;;  %v4350_v56 = vmul.f32 1.442695, %v4224_v8  ;;  %v4542_v43 = vmul.f32 1.442695, %v4416_v50 }
 0x353   :  { %14117 = vst [vmem:[#allocation435_spill] sm:$0xff] %v11107_v35  ;;  %7388 = vpow2.f32 %v3702_v38  ;;  %v3323_v52 = vmax.f32 %v231_v36, %v3259_v17  ;;  %v11124_v35 = vpop.f32.mrf.mxu1  ;;  %v4925_v6 = vadd.f32 %v11115_v26, %v4861_v3  ;;  %v3512_v38 = vmul.f32 1.442695, %v3386_v61  ;;  %v11136_v3 = vpop.f32.mrf.mxu2  ;;  %v6609_v50 = vld [vmem:[%s12975_s3 + $0x34] sm:$0xf]  ;;  %1863 = vmatmul.bf16.gmra.mxu2 %v13905_v13  ;;  %1774 = vmatmul.bf16.gmra.mxu1 %v13907_v63 }
 0x354   :  { %4988 = vst [vmem:[#allocation6 + $0x580] sm:$0xff] %v4924_v44  ;;  %v11119_v44 = vpop.eup %7378  ;;  %7390 = vpow2.f32 %v4348_v58  ;;  %v3704_v29 = vmul.f32 1.442695, %v3578_v45 }
 0x355   :  { %14118 = vst [vmem:[#allocation436_spill] sm:$0xff] %v11110_v22  ;;  %v11127_v62 = vpop.eup %7380  ;;  %7392 = vpow2.f32 %v4540_v0  ;;  %v3387_v21 = vsub.f32 %v231_v36, %v3323_v52  ;;  %v40_v22 = vld [vmem:[#allocation2] sm:$0xff]  ;;  %v1716_v0 = vadd.f32 %v11076_v39, %v11074_v49 }
 0x356   :  { %14119 = vst [vmem:[#allocation437_spill] sm:$0xff] %v11115_v26  ;;  %v11130_v14 = vpop.eup %7382  ;;  %7394 = vpow2.f32 %v4350_v56  ;;  %v3708_v8 = vmul.f32 %v9491_v27, %v40_v22  ;;  %v14125_v27 = vld [vmem:[#allocation43_spill] sm:$0xff]  ;;  %v6625_v56 = vld [vmem:[%s12975_s3 + $0xb4] sm:$0xf] }
 0x357   :  { %5056 = vst [vmem:[#allocation6 + $0x5f0] sm:$0xff] %v4160_v59  ;;  %v11132_v59 = vpop.eup %7384  ;;  %v4862_v47 = vmul.f32 %v11130_v14, %v222_v37  ;;  %7396 = vpow2.f32 %v3512_v38  ;;  %v3514_v58 = vmul.f32 1.442695, %v3387_v21  ;;  %v223_v37 = vld [vmem:[#allocation2 + $0x5b8] sm:$0xff]  ;;  %vm2249_vm4 = vweird.f32 %v14125_v27 }
 0x358   :  { %14120 = vst [vmem:[#allocation438_spill] sm:$0xff] %v11119_v44  ;;  %v3579_v44 = vsub.f32 %v3259_v17, %v3323_v52  ;;  %v11148_v17 = vpop.f32.mrf.mxu3  ;;  %7398 = vpow2.f32 %v3704_v29  ;;  %v3772_v45 = vmul.f32 %v9494_v1, %v1716_v0  ;;  %v4546_v52 = vmul.f32 %v9481_v51, %v40_v22  ;;  %v228_v29 = vld [vmem:[#allocation2 + $0x5e0] sm:$0xff]  ;;  %1952 = vmatmul.bf16.gmra.mxu3 %v13907_v63 }
 0x359   :  { %14121 = vst [vmem:[#allocation439_spill] sm:$0xff] %v11127_v62  ;;  %v4097_v62 = vadd.f32 %v9340_v23, %v231_v36  ;;  %v6407_v23 = vld [vmem:[%s12975_s3 + $0x38] sm:$0xf0]  ;;  %v11150_v36 = vpop.eup %7386  ;;  %v4926_v5 = vadd.f32 %v11132_v59, %v4862_v47  ;;  %7400 = vpow2.f32 %v4542_v43  ;;  %v1896_v63 = vadd.f32 %v11148_v17, %v11136_v3  ;;  %v14163_v17 = vld [vmem:[#allocation32_spill] sm:$0xff] }
 0x35a   :  { %14122 = vst [vmem:[#allocation440_spill] sm:$0xff] %v11130_v14  ;;  %v3706_v61 = vmul.f32 1.442695, %v3579_v44  ;;  %v11155_v39 = vpop.eup %7388  ;;  %v6471_v44 = vld [vmem:[%s12975_s3 + $0xb8] sm:$0xf0]  ;;  %7402 = vpow2.f32 %v3514_v58  ;;  %v6410_v21 = vor.u32 %v6609_v50, %v6407_v23  ;;  %v3836_v22 = vadd.f32 %v3772_v45, %v3708_v8 }
 0x35b   :  { %14123 = vst [vmem:[#allocation441_spill] sm:$0xff] %v11132_v59  ;;  %v4161_v49 = vmax.f32 %v4097_v62, %v11098_v46  ;;  %v11166_v38 = vpop.eup %7390  ;;  %v6474_v58 = vor.u32 %v6625_v56, %v6471_v44  ;;  %v1894_v8 = vadd.f32 %v11100_v33, %v11092_v57  ;;  %v2255_v57 = vand.u32 2147483648, %v14125_v27  ;;  %v14212_v14 = vld [vmem:[#allocation54_spill] sm:$0xff] }
 0x35c   :  { %4989 = vst [vmem:[#allocation6 + $0x588] sm:$0xff] %v4925_v6  ;;  %v4610_v6 = vmul.f32 %v9488_v18, %v1716_v0  ;;  %v11169_v51 = vpop.eup %7392  ;;  %v4863_v18 = vmul.f32 %v11166_v38, %v223_v37  ;;  %7404 = vpow2.f32 %v3706_v61  ;;  %5656 = vmatpush.bf16.msrb.mxu2 %v6410_v21  ;;  %v5058_v23 = vmul.f32 %v3836_v22, %v9299_v60  ;;  %v11182_v37 = vpop.f32.mrf.mxu0  ;;  %v14139_v21 = vld [vmem:[#allocation30_spill] sm:$0xff] }
 0x35d   :  { %14124 = vst [vmem:[#allocation442_spill] sm:$0xff] %v11150_v36  ;;  %v4225_v43 = vsub.f32 %v4097_v62, %v4161_v49  ;;  %v4417_v1 = vsub.f32 %v11098_v46, %v4161_v49  ;;  %v11172_v0 = vpop.eup %7394  ;;  %7406 = vrcp.f32 %v9512_v28  ;;  %v11184_v61 = vpop.f32.mrf.mxu1  ;;  %5745 = vmatpush.bf16.msrb.mxu3 %v6474_v58  ;;  %v2253_v60 = vand.u32 2147483647, %v14125_v27  ;;  %v14143_v58 = vld [vmem:[#allocation224_spill] sm:$0xff]  ;;  %v46_v27 = vld [vmem:[#allocation2 + $0x30] sm:$0xff] }
 0x35e   :  { %14126 = vst [vmem:[#allocation43_spill] sm:$0xff] %v11155_v39  ;;  %v4674_v47 = vadd.f32 %v4610_v6, %v4546_v52  ;;  %v11175_v62 = vpop.eup %7396  ;;  %v4927_v46 = vadd.f32 %v11169_v51, %v4863_v18  ;;  %v4864_v50 = vmul.f32 %v11172_v0, %v228_v29  ;;  %v14134_v52 = vld [vmem:[#allocation48_spill] sm:$0xff]  ;;  %v3773_v44 = vmul.f32 %v9538_v30, %v1894_v8  ;;  %v11207_v22 = vpop.f32.mrf.mxu2 }
 0x35f   :  { %14127 = vst [vmem:[#allocation443_spill] sm:$0xff] %v11166_v38  ;;  %v4352_v39 = vmul.f32 1.442695, %v4225_v43  ;;  %v4544_v36 = vmul.f32 1.442695, %v4417_v1  ;;  %v11186_v28 = vpop.eup %7398  ;;  %vm2250_vm5 = vweird.f32 %v14134_v52  ;;  %vm11202_vm6 = vcmp.eq.f32.partialorder %v2253_v60, 8.507059e+37 }
 0x360   :  { %4990 = vst [vmem:[#allocation6 + $0x5b0] sm:$0xff] %v4926_v5  ;;  %v41_v5 = vld [vmem:[#allocation2 + $0x8] sm:$0xff]  ;;  %v11193_v56 = vpop.eup %7400  ;;  %vm11216_vm7 = vmor %vm2249_vm4, %vm2250_vm5  ;;  %v2256_v30 = vor.u32 1.1754944e-38, %v2255_v57  ;;  %v1718_v60 = vadd.f32 %v11124_v35, %v11122_v55  ;;  %v6405_v35 = vld [vmem:[%s12975_s3 + $0x30] sm:$0xf] }
 0x361   :  { %14128 = vst [vmem:[#allocation444_spill] sm:$0xff] %v11169_v51  ;;  %7408 = vpow2.f32 %v4352_v39  ;;  %v3709_v33 = vmul.f32 %v9533_v2, %v41_v5  ;;  %v11198_v39 = vpop.eup %7402  ;;  %v4928_v29 = vadd.f32 %v11193_v56, %v4864_v50  ;;  %v4547_v18 = vmul.f32 %v14139_v21, %v41_v5  ;;  %v14144_v50 = vld [vmem:[#allocation226_spill] sm:$0xff]  ;;  %v11222_v5 = vpop.f32.mrf.mxu3  ;;  %v14145_v21 = vld [vmem:[#allocation88_spill] sm:$0xff] }
 0x362   :  { %5057 = vst [vmem:[#allocation6 + $0x5f8] sm:$0xff] %v4161_v49  ;;  %v14132_v49 = vld [vmem:[#allocation87_spill] sm:$0xff]  ;;  %7410 = vpow2.f32 %v4544_v36  ;;  %v11210_v36 = vpop.eup %7404  ;;  %v14146_v57 = vsub.f32 1.0, %v14145_v21  ;;  %v6610_v1 = vld [vmem:[%s12975_s3 + $0x34] sm:$0xf0]  ;;  %v14155_v21 = vld [vmem:[#allocation228_spill] sm:$0xff] }
 0x363   :  { %14129 = vst [vmem:[#allocation445_spill] sm:$0xff] %v11172_v0  ;;  %v14133_v45 = vsub.f32 1.0, %v14132_v49  ;;  %7412 = vrcp.f32 %v14144_v50  ;;  %v7407_v49 = vpop.eup %7406  ;;  %v14209_v38 = vld [vmem:[#allocation112_spill] sm:$0xff] }
 0x364   :  { %14130 = vst [vmem:[#allocation446_spill] sm:$0xff] %v11175_v62  ;;  %v14210_v59 = vsub.f32 1.0, %v14209_v38  ;;  %v2358_v38 = vand.u32 2147483647, %v14212_v14 }
 0x365   :  { %4738 = vst [vmem:[#allocation6] sm:$0xff] %v4674_v47  ;;  %v2247_v6 = vmul.f32 %v14134_v52, %v14133_v45  ;;  %v3837_v47 = vadd.f32 %v3773_v44, %v3709_v33  ;;  %v229_v45 = vld [vmem:[#allocation2 + $0x5e8] sm:$0xff]  ;;  %v14147_v33 = vld [vmem:[#allocation49_spill] sm:$0xff] }
 0x366   :  { %14131 = vst [vmem:[#allocation447_spill] sm:$0xff] %v11186_v28  ;;  %v2262_v44 = vmul.f32 %v14147_v33, %v14146_v57  ;;  %vm2265_vm9 = vweird.f32 %v14147_v33  ;;  %v4548_v57 = vmul.f32 %v14155_v21, %v46_v27  ;;  %v14192_v28 = vld [vmem:[#allocation50_spill] sm:$0xff] }
 0x367   :  { %14135 = vst [vmem:[#allocation87_spill] sm:$0xff] %v11193_v56  ;;  %v2248_v43 = vadd.f32 %v14134_v52, %v2247_v6  ;;  %v11243_v55 = vpop.eup %7408  ;;  %v11278_v56 = vpop.f32.mrf.mxu1 }
 0x368   :  { %4991 = vst [vmem:[#allocation6 + $0x5b8] sm:$0xff] %v4927_v46  ;;  %v4611_v46 = vmul.f32 %v14143_v58, %v1894_v8  ;;  %v14148_v8 = vld [vmem:[#allocation44_spill] sm:$0xff]  ;;  %v11234_v58 = vmul.f32 %v7407_v49, %v5058_v23  ;;  %v4865_v2 = vmul.f32 %v11243_v55, %v229_v45  ;;  %v14154_v49 = vld [vmem:[#allocation227_spill] sm:$0xff]  ;;  %v6626_v45 = vld [vmem:[%s12975_s3 + $0xb4] sm:$0xf0] }
 0x369   :  { %14136 = vst [vmem:[#allocation48_spill] sm:$0xff] %v11198_v39  ;;  %v2252_v6 = vsel %vm11216_vm7, %v14134_v52, %v2248_v43  ;;  %vm2264_vm8 = vweird.f32 %v14148_v8  ;;  %v2263_v43 = vadd.f32 %v14147_v33, %v2262_v44  ;;  %v2268_v13 = vand.u32 2147483647, %v14148_v8  ;;  %v6469_v44 = vld [vmem:[%s12975_s3 + $0xb0] sm:$0xf]  ;;  %v11276_v39 = vpop.f32.mrf.mxu0 }
 0x36a   :  { %14140 = vst [vmem:[#allocation30_spill] sm:$0xff] %v11210_v36  ;;  %v4675_v50 = vadd.f32 %v4611_v46, %v4547_v18  ;;  %v2270_v23 = vand.u32 2147483648, %v14148_v8  ;;  %v11251_v18 = vpop.eup %7410  ;;  %vm11256_vm10 = vmor %vm2264_vm8, %vm2265_vm9  ;;  %v6406_v36 = vor.u32 %v6610_v1, %v6405_v35  ;;  %v14161_v1 = vld [vmem:[#allocation45_spill] sm:$0xff]  ;;  %vm2324_vm8 = vweird.f32 %v14192_v28 }
 0x36b   :  { %4992 = vst [vmem:[#allocation6 + $0x5e0] sm:$0xff] %v4928_v29  ;;  %v2257_v29 = vsel %vm11202_vm6, %v2256_v30, %v2252_v6  ;;  %v3774_v6 = vmul.f32 %v14154_v49, %v1718_v60  ;;  %v2267_v8 = vsel %vm11256_vm10, %v14147_v33, %v2263_v43  ;;  %vm2269_vm11 = vcmp.eq.f32.partialorder %v2268_v13, 8.507059e+37  ;;  %v7413_v49 = vpop.eup %7412 }
 0x36c   :  { %14149 = vst [vmem:[#allocation224_spill] sm:$0xff] %v11243_v55  ;;  %v5059_v52 = vmul.f32 %v3837_v47, %v2257_v29  ;;  %v14153_v47 = vld [vmem:[#allocation225_spill] sm:$0xff]  ;;  %v2271_v29 = vor.u32 1.1754944e-38, %v2270_v23  ;;  %v14157_v55 = vld [vmem:[#allocation230_spill] sm:$0xff]  ;;  %v6470_v13 = vor.u32 %v6626_v45, %v6469_v44  ;;  %5478 = vmatpush.bf16.msrb.mxu0 %v6406_v36  ;;  %vm2279_vm12 = vweird.f32 %v14161_v1  ;;  %v11292_v36 = vpop.f32.mrf.mxu2  ;;  %v14164_v45 = vld [vmem:[#allocation231_spill] sm:$0xff] }
 0x36d   :  { %14150 = vst [vmem:[#allocation226_spill] sm:$0xff] %v11251_v18  ;;  %v3710_v46 = vmul.f32 %v14153_v47, %v46_v27  ;;  %v4929_v27 = vadd.f32 %v11251_v18, %v4865_v2  ;;  %7414 = vrcp.f32 %v14157_v55  ;;  %v47_v23 = vld [vmem:[#allocation2 + $0x38] sm:$0xff]  ;;  %v14160_v55 = vld [vmem:[#allocation51_spill] sm:$0xff]  ;;  %v3775_v44 = vmul.f32 %v14163_v17, %v1896_v63 }
 0x36e   :  { %4739 = vst [vmem:[#allocation6 + $0x8] sm:$0xff] %v4675_v50  ;;  %v14156_v50 = vld [vmem:[#allocation229_spill] sm:$0xff]  ;;  %v11280_v0 = vmul.f32 %v7413_v49, %v5059_v52  ;;  %v2272_v33 = vsel %vm2269_vm11, %v2271_v29, %v2267_v8  ;;  %v14158_v2 = vld [vmem:[#allocation90_spill] sm:$0xff]  ;;  %5567 = vmatpush.bf16.msrb.mxu1 %v6470_v13  ;;  %vm2280_vm13 = vweird.f32 %v14160_v55  ;;  %v2283_v52 = vand.u32 2147483647, %v14161_v1  ;;  %v14165_v29 = vld [vmem:[#allocation232_spill] sm:$0xff] }
 0x36f   :  { %v4612_v47 = vmul.f32 %v14156_v50, %v1718_v60  ;;  %v3838_v21 = vadd.f32 %v3774_v6, %v3710_v46  ;;  %4993 = vst [vmem:[#allocation6 + $0x5e8] sm:$0xff] %v4929_v27  ;;  %v14159_v30 = vsub.f32 1.0, %v14158_v2  ;;  %v2285_v46 = vand.u32 2147483648, %v14161_v1  ;;  %v14162_v6 = vld [vmem:[#allocation31_spill] sm:$0xff]  ;;  %vm2281_vm14 = vmor %vm2279_vm12, %vm2280_vm13  ;;  %v14166_v27 = vld [vmem:[#allocation234_spill] sm:$0xff] }
 0x370   :  { %v4549_v8 = vmul.f32 %v14164_v45, %v47_v23  ;;  %v4613_v50 = vmul.f32 %v14165_v29, %v1896_v63  ;;  %vm2284_vm15 = vcmp.eq.f32.partialorder %v2283_v52, 8.507059e+37  ;;  %7416 = vrcp.f32 %v14166_v27  ;;  %v14169_v1 = vld [vmem:[#allocation52_spill] sm:$0xff]  ;;  %v14170_v45 = vld [vmem:[#allocation46_spill] sm:$0xff] }
 0x371   :  { %v4676_v43 = vadd.f32 %v4612_v47, %v4548_v57  ;;  %v5060_v60 = vmul.f32 %v3838_v21, %v2272_v33  ;;  %v2277_v35 = vmul.f32 %v14160_v55, %v14159_v30  ;;  %v3711_v57 = vmul.f32 %v14162_v6, %v47_v23  ;;  %v11298_v47 = vpop.f32.mrf.mxu3  ;;  %v52_v30 = vld [vmem:[#allocation2 + $0x60] sm:$0xff]  ;;  %v14175_v29 = vld [vmem:[#allocation236_spill] sm:$0xff] }
 0x372   :  { %v2286_v49 = vor.u32 1.1754944e-38, %v2285_v46  ;;  %v1721_v21 = vadd.f32 %v11184_v61, %v11182_v37  ;;  %v4677_v2 = vadd.f32 %v4613_v50, %v4549_v8  ;;  %vm2294_vm0 = vweird.f32 %v14170_v45 }
 0x373   :  { %4740 = vst [vmem:[#allocation6 + $0x30] sm:$0xff] %v4676_v43  ;;  %v2278_v3 = vadd.f32 %v14160_v55, %v2277_v35  ;;  %v7415_v33 = vpop.eup %7414  ;;  %v3839_v13 = vadd.f32 %v3775_v44, %v3711_v57  ;;  %v14167_v35 = vld [vmem:[#allocation95_spill] sm:$0xff]  ;;  %vm2295_vm1 = vweird.f32 %v14169_v1  ;;  %v2298_v61 = vand.u32 2147483647, %v14170_v45 }
 0x374   :  { %v14168_v23 = vsub.f32 1.0, %v14167_v35  ;;  %v5188_v6 = vmul.f32 %v7415_v33, %v5060_v60  ;;  %4741 = vst [vmem:[#allocation6 + $0x38] sm:$0xff] %v4677_v2  ;;  %vm11315_vm2 = vmor %vm2294_vm0, %vm2295_vm1  ;;  %v14173_v60 = vld [vmem:[#allocation233_spill] sm:$0xff]  ;;  %v14174_v44 = vld [vmem:[#allocation235_spill] sm:$0xff]  ;;  %v4550_v50 = vmul.f32 %v14175_v29, %v52_v30  ;;  %v11329_v2 = vpop.f32.mrf.mxu1  ;;  %vm2354_vm0 = vweird.f32 %v14212_v14 }
 0x375   :  { %v2282_v43 = vsel %vm2281_vm14, %v14160_v55, %v2278_v3  ;;  %v2300_v55 = vand.u32 2147483648, %v14170_v45  ;;  %v3712_v3 = vmul.f32 %v14173_v60, %v52_v30  ;;  %v3776_v8 = vmul.f32 %v14174_v44, %v1721_v21  ;;  %v14180_v45 = vld [vmem:[#allocation55_spill] sm:$0xff] }
 0x376   :  { %v2292_v63 = vmul.f32 %v14169_v1, %v14168_v23  ;;  %v2287_v17 = vsel %vm2284_vm15, %v2286_v49, %v2282_v43  ;;  %v11313_v46 = vpack.c.bf16 %v5188_v6, %v11234_v58  ;;  %v14176_v49 = vld [vmem:[#allocation37_spill] sm:$0xff]  ;;  %vm2299_vm3 = vcmp.eq.f32.partialorder %v2298_v61, 8.507059e+37  ;;  %v7417_v35 = vpop.eup %7416  ;;  %v14178_v6 = vld [vmem:[#allocation98_spill] sm:$0xff]  ;;  %v14181_v57 = vld [vmem:[#allocation47_spill] sm:$0xff] }
 0x377   :  { %v5061_v52 = vmul.f32 %v3839_v13, %v2287_v17  ;;  %1868 = vmatmul.bf16.gmra.mxu2 %v14176_v49  ;;  %v2301_v33 = vor.u32 1.1754944e-38, %v2300_v55  ;;  %v14177_v58 = vld [vmem:[#allocation237_spill] sm:$0xff]  ;;  %v11327_v13 = vpop.f32.mrf.mxu0  ;;  %v3840_v23 = vadd.f32 %v3776_v8, %v3712_v3  ;;  %v1899_v30 = vadd.f32 %v11222_v5, %v11207_v22  ;;  %1690 = vmatmul.bf16.gmra.mxu0 %v14176_v49  ;;  %v14182_v61 = vld [vmem:[#allocation38_spill] sm:$0xff]  ;;  %v11345_v8 = vpop.f32.mrf.mxu2 }
 0x378   :  { %v2293_v37 = vadd.f32 %v14169_v1, %v2292_v63  ;;  %v4614_v43 = vmul.f32 %v14177_v58, %v1721_v21  ;;  %v53_v63 = vld [vmem:[#allocation2 + $0x68] sm:$0xff]  ;;  %v14179_v17 = vsub.f32 1.0, %v14178_v6  ;;  %vm2309_vm4 = vweird.f32 %v14181_v57  ;;  %1957 = vmatmul.bf16.gmra.mxu3 %v14182_v61  ;;  %1779 = vmatmul.bf16.gmra.mxu1 %v14182_v61 }
 0x379   :  { %vm2310_vm5 = vweird.f32 %v14180_v45  ;;  %v2313_v22 = vand.u32 2147483647, %v14181_v57  ;;  %v2315_v5 = vand.u32 2147483648, %v14181_v57  ;;  %v1726_v51 = vadd.f32 %v11329_v2, %v11327_v13  ;;  %v6463_v13 = vld [vmem:[%s12975_s3 + $0xa8] sm:$0xf0] }
 0x37a   :  { %v2297_v27 = vsel %vm11315_vm2, %v14169_v1, %v2293_v37  ;;  %v2307_v29 = vmul.f32 %v14180_v45, %v14179_v17  ;;  %v5189_v1 = vmul.f32 %v7417_v35, %v5061_v52  ;;  %v4678_v37 = vadd.f32 %v4614_v43, %v4550_v50  ;;  %vm11350_vm6 = vmor %vm2309_vm4, %vm2310_vm5  ;;  %v14185_v50 = vld [vmem:[#allocation239_spill] sm:$0xff]  ;;  %v14187_v43 = vld [vmem:[#allocation238_spill] sm:$0xff] }
 0x37b   :  { %v2302_v21 = vsel %vm2299_vm3, %v2301_v33, %v2297_v27  ;;  %v3713_v49 = vmul.f32 %v14185_v50, %v53_v63  ;;  %v14186_v27 = vld [vmem:[#allocation240_spill] sm:$0xff]  ;;  %v4551_v35 = vmul.f32 %v14187_v43, %v53_v63  ;;  %vm2314_vm7 = vcmp.eq.f32.partialorder %v2313_v22, 8.507059e+37  ;;  %v14188_v17 = vld [vmem:[#allocation241_spill] sm:$0xff]  ;;  %v14191_v63 = vld [vmem:[#allocation58_spill] sm:$0xff] }
 0x37c   :  { %v11340_v55 = vmul.f32 %v3840_v23, %v2302_v21  ;;  %v2308_v3 = vadd.f32 %v14180_v45, %v2307_v29  ;;  %v11348_v58 = vpack.c.bf16 %v5189_v1, %v11280_v0  ;;  %4742 = vst [vmem:[#allocation6 + $0x60] sm:$0xff] %v4678_v37  ;;  %v3777_v33 = vmul.f32 %v14186_v27, %v1899_v30  ;;  %v11357_v23 = vpop.f32.mrf.mxu3  ;;  %v58_v1 = vld [vmem:[#allocation2 + $0x90] sm:$0xff]  ;;  %v14189_v37 = vld [vmem:[#allocation103_spill] sm:$0xff]  ;;  %v14193_v22 = vld [vmem:[#allocation242_spill] sm:$0xff] }
 0x37d   :  { %v2316_v0 = vor.u32 1.1754944e-38, %v2315_v5  ;;  %v4615_v29 = vmul.f32 %v14188_v17, %v1899_v30  ;;  %v1723_v21 = vadd.f32 %v11278_v56, %v11276_v39  ;;  %v14190_v18 = vsub.f32 1.0, %v14189_v37  ;;  %v14201_v37 = vld [vmem:[#allocation63_spill] sm:$0xff] }
 0x37e   :  { %v2312_v6 = vsel %vm11350_vm6, %v14180_v45, %v2308_v3  ;;  %v3841_v57 = vadd.f32 %v3777_v33, %v3713_v49  ;;  %vm2325_vm9 = vweird.f32 %v14191_v63  ;;  %v2328_v45 = vand.u32 2147483647, %v14192_v28  ;;  %v14197_v49 = vld [vmem:[#allocation244_spill] sm:$0xff] }
 0x37f   :  { %v2322_v43 = vmul.f32 %v14191_v63, %v14190_v18  ;;  %v2317_v62 = vsel %vm2314_vm7, %v2316_v0, %v2312_v6  ;;  %v4679_v52 = vadd.f32 %v4615_v29, %v4551_v35  ;;  %v2330_v3 = vand.u32 2147483648, %v14192_v28  ;;  %vm11377_vm10 = vmor %vm2324_vm8, %vm2325_vm9  ;;  %v14196_v18 = vld [vmem:[#allocation243_spill] sm:$0xff]  ;;  %v14198_v35 = vld [vmem:[#allocation33_spill] sm:$0xff] }
 0x380   :  { %v11372_v30 = vmul.f32 %v3841_v57, %v2317_v62  ;;  %v3714_v56 = vmul.f32 %v14193_v22, %v58_v1  ;;  %vm2329_vm11 = vcmp.eq.f32.partialorder %v2328_v45, 8.507059e+37  ;;  %v3778_v5 = vmul.f32 %v14196_v18, %v1723_v21  ;;  %v59_v28 = vld [vmem:[#allocation2 + $0x98] sm:$0xff]  ;;  %v14199_v29 = vld [vmem:[#allocation111_spill] sm:$0xff]  ;;  %v11394_v45 = vpop.f32.mrf.mxu1 }
 0x381   :  { %v2323_v61 = vadd.f32 %v14191_v63, %v2322_v43  ;;  %4743 = vst [vmem:[#allocation6 + $0x68] sm:$0xff] %v4679_v52  ;;  %v4552_v33 = vmul.f32 %v14197_v49, %v58_v1  ;;  %v4616_v6 = vmul.f32 %v14198_v35, %v1723_v21  ;;  %v2331_v0 = vor.u32 1.1754944e-38, %v2330_v3  ;;  %v11392_v52 = vpop.f32.mrf.mxu0  ;;  %v14202_v21 = vld [vmem:[#allocation53_spill] sm:$0xff] }
 0x382   :  { %v1901_v17 = vadd.f32 %v11298_v47, %v11292_v36  ;;  %v14200_v57 = vsub.f32 1.0, %v14199_v29  ;;  %v3842_v1 = vadd.f32 %v3778_v5, %v3714_v56  ;;  %vm2339_vm12 = vweird.f32 %v14202_v21  ;;  %v14205_v56 = vld [vmem:[#allocation245_spill] sm:$0xff] }
 0x383   :  { %v2327_v62 = vsel %vm11377_vm10, %v14191_v63, %v2323_v61  ;;  %v4680_v49 = vadd.f32 %v4616_v6, %v4552_v33  ;;  %vm2340_vm13 = vweird.f32 %v14201_v37  ;;  %v2343_v3 = vand.u32 2147483647, %v14202_v21  ;;  %v14206_v33 = vld [vmem:[#allocation246_spill] sm:$0xff] }
 0x384   :  { %v2337_v43 = vmul.f32 %v14201_v37, %v14200_v57  ;;  %v2332_v63 = vsel %vm2329_vm11, %v2331_v0, %v2327_v62  ;;  %v2345_v36 = vand.u32 2147483648, %v14202_v21  ;;  %vm11403_vm14 = vmor %vm2339_vm12, %vm2340_vm13  ;;  %v3715_v5 = vmul.f32 %v14205_v56, %v59_v28  ;;  %v14207_v6 = vld [vmem:[#allocation34_spill] sm:$0xff]  ;;  %v11410_v62 = vpop.f32.mrf.mxu2 }
 0x385   :  { %4744 = vst [vmem:[#allocation6 + $0x90] sm:$0xff] %v4680_v49  ;;  %v11401_v47 = vmul.f32 %v3842_v1, %v2332_v63  ;;  %v3779_v35 = vmul.f32 %v14206_v33, %v1901_v17  ;;  %v4553_v29 = vmul.f32 %v14207_v6, %v59_v28  ;;  %vm2344_vm15 = vcmp.eq.f32.partialorder %v2343_v3, 8.507059e+37  ;;  %v11416_v49 = vpop.f32.mrf.mxu3  ;;  %v64_v63 = vld [vmem:[#allocation2 + $0xc0] sm:$0xff]  ;;  %v14211_v28 = vld [vmem:[#allocation65_spill] sm:$0xff] }
 0x386   :  { %v2338_v61 = vadd.f32 %v14201_v37, %v2337_v43  ;;  %v2346_v57 = vor.u32 1.1754944e-38, %v2345_v36  ;;  %v14208_v43 = vld [vmem:[#allocation247_spill] sm:$0xff]  ;;  %v2352_v6 = vmul.f32 %v14211_v28, %v14210_v59  ;;  %vm2355_vm1 = vweird.f32 %v14211_v28 }
 0x387   :  { %v4617_v1 = vmul.f32 %v14208_v43, %v1901_v17  ;;  %v3843_v21 = vadd.f32 %v3779_v35, %v3715_v5  ;;  %v6399_v17 = vld [vmem:[%s12975_s3 + $0x28] sm:$0xf0]  ;;  %v6623_v59 = vld [vmem:[%s12975_s3 + $0xa4] sm:$0xf]  ;;  %v2360_v5 = vand.u32 2147483648, %v14212_v14  ;;  %vm11447_vm2 = vmor %vm2354_vm0, %vm2355_vm1  ;;  %vm11451_vm3 = vcmp.eq.f32.partialorder %v2358_v38, 8.507059e+37 }
 0x388   :  { %v2342_v0 = vsel %vm11403_vm14, %v14201_v37, %v2338_v61  ;;  %v6607_v37 = vld [vmem:[%s12975_s3 + $0x24] sm:$0xf]  ;;  %v2353_v39 = vadd.f32 %v14211_v28, %v2352_v6  ;;  %v14214_v35 = vld [vmem:[#allocation248_spill] sm:$0xff]  ;;  %v14219_v43 = vld [vmem:[#allocation249_spill] sm:$0xff]  ;;  %1962 = vmatmul.bf16.gmra.mxu3 %v14222_v19  ;;  %v6466_v7 = vor.u32 %v6623_v59, %v6463_v13  ;;  %v1904_v32 = vadd.f32 %v11357_v23, %v11345_v8 }
 0x389   :  { %v14213_v61 = vld [vmem:[#allocation39_spill] sm:$0xff]  ;;  %v2347_v3 = vsel %vm2344_vm15, %v2346_v57, %v2342_v0  ;;  %v4681_v36 = vadd.f32 %v4617_v1, %v4553_v29  ;;  %v3716_v29 = vmul.f32 %v14214_v35, %v64_v63  ;;  %v3780_v1 = vmul.f32 %v14219_v43, %v1726_v51  ;;  %v14227_v23 = vld [vmem:[#allocation253_spill] sm:$0xff]  ;;  %1784 = vmatmul.bf16.gmra.mxu1 %v14222_v19  ;;  %v14232_v13 = vld [vmem:[#allocation254_spill] sm:$0xff] }
 0x38a   :  { %1873 = vmatmul.bf16.gmra.mxu2 %v14213_v61  ;;  %v11439_v2 = vmul.f32 %v3843_v21, %v2347_v3  ;;  %1695 = vmatmul.bf16.gmra.mxu0 %v14213_v61  ;;  %v14220_v21 = vld [vmem:[#allocation250_spill] sm:$0xff]  ;;  %v14221_v3 = vld [vmem:[#allocation251_spill] sm:$0xff]  ;;  %v2357_v14 = vsel %vm11447_vm2, %v14211_v28, %v2353_v39  ;;  %v2361_v61 = vor.u32 1.1754944e-38, %v2360_v5  ;;  %v3781_v39 = vmul.f32 %v14232_v13, %v1904_v32  ;;  %v6624_v59 = vld [vmem:[%s12975_s3 + $0xa4] sm:$0xf0] }
 0x38b   :  { %4745 = vst [vmem:[#allocation6 + $0x98] sm:$0xff] %v4681_v36  ;;  %v4554_v6 = vmul.f32 %v14220_v21, %v64_v63  ;;  %v4618_v26 = vmul.f32 %v14221_v3, %v1726_v51  ;;  %v6402_v36 = vor.u32 %v6607_v37, %v6399_v17  ;;  %v3844_v42 = vadd.f32 %v3780_v1, %v3716_v29  ;;  %v14225_v63 = vld [vmem:[#allocation67_spill] sm:$0xff]  ;;  %v11467_v51 = vpop.f32.mrf.mxu0  ;;  %v11469_v3 = vpop.f32.mrf.mxu1  ;;  %v14226_v37 = vld [vmem:[#allocation56_spill] sm:$0xff] }
 0x38c   :  { %v2367_v21 = vmul.f32 %v14225_v63, %v14224_v24  ;;  %v2362_v28 = vsel %vm11451_vm3, %v2361_v61, %v2357_v14  ;;  %5746 = vmatpush.bf16.msrb.mxu3 %v6466_v7  ;;  %vm2369_vm4 = vweird.f32 %v14226_v37  ;;  %vm2370_vm5 = vweird.f32 %v14225_v63  ;;  %v14234_v29 = vld [vmem:[#allocation255_spill] sm:$0xff]  ;;  %v11493_v57 = vpop.f32.mrf.mxu2  ;;  %v14242_v7 = vld [vmem:[#allocation36_spill] sm:$0xff] }
 0x38d   :  { %v4682_v38 = vadd.f32 %v4618_v26, %v4554_v6  ;;  %5657 = vmatpush.bf16.msrb.mxu2 %v6402_v36  ;;  %v2373_v26 = vand.u32 2147483647, %v14226_v37  ;;  %v11476_v8 = vmul.f32 %v3844_v42, %v2362_v28  ;;  %v2375_v11 = vand.u32 2147483648, %v14226_v37  ;;  %vm11482_vm6 = vmor %vm2369_vm4, %vm2370_vm5  ;;  %v14233_v42 = vld [vmem:[#allocation252_spill] sm:$0xff]  ;;  %v70_v6 = vld [vmem:[#allocation2 + $0xf0] sm:$0xff]  ;;  %v11503_v28 = vpop.f32.mrf.mxu3 }
 0x38e   :  { %v2368_v24 = vadd.f32 %v14225_v63, %v2367_v21  ;;  %v3717_v17 = vmul.f32 %v14227_v23, %v65_v15  ;;  %v4555_v5 = vmul.f32 %v14233_v42, %v65_v15  ;;  %v4619_v0 = vmul.f32 %v14234_v29, %v1904_v32  ;;  %v14235_v61 = vld [vmem:[#allocation115_spill] sm:$0xff]  ;;  %v14238_v32 = vld [vmem:[#allocation57_spill] sm:$0xff]  ;;  %v14240_v42 = vld [vmem:[#allocation256_spill] sm:$0xff] }
 0x38f   :  { %4746 = vst [vmem:[#allocation6 + $0xc0] sm:$0xff] %v4682_v38  ;;  %vm11486_vm7 = vcmp.eq.f32.partialorder %v2373_v26, 8.507059e+37  ;;  %v2376_v1 = vor.u32 1.1754944e-38, %v2375_v11  ;;  %v1728_v14 = vadd.f32 %v11394_v45, %v11392_v52  ;;  %v14236_v36 = vsub.f32 1.0, %v14235_v61  ;;  %v14237_v38 = vld [vmem:[#allocation69_spill] sm:$0xff]  ;;  %v14241_v29 = vld [vmem:[#allocation35_spill] sm:$0xff] }
 0x390   :  { %v2372_v19 = vsel %vm11482_vm6, %v14225_v63, %v2368_v24  ;;  %v3845_v15 = vadd.f32 %v3781_v39, %v3717_v17  ;;  %v4683_v37 = vadd.f32 %v4619_v0, %v4555_v5  ;;  %vm2384_vm8 = vweird.f32 %v14238_v32  ;;  %v6397_v63 = vld [vmem:[%s12975_s3 + $0x20] sm:$0xf]  ;;  %v6608_v52 = vld [vmem:[%s12975_s3 + $0x24] sm:$0xf0] }
 0x391   :  { %v2382_v21 = vmul.f32 %v14237_v38, %v14236_v36  ;;  %vm2385_vm9 = vweird.f32 %v14237_v38  ;;  %v6461_v45 = vld [vmem:[%s12975_s3 + $0xa0] sm:$0xf]  ;;  %v2377_v26 = vsel %vm11486_vm7, %v2376_v1, %v2372_v19  ;;  %v2388_v11 = vand.u32 2147483647, %v14238_v32  ;;  %v14243_v36 = vld [vmem:[#allocation257_spill] sm:$0xff] }
 0x392   :  { %v2390_v17 = vand.u32 2147483648, %v14238_v32  ;;  %4747 = vst [vmem:[#allocation6 + $0xc8] sm:$0xff] %v4683_v37  ;;  %v11524_v39 = vmul.f32 %v3845_v15, %v2377_v26  ;;  %vm2386_vm10 = vmor %vm2384_vm8, %vm2385_vm9  ;;  %v3718_v5 = vmul.f32 %v14240_v42, %v70_v6  ;;  %v3782_v0 = vmul.f32 %v14241_v29, %v1728_v14 }
 0x393   :  { %v2383_v24 = vadd.f32 %v14237_v38, %v2382_v21  ;;  %v4556_v19 = vmul.f32 %v14242_v7, %v70_v6  ;;  %vm2389_vm11 = vcmp.eq.f32.partialorder %v2388_v11, 8.507059e+37  ;;  %v4620_v21 = vmul.f32 %v14243_v36, %v1728_v14  ;;  %v14247_v6 = vld [vmem:[#allocation59_spill] sm:$0xff]  ;;  %v14250_v11 = vld [vmem:[#allocation260_spill] sm:$0xff] }
 0x394   :  { %14239 = vst [vmem:[#allocation88_spill] sm:$0xff] %v11524_v39  ;;  %v2391_v61 = vor.u32 1.1754944e-38, %v2390_v17  ;;  %v3846_v32 = vadd.f32 %v3782_v0, %v3718_v5  ;;  %v6398_v10 = vor.u32 %v6608_v52, %v6397_v63  ;;  %v6462_v48 = vor.u32 %v6624_v59, %v6461_v45  ;;  %v14249_v52 = vld [vmem:[#allocation259_spill] sm:$0xff]  ;;  %v11557_v7 = vpop.f32.mrf.mxu2  ;;  %v14265_v59 = vld [vmem:[#allocation264_spill] sm:$0xff] }
 0x395   :  { %v2387_v1 = vsel %vm2386_vm10, %v14237_v38, %v2383_v24  ;;  %v1906_v15 = vadd.f32 %v11416_v49, %v11410_v62  ;;  %v4684_v26 = vadd.f32 %v4620_v21, %v4556_v19  ;;  %vm2399_vm12 = vweird.f32 %v14247_v6  ;;  %v11537_v38 = vpop.f32.mrf.mxu0  ;;  %v11539_v24 = vpop.f32.mrf.mxu1  ;;  %v14257_v21 = vld [vmem:[#allocation71_spill] sm:$0xff]  ;;  %v14336_v39 = vld [vmem:[#allocation76_spill] sm:$0xff] }
 0x396   :  { %v2392_v37 = vsel %vm2389_vm11, %v2391_v61, %v2387_v1  ;;  %5479 = vmatpush.bf16.msrb.mxu0 %v6398_v10  ;;  %5568 = vmatpush.bf16.msrb.mxu1 %v6462_v48  ;;  %vm2400_vm13 = vweird.f32 %v14246_v53  ;;  %v2403_v62 = vand.u32 2147483647, %v14247_v6  ;;  %v2405_v49 = vand.u32 2147483648, %v14247_v6  ;;  %v14253_v48 = vld [vmem:[#allocation261_spill] sm:$0xff]  ;;  %v76_v1 = vld [vmem:[#allocation2 + $0x120] sm:$0xff]  ;;  %v14255_v61 = vld [vmem:[#allocation124_spill] sm:$0xff] }
 0x397   :  { %v11541_v14 = vmul.f32 %v3846_v32, %v2392_v37  ;;  %4748 = vst [vmem:[#allocation6 + $0xf0] sm:$0xff] %v4684_v26  ;;  %v3719_v63 = vmul.f32 %v14248_v16, %v71_v20  ;;  %v3783_v45 = vmul.f32 %v14249_v52, %v1906_v15  ;;  %v4557_v17 = vmul.f32 %v14250_v11, %v71_v20  ;;  %vm11550_vm14 = vmor %vm2399_vm12, %vm2400_vm13  ;;  %v11568_v37 = vpop.f32.mrf.mxu3  ;;  %v14264_v11 = vld [vmem:[#allocation263_spill] sm:$0xff] }
 0x398   :  { %vm2404_vm15 = vcmp.eq.f32.partialorder %v2403_v62, 8.507059e+37  ;;  %v2406_v10 = vor.u32 1.1754944e-38, %v2405_v49  ;;  %v4621_v5 = vmul.f32 %v14253_v48, %v1906_v15  ;;  %v1731_v0 = vadd.f32 %v11469_v3, %v11467_v51  ;;  %v14258_v15 = vld [vmem:[#allocation60_spill] sm:$0xff]  ;;  %v14259_v51 = vld [vmem:[#allocation42_spill] sm:$0xff]  ;;  %v14266_v48 = vld [vmem:[#allocation265_spill] sm:$0xff] }
 0x399   :  { %v2402_v20 = vsel %vm11550_vm14, %v14246_v53, %v2398_v4  ;;  %v3847_v19 = vadd.f32 %v3783_v45, %v3719_v63  ;;  %v14256_v36 = vsub.f32 1.0, %v14255_v61  ;;  %vm2414_vm0 = vweird.f32 %v14258_v15  ;;  %1967 = vmatmul.bf16.gmra.mxu3 %v14259_v51  ;;  %v14261_v4 = vld [vmem:[#allocation262_spill] sm:$0xff]  ;;  %1789 = vmatmul.bf16.gmra.mxu1 %v14259_v51 }
 0x39a   :  { %1700 = vmatmul.bf16.gmra.mxu0 %v14254_v9  ;;  %1878 = vmatmul.bf16.gmra.mxu2 %v14254_v9  ;;  %v2407_v3 = vsel %vm2404_vm15, %v2406_v10, %v2402_v20  ;;  %v4685_v26 = vadd.f32 %v4621_v5, %v4557_v17  ;;  %vm2415_vm1 = vweird.f32 %v14257_v21  ;;  %v2418_v6 = vand.u32 2147483647, %v14258_v15  ;;  %v14272_v51 = vld [vmem:[#allocation266_spill] sm:$0xff] }
 0x39b   :  { %v2412_v32 = vmul.f32 %v14257_v21, %v14256_v36  ;;  %v11573_v62 = vmul.f32 %v3847_v19, %v2407_v3  ;;  %v2420_v49 = vand.u32 2147483648, %v14258_v15  ;;  %v3720_v63 = vmul.f32 %v14261_v4, %v76_v1  ;;  %vm11578_vm2 = vmor %vm2414_vm0, %vm2415_vm1  ;;  %v77_v19 = vld [vmem:[#allocation2 + $0x128] sm:$0xff]  ;;  %v14267_v36 = vld [vmem:[#allocation125_spill] sm:$0xff] }
 0x39c   :  { %4749 = vst [vmem:[#allocation6 + $0xf8] sm:$0xff] %v4685_v26  ;;  %vm2419_vm3 = vcmp.eq.f32.partialorder %v2418_v6, 8.507059e+37  ;;  %v3784_v17 = vmul.f32 %v14264_v11, %v1731_v0  ;;  %v4558_v10 = vmul.f32 %v14265_v59, %v76_v1  ;;  %v4622_v5 = vmul.f32 %v14266_v48, %v1731_v0  ;;  %v14269_v15 = vld [vmem:[#allocation72_spill] sm:$0xff]  ;;  %v14270_v1 = vld [vmem:[#allocation61_spill] sm:$0xff] }
 0x39d   :  { %14260 = vst [vmem:[#allocation49_spill] sm:$0xff] %v11573_v62  ;;  %v2413_v53 = vadd.f32 %v14257_v21, %v2412_v32  ;;  %v2421_v20 = vor.u32 1.1754944e-38, %v2420_v49  ;;  %v1909_v61 = vadd.f32 %v11503_v28, %v11493_v57  ;;  %v14268_v32 = vsub.f32 1.0, %v14267_v36  ;;  %v1646_v57 = vpop.f32.mrf.mxu0  ;;  %v1735_v28 = vpop.f32.mrf.mxu1 }
 0x39e   :  { %v3848_v26 = vadd.f32 %v3784_v17, %v3720_v63  ;;  %v4686_v6 = vadd.f32 %v4622_v5, %v4558_v10  ;;  %vm2429_vm4 = vweird.f32 %v14270_v1  ;;  %vm2430_vm5 = vweird.f32 %v14269_v15  ;;  %v14273_v17 = vld [vmem:[#allocation267_spill] sm:$0xff]  ;;  %v14274_v10 = vld [vmem:[#allocation268_spill] sm:$0xff] }
 0x39f   :  { %v2417_v9 = vsel %vm11578_vm2, %v14257_v21, %v2413_v53  ;;  %v2427_v3 = vmul.f32 %v14269_v15, %v14268_v32  ;;  %v2433_v53 = vand.u32 2147483647, %v14270_v1  ;;  %v2435_v49 = vand.u32 2147483648, %v14270_v1  ;;  %vm2431_vm6 = vmor %vm2429_vm4, %vm2430_vm5 }
 0x3a0   :  { %v2422_v0 = vsel %vm2419_vm3, %v2421_v20, %v2417_v9  ;;  %4750 = vst [vmem:[#allocation6 + $0x120] sm:$0xff] %v4686_v6  ;;  %v3721_v63 = vmul.f32 %v14272_v51, %v77_v19  ;;  %v3785_v59 = vmul.f32 %v14273_v17, %v1909_v61  ;;  %v4559_v48 = vmul.f32 %v14274_v10, %v77_v19  ;;  %v14275_v20 = vld [vmem:[#allocation269_spill] sm:$0xff]  ;;  %v89_v51 = vld [vmem:[#allocation2 + $0x188] sm:$0xff] }
 0x3a1   :  { %v2428_v21 = vadd.f32 %v14269_v15, %v2427_v3  ;;  %v11599_v45 = vmul.f32 %v3848_v26, %v2422_v0  ;;  %vm2434_vm7 = vcmp.eq.f32.partialorder %v2433_v53, 8.507059e+37  ;;  %v2436_v9 = vor.u32 1.1754944e-38, %v2435_v49  ;;  %v82_v3 = vld [vmem:[#allocation2 + $0x150] sm:$0xff]  ;;  %v14276_v26 = vld [vmem:[#allocation127_spill] sm:$0xff]  ;;  %v14278_v0 = vld [vmem:[#allocation74_spill] sm:$0xff] }
 0x3a2   :  { %v4623_v36 = vmul.f32 %v14275_v20, %v1909_v61  ;;  %v3849_v32 = vadd.f32 %v3785_v59, %v3721_v63  ;;  %v1733_v6 = vadd.f32 %v11539_v24, %v11537_v38  ;;  %v14277_v1 = vsub.f32 1.0, %v14276_v26  ;;  %v14281_v53 = vld [vmem:[#allocation272_spill] sm:$0xff]  ;;  %v14284_v49 = vld [vmem:[#allocation273_spill] sm:$0xff]  ;;  %v14285_v59 = vld [vmem:[#allocation270_spill] sm:$0xff] }
 0x3a3   :  { %14271 = vst [vmem:[#allocation44_spill] sm:$0xff] %v11599_v45  ;;  %v2432_v5 = vsel %vm2431_vm6, %v14269_v15, %v2428_v21  ;;  %vm2444_vm8 = vweird.f32 %v14279_v12  ;;  %vm2445_vm9 = vweird.f32 %v14278_v0  ;;  %v2448_v19 = vand.u32 2147483647, %v14279_v12  ;;  %v83_v20 = vld [vmem:[#allocation2 + $0x158] sm:$0xff]  ;;  %v14289_v26 = vld [vmem:[#allocation75_spill] sm:$0xff] }
 0x3a4   :  { %v2442_v45 = vmul.f32 %v14278_v0, %v14277_v1  ;;  %v2437_v25 = vsel %vm2434_vm7, %v2436_v9, %v2432_v5  ;;  %v4687_v17 = vadd.f32 %v4623_v36, %v4559_v48  ;;  %v2450_v21 = vand.u32 2147483648, %v14279_v12  ;;  %vm11619_vm10 = vmor %vm2444_vm8, %vm2445_vm9  ;;  %v14286_v48 = vld [vmem:[#allocation271_spill] sm:$0xff]  ;;  %v1913_v9 = vpop.f32.mrf.mxu3  ;;  %v14287_v36 = vld [vmem:[#allocation128_spill] sm:$0xff] }
 0x3a5   :  { %v11614_v15 = vmul.f32 %v3849_v32, %v2437_v25  ;;  %v3722_v38 = vmul.f32 %v14281_v53, %v82_v3  ;;  %vm2449_vm11 = vcmp.eq.f32.partialorder %v2448_v19, 8.507059e+37  ;;  %v3786_v63 = vmul.f32 %v14284_v49, %v1733_v6  ;;  %v1824_v25 = vpop.f32.mrf.mxu2  ;;  %v14295_v24 = vld [vmem:[#allocation275_spill] sm:$0xff]  ;;  %v14300_v49 = vld [vmem:[#allocation77_spill] sm:$0xff] }
 0x3a6   :  { %v2443_v61 = vadd.f32 %v14278_v0, %v2442_v45  ;;  %4751 = vst [vmem:[#allocation6 + $0x128] sm:$0xff] %v4687_v17  ;;  %v4560_v10 = vmul.f32 %v14285_v59, %v82_v3  ;;  %v4624_v5 = vmul.f32 %v14286_v48, %v1733_v6  ;;  %v2451_v45 = vor.u32 1.1754944e-38, %v2450_v21  ;;  %v14290_v3 = vld [vmem:[#allocation64_spill] sm:$0xff] }
 0x3a7   :  { %14280 = vst [vmem:[#allocation225_spill] sm:$0xff] %v11614_v15  ;;  %v1911_v17 = vadd.f32 %v11568_v37, %v11557_v7  ;;  %v14288_v32 = vsub.f32 1.0, %v14287_v36  ;;  %v3850_v19 = vadd.f32 %v3786_v63, %v3722_v38  ;;  %vm2459_vm12 = vweird.f32 %v14290_v3  ;;  %v14294_v37 = vld [vmem:[#allocation274_spill] sm:$0xff]  ;;  %v14297_v36 = vld [vmem:[#allocation277_spill] sm:$0xff] }
 0x3a8   :  { %v2447_v12 = vsel %vm11619_vm10, %v14278_v0, %v2443_v61  ;;  %v4688_v15 = vadd.f32 %v4624_v5, %v4560_v10  ;;  %vm2460_vm13 = vweird.f32 %v14289_v26  ;;  %v2463_v0 = vand.u32 2147483647, %v14290_v3  ;;  %v14296_v10 = vld [vmem:[#allocation276_spill] sm:$0xff]  ;;  %v1648_v5 = vpop.f32.mrf.mxu0 }
 0x3a9   :  { %v2457_v1 = vmul.f32 %v14289_v26, %v14288_v32  ;;  %v2452_v6 = vsel %vm2449_vm11, %v2451_v45, %v2447_v12  ;;  %v2465_v61 = vand.u32 2147483648, %v14290_v3  ;;  %vm11641_vm14 = vmor %vm2459_vm12, %vm2460_vm13  ;;  %v3723_v38 = vmul.f32 %v14294_v37, %v83_v20  ;;  %v1737_v12 = vpop.f32.mrf.mxu1 }
 0x3aa   :  { %4752 = vst [vmem:[#allocation6 + $0x150] sm:$0xff] %v4688_v15  ;;  %v11639_v21 = vmul.f32 %v3850_v19, %v2452_v6  ;;  %v3787_v63 = vmul.f32 %v14295_v24, %v1911_v17  ;;  %v4561_v48 = vmul.f32 %v14296_v10, %v83_v20  ;;  %vm2464_vm15 = vcmp.eq.f32.partialorder %v2463_v0, 8.507059e+37  ;;  %v88_v19 = vld [vmem:[#allocation2 + $0x180] sm:$0xff]  ;;  %v14298_v6 = vld [vmem:[#allocation129_spill] sm:$0xff]  ;;  %v14301_v24 = vld [vmem:[#allocation66_spill] sm:$0xff] }
 0x3ab   :  { %v2458_v59 = vadd.f32 %v14289_v26, %v2457_v1  ;;  %v2466_v15 = vor.u32 1.1754944e-38, %v2465_v61  ;;  %v4625_v32 = vmul.f32 %v14297_v36, %v1911_v17  ;;  %v1736_v3 = vadd.f32 %v1735_v28, %v1646_v57  ;;  %v6605_v20 = vld [vmem:[%s12975_s3 + $0x14] sm:$0xf]  ;;  %v6455_v17 = vld [vmem:[%s12975_s3 + $0x98] sm:$0xf0] }
 0x3ac   :  { %14291 = vst [vmem:[#allocation227_spill] sm:$0xff] %v11639_v21  ;;  %v3851_v1 = vadd.f32 %v3787_v63, %v3723_v38  ;;  %v14299_v21 = vsub.f32 1.0, %v14298_v6  ;;  %vm2474_vm0 = vweird.f32 %v14301_v24  ;;  %vm2475_vm1 = vweird.f32 %v14300_v49  ;;  %v6621_v28 = vld [vmem:[%s12975_s3 + $0x94] sm:$0xf]  ;;  %v14303_v38 = vld [vmem:[#allocation278_spill] sm:$0xff] }
 0x3ad   :  { %v2462_v45 = vsel %vm11641_vm14, %v14289_v26, %v2458_v59  ;;  %v6391_v26 = vld [vmem:[%s12975_s3 + $0x18] sm:$0xf0]  ;;  %v4689_v0 = vadd.f32 %v4625_v32, %v4561_v48  ;;  %v2478_v57 = vand.u32 2147483647, %v14301_v24  ;;  %v2480_v7 = vand.u32 2147483648, %v14301_v24  ;;  %vm11675_vm2 = vmor %vm2474_vm0, %vm2475_vm1  ;;  %v14306_v48 = vld [vmem:[#allocation279_spill] sm:$0xff] }
 0x3ae   :  { %v2472_v11 = vmul.f32 %v14300_v49, %v14299_v21  ;;  %v2467_v59 = vsel %vm2464_vm15, %v2466_v15, %v2462_v45  ;;  %v3724_v63 = vmul.f32 %v14303_v38, %v88_v19  ;;  %v3788_v45 = vmul.f32 %v14306_v48, %v1736_v3  ;;  %v14307_v15 = vld [vmem:[#allocation280_spill] sm:$0xff]  ;;  %v14308_v32 = vld [vmem:[#allocation281_spill] sm:$0xff]  ;;  %v1826_v38 = vpop.f32.mrf.mxu2  ;;  %v14311_v48 = vld [vmem:[#allocation78_spill] sm:$0xff] }
 0x3af   :  { %v11670_v61 = vmul.f32 %v3851_v1, %v2467_v59  ;;  %4753 = vst [vmem:[#allocation6 + $0x158] sm:$0xff] %v4689_v0  ;;  %vm2479_vm3 = vcmp.eq.f32.partialorder %v2478_v57, 8.507059e+37  ;;  %v4562_v36 = vmul.f32 %v14307_v15, %v88_v19  ;;  %v4626_v6 = vmul.f32 %v14308_v32, %v1736_v3  ;;  %v1915_v0 = vpop.f32.mrf.mxu3  ;;  %v14309_v57 = vld [vmem:[#allocation130_spill] sm:$0xff]  ;;  %v14312_v3 = vld [vmem:[#allocation68_spill] sm:$0xff]  ;;  %v94_v32 = vld [vmem:[#allocation2 + $0x1b0] sm:$0xff] }
 0x3b0   :  { %v2473_v21 = vadd.f32 %v14300_v49, %v2472_v11  ;;  %v2481_v1 = vor.u32 1.1754944e-38, %v2480_v7  ;;  %v6394_v24 = vor.u32 %v6605_v20, %v6391_v26  ;;  %v6458_v59 = vor.u32 %v6621_v28, %v6455_v17 }
 0x3b1   :  { %14302 = vst [vmem:[#allocation228_spill] sm:$0xff] %v11670_v61  ;;  %v3852_v61 = vadd.f32 %v3788_v45, %v3724_v63  ;;  %v4690_v37 = vadd.f32 %v4626_v6, %v4562_v36  ;;  %v1914_v53 = vadd.f32 %v1913_v9, %v1824_v25  ;;  %v14310_v4 = vsub.f32 1.0, %v14309_v57  ;;  %v14314_v9 = vld [vmem:[#allocation283_spill] sm:$0xff]  ;;  %v14320_v63 = vld [vmem:[#allocation282_spill] sm:$0xff]  ;;  %v1651_v45 = vpop.f32.mrf.mxu0 }
 0x3b2   :  { %v2477_v11 = vsel %vm11675_vm2, %v14300_v49, %v2473_v21  ;;  %5658 = vmatpush.bf16.msrb.mxu2 %v6394_v24  ;;  %5747 = vmatpush.bf16.msrb.mxu3 %v6458_v59  ;;  %vm2489_vm4 = vweird.f32 %v14312_v3  ;;  %vm2490_vm5 = vweird.f32 %v14311_v48  ;;  %v2493_v49 = vand.u32 2147483647, %v14312_v3  ;;  %v14319_v21 = vld [vmem:[#allocation284_spill] sm:$0xff]  ;;  %v14324_v24 = vld [vmem:[#allocation81_spill] sm:$0xff] }
 0x3b3   :  { %v2487_v62 = vmul.f32 %v14311_v48, %v14310_v4  ;;  %v2482_v19 = vsel %vm2479_vm3, %v2481_v1, %v2477_v11  ;;  %4754 = vst [vmem:[#allocation6 + $0x180] sm:$0xff] %v4690_v37  ;;  %v2495_v25 = vand.u32 2147483648, %v14312_v3  ;;  %v3725_v28 = vmul.f32 %v14314_v9, %v89_v51  ;;  %vm11696_vm6 = vmor %vm2489_vm4, %vm2490_vm5  ;;  %v14322_v11 = vld [vmem:[#allocation132_spill] sm:$0xff]  ;;  %v14325_v3 = vld [vmem:[#allocation73_spill] sm:$0xff] }
 0x3b4   :  { %v11691_v20 = vmul.f32 %v3852_v61, %v2482_v19  ;;  %vm11700_vm7 = vcmp.eq.f32.partialorder %v2493_v49, 8.507059e+37  ;;  %v3789_v7 = vmul.f32 %v14319_v21, %v1914_v53  ;;  %v4563_v37 = vmul.f32 %v14320_v63, %v89_v51  ;;  %v14321_v61 = vld [vmem:[#allocation285_spill] sm:$0xff]  ;;  %v14330_v63 = vld [vmem:[#allocation287_spill] sm:$0xff] }
 0x3b5   :  { %v2488_v26 = vadd.f32 %v14311_v48, %v2487_v62  ;;  %v4627_v10 = vmul.f32 %v14321_v61, %v1914_v53  ;;  %v1740_v62 = vpop.f32.mrf.mxu1  ;;  %v2496_v36 = vor.u32 1.1754944e-38, %v2495_v25  ;;  %v1738_v6 = vadd.f32 %v1737_v12, %v1648_v5  ;;  %v6389_v51 = vld [vmem:[%s12975_s3 + $0x10] sm:$0xf]  ;;  %v6606_v53 = vld [vmem:[%s12975_s3 + $0x14] sm:$0xf0]  ;;  %v14331_v61 = vld [vmem:[#allocation288_spill] sm:$0xff] }
 0x3b6   :  { %14313 = vst [vmem:[#allocation229_spill] sm:$0xff] %v11691_v20  ;;  %v14323_v1 = vsub.f32 1.0, %v14322_v11  ;;  %v3853_v57 = vadd.f32 %v3789_v7, %v3725_v28  ;;  %vm2504_vm8 = vweird.f32 %v14325_v3  ;;  %vm2505_vm9 = vweird.f32 %v14324_v24  ;;  %v6453_v5 = vld [vmem:[%s12975_s3 + $0x90] sm:$0xf]  ;;  %v6622_v25 = vld [vmem:[%s12975_s3 + $0x94] sm:$0xf0] }
 0x3b7   :  { %v2492_v15 = vsel %vm11696_vm6, %v14311_v48, %v2488_v26  ;;  %v4691_v19 = vadd.f32 %v4627_v10, %v4563_v37  ;;  %v2508_v49 = vand.u32 2147483647, %v14325_v3  ;;  %v2510_v26 = vand.u32 2147483648, %v14325_v3  ;;  %vm11734_vm10 = vmor %vm2504_vm8, %vm2505_vm9  ;;  %v14329_v7 = vld [vmem:[#allocation286_spill] sm:$0xff]  ;;  %v14332_v11 = vld [vmem:[#allocation289_spill] sm:$0xff]  ;;  %v1918_v20 = vpop.f32.mrf.mxu3 }
 0x3b8   :  { %v2502_v59 = vmul.f32 %v14324_v24, %v14323_v1  ;;  %v2497_v12 = vsel %vm11700_vm7, %v2496_v36, %v2492_v15  ;;  %v3726_v17 = vmul.f32 %v14329_v7, %v94_v32  ;;  %v3790_v37 = vmul.f32 %v14330_v63, %v1738_v6  ;;  %v95_v3 = vld [vmem:[#allocation2 + $0x1b8] sm:$0xff]  ;;  %v14333_v63 = vld [vmem:[#allocation140_spill] sm:$0xff] }
 0x3b9   :  { %4755 = vst [vmem:[#allocation6 + $0x188] sm:$0xff] %v4691_v19  ;;  %v11732_v28 = vmul.f32 %v3853_v57, %v2497_v12  ;;  %v4564_v10 = vmul.f32 %v14331_v61, %v94_v32  ;;  %vm2509_vm11 = vcmp.eq.f32.partialorder %v2508_v49, 8.507059e+37  ;;  %v2511_v36 = vor.u32 1.1754944e-38, %v2510_v26  ;;  %v14335_v32 = vld [vmem:[#allocation84_spill] sm:$0xff]  ;;  %v14340_v49 = vld [vmem:[#allocation290_spill] sm:$0xff] }
 0x3ba   :  { %v2503_v48 = vadd.f32 %v14324_v24, %v2502_v59  ;;  %v4628_v1 = vmul.f32 %v14332_v11, %v1738_v6  ;;  %v3854_v59 = vadd.f32 %v3790_v37, %v3726_v17  ;;  %v6390_v57 = vor.u32 %v6606_v53, %v6389_v51  ;;  %v14338_v51 = vld [vmem:[#allocation291_spill] sm:$0xff]  ;;  %v1653_v17 = vpop.f32.mrf.mxu0 }
 0x3bb   :  { %14326 = vst [vmem:[#allocation230_spill] sm:$0xff] %v11732_v28  ;;  %v6454_v19 = vor.u32 %v6622_v25, %v6453_v5  ;;  %v1916_v12 = vadd.f32 %v1915_v0, %v1826_v38  ;;  %v1829_v28 = vpop.f32.mrf.mxu2  ;;  %v14334_v7 = vsub.f32 1.0, %v14333_v63  ;;  %vm2519_vm12 = vweird.f32 %v14336_v39  ;;  %v14339_v5 = vld [vmem:[#allocation292_spill] sm:$0xff]  ;;  %v14341_v25 = vld [vmem:[#allocation293_spill] sm:$0xff] }
 0x3bc   :  { %v2507_v15 = vsel %vm11734_vm10, %v14324_v24, %v2503_v48  ;;  %v4692_v9 = vadd.f32 %v4628_v1, %v4564_v10  ;;  %5480 = vmatpush.bf16.msrb.mxu0 %v6390_v57  ;;  %vm2520_vm13 = vweird.f32 %v14335_v32  ;;  %v2523_v6 = vand.u32 2147483647, %v14336_v39  ;;  %v14342_v10 = vld [vmem:[#allocation141_spill] sm:$0xff]  ;;  %v14345_v1 = vld [vmem:[#allocation79_spill] sm:$0xff] }
 0x3bd   :  { %v2512_v21 = vsel %vm2509_vm11, %v2511_v36, %v2507_v15  ;;  %v2517_v61 = vmul.f32 %v14335_v32, %v14334_v7  ;;  %5569 = vmatpush.bf16.msrb.mxu1 %v6454_v19  ;;  %v2525_v38 = vand.u32 2147483648, %v14336_v39  ;;  %v3727_v53 = vmul.f32 %v14338_v51, %v95_v3  ;;  %vm2521_vm14 = vmor %vm2519_vm12, %vm2520_vm13  ;;  %v1742_v63 = vpop.f32.mrf.mxu1  ;;  %v14344_v36 = vld [vmem:[#allocation92_spill] sm:$0xff] }
 0x3be   :  { %v11749_v24 = vmul.f32 %v3854_v59, %v2512_v21  ;;  %4756 = vst [vmem:[#allocation6 + $0x1b0] sm:$0xff] %v4692_v9  ;;  %v3791_v48 = vmul.f32 %v14339_v5, %v1916_v12  ;;  %v4565_v26 = vmul.f32 %v14340_v49, %v95_v3  ;;  %vm2524_vm15 = vcmp.eq.f32.partialorder %v2523_v6, 8.507059e+37  ;;  %v100_v9 = vld [vmem:[#allocation2 + $0x1e0] sm:$0xff] }
 0x3bf   :  { %v2518_v0 = vadd.f32 %v14335_v32, %v2517_v61  ;;  %v2526_v21 = vor.u32 1.1754944e-38, %v2525_v38  ;;  %v4629_v4 = vmul.f32 %v14341_v25, %v1916_v12  ;;  %v1741_v7 = vadd.f32 %v1740_v62, %v1651_v45  ;;  %v14347_v12 = vld [vmem:[#allocation294_spill] sm:$0xff]  ;;  %v14350_v6 = vld [vmem:[#allocation295_spill] sm:$0xff]  ;;  %v101_v25 = vld [vmem:[#allocation2 + $0x1e8] sm:$0xff] }
 0x3c0   :  { %14337 = vst [vmem:[#allocation90_spill] sm:$0xff] %v11749_v24  ;;  %v3855_v39 = vadd.f32 %v3791_v48, %v3727_v53  ;;  %v14343_v15 = vsub.f32 1.0, %v14342_v10  ;;  %vm2534_vm0 = vweird.f32 %v14345_v1  ;;  %vm2535_vm1 = vweird.f32 %v14344_v36  ;;  %v14352_v48 = vld [vmem:[#allocation297_spill] sm:$0xff]  ;;  %v14355_v10 = vld [vmem:[#allocation94_spill] sm:$0xff]  ;;  %v14361_v61 = vld [vmem:[#allocation299_spill] sm:$0xff] }
 0x3c1   :  { %v2522_v37 = vsel %vm2521_vm14, %v14335_v32, %v2518_v0  ;;  %v4693_v57 = vadd.f32 %v4629_v4, %v4565_v26  ;;  %v2538_v19 = vand.u32 2147483647, %v14345_v1  ;;  %v2540_v62 = vand.u32 2147483648, %v14345_v1  ;;  %vm11771_vm2 = vmor %vm2534_vm0, %vm2535_vm1  ;;  %v14351_v0 = vld [vmem:[#allocation296_spill] sm:$0xff] }
 0x3c2   :  { %v2532_v11 = vmul.f32 %v14344_v36, %v14343_v15  ;;  %v2527_v59 = vsel %vm2524_vm15, %v2526_v21, %v2522_v37  ;;  %v3728_v32 = vmul.f32 %v14347_v12, %v100_v9  ;;  %v3792_v38 = vmul.f32 %v14350_v6, %v1741_v7  ;;  %v14353_v37 = vld [vmem:[#allocation144_spill] sm:$0xff] }
 0x3c3   :  { %v11766_v3 = vmul.f32 %v3855_v39, %v2527_v59  ;;  %4757 = vst [vmem:[#allocation6 + $0x1b8] sm:$0xff] %v4693_v57  ;;  %vm2539_vm3 = vcmp.eq.f32.partialorder %v2538_v19, 8.507059e+37  ;;  %v4566_v53 = vmul.f32 %v14351_v0, %v100_v9  ;;  %v4630_v49 = vmul.f32 %v14352_v48, %v1741_v7  ;;  %v14356_v59 = vld [vmem:[#allocation80_spill] sm:$0xff]  ;;  %v1831_v9 = vpop.f32.mrf.mxu2  ;;  %v1920_v57 = vpop.f32.mrf.mxu3 }
 0x3c4   :  { %v2533_v45 = vadd.f32 %v14344_v36, %v2532_v11  ;;  %v2541_v21 = vor.u32 1.1754944e-38, %v2540_v62  ;;  %v1919_v4 = vadd.f32 %v1918_v20, %v1829_v28  ;;  %v14354_v39 = vsub.f32 1.0, %v14353_v37  ;;  %v14360_v62 = vld [vmem:[#allocation298_spill] sm:$0xff]  ;;  %v14362_v0 = vld [vmem:[#allocation300_spill] sm:$0xff] }
 0x3c5   :  { %14346 = vst [vmem:[#allocation51_spill] sm:$0xff] %v11766_v3  ;;  %v3856_v11 = vadd.f32 %v3792_v38, %v3728_v32  ;;  %v4694_v1 = vadd.f32 %v4630_v49, %v4566_v53  ;;  %vm2549_vm4 = vweird.f32 %v14356_v59  ;;  %vm2550_vm5 = vweird.f32 %v14355_v10  ;;  %v1745_v6 = vpop.f32.mrf.mxu1  ;;  %v113_v12 = vld [vmem:[#allocation2 + $0x248] sm:$0xff] }
 0x3c6   :  { %v2537_v26 = vsel %vm11771_vm2, %v14344_v36, %v2533_v45  ;;  %v2547_v15 = vmul.f32 %v14355_v10, %v14354_v39  ;;  %v2553_v36 = vand.u32 2147483647, %v14356_v59  ;;  %v2555_v45 = vand.u32 2147483648, %v14356_v59  ;;  %vm11791_vm6 = vmor %vm2549_vm4, %vm2550_vm5  ;;  %v106_v39 = vld [vmem:[#allocation2 + $0x210] sm:$0xff] }
 0x3c7   :  { %v2542_v7 = vsel %vm2539_vm3, %v2541_v21, %v2537_v26  ;;  %4758 = vst [vmem:[#allocation6 + $0x1e0] sm:$0xff] %v4694_v1  ;;  %v3729_v32 = vmul.f32 %v14360_v62, %v101_v25  ;;  %v3793_v38 = vmul.f32 %v14361_v61, %v1919_v4  ;;  %v4567_v53 = vmul.f32 %v14362_v0, %v101_v25  ;;  %v14363_v26 = vld [vmem:[#allocation301_spill] sm:$0xff]  ;;  %v1656_v61 = vpop.f32.mrf.mxu0 }
 0x3c8   :  { %v2548_v19 = vadd.f32 %v14355_v10, %v2547_v15  ;;  %v11789_v20 = vmul.f32 %v3856_v11, %v2542_v7  ;;  %vm2554_vm7 = vcmp.eq.f32.partialorder %v2553_v36, 8.507059e+37  ;;  %v2556_v49 = vor.u32 1.1754944e-38, %v2555_v45  ;;  %v14364_v11 = vld [vmem:[#allocation145_spill] sm:$0xff]  ;;  %v14370_v45 = vld [vmem:[#allocation304_spill] sm:$0xff] }
 0x3c9   :  { %v4631_v21 = vmul.f32 %v14363_v26, %v1919_v4  ;;  %v3857_v37 = vadd.f32 %v3793_v38, %v3729_v32  ;;  %v1743_v15 = vadd.f32 %v1742_v63, %v1653_v17  ;;  %v14365_v1 = vsub.f32 1.0, %v14364_v11  ;;  %v14366_v59 = vld [vmem:[#allocation97_spill] sm:$0xff]  ;;  %v14369_v63 = vld [vmem:[#allocation303_spill] sm:$0xff]  ;;  %v14371_v32 = vld [vmem:[#allocation302_spill] sm:$0xff] }
 0x3ca   :  { %14357 = vst [vmem:[#allocation45_spill] sm:$0xff] %v11789_v20  ;;  %v2552_v48 = vsel %vm11791_vm6, %v14355_v10, %v2548_v19  ;;  %v14367_v20 = vld [vmem:[#allocation82_spill] sm:$0xff]  ;;  %vm2565_vm9 = vweird.f32 %v14366_v59  ;;  %v3730_v36 = vmul.f32 %v14369_v63, %v106_v39  ;;  %v4568_v38 = vmul.f32 %v14371_v32, %v106_v39  ;;  %v14373_v11 = vld [vmem:[#allocation147_spill] sm:$0xff] }
 0x3cb   :  { %v2562_v7 = vmul.f32 %v14366_v59, %v14365_v1  ;;  %vm2564_vm8 = vweird.f32 %v14367_v20  ;;  %v2557_v25 = vsel %vm2554_vm7, %v2556_v49, %v2552_v48  ;;  %v4695_v0 = vadd.f32 %v4631_v21, %v4567_v53  ;;  %v14372_v53 = vld [vmem:[#allocation305_spill] sm:$0xff]  ;;  %v107_v21 = vld [vmem:[#allocation2 + $0x218] sm:$0xff]  ;;  %v14381_v32 = vld [vmem:[#allocation307_spill] sm:$0xff] }
 0x3cc   :  { %v2568_v10 = vand.u32 2147483647, %v14367_v20  ;;  %v11808_v19 = vmul.f32 %v3857_v37, %v2557_v25  ;;  %v2570_v17 = vand.u32 2147483648, %v14367_v20  ;;  %vm2566_vm10 = vmor %vm2564_vm8, %vm2565_vm9  ;;  %v3794_v28 = vmul.f32 %v14370_v45, %v1743_v15 }
 0x3cd   :  { %v2563_v4 = vadd.f32 %v14366_v59, %v2562_v7  ;;  %4759 = vst [vmem:[#allocation6 + $0x1e8] sm:$0xff] %v4695_v0  ;;  %v4632_v48 = vmul.f32 %v14372_v53, %v1743_v15  ;;  %v1921_v37 = vadd.f32 %v1920_v57, %v1831_v9  ;;  %v14374_v1 = vsub.f32 1.0, %v14373_v11  ;;  %v14375_v7 = vld [vmem:[#allocation100_spill] sm:$0xff]  ;;  %v14376_v0 = vld [vmem:[#allocation83_spill] sm:$0xff]  ;;  %v14383_v11 = vld [vmem:[#allocation309_spill] sm:$0xff]  ;;  %v1747_v57 = vpop.f32.mrf.mxu1 }
 0x3ce   :  { %14368 = vst [vmem:[#allocation31_spill] sm:$0xff] %v11808_v19  ;;  %vm2569_vm11 = vcmp.eq.f32.partialorder %v2568_v10, 8.507059e+37  ;;  %v2571_v26 = vor.u32 1.1754944e-38, %v2570_v17  ;;  %v3858_v25 = vadd.f32 %v3794_v28, %v3730_v36  ;;  %vm2579_vm12 = vweird.f32 %v14376_v0  ;;  %v1923_v17 = vpop.f32.mrf.mxu3  ;;  %v14380_v36 = vld [vmem:[#allocation306_spill] sm:$0xff]  ;;  %v14382_v53 = vld [vmem:[#allocation308_spill] sm:$0xff] }
 0x3cf   :  { %v2567_v49 = vsel %vm2566_vm10, %v14366_v59, %v2563_v4  ;;  %v2577_v20 = vmul.f32 %v14375_v7, %v14374_v1  ;;  %v4696_v19 = vadd.f32 %v4632_v48, %v4568_v38  ;;  %vm2580_vm13 = vweird.f32 %v14375_v7  ;;  %v1834_v4 = vpop.f32.mrf.mxu2 }
 0x3d0   :  { %v2572_v10 = vsel %vm2569_vm11, %v2571_v26, %v2567_v49  ;;  %v2583_v15 = vand.u32 2147483647, %v14376_v0  ;;  %v2585_v59 = vand.u32 2147483648, %v14376_v0  ;;  %vm11827_vm14 = vmor %vm2579_vm12, %vm2580_vm13  ;;  %v3731_v28 = vmul.f32 %v14380_v36, %v107_v21  ;;  %v14384_v0 = vld [vmem:[#allocation148_spill] sm:$0xff]  ;;  %v14387_v36 = vld [vmem:[#allocation85_spill] sm:$0xff] }
 0x3d1   :  { %v2578_v39 = vadd.f32 %v14375_v7, %v2577_v20  ;;  %4760 = vst [vmem:[#allocation6 + $0x210] sm:$0xff] %v4696_v19  ;;  %v11825_v9 = vmul.f32 %v3858_v25, %v2572_v10  ;;  %v3795_v38 = vmul.f32 %v14381_v32, %v1921_v37  ;;  %v4569_v48 = vmul.f32 %v14382_v53, %v107_v21  ;;  %v112_v20 = vld [vmem:[#allocation2 + $0x240] sm:$0xff] }
 0x3d2   :  { %vm2584_vm15 = vcmp.eq.f32.partialorder %v2583_v15, 8.507059e+37  ;;  %v2586_v26 = vor.u32 1.1754944e-38, %v2585_v59  ;;  %v4633_v19 = vmul.f32 %v14383_v11, %v1921_v37  ;;  %v1746_v25 = vadd.f32 %v1745_v6, %v1656_v61  ;;  %v6603_v21 = vld [vmem:[%s12975_s3 + $0x4] sm:$0xf]  ;;  %v6447_v37 = vld [vmem:[%s12975_s3 + $0x88] sm:$0xf0]  ;;  %v1658_v59 = vpop.f32.mrf.mxu0 }
 0x3d3   :  { %14377 = vst [vmem:[#allocation32_spill] sm:$0xff] %v11825_v9  ;;  %v2582_v49 = vsel %vm11827_vm14, %v14375_v7, %v2578_v39  ;;  %v3859_v1 = vadd.f32 %v3795_v38, %v3731_v28  ;;  %v14385_v10 = vsub.f32 1.0, %v14384_v0  ;;  %v14386_v9 = vld [vmem:[#allocation101_spill] sm:$0xff]  ;;  %vm2594_vm0 = vweird.f32 %v14387_v36  ;;  %v6383_v7 = vld [vmem:[%s12975_s3 + $0x8] sm:$0xf0] }
 0x3d4   :  { %v2587_v39 = vsel %vm2584_vm15, %v2586_v26, %v2582_v49  ;;  %v4697_v15 = vadd.f32 %v4633_v19, %v4569_v48  ;;  %vm2595_vm1 = vweird.f32 %v14386_v9  ;;  %v2598_v6 = vand.u32 2147483647, %v14387_v36  ;;  %v6619_v61 = vld [vmem:[%s12975_s3 + $0x84] sm:$0xf]  ;;  %v14390_v26 = vld [vmem:[#allocation310_spill] sm:$0xff]  ;;  %v14391_v19 = vld [vmem:[#allocation12_spill] sm:$0xff] }
 0x3d5   :  { %v2592_v45 = vmul.f32 %v14386_v9, %v14385_v10  ;;  %v11856_v28 = vmul.f32 %v3859_v1, %v2587_v39  ;;  %v2600_v53 = vand.u32 2147483648, %v14387_v36  ;;  %v14389_v48 = vld [vmem:[#allocation11_spill] sm:$0xff]  ;;  %vm2596_vm2 = vmor %vm2594_vm0, %vm2595_vm1  ;;  %v3796_v11 = vmul.f32 %v14390_v26, %v1746_v25  ;;  %v14395_v36 = vld [vmem:[#allocation102_spill] sm:$0xff] }
 0x3d6   :  { %v3732_v49 = vmul.f32 %v14389_v48, %v112_v20  ;;  %4761 = vst [vmem:[#allocation6 + $0x218] sm:$0xff] %v4697_v15  ;;  %vm2599_vm3 = vcmp.eq.f32.partialorder %v2598_v6, 8.507059e+37  ;;  %v4570_v0 = vmul.f32 %v14391_v19, %v112_v20  ;;  %v14392_v10 = vld [vmem:[#allocation311_spill] sm:$0xff]  ;;  %v1924_v48 = vadd.f32 %v1923_v17, %v1834_v4  ;;  %v14393_v15 = vld [vmem:[#allocation149_spill] sm:$0xff]  ;;  %v14396_v26 = vld [vmem:[#allocation86_spill] sm:$0xff] }
 0x3d7   :  { %14388 = vst [vmem:[#allocation231_spill] sm:$0xff] %v11856_v28  ;;  %v2593_v38 = vadd.f32 %v14386_v9, %v2592_v45  ;;  %v4634_v32 = vmul.f32 %v14392_v10, %v1746_v25  ;;  %v2601_v39 = vor.u32 1.1754944e-38, %v2600_v53  ;;  %v6386_v28 = vor.u32 %v6603_v21, %v6383_v7  ;;  %v14398_v17 = vld [vmem:[#allocation312_spill] sm:$0xff]  ;;  %v1836_v21 = vpop.f32.mrf.mxu2  ;;  %v14406_v19 = vld [vmem:[#allocation157_spill] sm:$0xff] }
 0x3d8   :  { %v6450_v45 = vor.u32 %v6619_v61, %v6447_v37  ;;  %v3860_v62 = vadd.f32 %v3796_v11, %v3732_v49  ;;  %v14394_v3 = vsub.f32 1.0, %v14393_v15  ;;  %vm2609_vm4 = vweird.f32 %v14396_v26  ;;  %v14403_v37 = vld [vmem:[#allocation313_spill] sm:$0xff]  ;;  %v14408_v10 = vld [vmem:[#allocation104_spill] sm:$0xff] }
 0x3d9   :  { %v2597_v1 = vsel %vm2596_vm2, %v14386_v9, %v2593_v38  ;;  %v4698_v63 = vadd.f32 %v4634_v32, %v4570_v0  ;;  %5659 = vmatpush.bf16.msrb.mxu2 %v6386_v28  ;;  %vm2610_vm5 = vweird.f32 %v14395_v36  ;;  %v2613_v9 = vand.u32 2147483647, %v14396_v26  ;;  %v14405_v38 = vld [vmem:[#allocation315_spill] sm:$0xff]  ;;  %v14412_v61 = vld [vmem:[#allocation317_spill] sm:$0xff] }
 0x3da   :  { %v2607_v24 = vmul.f32 %v14395_v36, %v14394_v3  ;;  %v2602_v6 = vsel %vm2599_vm3, %v2601_v39, %v2597_v1  ;;  %5748 = vmatpush.bf16.msrb.mxu3 %v6450_v45  ;;  %v2615_v4 = vand.u32 2147483648, %v14396_v26  ;;  %v3733_v25 = vmul.f32 %v14398_v17, %v113_v12  ;;  %v1925_v3 = vpop.f32.mrf.mxu3  ;;  %vm11878_vm6 = vmor %vm2609_vm4, %vm2610_vm5  ;;  %v118_v26 = vld [vmem:[#allocation2 + $0x270] sm:$0xff] }
 0x3db   :  { %4762 = vst [vmem:[#allocation6 + $0x240] sm:$0xff] %v4698_v63  ;;  %v11873_v20 = vmul.f32 %v3860_v62, %v2602_v6  ;;  %vm11882_vm7 = vcmp.eq.f32.partialorder %v2613_v9, 8.507059e+37  ;;  %v3797_v63 = vmul.f32 %v14403_v37, %v1924_v48  ;;  %v14404_v62 = vld [vmem:[#allocation314_spill] sm:$0xff]  ;;  %v1748_v11 = vadd.f32 %v1747_v57, %v1658_v59  ;;  %v6604_v59 = vld [vmem:[%s12975_s3 + $0x4] sm:$0xf0] }
 0x3dc   :  { %v2608_v32 = vadd.f32 %v14395_v36, %v2607_v24  ;;  %v4571_v28 = vmul.f32 %v14404_v62, %v113_v12  ;;  %v4635_v24 = vmul.f32 %v14405_v38, %v1924_v48  ;;  %v2616_v49 = vor.u32 1.1754944e-38, %v2615_v4  ;;  %5660 = vmatmul.bf16.vlgmr.msrb.gmra.mxu2 %v11313_v46  ;;  %v14409_v12 = vld [vmem:[#allocation89_spill] sm:$0xff]  ;;  %v6381_v48 = vld [vmem:[%s12975_s3] sm:$0xf]  ;;  %v1661_v4 = vpop.f32.mrf.mxu0  ;;  %v14413_v38 = vld [vmem:[#allocation318_spill] sm:$0xff] }
 0x3dd   :  { %14397 = vst [vmem:[#allocation232_spill] sm:$0xff] %v11873_v20  ;;  %v14407_v0 = vsub.f32 1.0, %v14406_v19  ;;  %5749 = vmatmul.bf16.vlgmr.msrb.gmra.mxu3 %v11348_v58  ;;  %v3861_v39 = vadd.f32 %v3797_v63, %v3733_v25  ;;  %vm2624_vm8 = vweird.f32 %v14409_v12  ;;  %vm2625_vm9 = vweird.f32 %v14408_v10  ;;  %v6445_v57 = vld [vmem:[%s12975_s3 + $0x80] sm:$0xf]  ;;  %v1750_v25 = vpop.f32.mrf.mxu1  ;;  %v14411_v63 = vld [vmem:[#allocation316_spill] sm:$0xff]  ;;  %v14414_v19 = vld [vmem:[#allocation13_spill] sm:$0xff] }
 0x3de   :  { %v2612_v53 = vsel %vm11878_vm6, %v14395_v36, %v2608_v32  ;;  %v4699_v45 = vadd.f32 %v4635_v24, %v4571_v28  ;;  %v2628_v6 = vand.u32 2147483647, %v14409_v12  ;;  %v2630_v9 = vand.u32 2147483648, %v14409_v12  ;;  %v6620_v32 = vld [vmem:[%s12975_s3 + $0x84] sm:$0xf0]  ;;  %vm2626_vm10 = vmor %vm2624_vm8, %vm2625_vm9  ;;  %v119_v37 = vld [vmem:[#allocation2 + $0x278] sm:$0xff] }
 0x3df   :  { %v2622_v1 = vmul.f32 %v14408_v10, %v14407_v0  ;;  %v2617_v15 = vsel %vm11882_vm7, %v2616_v49, %v2612_v53  ;;  %v3734_v62 = vmul.f32 %v14411_v63, %v118_v26  ;;  %v3798_v28 = vmul.f32 %v14412_v61, %v1748_v11  ;;  %v14417_v63 = vld [vmem:[#allocation106_spill] sm:$0xff]  ;;  %v14418_v61 = vld [vmem:[#allocation91_spill] sm:$0xff]  ;;  %s7679_s3 = smov [#allocation6]  }
 0x3e0   :  { %4763 = vst [vmem:[#allocation6 + $0x248] sm:$0xff] %v4699_v45  ;;  %v11916_v7 = vmul.f32 %v3861_v39, %v2617_v15  ;;  %v4572_v24 = vmul.f32 %v14413_v38, %v118_v26  ;;  %vm2629_vm11 = vcmp.eq.f32.partialorder %v2628_v6, 8.507059e+37  ;;  %v2631_v49 = vor.u32 1.1754944e-38, %v2630_v9  ;;  %v1839_v6 = vpop.f32.mrf.mxu2  ;;  %v124_v38 = vld [vmem:[#allocation2 + $0x2a0] sm:$0xff]  ;;  %s5911_s23 = sshll.u32 %s7679_s3, 4  ;;  %s5912_s23 = int_to_ptr.vmem [resolvable:$true] %s5911_s23 }
 0x3e1   :  { %v2623_v36 = vadd.f32 %v14408_v10, %v2622_v1  ;;  %v4636_v0 = vmul.f32 %v14414_v19, %v1748_v11  ;;  %v3862_v1 = vadd.f32 %v3798_v28, %v3734_v62  ;;  %v6382_v12 = vor.u32 %v6604_v59, %v6381_v48  ;;  %v14420_v59 = vld [vmem:[#allocation320_spill] sm:$0xff]  ;;  %v14426_v19 = vld [vmem:[#allocation93_spill] sm:$0xff] }
 0x3e2   :  { %14410 = vst [vmem:[#allocation234_spill] sm:$0xff] %v11916_v7  ;;  %v6446_v20 = vor.u32 %v6620_v32, %v6445_v57  ;;  %v1926_v45 = vadd.f32 %v1925_v3, %v1836_v21  ;;  %v14415_v7 = vld [vmem:[#allocation158_spill] sm:$0xff]  ;;  %vm2639_vm12 = vweird.f32 %v14418_v61  ;;  %vm2640_vm13 = vweird.f32 %v14417_v63  ;;  %v14419_v3 = vld [vmem:[#allocation319_spill] sm:$0xff]  ;;  %v1928_v9 = vpop.f32.mrf.mxu3  ;;  %v14422_v32 = vld [vmem:[#allocation321_spill] sm:$0xff] }
 0x3e3   :  { %v2627_v53 = vsel %vm2626_vm10, %v14408_v10, %v2623_v36  ;;  %v4700_v15 = vadd.f32 %v4636_v0, %v4572_v24  ;;  %v14416_v17 = vsub.f32 1.0, %v14415_v7  ;;  %5481 = vmatpush.bf16.msrb.mxu0 %v6382_v12  ;;  %v2643_v11 = vand.u32 2147483647, %v14418_v61  ;;  %vm2641_vm14 = vmor %vm2639_vm12, %vm2640_vm13  ;;  %v14423_v24 = vld [vmem:[#allocation160_spill] sm:$0xff]  ;;  %v14427_v12 = vld [vmem:[#allocation323_spill] sm:$0xff] }
 0x3e4   :  { %v2632_v39 = vsel %vm2629_vm11, %v2631_v49, %v2627_v53  ;;  %5570 = vmatpush.bf16.msrb.mxu1 %v6446_v20  ;;  %v2645_v10 = vand.u32 2147483648, %v14418_v61  ;;  %v3735_v48 = vmul.f32 %v14419_v3, %v119_v37  ;;  %v3799_v57 = vmul.f32 %v14420_v59, %v1926_v45  ;;  %v14425_v53 = vld [vmem:[#allocation107_spill] sm:$0xff] }
 0x3e5   :  { %v2637_v5 = vmul.f32 %v14417_v63, %v14416_v17  ;;  %v11927_v26 = vmul.f32 %v3862_v1, %v2632_v39  ;;  %4764 = vst [vmem:[#allocation6 + $0x270] sm:$0xff] %v4700_v15  ;;  %v14421_v17 = vld [vmem:[#allocation14_spill] sm:$0xff]  ;;  %vm2644_vm15 = vcmp.eq.f32.partialorder %v2643_v11, 8.507059e+37  ;;  %v4637_v7 = vmul.f32 %v14422_v32, %v1926_v45  ;;  %v1663_v39 = vpop.f32.mrf.mxu0  ;;  %v1752_v15 = vpop.f32.mrf.mxu1  ;;  %v14431_v32 = vld [vmem:[#allocation161_spill] sm:$0xff] }
 0x3e6   :  { %v4573_v36 = vmul.f32 %v14421_v17, %v119_v37  ;;  %v2646_v20 = vor.u32 1.1754944e-38, %v2645_v10  ;;  %v1751_v62 = vadd.f32 %v1750_v25, %v1661_v4  ;;  %v3863_v61 = vadd.f32 %v3799_v57, %v3735_v48  ;;  %5482 = vmatmul.bf16.vlgmr.msrb.gmra.mxu0 %v11313_v46  ;;  %v14428_v46 = vld [vmem:[#allocation324_spill] sm:$0xff]  ;;  %v14429_v11 = vld [vmem:[#allocation322_spill] sm:$0xff] }
 0x3e7   :  { %v2638_v21 = vadd.f32 %v14417_v63, %v2637_v5  ;;  %v14424_v5 = vsub.f32 1.0, %v14423_v24  ;;  %vm2654_vm0 = vweird.f32 %v14426_v19  ;;  %5571 = vmatmul.bf16.vlgmr.msrb.gmra.mxu1 %v11348_v58  ;;  %vm2655_vm1 = vweird.f32 %v14425_v53 }
 0x3e8   :  { %v4701_v0 = vadd.f32 %v4637_v7, %v4573_v36  ;;  %v2658_v4 = vand.u32 2147483647, %v14426_v19  ;;  %v2660_v1 = vand.u32 2147483648, %v14426_v19  ;;  %v3736_v45 = vmul.f32 %v14427_v12, %v124_v38  ;;  %vm2656_vm2 = vmor %vm2654_vm0, %vm2655_vm1  ;;  %v125_v36 = vld [vmem:[#allocation2 + $0x2a8] sm:$0xff] }
 0x3e9   :  { %v2642_v28 = vsel %vm2641_vm14, %v14417_v63, %v2638_v21  ;;  %v2652_v49 = vmul.f32 %v14425_v53, %v14424_v5  ;;  %v3800_v58 = vmul.f32 %v14428_v46, %v1751_v62  ;;  %v4574_v10 = vmul.f32 %v14429_v11, %v124_v38  ;;  %v14430_v21 = vld [vmem:[#allocation325_spill] sm:$0xff] }
 0x3ea   :  { %v2647_v37 = vsel %vm2644_vm15, %v2646_v20, %v2642_v28  ;;  %4765 = vst [vmem:[#allocation6 + $0x278] sm:$0xff] %v4701_v0  ;;  %vm2659_vm3 = vcmp.eq.f32.partialorder %v2658_v4, 8.507059e+37  ;;  %v4638_v48 = vmul.f32 %v14430_v21, %v1751_v62  ;;  %v2661_v17 = vor.u32 1.1754944e-38, %v2660_v1  ;;  %v14433_v28 = vld [vmem:[#allocation109_spill] sm:$0xff]  ;;  %v14439_v4 = vld [vmem:[#allocation327_spill] sm:$0xff]  ;;  %v14440_v1 = vld [vmem:[#allocation328_spill] sm:$0xff] }
 0x3eb   :  { %v11946_v25 = vmul.f32 %v3863_v61, %v2647_v37  ;;  %v2653_v63 = vadd.f32 %v14425_v53, %v2652_v49  ;;  %v1929_v20 = vadd.f32 %v1928_v9, %v1839_v6  ;;  %v14432_v7 = vsub.f32 1.0, %v14431_v32  ;;  %v14434_v49 = vld [vmem:[#allocation96_spill] sm:$0xff]  ;;  %v14438_v9 = vld [vmem:[#allocation326_spill] sm:$0xff]  ;;  %v130_v32 = vld [vmem:[#allocation2 + $0x2d0] sm:$0xff] }
 0x3ec   :  { %v3864_v24 = vadd.f32 %v3800_v58, %v3736_v45  ;;  %v4702_v5 = vadd.f32 %v4638_v48, %v4574_v10  ;;  %vm2669_vm4 = vweird.f32 %v14434_v49  ;;  %vm2670_vm5 = vweird.f32 %v14433_v28  ;;  %v14441_v10 = vld [vmem:[#allocation329_spill] sm:$0xff]  ;;  %v1841_v48 = vpop.f32.mrf.mxu2  ;;  %v14450_v6 = vld [vmem:[#allocation15_spill] sm:$0xff] }
 0x3ed   :  { %v2657_v57 = vsel %vm2656_vm2, %v14425_v53, %v2653_v63  ;;  %v2667_v61 = vmul.f32 %v14433_v28, %v14432_v7  ;;  %v2673_v62 = vand.u32 2147483647, %v14434_v49  ;;  %v2675_v53 = vand.u32 2147483648, %v14434_v49  ;;  %vm11965_vm6 = vmor %vm2669_vm4, %vm2670_vm5 }
 0x3ee   :  { %v2662_v19 = vsel %vm2659_vm3, %v2661_v17, %v2657_v57  ;;  %4766 = vst [vmem:[#allocation6 + $0x2a0] sm:$0xff] %v4702_v5  ;;  %v3737_v0 = vmul.f32 %v14438_v9, %v125_v36  ;;  %v3801_v63 = vmul.f32 %v14439_v4, %v1929_v20  ;;  %v4575_v45 = vmul.f32 %v14440_v1, %v125_v36  ;;  %v1930_v57 = vpop.f32.mrf.mxu3  ;;  %v14444_v5 = vld [vmem:[#allocation110_spill] sm:$0xff]  ;;  %v14456_v4 = vld [vmem:[#allocation105_spill] sm:$0xff] }
 0x3ef   :  { %v2668_v38 = vadd.f32 %v14433_v28, %v2667_v61  ;;  %v11963_v37 = vmul.f32 %v3864_v24, %v2662_v19  ;;  %vm2674_vm7 = vcmp.eq.f32.partialorder %v2673_v62, 8.507059e+37  ;;  %v2676_v11 = vor.u32 1.1754944e-38, %v2675_v53  ;;  %v14442_v61 = vld [vmem:[#allocation162_spill] sm:$0xff]  ;;  %v14445_v19 = vld [vmem:[#allocation99_spill] sm:$0xff] }
 0x3f0   :  { %v4639_v21 = vmul.f32 %v14441_v10, %v1929_v20  ;;  %v3865_v17 = vadd.f32 %v3801_v63, %v3737_v0  ;;  %v1753_v7 = vadd.f32 %v1752_v15, %v1663_v39  ;;  %v14443_v24 = vsub.f32 1.0, %v14442_v61  ;;  %v14447_v53 = vld [vmem:[#allocation330_spill] sm:$0xff]  ;;  %v14451_v63 = vld [vmem:[#allocation331_spill] sm:$0xff]  ;;  %v1666_v10 = vpop.f32.mrf.mxu0 }
 0x3f1   :  { %14435 = vst [vmem:[#allocation95_spill] sm:$0xff] %v11963_v37  ;;  %v2672_v58 = vsel %vm11965_vm6, %v14433_v28, %v2668_v38  ;;  %vm2684_vm8 = vweird.f32 %v14445_v19  ;;  %vm2685_vm9 = vweird.f32 %v14444_v5  ;;  %v2688_v28 = vand.u32 2147483647, %v14445_v19 }
 0x3f2   :  { %v2682_v49 = vmul.f32 %v14444_v5, %v14443_v24  ;;  %v2677_v36 = vsel %vm2674_vm7, %v2676_v11, %v2672_v58  ;;  %v4703_v1 = vadd.f32 %v4639_v21, %v4575_v45  ;;  %v2690_v62 = vand.u32 2147483648, %v14445_v19  ;;  %vm11987_vm10 = vmor %vm2684_vm8, %vm2685_vm9  ;;  %v14452_v58 = vld [vmem:[#allocation332_spill] sm:$0xff]  ;;  %v1755_v21 = vpop.f32.mrf.mxu1  ;;  %v131_v24 = vld [vmem:[#allocation2 + $0x2d8] sm:$0xff] }
 0x3f3   :  { %v11982_v38 = vmul.f32 %v3865_v17, %v2677_v36  ;;  %v3738_v39 = vmul.f32 %v14447_v53, %v130_v32  ;;  %vm2689_vm11 = vcmp.eq.f32.partialorder %v2688_v28, 8.507059e+37  ;;  %v3802_v0 = vmul.f32 %v14450_v6, %v1753_v7  ;;  %v14453_v19 = vld [vmem:[#allocation163_spill] sm:$0xff] }
 0x3f4   :  { %v2683_v20 = vadd.f32 %v14444_v5, %v2682_v49  ;;  %4767 = vst [vmem:[#allocation6 + $0x2a8] sm:$0xff] %v4703_v1  ;;  %v4576_v45 = vmul.f32 %v14451_v63, %v130_v32  ;;  %v4640_v11 = vmul.f32 %v14452_v58, %v1753_v7  ;;  %v2691_v61 = vor.u32 1.1754944e-38, %v2690_v62  ;;  %v14455_v1 = vld [vmem:[#allocation120_spill] sm:$0xff] }
 0x3f5   :  { %14446 = vst [vmem:[#allocation52_spill] sm:$0xff] %v11982_v38  ;;  %v1931_v49 = vadd.f32 %v1930_v57, %v1841_v48  ;;  %v14454_v36 = vsub.f32 1.0, %v14453_v19  ;;  %v3866_v28 = vadd.f32 %v3802_v0, %v3738_v39  ;;  %vm2699_vm12 = vweird.f32 %v14456_v4  ;;  %v14460_v57 = vld [vmem:[#allocation16_spill] sm:$0xff]  ;;  %v14461_v39 = vld [vmem:[#allocation333_spill] sm:$0xff] }
 0x3f6   :  { %v2687_v17 = vsel %vm11987_vm10, %v14444_v5, %v2683_v20  ;;  %v4704_v37 = vadd.f32 %v4640_v11, %v4576_v45  ;;  %vm2700_vm13 = vweird.f32 %v14455_v1  ;;  %v2703_v63 = vand.u32 2147483647, %v14456_v4  ;;  %v136_v11 = vld [vmem:[#allocation2 + $0x300] sm:$0xff]  ;;  %v14471_v48 = vld [vmem:[#allocation337_spill] sm:$0xff] }
 0x3f7   :  { %v2697_v38 = vmul.f32 %v14455_v1, %v14454_v36  ;;  %v2692_v32 = vsel %vm2689_vm11, %v2691_v61, %v2687_v17  ;;  %v2705_v5 = vand.u32 2147483648, %v14456_v4  ;;  %vm12007_vm14 = vmor %vm2699_vm12, %vm2700_vm13  ;;  %v3739_v62 = vmul.f32 %v14460_v57, %v131_v24  ;;  %v14462_v4 = vld [vmem:[#allocation334_spill] sm:$0xff]  ;;  %v14465_v36 = vld [vmem:[#allocation123_spill] sm:$0xff] }
 0x3f8   :  { %4768 = vst [vmem:[#allocation6 + $0x2d0] sm:$0xff] %v4704_v37  ;;  %v12005_v20 = vmul.f32 %v3866_v28, %v2692_v32  ;;  %v3803_v15 = vmul.f32 %v14461_v39, %v1931_v49  ;;  %v4577_v0 = vmul.f32 %v10349_v34, %v131_v24  ;;  %vm2704_vm15 = vcmp.eq.f32.partialorder %v2703_v63, 8.507059e+37  ;;  %v14463_v61 = vld [vmem:[#allocation166_spill] sm:$0xff]  ;;  %v14466_v32 = vld [vmem:[#allocation108_spill] sm:$0xff]  ;;  %v1933_v39 = vpop.f32.mrf.mxu3 }
 0x3f9   :  { %v2698_v7 = vadd.f32 %v14455_v1, %v2697_v38  ;;  %v2706_v45 = vor.u32 1.1754944e-38, %v2705_v5  ;;  %v4641_v37 = vmul.f32 %v14462_v4, %v1931_v49  ;;  %v1756_v17 = vadd.f32 %v1755_v21, %v1666_v10  ;;  %v14468_v21 = vld [vmem:[#allocation336_spill] sm:$0xff]  ;;  %v14480_v5 = vld [vmem:[#allocation17_spill] sm:$0xff] }
 0x3fa   :  { %14457 = vst [vmem:[#allocation46_spill] sm:$0xff] %v12005_v20  ;;  %v3867_v58 = vadd.f32 %v3803_v15, %v3739_v62  ;;  %v14464_v19 = vsub.f32 1.0, %v14463_v61  ;;  %vm2714_vm0 = vweird.f32 %v14466_v32  ;;  %v1844_v20 = vpop.f32.mrf.mxu2  ;;  %vm2715_vm1 = vweird.f32 %v14465_v36  ;;  %v14472_v15 = vld [vmem:[#allocation335_spill] sm:$0xff] }
 0x3fb   :  { %v2702_v38 = vsel %vm12007_vm14, %v14455_v1, %v2698_v7  ;;  %v4705_v24 = vadd.f32 %v4641_v37, %v4577_v0  ;;  %v2718_v1 = vand.u32 2147483647, %v14466_v32  ;;  %v2720_v10 = vand.u32 2147483648, %v14466_v32  ;;  %vm12029_vm2 = vmor %vm2714_vm0, %vm2715_vm1  ;;  %v14476_v32 = vld [vmem:[#allocation135_spill] sm:$0xff] }
 0x3fc   :  { %v2712_v28 = vmul.f32 %v14465_v36, %v14464_v19  ;;  %v2707_v34 = vsel %vm2704_vm15, %v2706_v45, %v2702_v38  ;;  %v3740_v63 = vmul.f32 %v14468_v21, %v136_v11  ;;  %v3804_v62 = vmul.f32 %v14471_v48, %v1756_v17  ;;  %v14473_v38 = vld [vmem:[#allocation338_spill] sm:$0xff]  ;;  %v14474_v19 = vld [vmem:[#allocation167_spill] sm:$0xff]  ;;  %v1757_v21 = vpop.f32.mrf.mxu1  ;;  %v14477_v48 = vld [vmem:[#allocation117_spill] sm:$0xff] }
 0x3fd   :  { %v12024_v7 = vmul.f32 %v3867_v58, %v2707_v34  ;;  %4769 = vst [vmem:[#allocation6 + $0x2d8] sm:$0xff] %v4705_v24  ;;  %vm2719_vm3 = vcmp.eq.f32.partialorder %v2718_v1, 8.507059e+37  ;;  %v4578_v0 = vmul.f32 %v14472_v15, %v136_v11  ;;  %v4642_v45 = vmul.f32 %v14473_v38, %v1756_v17  ;;  %v137_v58 = vld [vmem:[#allocation2 + $0x308] sm:$0xff]  ;;  %v1668_v24 = vpop.f32.mrf.mxu0 }
 0x3fe   :  { %v2713_v49 = vadd.f32 %v14465_v36, %v2712_v28  ;;  %v2721_v37 = vor.u32 1.1754944e-38, %v2720_v10  ;;  %v1934_v61 = vadd.f32 %v1933_v39, %v1844_v20  ;;  %v14475_v28 = vsub.f32 1.0, %v14474_v19  ;;  %v14479_v39 = vld [vmem:[#allocation339_spill] sm:$0xff]  ;;  %v14483_v19 = vld [vmem:[#allocation137_spill] sm:$0xff] }
 0x3ff   :  { %14467 = vst [vmem:[#allocation233_spill] sm:$0xff] %v12024_v7  ;;  %v3868_v1 = vadd.f32 %v3804_v62, %v3740_v63  ;;  %v4706_v7 = vadd.f32 %v4642_v45, %v4578_v0  ;;  %vm2729_vm4 = vweird.f32 %v14477_v48  ;;  %vm2730_vm5 = vweird.f32 %v14476_v32 }
 0x400   :  { %v2717_v4 = vsel %vm12029_vm2, %v14465_v36, %v2713_v49  ;;  %v2727_v34 = vmul.f32 %v14476_v32, %v14475_v28  ;;  %v2733_v36 = vand.u32 2147483647, %v14477_v48  ;;  %v2735_v49 = vand.u32 2147483648, %v14477_v48  ;;  %vm2731_vm6 = vmor %vm2729_vm4, %vm2730_vm5  ;;  %v14481_v48 = vld [vmem:[#allocation170_spill] sm:$0xff] }
 0x401   :  { %v2722_v11 = vsel %vm2719_vm3, %v2721_v37, %v2717_v4  ;;  %4770 = vst [vmem:[#allocation6 + $0x300] sm:$0xff] %v4706_v7  ;;  %v3741_v10 = vmul.f32 %v14479_v39, %v137_v58  ;;  %v3805_v63 = vmul.f32 %v14480_v5, %v1934_v61  ;;  %v4579_v62 = vmul.f32 %v10412_v31, %v137_v58  ;;  %v142_v4 = vld [vmem:[#allocation2 + $0x330] sm:$0xff] }
 0x402   :  { %v2728_v17 = vadd.f32 %v14476_v32, %v2727_v34  ;;  %v12047_v20 = vmul.f32 %v3868_v1, %v2722_v11  ;;  %vm2734_vm7 = vcmp.eq.f32.partialorder %v2733_v36, 8.507059e+37  ;;  %v2736_v0 = vor.u32 1.1754944e-38, %v2735_v49  ;;  %v14484_v34 = vld [vmem:[#allocation119_spill] sm:$0xff]  ;;  %v1846_v58 = vpop.f32.mrf.mxu2  ;;  %v14489_v49 = vld [vmem:[#allocation340_spill] sm:$0xff] }
 0x403   :  { %v4643_v38 = vmul.f32 %v10416_v54, %v1934_v61  ;;  %v3869_v45 = vadd.f32 %v3805_v63, %v3741_v10  ;;  %v1758_v37 = vadd.f32 %v1757_v21, %v1668_v24  ;;  %v14482_v7 = vsub.f32 1.0, %v14481_v48  ;;  %v14486_v61 = vld [vmem:[#allocation18_spill] sm:$0xff]  ;;  %v14490_v63 = vld [vmem:[#allocation341_spill] sm:$0xff] }
 0x404   :  { %14478 = vst [vmem:[#allocation235_spill] sm:$0xff] %v12047_v20  ;;  %v2732_v15 = vsel %vm2731_vm6, %v14476_v32, %v2728_v17  ;;  %vm2744_vm8 = vweird.f32 %v14484_v34  ;;  %vm2745_vm9 = vweird.f32 %v14483_v19  ;;  %v2748_v31 = vand.u32 2147483647, %v14484_v34  ;;  %v1935_v32 = vpop.f32.mrf.mxu3  ;;  %v143_v48 = vld [vmem:[#allocation2 + $0x338] sm:$0xff] }
 0x405   :  { %v2742_v28 = vmul.f32 %v14483_v19, %v14482_v7  ;;  %v2737_v1 = vsel %vm2734_vm7, %v2736_v0, %v2732_v15  ;;  %v4707_v11 = vadd.f32 %v4643_v38, %v4579_v62  ;;  %v2750_v21 = vand.u32 2147483648, %v14484_v34  ;;  %vm12065_vm10 = vmor %vm2744_vm8, %vm2745_vm9  ;;  %v14491_v15 = vld [vmem:[#allocation342_spill] sm:$0xff] }
 0x406   :  { %v12060_v17 = vmul.f32 %v3869_v45, %v2737_v1  ;;  %v3742_v24 = vmul.f32 %v14486_v61, %v142_v4  ;;  %vm2749_vm11 = vcmp.eq.f32.partialorder %v2748_v31, 8.507059e+37  ;;  %v3806_v10 = vmul.f32 %v14489_v49, %v1758_v37  ;;  %v14494_v1 = vld [vmem:[#allocation139_spill] sm:$0xff]  ;;  %v14495_v31 = vld [vmem:[#allocation121_spill] sm:$0xff] }
 0x407   :  { %v2743_v54 = vadd.f32 %v14483_v19, %v2742_v28  ;;  %4771 = vst [vmem:[#allocation6 + $0x308] sm:$0xff] %v4707_v11  ;;  %v4580_v62 = vmul.f32 %v14490_v63, %v142_v4  ;;  %v4644_v0 = vmul.f32 %v14491_v15, %v1758_v37  ;;  %v2751_v45 = vor.u32 1.1754944e-38, %v2750_v21  ;;  %v14492_v28 = vld [vmem:[#allocation171_spill] sm:$0xff]  ;;  %v1671_v4 = vpop.f32.mrf.mxu0  ;;  %v1760_v63 = vpop.f32.mrf.mxu1 }
 0x408   :  { %14485 = vst [vmem:[#allocation236_spill] sm:$0xff] %v12060_v17  ;;  %v1936_v7 = vadd.f32 %v1935_v32, %v1846_v58  ;;  %v14493_v34 = vsub.f32 1.0, %v14492_v28  ;;  %v3870_v17 = vadd.f32 %v3806_v10, %v3742_v24  ;;  %vm2759_vm12 = vweird.f32 %v14495_v31  ;;  %v14497_v32 = vld [vmem:[#allocation345_spill] sm:$0xff]  ;;  %v14498_v24 = vld [vmem:[#allocation346_spill] sm:$0xff]  ;;  %v14499_v10 = vld [vmem:[#allocation343_spill] sm:$0xff] }
 0x409   :  { %v2747_v38 = vsel %vm12065_vm10, %v14483_v19, %v2743_v54  ;;  %v4708_v20 = vadd.f32 %v4644_v0, %v4580_v62  ;;  %vm2760_vm13 = vweird.f32 %v14494_v1  ;;  %v2763_v19 = vand.u32 2147483647, %v14495_v31 }
 0x40a   :  { %v2757_v11 = vmul.f32 %v14494_v1, %v14493_v34  ;;  %v2752_v37 = vsel %vm2749_vm11, %v2751_v45, %v2747_v38  ;;  %v2765_v54 = vand.u32 2147483648, %v14495_v31  ;;  %vm2761_vm14 = vmor %vm2759_vm12, %vm2760_vm13  ;;  %v3743_v21 = vmul.f32 %v14497_v32, %v143_v48  ;;  %v14500_v45 = vld [vmem:[#allocation344_spill] sm:$0xff]  ;;  %v14501_v31 = vld [vmem:[#allocation173_spill] sm:$0xff] }
 0x40b   :  { %4772 = vst [vmem:[#allocation6 + $0x330] sm:$0xff] %v4708_v20  ;;  %v12083_v58 = vmul.f32 %v3870_v17, %v2752_v37  ;;  %v3807_v36 = vmul.f32 %v14498_v24, %v1936_v7  ;;  %v4581_v62 = vmul.f32 %v14499_v10, %v143_v48  ;;  %vm2764_vm15 = vcmp.eq.f32.partialorder %v2763_v19, 8.507059e+37  ;;  %v14503_v17 = vld [vmem:[#allocation143_spill] sm:$0xff]  ;;  %v14512_v10 = vld [vmem:[#allocation349_spill] sm:$0xff] }
 0x40c   :  { %v2758_v15 = vadd.f32 %v14494_v1, %v2757_v11  ;;  %v2766_v38 = vor.u32 1.1754944e-38, %v2765_v54  ;;  %v4645_v28 = vmul.f32 %v14500_v45, %v1936_v7  ;;  %v148_v11 = vld [vmem:[#allocation2 + $0x360] sm:$0xff]  ;;  %v1761_v5 = vadd.f32 %v1760_v63, %v1671_v4  ;;  %v1938_v45 = vpop.f32.mrf.mxu3 }
 0x40d   :  { %14496 = vst [vmem:[#allocation37_spill] sm:$0xff] %v12083_v58  ;;  %v3871_v34 = vadd.f32 %v3807_v36, %v3743_v21  ;;  %v14502_v20 = vsub.f32 1.0, %v14501_v31  ;;  %v14504_v58 = vld [vmem:[#allocation122_spill] sm:$0xff]  ;;  %vm2775_vm1 = vweird.f32 %v14503_v17  ;;  %v14506_v19 = vld [vmem:[#allocation347_spill] sm:$0xff]  ;;  %v14511_v21 = vld [vmem:[#allocation348_spill] sm:$0xff] }
 0x40e   :  { %v2762_v0 = vsel %vm2761_vm14, %v14494_v1, %v2758_v15  ;;  %vm2774_vm0 = vweird.f32 %v14504_v58  ;;  %v4709_v32 = vadd.f32 %v4645_v28, %v4581_v62  ;;  %v2778_v48 = vand.u32 2147483647, %v14504_v58  ;;  %v14513_v62 = vld [vmem:[#allocation19_spill] sm:$0xff]  ;;  %v7538_v28 = vld [vmem:[#allocation2 + $0x70] sm:$0xff] }
 0x40f   :  { %v2772_v37 = vmul.f32 %v14503_v17, %v14502_v20  ;;  %v2767_v49 = vsel %vm2764_vm15, %v2766_v38, %v2762_v0  ;;  %v2780_v7 = vand.u32 2147483648, %v14504_v58  ;;  %v3744_v4 = vmul.f32 %v14506_v19, %v148_v11  ;;  %vm12101_vm2 = vmor %vm2774_vm0, %vm2775_vm1  ;;  %v1849_v38 = vpop.f32.mrf.mxu2  ;;  %v7539_v31 = vld [vmem:[#allocation2 + $0xa0] sm:$0xff]  ;;  %v1762_v63 = vpop.f32.mrf.mxu1 }
 0x410   :  { %v12096_v1 = vmul.f32 %v3871_v34, %v2767_v49  ;;  %4773 = vst [vmem:[#allocation6 + $0x338] sm:$0xff] %v4709_v32  ;;  %vm12105_vm3 = vcmp.eq.f32.partialorder %v2778_v48, 8.507059e+37  ;;  %v3808_v36 = vmul.f32 %v14511_v21, %v1761_v5  ;;  %v4582_v49 = vmul.f32 %v14512_v10, %v148_v11  ;;  %v7541_v10 = vld [vmem:[#allocation2 + $0xa8] sm:$0xff] }
 0x411   :  { %v2773_v15 = vadd.f32 %v14503_v17, %v2772_v37  ;;  %v4646_v0 = vmul.f32 %v14513_v62, %v1761_v5  ;;  %v2781_v32 = vor.u32 1.1754944e-38, %v2780_v7  ;;  %v3904_v34 = vmul.f32 %v7538_v28, %v14173_v60  ;;  %v1673_v60 = vpop.f32.mrf.mxu0 }
 0x412   :  { %14505 = vst [vmem:[#allocation237_spill] sm:$0xff] %v12096_v1  ;;  %v3906_v20 = vmul.f32 %v7539_v31, %v14193_v22  ;;  %v3872_v37 = vadd.f32 %v3808_v36, %v3744_v4  ;;  %v7540_v1 = vld [vmem:[#allocation2 + $0x78] sm:$0xff]  ;;  %v3907_v5 = vmul.f32 %v7541_v10, %v14205_v56  ;;  %v1939_v7 = vadd.f32 %v1938_v45, %v1849_v38 }
 0x413   :  { %v2777_v58 = vsel %vm12101_vm2, %v14503_v17, %v2773_v15  ;;  %v4710_v48 = vadd.f32 %v4646_v0, %v4582_v49  ;;  %v3905_v11 = vmul.f32 %v7540_v1, %v14185_v50  ;;  %v3968_v17 = vadd.f32 %v14174_v44, %v3904_v34  ;;  %v149_v1 = vld [vmem:[#allocation2 + $0x368] sm:$0xff]  ;;  %v14515_v36 = vld [vmem:[#allocation174_spill] sm:$0xff] }
 0x414   :  { %v2782_v62 = vsel %vm12105_vm3, %v2781_v32, %v2777_v58  ;;  %v3970_v15 = vadd.f32 %v14196_v18, %v3906_v20  ;;  %v3971_v50 = vadd.f32 %v14206_v33, %v3907_v5  ;;  %v14516_v56 = vsub.f32 1.0, %v14515_v36  ;;  %v14517_v49 = vld [vmem:[#allocation146_spill] sm:$0xff]  ;;  %v14520_v33 = vld [vmem:[#allocation352_spill] sm:$0xff]  ;;  %v14522_v20 = vld [vmem:[#allocation351_spill] sm:$0xff] }
 0x415   :  { %4774 = vst [vmem:[#allocation6 + $0x360] sm:$0xff] %v4710_v48  ;;  %v12123_v22 = vmul.f32 %v3872_v37, %v2782_v62  ;;  %v3969_v4 = vadd.f32 %v14186_v27, %v3905_v11  ;;  %7418 = vrcp.f32 %v3968_v17  ;;  %v14518_v0 = vld [vmem:[#allocation126_spill] sm:$0xff]  ;;  %vm2790_vm5 = vweird.f32 %v14517_v49  ;;  %v14519_v27 = vld [vmem:[#allocation20_spill] sm:$0xff]  ;;  %v154_v11 = vld [vmem:[#allocation2 + $0x390] sm:$0xff] }
 0x416   :  { %v2787_v54 = vmul.f32 %v14517_v49, %v14516_v56  ;;  %vm2789_vm4 = vweird.f32 %v14518_v0  ;;  %v2793_v44 = vand.u32 2147483647, %v14518_v0  ;;  %7420 = vrcp.f32 %v3970_v15  ;;  %v14521_v32 = vld [vmem:[#allocation350_spill] sm:$0xff]  ;;  %v14523_v5 = vld [vmem:[#allocation175_spill] sm:$0xff] }
 0x417   :  { %14514 = vst [vmem:[#allocation98_spill] sm:$0xff] %v12123_v22  ;;  %v2795_v38 = vand.u32 2147483648, %v14518_v0  ;;  %v3745_v45 = vmul.f32 %v14519_v27, %v149_v1  ;;  %7422 = vrcp.f32 %v3969_v4  ;;  %vm2791_vm6 = vmor %vm2789_vm4, %vm2790_vm5  ;;  %v3809_v58 = vmul.f32 %v14520_v33, %v1939_v7  ;;  %v14525_v17 = vld [vmem:[#allocation150_spill] sm:$0xff]  ;;  %v14526_v4 = vld [vmem:[#allocation131_spill] sm:$0xff]  ;;  %v1851_v0 = vpop.f32.mrf.mxu2 }
 0x418   :  { %v2788_v18 = vadd.f32 %v14517_v49, %v2787_v54  ;;  %vm2794_vm7 = vcmp.eq.f32.partialorder %v2793_v44, 8.507059e+37  ;;  %v4583_v28 = vmul.f32 %v14521_v32, %v149_v1  ;;  %7424 = vrcp.f32 %v3971_v50  ;;  %v1940_v44 = vpop.f32.mrf.mxu3  ;;  %v14533_v32 = vld [vmem:[#allocation355_spill] sm:$0xff] }
 0x419   :  { %v2796_v31 = vor.u32 1.1754944e-38, %v2795_v38  ;;  %v4647_v37 = vmul.f32 %v14522_v20, %v1939_v7  ;;  %v3873_v48 = vadd.f32 %v3809_v58, %v3745_v45  ;;  %v1763_v10 = vadd.f32 %v1762_v63, %v1673_v60  ;;  %v14528_v60 = vld [vmem:[#allocation354_spill] sm:$0xff]  ;;  %v14539_v45 = vld [vmem:[#allocation133_spill] sm:$0xff] }
 0x41a   :  { %v2792_v34 = vsel %vm2791_vm6, %v14517_v49, %v2788_v18  ;;  %v14524_v62 = vsub.f32 1.0, %v14523_v5  ;;  %vm2804_vm8 = vweird.f32 %v14526_v4  ;;  %vm2805_vm9 = vweird.f32 %v14525_v17  ;;  %v14535_v5 = vld [vmem:[#allocation357_spill] sm:$0xff] }
 0x41b   :  { %v2797_v36 = vsel %vm2794_vm7, %v2796_v31, %v2792_v34  ;;  %v4711_v56 = vadd.f32 %v4647_v37, %v4583_v28  ;;  %v2808_v50 = vand.u32 2147483647, %v14526_v4  ;;  %v7419_v1 = vpop.eup %7418  ;;  %v2810_v54 = vand.u32 2147483648, %v14526_v4  ;;  %vm12154_vm10 = vmor %vm2804_vm8, %vm2805_vm9  ;;  %v14534_v34 = vld [vmem:[#allocation353_spill] sm:$0xff]  ;;  %v1765_v4 = vpop.f32.mrf.mxu1 }
 0x41c   :  { %v2802_v15 = vmul.f32 %v14525_v17, %v14524_v62  ;;  %v12146_v49 = vmul.f32 %v3873_v48, %v2797_v36  ;;  %v3746_v63 = vmul.f32 %v14528_v60, %v154_v11  ;;  %v7421_v18 = vpop.eup %7420  ;;  %v5190_v38 = vmul.f32 %v7419_v1, %v11340_v55 }
 0x41d   :  { %4775 = vst [vmem:[#allocation6 + $0x368] sm:$0xff] %v4711_v56  ;;  %vm12158_vm11 = vcmp.eq.f32.partialorder %v2808_v50, 8.507059e+37  ;;  %v3810_v28 = vmul.f32 %v14533_v32, %v1763_v10  ;;  %v4584_v31 = vmul.f32 %v14534_v34, %v154_v11  ;;  %v7423_v20 = vpop.eup %7422  ;;  %v5192_v37 = vmul.f32 %v7421_v18, %v11401_v47  ;;  %v14538_v11 = vld [vmem:[#allocation151_spill] sm:$0xff] }
 0x41e   :  { %14527 = vst [vmem:[#allocation55_spill] sm:$0xff] %v12146_v49  ;;  %v2803_v7 = vadd.f32 %v14525_v17, %v2802_v15  ;;  %v2811_v48 = vor.u32 1.1754944e-38, %v2810_v54  ;;  %v4648_v62 = vmul.f32 %v14535_v5, %v1763_v10  ;;  %v1676_v15 = vpop.f32.mrf.mxu0  ;;  %v7425_v36 = vpop.eup %7424  ;;  %v5191_v56 = vmul.f32 %v7423_v20, %v11372_v30  ;;  %v14536_v49 = vld [vmem:[#allocation182_spill] sm:$0xff] }
 0x41f   :  { %v3874_v50 = vadd.f32 %v3810_v28, %v3746_v63  ;;  %v1941_v1 = vadd.f32 %v1940_v44, %v1851_v0  ;;  %v14537_v22 = vsub.f32 1.0, %v14536_v49  ;;  %v5252_v33 = vpack.c.bf16 %v5192_v37, %v5190_v38  ;;  %v155_v54 = vld [vmem:[#allocation2 + $0x398] sm:$0xff]  ;;  %v14543_v38 = vld [vmem:[#allocation359_spill] sm:$0xff]  ;;  %v14544_v28 = vld [vmem:[#allocation360_spill] sm:$0xff] }
 0x420   :  { %v2807_v55 = vsel %vm12154_vm10, %v14525_v17, %v2803_v7  ;;  %v5193_v47 = vmul.f32 %v7425_v36, %v11439_v2  ;;  %v4712_v7 = vadd.f32 %v4648_v62, %v4584_v31  ;;  %vm2819_vm12 = vweird.f32 %v14539_v45  ;;  %v14542_v63 = vld [vmem:[#allocation358_spill] sm:$0xff]  ;;  %v160_v37 = vld [vmem:[#allocation2 + $0x3c0] sm:$0xff]  ;;  %v14547_v62 = vld [vmem:[#allocation153_spill] sm:$0xff] }
 0x421   :  { %v2817_v34 = vmul.f32 %v14538_v11, %v14537_v22  ;;  %v2812_v17 = vsel %vm12158_vm11, %v2811_v48, %v2807_v55  ;;  %vm2820_vm13 = vweird.f32 %v14538_v11  ;;  %5487 = vmatmul.bf16.gmra.mxu0 %v5252_v33  ;;  %5665 = vmatmul.bf16.gmra.mxu2 %v5252_v33  ;;  %v2823_v2 = vand.u32 2147483647, %v14539_v45  ;;  %v14545_v48 = vld [vmem:[#allocation183_spill] sm:$0xff]  ;;  %v1943_v22 = vpop.f32.mrf.mxu3 }
 0x422   :  { %v12176_v10 = vmul.f32 %v3874_v50, %v2812_v17  ;;  %v5253_v30 = vpack.c.bf16 %v5193_v47, %v5191_v56  ;;  %4776 = vst [vmem:[#allocation6 + $0x390] sm:$0xff] %v4712_v7  ;;  %vm12181_vm14 = vmor %vm2819_vm12, %vm2820_vm13  ;;  %v2825_v49 = vand.u32 2147483648, %v14539_v45  ;;  %v3747_v0 = vmul.f32 %v14542_v63, %v155_v54  ;;  %v14552_v7 = vld [vmem:[#allocation22_spill] sm:$0xff] }
 0x423   :  { %v2818_v18 = vadd.f32 %v14538_v11, %v2817_v34  ;;  %v3811_v58 = vmul.f32 %v14543_v38, %v1941_v1  ;;  %v4585_v31 = vmul.f32 %v14544_v28, %v155_v54  ;;  %v4649_v33 = vmul.f32 %v10597_v41, %v1941_v1  ;;  %v14548_v34 = vld [vmem:[#allocation134_spill] sm:$0xff]  ;;  %v1767_v28 = vpop.f32.mrf.mxu1 }
 0x424   :  { %5576 = vmatmul.bf16.gmra.mxu1 %v5253_v30  ;;  %5754 = vmatmul.bf16.gmra.mxu3 %v5253_v30  ;;  %vm2824_vm15 = vcmp.eq.f32.partialorder %v2823_v2, 8.507059e+37  ;;  %v2826_v20 = vor.u32 1.1754944e-38, %v2825_v49  ;;  %v1766_v55 = vadd.f32 %v1765_v4, %v1676_v15  ;;  %v14546_v5 = vsub.f32 1.0, %v14545_v48  ;;  %v1854_v30 = vpop.f32.mrf.mxu2  ;;  %v7543_v48 = vld [vmem:[#allocation2 + $0x100] sm:$0xff]  ;;  %v14556_v15 = vld [vmem:[#allocation186_spill] sm:$0xff] }
 0x425   :  { %v2822_v44 = vsel %vm12181_vm14, %v14538_v11, %v2818_v18  ;;  %v3875_v56 = vadd.f32 %v3811_v58, %v3747_v0  ;;  %v4713_v50 = vadd.f32 %v4649_v33, %v4585_v31  ;;  %vm2834_vm0 = vweird.f32 %v14548_v34  ;;  %v14553_v18 = vld [vmem:[#allocation21_spill] sm:$0xff] }
 0x426   :  { %v2832_v36 = vmul.f32 %v14547_v62, %v14546_v5  ;;  %vm2835_vm1 = vweird.f32 %v14547_v62  ;;  %v2827_v11 = vsel %vm2824_vm15, %v2826_v20, %v2822_v44  ;;  %v2838_v41 = vand.u32 2147483647, %v14548_v34  ;;  %v14554_v0 = vld [vmem:[#allocation361_spill] sm:$0xff]  ;;  %v1678_v58 = vpop.f32.mrf.mxu0 }
 0x427   :  { %v2840_v1 = vand.u32 2147483648, %v14548_v34  ;;  %4777 = vst [vmem:[#allocation6 + $0x398] sm:$0xff] %v4713_v50  ;;  %v12202_v17 = vmul.f32 %v3875_v56, %v2827_v11  ;;  %vm12204_vm2 = vmor %vm2834_vm0, %vm2835_vm1  ;;  %v3748_v4 = vmul.f32 %v10602_v40, %v160_v37  ;;  %v3812_v54 = vmul.f32 %v14552_v7, %v1766_v55  ;;  %v7542_v33 = vld [vmem:[#allocation2 + $0xd0] sm:$0xff]  ;;  %v7545_v34 = vld [vmem:[#allocation2 + $0x108] sm:$0xff] }
 0x428   :  { %v2833_v47 = vadd.f32 %v14547_v62, %v2832_v36  ;;  %v4586_v45 = vmul.f32 %v14553_v18, %v160_v37  ;;  %vm2839_vm3 = vcmp.eq.f32.partialorder %v2838_v41, 8.507059e+37  ;;  %v4650_v44 = vmul.f32 %v14554_v0, %v1766_v55  ;;  %v7544_v37 = vld [vmem:[#allocation2 + $0xd8] sm:$0xff]  ;;  %v14559_v18 = vld [vmem:[#allocation136_spill] sm:$0xff]  ;;  %v14563_v0 = vld [vmem:[#allocation365_spill] sm:$0xff] }
 0x429   :  { %14549 = vst [vmem:[#allocation47_spill] sm:$0xff] %v12202_v17  ;;  %v2841_v49 = vor.u32 1.1754944e-38, %v2840_v1  ;;  %v3876_v31 = vadd.f32 %v3812_v54, %v3748_v4  ;;  %v3908_v20 = vmul.f32 %v7542_v33, %v14214_v35  ;;  %v3910_v5 = vmul.f32 %v7543_v48, %v14240_v42  ;;  %v161_v1 = vld [vmem:[#allocation2 + $0x3c8] sm:$0xff]  ;;  %v14558_v4 = vld [vmem:[#allocation154_spill] sm:$0xff] }
 0x42a   :  { %v2837_v2 = vsel %vm12204_vm2, %v14547_v62, %v2833_v47  ;;  %v3909_v36 = vmul.f32 %v7544_v37, %v14227_v23  ;;  %v4714_v50 = vadd.f32 %v4650_v44, %v4586_v45  ;;  %v3911_v62 = vmul.f32 %v7545_v34, %v14248_v16  ;;  %v179_v17 = vld [vmem:[#allocation2 + $0x458] sm:$0xff] }
 0x42b   :  { %v2842_v56 = vsel %vm2839_vm3, %v2841_v49, %v2837_v2  ;;  %v1944_v11 = vadd.f32 %v1943_v22, %v1854_v30  ;;  %v3972_v55 = vadd.f32 %v14219_v43, %v3908_v20  ;;  %v3974_v41 = vadd.f32 %v14241_v29, %v3910_v5  ;;  %v14560_v29 = vld [vmem:[#allocation363_spill] sm:$0xff]  ;;  %v14561_v30 = vld [vmem:[#allocation364_spill] sm:$0xff]  ;;  %v14562_v22 = vld [vmem:[#allocation362_spill] sm:$0xff] }
 0x42c   :  { %v12219_v47 = vmul.f32 %v3876_v31, %v2842_v56  ;;  %v3973_v35 = vadd.f32 %v14232_v13, %v3909_v36  ;;  %4778 = vst [vmem:[#allocation6 + $0x3c0] sm:$0xff] %v4714_v50  ;;  %v3975_v42 = vadd.f32 %v14249_v52, %v3911_v62  ;;  %v14557_v23 = vsub.f32 1.0, %v14556_v15  ;;  %v166_v20 = vld [vmem:[#allocation2 + $0x3f0] sm:$0xff]  ;;  %v14564_v36 = vld [vmem:[#allocation187_spill] sm:$0xff]  ;;  %v14566_v50 = vld [vmem:[#allocation156_spill] sm:$0xff] }
 0x42d   :  { %vm2849_vm4 = vweird.f32 %v14559_v18  ;;  %vm2850_vm5 = vweird.f32 %v14558_v4  ;;  %7426 = vrcp.f32 %v3972_v55  ;;  %v2853_v16 = vand.u32 2147483647, %v14559_v18  ;;  %v14567_v62 = vld [vmem:[#allocation138_spill] sm:$0xff]  ;;  %v1856_v55 = vpop.f32.mrf.mxu2 }
 0x42e   :  { %14555 = vst [vmem:[#allocation38_spill] sm:$0xff] %v12219_v47  ;;  %v2847_v54 = vmul.f32 %v14558_v4, %v14557_v23  ;;  %v2855_v43 = vand.u32 2147483648, %v14559_v18  ;;  %v3749_v45 = vmul.f32 %v14560_v29, %v161_v1  ;;  %7428 = vrcp.f32 %v3974_v41  ;;  %vm2851_vm6 = vmor %vm2849_vm4, %vm2850_vm5  ;;  %v1945_v41 = vpop.f32.mrf.mxu3  ;;  %v14569_v23 = vld [vmem:[#allocation366_spill] sm:$0xff]  ;;  %v14608_v47 = vld [vmem:[#allocation169_spill] sm:$0xff] }
 0x42f   :  { %v3813_v52 = vmul.f32 %v14561_v30, %v1944_v11  ;;  %v4587_v2 = vmul.f32 %v14562_v22, %v161_v1  ;;  %7430 = vrcp.f32 %v3973_v35  ;;  %vm2854_vm7 = vcmp.eq.f32.partialorder %v2853_v16, 8.507059e+37  ;;  %v14571_v16 = vld [vmem:[#allocation368_spill] sm:$0xff]  ;;  %v14572_v22 = vld [vmem:[#allocation369_spill] sm:$0xff] }
 0x430   :  { %v2848_v13 = vadd.f32 %v14558_v4, %v2847_v54  ;;  %v2856_v49 = vor.u32 1.1754944e-38, %v2855_v43  ;;  %v4651_v44 = vmul.f32 %v14563_v0, %v1944_v11  ;;  %7432 = vrcp.f32 %v3975_v42  ;;  %v1681_v42 = vpop.f32.mrf.mxu0  ;;  %v14570_v54 = vld [vmem:[#allocation367_spill] sm:$0xff] }
 0x431   :  { %v3877_v33 = vadd.f32 %v3813_v52, %v3749_v45  ;;  %v1768_v48 = vadd.f32 %v1767_v28, %v1678_v58  ;;  %v14565_v56 = vsub.f32 1.0, %v14564_v36  ;;  %vm2864_vm8 = vweird.f32 %v14567_v62  ;;  %v1770_v58 = vpop.f32.mrf.mxu1 }
 0x432   :  { %v2852_v31 = vsel %vm2851_vm6, %v14558_v4, %v2848_v13  ;;  %v4715_v37 = vadd.f32 %v4651_v44, %v4587_v2  ;;  %vm2865_vm9 = vweird.f32 %v14566_v50  ;;  %v2868_v11 = vand.u32 2147483647, %v14567_v62 }
 0x433   :  { %v2857_v5 = vsel %vm2854_vm7, %v2856_v49, %v2852_v31  ;;  %v2862_v34 = vmul.f32 %v14566_v50, %v14565_v56  ;;  %v2870_v1 = vand.u32 2147483648, %v14567_v62  ;;  %v7427_v28 = vpop.eup %7426  ;;  %v3750_v4 = vmul.f32 %v14569_v23, %v166_v20  ;;  %vm2866_vm10 = vmor %vm2864_vm8, %vm2865_vm9  ;;  %v14576_v62 = vld [vmem:[#allocation159_spill] sm:$0xff] }
 0x434   :  { %v12242_v35 = vmul.f32 %v3877_v33, %v2857_v5  ;;  %4779 = vst [vmem:[#allocation6 + $0x3c8] sm:$0xff] %v4715_v37  ;;  %v3814_v18 = vmul.f32 %v14570_v54, %v1768_v48  ;;  %v4588_v43 = vmul.f32 %v14571_v16, %v166_v20  ;;  %v7429_v45 = vpop.eup %7428  ;;  %v5194_v13 = vmul.f32 %v7427_v28, %v11476_v8  ;;  %v14573_v37 = vld [vmem:[#allocation88_spill] sm:$0xff]  ;;  %v14574_v8 = vld [vmem:[#allocation190_spill] sm:$0xff] }
 0x435   :  { %v2863_v15 = vadd.f32 %v14566_v50, %v2862_v34  ;;  %vm2869_vm11 = vcmp.eq.f32.partialorder %v2868_v11, 8.507059e+37  ;;  %v2871_v52 = vor.u32 1.1754944e-38, %v2870_v1  ;;  %v4652_v2 = vmul.f32 %v14572_v22, %v1768_v48  ;;  %v7431_v49 = vpop.eup %7430  ;;  %v14577_v1 = vld [vmem:[#allocation49_spill] sm:$0xff]  ;;  %v167_v22 = vld [vmem:[#allocation2 + $0x3f8] sm:$0xff] }
 0x436   :  { %14568 = vst [vmem:[#allocation239_spill] sm:$0xff] %v12242_v35  ;;  %v5196_v0 = vmul.f32 %v7429_v45, %v11541_v14  ;;  %v3878_v31 = vadd.f32 %v3814_v18, %v3750_v4  ;;  %v1946_v33 = vadd.f32 %v1945_v41, %v1856_v55  ;;  %v7433_v5 = vpop.eup %7432  ;;  %v5195_v20 = vmul.f32 %v7431_v49, %v14573_v37  ;;  %v14579_v14 = vld [vmem:[#allocation142_spill] sm:$0xff]  ;;  %v14583_v45 = vld [vmem:[#allocation371_spill] sm:$0xff] }
 0x437   :  { %v2867_v44 = vsel %vm2866_vm10, %v14566_v50, %v2863_v15  ;;  %v4716_v56 = vadd.f32 %v4652_v2, %v4588_v43  ;;  %v14575_v34 = vsub.f32 1.0, %v14574_v8  ;;  %v5197_v16 = vmul.f32 %v7433_v5, %v14577_v1  ;;  %v14582_v18 = vld [vmem:[#allocation370_spill] sm:$0xff]  ;;  %v14586_v5 = vld [vmem:[#allocation373_spill] sm:$0xff]  ;;  %v1859_v8 = vpop.f32.mrf.mxu2 }
 0x438   :  { %v2872_v36 = vsel %vm2869_vm11, %v2871_v52, %v2867_v44  ;;  %v5254_v11 = vpack.c.bf16 %v5196_v0, %v5194_v13  ;;  %vm2879_vm12 = vweird.f32 %v14579_v14  ;;  %vm2880_vm13 = vweird.f32 %v14576_v62  ;;  %v14584_v52 = vld [vmem:[#allocation152_spill] sm:$0xff] }
 0x439   :  { %v2877_v28 = vmul.f32 %v14576_v62, %v14575_v34  ;;  %v12262_v48 = vmul.f32 %v3878_v31, %v2872_v36  ;;  %4780 = vst [vmem:[#allocation6 + $0x3f0] sm:$0xff] %v4716_v56  ;;  %v2883_v55 = vand.u32 2147483647, %v14579_v14  ;;  %v2885_v41 = vand.u32 2147483648, %v14579_v14  ;;  %vm12269_vm14 = vmor %vm2879_vm12, %vm2880_vm13  ;;  %v14585_v0 = vld [vmem:[#allocation372_spill] sm:$0xff]  ;;  %v1948_v34 = vpop.f32.mrf.mxu3  ;;  %v1683_v14 = vpop.f32.mrf.mxu0 }
 0x43a   :  { %5492 = vmatmul.bf16.gmra.mxu0 %v5254_v11  ;;  %v5255_v15 = vpack.c.bf16 %v5197_v16, %v5195_v20  ;;  %5670 = vmatmul.bf16.gmra.mxu2 %v5254_v11  ;;  %v3751_v43 = vmul.f32 %v14582_v18, %v167_v22  ;;  %v3815_v13 = vmul.f32 %v14583_v45, %v1946_v33  ;;  %vm2894_vm15 = vweird.f32 %v14584_v52  ;;  %v172_v20 = vld [vmem:[#allocation2 + $0x420] sm:$0xff]  ;;  %v14587_v56 = vld [vmem:[#allocation164_spill] sm:$0xff] }
 0x43b   :  { %14578 = vst [vmem:[#allocation240_spill] sm:$0xff] %v12262_v48  ;;  %v2878_v50 = vadd.f32 %v14576_v62, %v2877_v28  ;;  %vm2884_vm0 = vcmp.eq.f32.partialorder %v2883_v55, 8.507059e+37  ;;  %v2886_v49 = vor.u32 1.1754944e-38, %v2885_v41  ;;  %v4589_v44 = vmul.f32 %v14585_v0, %v167_v22  ;;  %v14588_v11 = vld [vmem:[#allocation191_spill] sm:$0xff] }
 0x43c   :  { %5581 = vmatmul.bf16.gmra.mxu1 %v5255_v15  ;;  %5759 = vmatmul.bf16.gmra.mxu3 %v5255_v15  ;;  %v3879_v31 = vadd.f32 %v3815_v13, %v3751_v43  ;;  %v4653_v37 = vmul.f32 %v14586_v5, %v1946_v33  ;;  %v1771_v36 = vadd.f32 %v1770_v58, %v1681_v42  ;;  %vm2895_vm1 = vweird.f32 %v14587_v56  ;;  %v14591_v33 = vld [vmem:[#allocation374_spill] sm:$0xff]  ;;  %v14592_v58 = vld [vmem:[#allocation375_spill] sm:$0xff]  ;;  %v7546_v5 = vld [vmem:[#allocation2 + $0x130] sm:$0xff] }
 0x43d   :  { %v2882_v2 = vsel %vm12269_vm14, %v14576_v62, %v2878_v50  ;;  %v14589_v1 = vsub.f32 1.0, %v14588_v11  ;;  %v2898_v16 = vand.u32 2147483647, %v14584_v52  ;;  %v2900_v22 = vand.u32 2147483648, %v14584_v52  ;;  %v1772_v50 = vpop.f32.mrf.mxu1  ;;  %vm2896_vm3 = vmor %vm2894_vm15, %vm2895_vm1  ;;  %v7547_v11 = vld [vmem:[#allocation2 + $0x160] sm:$0xff] }
 0x43e   :  { %v2887_v28 = vsel %vm2884_vm0, %v2886_v49, %v2882_v2  ;;  %v4717_v55 = vadd.f32 %v4653_v37, %v4589_v44  ;;  %v3752_v42 = vmul.f32 %v14591_v33, %v172_v20  ;;  %v3816_v15 = vmul.f32 %v14592_v58, %v1771_v36  ;;  %v14595_v2 = vld [vmem:[#allocation376_spill] sm:$0xff]  ;;  %v14596_v44 = vld [vmem:[#allocation377_spill] sm:$0xff]  ;;  %v14597_v37 = vld [vmem:[#allocation262_spill] sm:$0xff] }
 0x43f   :  { %v2892_v62 = vmul.f32 %v14587_v56, %v14589_v1  ;;  %v12287_v41 = vmul.f32 %v3879_v31, %v2887_v28  ;;  %vm12292_vm2 = vcmp.eq.f32.partialorder %v2898_v16, 8.507059e+37  ;;  %v2901_v13 = vor.u32 1.1754944e-38, %v2900_v22  ;;  %v14598_v1 = vld [vmem:[#allocation272_spill] sm:$0xff]  ;;  %v7548_v22 = vld [vmem:[#allocation2 + $0x138] sm:$0xff] }
 0x440   :  { %v4590_v49 = vmul.f32 %v14595_v2, %v172_v20  ;;  %4781 = vst [vmem:[#allocation6 + $0x3f8] sm:$0xff] %v4717_v55  ;;  %v3880_v0 = vadd.f32 %v3816_v15, %v3752_v42  ;;  %v4654_v31 = vmul.f32 %v14596_v44, %v1771_v36  ;;  %v3912_v28 = vmul.f32 %v7546_v5, %v14597_v37  ;;  %v7549_v55 = vld [vmem:[#allocation2 + $0x168] sm:$0xff]  ;;  %v14600_v2 = vld [vmem:[#allocation274_spill] sm:$0xff]  ;;  %v14601_v36 = vld [vmem:[#allocation263_spill] sm:$0xff] }
 0x441   :  { %14590 = vst [vmem:[#allocation238_spill] sm:$0xff] %v12287_v41  ;;  %v2893_v4 = vadd.f32 %v14587_v56, %v2892_v62  ;;  %v3914_v62 = vmul.f32 %v7547_v11, %v14598_v1  ;;  %v14599_v41 = vld [vmem:[#allocation266_spill] sm:$0xff]  ;;  %v3915_v35 = vmul.f32 %v7549_v55, %v14600_v2  ;;  %v1949_v48 = vadd.f32 %v1948_v34, %v1859_v8  ;;  %v14602_v44 = vld [vmem:[#allocation273_spill] sm:$0xff]  ;;  %v14604_v11 = vld [vmem:[#allocation267_spill] sm:$0xff]  ;;  %v1861_v2 = vpop.f32.mrf.mxu2 }
 0x442   :  { %v3913_v20 = vmul.f32 %v7548_v22, %v14599_v41  ;;  %v4718_v42 = vadd.f32 %v4654_v31, %v4590_v49  ;;  %v3976_v15 = vadd.f32 %v14601_v36, %v3912_v28  ;;  %v173_v58 = vld [vmem:[#allocation2 + $0x428] sm:$0xff]  ;;  %v14606_v41 = vld [vmem:[#allocation193_spill] sm:$0xff]  ;;  %v14609_v8 = vld [vmem:[#allocation155_spill] sm:$0xff]  ;;  %vm2910_vm5 = vweird.f32 %v14608_v47 }
 0x443   :  { %v2897_v16 = vsel %vm2896_vm3, %v14587_v56, %v2893_v4  ;;  %v3978_v5 = vadd.f32 %v14602_v44, %v3914_v62  ;;  %v14605_v56 = vld [vmem:[#allocation275_spill] sm:$0xff]  ;;  %v14607_v22 = vsub.f32 1.0, %v14606_v41  ;;  %vm2909_vm4 = vweird.f32 %v14609_v8  ;;  %v14610_v49 = vld [vmem:[#allocation378_spill] sm:$0xff] }
 0x444   :  { %v2902_v52 = vsel %vm12292_vm2, %v2901_v13, %v2897_v16  ;;  %v3977_v1 = vadd.f32 %v14604_v11, %v3913_v20  ;;  %v3979_v4 = vadd.f32 %v14605_v56, %v3915_v35  ;;  %4782 = vst [vmem:[#allocation6 + $0x420] sm:$0xff] %v4718_v42  ;;  %7434 = vrcp.f32 %v3976_v15  ;;  %vm12324_vm6 = vmor %vm2909_vm4, %vm2910_vm5  ;;  %v14615_v28 = vld [vmem:[#allocation379_spill] sm:$0xff]  ;;  %v14616_v16 = vld [vmem:[#allocation380_spill] sm:$0xff] }
 0x445   :  { %v12311_v37 = vmul.f32 %v3880_v0, %v2902_v52  ;;  %v2907_v55 = vmul.f32 %v14608_v47, %v14607_v22  ;;  %v2913_v34 = vand.u32 2147483647, %v14609_v8  ;;  %7436 = vrcp.f32 %v3978_v5  ;;  %v1950_v52 = vpop.f32.mrf.mxu3  ;;  %v14617_v15 = vld [vmem:[#allocation381_spill] sm:$0xff]  ;;  %v12338_v5 = vpop.f32.mrf.mxu0  ;;  %v14618_v22 = vld [vmem:[#allocation194_spill] sm:$0xff] }
 0x446   :  { %v2915_v13 = vand.u32 2147483648, %v14609_v8  ;;  %v3753_v35 = vmul.f32 %v14610_v49, %v173_v58  ;;  %7438 = vrcp.f32 %v3977_v1  ;;  %v3817_v62 = vmul.f32 %v14615_v28, %v1949_v48  ;;  %v1775_v11 = vpop.f32.mrf.mxu1  ;;  %v178_v56 = vld [vmem:[#allocation2 + $0x450] sm:$0xff]  ;;  %v14620_v8 = vld [vmem:[#allocation179_spill] sm:$0xff] }
 0x447   :  { %14603 = vst [vmem:[#allocation241_spill] sm:$0xff] %v12311_v37  ;;  %v2908_v43 = vadd.f32 %v14608_v47, %v2907_v55  ;;  %vm12328_vm7 = vcmp.eq.f32.partialorder %v2913_v34, 8.507059e+37  ;;  %v4591_v20 = vmul.f32 %v14616_v16, %v173_v58  ;;  %7440 = vrcp.f32 %v3979_v4  ;;  %v14621_v34 = vld [vmem:[#allocation23_spill] sm:$0xff]  ;;  %v14624_v16 = vld [vmem:[#allocation44_spill] sm:$0xff] }
 0x448   :  { %v2916_v36 = vor.u32 1.1754944e-38, %v2915_v13  ;;  %v4655_v44 = vmul.f32 %v14617_v15, %v1949_v48  ;;  %v3881_v1 = vadd.f32 %v3817_v62, %v3753_v35  ;;  %v1773_v41 = vadd.f32 %v1772_v50, %v1683_v14  ;;  %v14623_v50 = vld [vmem:[#allocation383_spill] sm:$0xff] }
 0x449   :  { %v2912_v42 = vsel %vm12324_vm6, %v14608_v47, %v2908_v43  ;;  %v14619_v55 = vsub.f32 1.0, %v14618_v22  ;;  %vm2924_vm8 = vweird.f32 %v14621_v34  ;;  %vm2925_vm9 = vweird.f32 %v14620_v8  ;;  %v14629_v22 = vld [vmem:[#allocation227_spill] sm:$0xff] }
 0x44a   :  { %v2917_v4 = vsel %vm12328_vm7, %v2916_v36, %v2912_v42  ;;  %v4719_v0 = vadd.f32 %v4655_v44, %v4591_v20  ;;  %v2928_v47 = vand.u32 2147483647, %v14621_v34  ;;  %v7435_v48 = vpop.eup %7434  ;;  %v2930_v14 = vand.u32 2147483648, %v14621_v34  ;;  %vm12354_vm10 = vmor %vm2924_vm8, %vm2925_vm9  ;;  %v14627_v20 = vld [vmem:[#allocation384_spill] sm:$0xff]  ;;  %v14628_v36 = vld [vmem:[#allocation382_spill] sm:$0xff] }
 0x44b   :  { %v2922_v58 = vmul.f32 %v14620_v8, %v14619_v55  ;;  %v12348_v43 = vmul.f32 %v3881_v1, %v2917_v4  ;;  %v3754_v35 = vmul.f32 %v14623_v50, %v178_v56  ;;  %v7437_v62 = vpop.eup %7436  ;;  %v5198_v15 = vmul.f32 %v7435_v48, %v14624_v16  ;;  %v14630_v4 = vld [vmem:[#allocation385_spill] sm:$0xff] }
 0x44c   :  { %4783 = vst [vmem:[#allocation6 + $0x428] sm:$0xff] %v4719_v0  ;;  %vm2929_vm11 = vcmp.eq.f32.partialorder %v2928_v47, 8.507059e+37  ;;  %v3818_v42 = vmul.f32 %v14627_v20, %v1773_v41  ;;  %v4592_v44 = vmul.f32 %v14628_v36, %v178_v56  ;;  %v7439_v1 = vpop.eup %7438  ;;  %v5200_v55 = vmul.f32 %v7437_v62, %v14629_v22  ;;  %v14631_v16 = vld [vmem:[#allocation225_spill] sm:$0xff]  ;;  %v14632_v47 = vld [vmem:[#allocation195_spill] sm:$0xff]  ;;  %v14635_v36 = vld [vmem:[#allocation228_spill] sm:$0xff] }
 0x44d   :  { %14622 = vst [vmem:[#allocation103_spill] sm:$0xff] %v12348_v43  ;;  %v2923_v13 = vadd.f32 %v14620_v8, %v2922_v58  ;;  %v2931_v34 = vor.u32 1.1754944e-38, %v2930_v14  ;;  %v4656_v48 = vmul.f32 %v14630_v4, %v1773_v41  ;;  %v7441_v0 = vpop.eup %7440  ;;  %v5199_v43 = vmul.f32 %v7439_v1, %v14631_v16  ;;  %v14634_v20 = vld [vmem:[#allocation181_spill] sm:$0xff]  ;;  %v14636_v41 = vld [vmem:[#allocation24_spill] sm:$0xff] }
 0x44e   :  { %v3882_v28 = vadd.f32 %v3818_v42, %v3754_v35  ;;  %v1951_v49 = vadd.f32 %v1950_v52, %v1861_v2  ;;  %v14633_v37 = vsub.f32 1.0, %v14632_v47  ;;  %v5256_v56 = vpack.c.bf16 %v5200_v55, %v5198_v15  ;;  %v1864_v35 = vpop.f32.mrf.mxu2  ;;  %v14640_v42 = vld [vmem:[#allocation387_spill] sm:$0xff]  ;;  %v14642_v1 = vld [vmem:[#allocation389_spill] sm:$0xff]  ;;  %v14643_v16 = vld [vmem:[#allocation196_spill] sm:$0xff] }
 0x44f   :  { %v2927_v58 = vsel %vm12354_vm10, %v14620_v8, %v2923_v13  ;;  %v5201_v45 = vmul.f32 %v7441_v0, %v14635_v36  ;;  %v4720_v22 = vadd.f32 %v4656_v48, %v4592_v44  ;;  %vm2939_vm12 = vweird.f32 %v14636_v41  ;;  %v184_v48 = vld [vmem:[#allocation2 + $0x480] sm:$0xff] }
 0x450   :  { %v2937_v50 = vmul.f32 %v14634_v20, %v14633_v37  ;;  %v2932_v62 = vsel %vm2929_vm11, %v2931_v34, %v2927_v58  ;;  %vm2940_vm13 = vweird.f32 %v14634_v20  ;;  %5497 = vmatmul.bf16.gmra.mxu0 %v5256_v56  ;;  %5675 = vmatmul.bf16.gmra.mxu2 %v5256_v56  ;;  %v2943_v52 = vand.u32 2147483647, %v14636_v41  ;;  %v12388_v58 = vpop.f32.mrf.mxu0  ;;  %v12390_v34 = vpop.f32.mrf.mxu1 }
 0x451   :  { %v12370_v31 = vmul.f32 %v3882_v28, %v2932_v62  ;;  %v5257_v2 = vpack.c.bf16 %v5201_v45, %v5199_v43  ;;  %4784 = vst [vmem:[#allocation6 + $0x450] sm:$0xff] %v4720_v22  ;;  %vm12375_vm14 = vmor %vm2939_vm12, %vm2940_vm13  ;;  %v2945_v13 = vand.u32 2147483648, %v14636_v41  ;;  %v14639_v28 = vld [vmem:[#allocation386_spill] sm:$0xff]  ;;  %v3819_v45 = vmul.f32 %v14640_v42, %v1951_v49  ;;  %v14641_v43 = vld [vmem:[#allocation388_spill] sm:$0xff] }
 0x452   :  { %v2938_v8 = vadd.f32 %v14634_v20, %v2937_v50  ;;  %v3755_v14 = vmul.f32 %v14639_v28, %v179_v17  ;;  %v1953_v50 = vpop.f32.mrf.mxu3  ;;  %v4593_v44 = vmul.f32 %v14641_v43, %v179_v17  ;;  %v4657_v55 = vmul.f32 %v14642_v1, %v1951_v49  ;;  %v14646_v17 = vld [vmem:[#allocation165_spill] sm:$0xff] }
 0x453   :  { %5586 = vmatmul.bf16.gmra.mxu1 %v5257_v2  ;;  %5764 = vmatmul.bf16.gmra.mxu3 %v5257_v2  ;;  %vm2944_vm15 = vcmp.eq.f32.partialorder %v2943_v52, 8.507059e+37  ;;  %v2946_v4 = vor.u32 1.1754944e-38, %v2945_v13  ;;  %v1776_v0 = vadd.f32 %v1775_v11, %v12338_v5  ;;  %v14644_v47 = vsub.f32 1.0, %v14643_v16  ;;  %v14650_v11 = vld [vmem:[#allocation390_spill] sm:$0xff]  ;;  %v14651_v52 = vld [vmem:[#allocation391_spill] sm:$0xff] }
 0x454   :  { %v2942_v15 = vsel %vm12375_vm14, %v14634_v20, %v2938_v8  ;;  %v14645_v20 = vld [vmem:[#allocation185_spill] sm:$0xff]  ;;  %v3883_v36 = vadd.f32 %v3819_v45, %v3755_v14  ;;  %v4721_v62 = vadd.f32 %v4657_v55, %v4593_v44  ;;  %vm2954_vm0 = vweird.f32 %v14646_v17  ;;  %v14652_v14 = vld [vmem:[#allocation392_spill] sm:$0xff]  ;;  %v14654_v16 = vld [vmem:[#allocation278_spill] sm:$0xff] }
 0x455   :  { %v2952_v56 = vmul.f32 %v14645_v20, %v14644_v47  ;;  %vm2955_vm1 = vweird.f32 %v14645_v20  ;;  %v2947_v49 = vsel %vm2944_vm15, %v2946_v4, %v2942_v15  ;;  %v2958_v8 = vand.u32 2147483647, %v14646_v17  ;;  %v14653_v44 = vld [vmem:[#allocation393_spill] sm:$0xff] }
 0x456   :  { %v2960_v41 = vand.u32 2147483648, %v14646_v17  ;;  %4785 = vst [vmem:[#allocation6 + $0x458] sm:$0xff] %v4721_v62  ;;  %v12401_v2 = vmul.f32 %v3883_v36, %v2947_v49  ;;  %vm12403_vm2 = vmor %vm2954_vm0, %vm2955_vm1  ;;  %v3756_v37 = vmul.f32 %v14650_v11, %v184_v48  ;;  %v3820_v13 = vmul.f32 %v14651_v52, %v1776_v0  ;;  %v7550_v4 = vld [vmem:[#allocation2 + $0x190] sm:$0xff]  ;;  %v14655_v36 = vld [vmem:[#allocation286_spill] sm:$0xff] }
 0x457   :  { %v2953_v22 = vadd.f32 %v14645_v20, %v2952_v56  ;;  %v4594_v45 = vmul.f32 %v14652_v14, %v184_v48  ;;  %vm2959_vm3 = vcmp.eq.f32.partialorder %v2958_v8, 8.507059e+37  ;;  %v4658_v1 = vmul.f32 %v14653_v44, %v1776_v0  ;;  %v7551_v56 = vld [vmem:[#allocation2 + $0x1c0] sm:$0xff]  ;;  %v7552_v17 = vld [vmem:[#allocation2 + $0x198] sm:$0xff]  ;;  %v7553_v14 = vld [vmem:[#allocation2 + $0x1c8] sm:$0xff] }
 0x458   :  { %14647 = vst [vmem:[#allocation58_spill] sm:$0xff] %v12401_v2  ;;  %v2961_v43 = vor.u32 1.1754944e-38, %v2960_v41  ;;  %v3884_v55 = vadd.f32 %v3820_v13, %v3756_v37  ;;  %v3916_v47 = vmul.f32 %v7550_v4, %v14654_v16  ;;  %v3918_v62 = vmul.f32 %v7551_v56, %v14655_v36  ;;  %v14656_v49 = vld [vmem:[#allocation283_spill] sm:$0xff]  ;;  %v14660_v13 = vld [vmem:[#allocation284_spill] sm:$0xff]  ;;  %v14662_v36 = vld [vmem:[#allocation118_spill] sm:$0xff] }
 0x459   :  { %v2957_v15 = vsel %vm12403_vm2, %v14645_v20, %v2953_v22  ;;  %v3917_v2 = vmul.f32 %v7552_v17, %v14656_v49  ;;  %v4722_v48 = vadd.f32 %v4658_v1, %v4594_v45  ;;  %v3919_v5 = vmul.f32 %v7553_v14, %v14338_v51  ;;  %v14658_v8 = vld [vmem:[#allocation279_spill] sm:$0xff]  ;;  %v185_v4 = vld [vmem:[#allocation2 + $0x488] sm:$0xff]  ;;  %v1866_v51 = vpop.f32.mrf.mxu2 }
 0x45a   :  { %v2962_v52 = vsel %vm2959_vm3, %v2961_v43, %v2957_v15  ;;  %v1954_v20 = vadd.f32 %v1953_v50, %v1864_v35  ;;  %v3980_v0 = vadd.f32 %v14658_v8, %v3916_v47  ;;  %v14659_v41 = vld [vmem:[#allocation287_spill] sm:$0xff]  ;;  %v14661_v16 = vld [vmem:[#allocation292_spill] sm:$0xff]  ;;  %v14663_v17 = vsub.f32 1.0, %v14662_v36  ;;  %v14664_v15 = vld [vmem:[#allocation189_spill] sm:$0xff]  ;;  %v1955_v35 = vpop.f32.mrf.mxu3  ;;  %v12434_v47 = vpop.f32.mrf.mxu1 }
 0x45b   :  { %v12418_v22 = vmul.f32 %v3884_v55, %v2962_v52  ;;  %v3982_v37 = vadd.f32 %v14659_v41, %v3918_v62  ;;  %v3981_v44 = vadd.f32 %v14660_v13, %v3917_v2  ;;  %4786 = vst [vmem:[#allocation6 + $0x480] sm:$0xff] %v4722_v48  ;;  %v3983_v56 = vadd.f32 %v14661_v16, %v3919_v5  ;;  %v14665_v43 = vld [vmem:[#allocation168_spill] sm:$0xff]  ;;  %v14666_v2 = vld [vmem:[#allocation394_spill] sm:$0xff]  ;;  %v12432_v55 = vpop.f32.mrf.mxu0  ;;  %v14667_v49 = vld [vmem:[#allocation395_spill] sm:$0xff] }
 0x45c   :  { %v2967_v45 = vmul.f32 %v14664_v15, %v14663_v17  ;;  %vm2969_vm4 = vweird.f32 %v14665_v43  ;;  %vm2970_vm5 = vweird.f32 %v14664_v15  ;;  %7442 = vrcp.f32 %v3980_v0  ;;  %v14668_v14 = vld [vmem:[#allocation396_spill] sm:$0xff]  ;;  %v14669_v0 = vld [vmem:[#allocation397_spill] sm:$0xff] }
 0x45d   :  { %14657 = vst [vmem:[#allocation50_spill] sm:$0xff] %v12418_v22  ;;  %v2973_v50 = vand.u32 2147483647, %v14665_v43  ;;  %v2975_v52 = vand.u32 2147483648, %v14665_v43  ;;  %v3757_v1 = vmul.f32 %v14666_v2, %v185_v4  ;;  %7444 = vrcp.f32 %v3982_v37  ;;  %vm2971_vm6 = vmor %vm2969_vm4, %vm2970_vm5  ;;  %v190_v36 = vld [vmem:[#allocation2 + $0x4b0] sm:$0xff]  ;;  %v14673_v43 = vld [vmem:[#allocation172_spill] sm:$0xff] }
 0x45e   :  { %v2968_v62 = vadd.f32 %v14664_v15, %v2967_v45  ;;  %v3821_v48 = vmul.f32 %v14667_v49, %v1954_v20  ;;  %v4595_v5 = vmul.f32 %v14668_v14, %v185_v4  ;;  %7446 = vrcp.f32 %v3981_v44  ;;  %v14670_v49 = vld [vmem:[#allocation202_spill] sm:$0xff]  ;;  %v14672_v44 = vld [vmem:[#allocation192_spill] sm:$0xff] }
 0x45f   :  { %vm2974_vm7 = vcmp.eq.f32.partialorder %v2973_v50, 8.507059e+37  ;;  %v2976_v8 = vor.u32 1.1754944e-38, %v2975_v52  ;;  %v4659_v41 = vmul.f32 %v14669_v0, %v1954_v20  ;;  %7448 = vrcp.f32 %v3983_v56  ;;  %v14681_v22 = vld [vmem:[#allocation230_spill] sm:$0xff] }
 0x460   :  { %v2972_v13 = vsel %vm2971_vm6, %v14664_v15, %v2968_v62  ;;  %v3885_v16 = vadd.f32 %v3821_v48, %v3757_v1  ;;  %v1778_v37 = vadd.f32 %v12390_v34, %v12388_v58  ;;  %v14671_v4 = vsub.f32 1.0, %v14670_v49  ;;  %v14675_v34 = vld [vmem:[#allocation398_spill] sm:$0xff]  ;;  %v14676_v1 = vld [vmem:[#allocation399_spill] sm:$0xff]  ;;  %v14677_v49 = vld [vmem:[#allocation400_spill] sm:$0xff] }
 0x461   :  { %v2977_v17 = vsel %vm2974_vm7, %v2976_v8, %v2972_v13  ;;  %v4723_v45 = vadd.f32 %v4659_v41, %v4595_v5  ;;  %vm2984_vm8 = vweird.f32 %v14673_v43  ;;  %vm2985_vm9 = vweird.f32 %v14672_v44  ;;  %v14678_v8 = vld [vmem:[#allocation229_spill] sm:$0xff] }
 0x462   :  { %v2982_v14 = vmul.f32 %v14672_v44, %v14671_v4  ;;  %v12449_v50 = vmul.f32 %v3885_v16, %v2977_v17  ;;  %v2988_v20 = vand.u32 2147483647, %v14673_v43  ;;  %v2990_v56 = vand.u32 2147483648, %v14673_v43  ;;  %v7443_v15 = vpop.eup %7442  ;;  %vm2986_vm10 = vmor %vm2984_vm8, %vm2985_vm9  ;;  %v14679_v13 = vld [vmem:[#allocation401_spill] sm:$0xff]  ;;  %v14680_v4 = vld [vmem:[#allocation90_spill] sm:$0xff] }
 0x463   :  { %4787 = vst [vmem:[#allocation6 + $0x488] sm:$0xff] %v4723_v45  ;;  %v3758_v52 = vmul.f32 %v14675_v34, %v190_v36  ;;  %v3822_v62 = vmul.f32 %v14676_v1, %v1778_v37  ;;  %v4596_v48 = vmul.f32 %v14677_v49, %v190_v36  ;;  %v7445_v5 = vpop.eup %7444  ;;  %v5202_v0 = vmul.f32 %v7443_v15, %v14678_v8  ;;  %v14682_v49 = vld [vmem:[#allocation203_spill] sm:$0xff]  ;;  %v14684_v15 = vld [vmem:[#allocation25_spill] sm:$0xff] }
 0x464   :  { %14674 = vst [vmem:[#allocation242_spill] sm:$0xff] %v12449_v50  ;;  %v2983_v58 = vadd.f32 %v14672_v44, %v2982_v14  ;;  %vm2989_vm11 = vcmp.eq.f32.partialorder %v2988_v20, 8.507059e+37  ;;  %v2991_v41 = vor.u32 1.1754944e-38, %v2990_v56  ;;  %v4660_v16 = vmul.f32 %v14679_v13, %v1778_v37  ;;  %v7447_v17 = vpop.eup %7446  ;;  %v1869_v20 = vpop.f32.mrf.mxu2  ;;  %v14685_v37 = vld [vmem:[#allocation51_spill] sm:$0xff] }
 0x465   :  { %v5204_v43 = vmul.f32 %v7445_v5, %v14680_v4  ;;  %v3886_v14 = vadd.f32 %v3822_v62, %v3758_v52  ;;  %v1956_v50 = vadd.f32 %v1955_v35, %v1866_v51  ;;  %v7449_v2 = vpop.eup %7448  ;;  %v5203_v1 = vmul.f32 %v7447_v17, %v14681_v22  ;;  %v1958_v56 = vpop.f32.mrf.mxu3  ;;  %v191_v5 = vld [vmem:[#allocation2 + $0x4b8] sm:$0xff]  ;;  %v14693_v4 = vld [vmem:[#allocation404_spill] sm:$0xff] }
 0x466   :  { %v2987_v45 = vsel %vm2986_vm10, %v14672_v44, %v2983_v58  ;;  %v4724_v36 = vadd.f32 %v4660_v16, %v4596_v48  ;;  %v14683_v11 = vsub.f32 1.0, %v14682_v49  ;;  %v5205_v13 = vmul.f32 %v7449_v2, %v14685_v37  ;;  %v14687_v44 = vld [vmem:[#allocation176_spill] sm:$0xff]  ;;  %v12470_v51 = vpop.f32.mrf.mxu0  ;;  %v12472_v35 = vpop.f32.mrf.mxu1  ;;  %v14690_v52 = vld [vmem:[#allocation402_spill] sm:$0xff]  ;;  %v14691_v48 = vld [vmem:[#allocation403_spill] sm:$0xff] }
 0x467   :  { %v2992_v34 = vsel %vm2989_vm11, %v2991_v41, %v2987_v45  ;;  %v5258_v42 = vpack.c.bf16 %v5204_v43, %v5202_v0  ;;  %vm2999_vm12 = vweird.f32 %v14687_v44  ;;  %vm3000_vm13 = vweird.f32 %v14684_v15  ;;  %v14692_v41 = vld [vmem:[#allocation177_spill] sm:$0xff]  ;;  %v14695_v49 = vld [vmem:[#allocation26_spill] sm:$0xff]  ;;  %v14696_v37 = vld [vmem:[#allocation204_spill] sm:$0xff] }
 0x468   :  { %v2997_v8 = vmul.f32 %v14684_v15, %v14683_v11  ;;  %v12467_v28 = vmul.f32 %v3886_v14, %v2992_v34  ;;  %4788 = vst [vmem:[#allocation6 + $0x4b0] sm:$0xff] %v4724_v36  ;;  %v3003_v11 = vand.u32 2147483647, %v14687_v44  ;;  %v3005_v58 = vand.u32 2147483648, %v14687_v44  ;;  %vm12478_vm14 = vmor %vm2999_vm12, %vm3000_vm13  ;;  %v196_v14 = vld [vmem:[#allocation2 + $0x4e0] sm:$0xff] }
 0x469   :  { %5502 = vmatmul.bf16.gmra.mxu0 %v5258_v42  ;;  %v5259_v2 = vpack.c.bf16 %v5205_v13, %v5203_v1  ;;  %5680 = vmatmul.bf16.gmra.mxu2 %v5258_v42  ;;  %v3759_v62 = vmul.f32 %v14690_v52, %v191_v5  ;;  %v3823_v0 = vmul.f32 %v14691_v48, %v1956_v50  ;;  %vm3014_vm15 = vweird.f32 %v14692_v41  ;;  %v14694_v1 = vld [vmem:[#allocation405_spill] sm:$0xff]  ;;  %v14740_v48 = vld [vmem:[#allocation208_spill] sm:$0xff] }
 0x46a   :  { %14686 = vst [vmem:[#allocation243_spill] sm:$0xff] %v12467_v28  ;;  %v2998_v22 = vadd.f32 %v14684_v15, %v2997_v8  ;;  %vm3004_vm0 = vcmp.eq.f32.partialorder %v3003_v11, 8.507059e+37  ;;  %v3006_v17 = vor.u32 1.1754944e-38, %v3005_v58  ;;  %v4597_v43 = vmul.f32 %v14693_v4, %v191_v5  ;;  %v14699_v58 = vld [vmem:[#allocation407_spill] sm:$0xff] }
 0x46b   :  { %5591 = vmatmul.bf16.gmra.mxu1 %v5259_v2  ;;  %5769 = vmatmul.bf16.gmra.mxu3 %v5259_v2  ;;  %v3887_v42 = vadd.f32 %v3823_v0, %v3759_v62  ;;  %v4661_v45 = vmul.f32 %v14694_v1, %v1956_v50  ;;  %v1781_v36 = vadd.f32 %v12434_v47, %v12432_v55  ;;  %vm3015_vm1 = vweird.f32 %v14695_v49  ;;  %v14700_v2 = vld [vmem:[#allocation408_spill] sm:$0xff]  ;;  %v14703_v0 = vld [vmem:[#allocation406_spill] sm:$0xff]  ;;  %v7554_v1 = vld [vmem:[#allocation2 + $0x1f0] sm:$0xff] }
 0x46c   :  { %v3002_v16 = vsel %vm12478_vm14, %v14684_v15, %v2998_v22  ;;  %v14697_v13 = vsub.f32 1.0, %v14696_v37  ;;  %v3018_v44 = vand.u32 2147483647, %v14692_v41  ;;  %v3020_v5 = vand.u32 2147483648, %v14692_v41  ;;  %vm12510_vm3 = vmor %vm3014_vm15, %vm3015_vm1  ;;  %v7555_v37 = vld [vmem:[#allocation2 + $0x220] sm:$0xff]  ;;  %v14718_v47 = vld [vmem:[#allocation198_spill] sm:$0xff] }
 0x46d   :  { %v3007_v8 = vsel %vm3004_vm0, %v3006_v17, %v3002_v16  ;;  %v4725_v22 = vadd.f32 %v4661_v45, %v4597_v43  ;;  %v3760_v50 = vmul.f32 %v14699_v58, %v196_v14  ;;  %v3824_v34 = vmul.f32 %v14700_v2, %v1781_v36  ;;  %v14706_v43 = vld [vmem:[#allocation409_spill] sm:$0xff]  ;;  %v14707_v45 = vld [vmem:[#allocation294_spill] sm:$0xff] }
 0x46e   :  { %v3012_v15 = vmul.f32 %v14695_v49, %v14697_v13  ;;  %v12498_v11 = vmul.f32 %v3887_v42, %v3007_v8  ;;  %vm12503_vm2 = vcmp.eq.f32.partialorder %v3018_v44, 8.507059e+37  ;;  %v3021_v62 = vor.u32 1.1754944e-38, %v3020_v5  ;;  %v14708_v13 = vld [vmem:[#allocation303_spill] sm:$0xff]  ;;  %v7556_v44 = vld [vmem:[#allocation2 + $0x1f8] sm:$0xff] }
 0x46f   :  { %v4598_v16 = vmul.f32 %v14703_v0, %v196_v14  ;;  %4789 = vst [vmem:[#allocation6 + $0x4b8] sm:$0xff] %v4725_v22  ;;  %v3888_v4 = vadd.f32 %v3824_v34, %v3760_v50  ;;  %v4662_v42 = vmul.f32 %v14706_v43, %v1781_v36  ;;  %v3920_v8 = vmul.f32 %v7554_v1, %v14707_v45  ;;  %v14709_v5 = vld [vmem:[#allocation298_spill] sm:$0xff]  ;;  %v7557_v22 = vld [vmem:[#allocation2 + $0x228] sm:$0xff]  ;;  %v12522_v50 = vpop.f32.mrf.mxu2  ;;  %v12524_v36 = vpop.f32.mrf.mxu3  ;;  %v14711_v1 = vld [vmem:[#allocation295_spill] sm:$0xff] }
 0x470   :  { %14698 = vst [vmem:[#allocation244_spill] sm:$0xff] %v12498_v11  ;;  %v3013_v55 = vadd.f32 %v14695_v49, %v3012_v15  ;;  %v3922_v15 = vmul.f32 %v7555_v37, %v14708_v13  ;;  %v3921_v41 = vmul.f32 %v7556_v44, %v14709_v5  ;;  %v14710_v0 = vld [vmem:[#allocation306_spill] sm:$0xff]  ;;  %v1959_v2 = vadd.f32 %v1958_v56, %v1869_v20  ;;  %v14712_v37 = vld [vmem:[#allocation304_spill] sm:$0xff]  ;;  %v14714_v44 = vld [vmem:[#allocation299_spill] sm:$0xff] }
 0x471   :  { %v3923_v11 = vmul.f32 %v7557_v22, %v14710_v0  ;;  %v4726_v43 = vadd.f32 %v4662_v42, %v4598_v16  ;;  %v3984_v45 = vadd.f32 %v14711_v1, %v3920_v8  ;;  %v14715_v56 = vld [vmem:[#allocation307_spill] sm:$0xff]  ;;  %v197_v22 = vld [vmem:[#allocation2 + $0x4e8] sm:$0xff]  ;;  %v14716_v0 = vld [vmem:[#allocation206_spill] sm:$0xff]  ;;  %vm3030_vm5 = vweird.f32 %v14718_v47 }
 0x472   :  { %v3017_v14 = vsel %vm12510_vm3, %v14695_v49, %v3013_v55  ;;  %v3986_v17 = vadd.f32 %v14712_v37, %v3922_v15  ;;  %v12530_v49 = vpop.f32.mrf.mxu0  ;;  %v12532_v55 = vpop.f32.mrf.mxu1  ;;  %v3985_v20 = vadd.f32 %v14714_v44, %v3921_v41  ;;  %v14717_v58 = vsub.f32 1.0, %v14716_v0  ;;  %v14719_v16 = vld [vmem:[#allocation178_spill] sm:$0xff]  ;;  %v14722_v41 = vld [vmem:[#allocation411_spill] sm:$0xff]  ;;  %v202_v44 = vld [vmem:[#allocation2 + $0x510] sm:$0xff] }
 0x473   :  { %v3022_v34 = vsel %vm12503_vm2, %v3021_v62, %v3017_v14  ;;  %v3987_v5 = vadd.f32 %v14715_v56, %v3923_v11  ;;  %4790 = vst [vmem:[#allocation6 + $0x4e0] sm:$0xff] %v4726_v43  ;;  %7450 = vrcp.f32 %v3984_v45  ;;  %vm3029_vm4 = vweird.f32 %v14719_v16  ;;  %v14720_v15 = vld [vmem:[#allocation410_spill] sm:$0xff]  ;;  %v14723_v45 = vld [vmem:[#allocation412_spill] sm:$0xff]  ;;  %v14724_v0 = vld [vmem:[#allocation207_spill] sm:$0xff] }
 0x474   :  { %v12534_v13 = vmul.f32 %v3888_v4, %v3022_v34  ;;  %v3027_v62 = vmul.f32 %v14718_v47, %v14717_v58  ;;  %v3033_v42 = vand.u32 2147483647, %v14719_v16  ;;  %7452 = vrcp.f32 %v3986_v17  ;;  %vm3031_vm6 = vmor %vm3029_vm4, %vm3030_vm5  ;;  %v14721_v14 = vld [vmem:[#allocation414_spill] sm:$0xff] }
 0x475   :  { %v3035_v8 = vand.u32 2147483648, %v14719_v16  ;;  %v3761_v11 = vmul.f32 %v14720_v15, %v197_v22  ;;  %7454 = vrcp.f32 %v3985_v20  ;;  %v3825_v58 = vmul.f32 %v14721_v14, %v1959_v2  ;;  %v14726_v20 = vld [vmem:[#allocation199_spill] sm:$0xff] }
 0x476   :  { %14713 = vst [vmem:[#allocation33_spill] sm:$0xff] %v12534_v13  ;;  %v3028_v4 = vadd.f32 %v14718_v47, %v3027_v62  ;;  %vm3034_vm7 = vcmp.eq.f32.partialorder %v3033_v42, 8.507059e+37  ;;  %v4599_v34 = vmul.f32 %v14722_v41, %v197_v22  ;;  %7456 = vrcp.f32 %v3987_v5  ;;  %v14727_v42 = vld [vmem:[#allocation180_spill] sm:$0xff] }
 0x477   :  { %v3036_v1 = vor.u32 1.1754944e-38, %v3035_v8  ;;  %v4663_v37 = vmul.f32 %v14723_v45, %v1959_v2  ;;  %v3889_v17 = vadd.f32 %v3825_v58, %v3761_v11  ;;  %v1783_v56 = vadd.f32 %v12472_v35, %v12470_v51  ;;  %v14729_v51 = vld [vmem:[#allocation415_spill] sm:$0xff]  ;;  %v14730_v11 = vld [vmem:[#allocation45_spill] sm:$0xff] }
 0x478   :  { %v3032_v43 = vsel %vm3031_vm6, %v14718_v47, %v3028_v4  ;;  %v14725_v62 = vsub.f32 1.0, %v14724_v0  ;;  %vm3044_vm8 = vweird.f32 %v14727_v42  ;;  %vm3045_vm9 = vweird.f32 %v14726_v20 }
 0x479   :  { %v3037_v14 = vsel %vm3034_vm7, %v3036_v1, %v3032_v43  ;;  %v4727_v15 = vadd.f32 %v4663_v37, %v4599_v34  ;;  %v3048_v5 = vand.u32 2147483647, %v14727_v42  ;;  %v7451_v22 = vpop.eup %7450  ;;  %v3050_v4 = vand.u32 2147483648, %v14727_v42  ;;  %vm12565_vm10 = vmor %vm3044_vm8, %vm3045_vm9  ;;  %v14736_v1 = vld [vmem:[#allocation413_spill] sm:$0xff]  ;;  %v12575_v37 = vpop.f32.mrf.mxu2 }
 0x47a   :  { %v3042_v16 = vmul.f32 %v14726_v20, %v14725_v62  ;;  %v12559_v47 = vmul.f32 %v3889_v17, %v3037_v14  ;;  %v3762_v35 = vmul.f32 %v14729_v51, %v202_v44  ;;  %v7453_v8 = vpop.eup %7452  ;;  %v5206_v58 = vmul.f32 %v7451_v22, %v14730_v11  ;;  %v14735_v14 = vld [vmem:[#allocation417_spill] sm:$0xff]  ;;  %v12577_v17 = vpop.f32.mrf.mxu3  ;;  %v14737_v62 = vld [vmem:[#allocation32_spill] sm:$0xff] }
 0x47b   :  { %4791 = vst [vmem:[#allocation6 + $0x4e8] sm:$0xff] %v4727_v15  ;;  %vm12569_vm11 = vcmp.eq.f32.partialorder %v3048_v5, 8.507059e+37  ;;  %v3826_v43 = vmul.f32 %v14735_v14, %v1783_v56  ;;  %v4600_v45 = vmul.f32 %v14736_v1, %v202_v44  ;;  %v7455_v0 = vpop.eup %7454  ;;  %v3051_v42 = vor.u32 1.1754944e-38, %v3050_v4  ;;  %v14738_v5 = vld [vmem:[#allocation416_spill] sm:$0xff]  ;;  %v12584_v11 = vpop.f32.mrf.mxu0  ;;  %v14739_v44 = vld [vmem:[#allocation31_spill] sm:$0xff] }
 0x47c   :  { %14728 = vst [vmem:[#allocation111_spill] sm:$0xff] %v12559_v47  ;;  %v3043_v2 = vadd.f32 %v14726_v20, %v3042_v16  ;;  %v5208_v16 = vmul.f32 %v7453_v8, %v14737_v62  ;;  %v4664_v22 = vmul.f32 %v14738_v5, %v1783_v56  ;;  %v12586_v47 = vpop.f32.mrf.mxu1  ;;  %v7457_v13 = vpop.eup %7456  ;;  %v5207_v1 = vmul.f32 %v7455_v0, %v14739_v44  ;;  %v14742_v62 = vld [vmem:[#allocation113_spill] sm:$0xff]  ;;  %v203_v5 = vld [vmem:[#allocation2 + $0x518] sm:$0xff]  ;;  %v208_v44 = vld [vmem:[#allocation2 + $0x540] sm:$0xff] }
 0x47d   :  { %v3890_v14 = vadd.f32 %v3826_v43, %v3762_v35  ;;  %v1961_v51 = vadd.f32 %v12524_v36, %v12522_v50  ;;  %v14741_v8 = vsub.f32 1.0, %v14740_v48  ;;  %v14744_v35 = vld [vmem:[#allocation184_spill] sm:$0xff]  ;;  %vm3060_vm13 = vweird.f32 %v14742_v62 }
 0x47e   :  { %v3047_v15 = vsel %vm12565_vm10, %v14726_v20, %v3043_v2  ;;  %v5260_v41 = vpack.c.bf16 %v5208_v16, %v5206_v58  ;;  %v14743_v20 = vld [vmem:[#allocation231_spill] sm:$0xff]  ;;  %v4728_v4 = vadd.f32 %v4664_v22, %v4600_v45  ;;  %vm3059_vm12 = vweird.f32 %v14744_v35  ;;  %v14747_v58 = vld [vmem:[#allocation418_spill] sm:$0xff]  ;;  %v14749_v45 = vld [vmem:[#allocation420_spill] sm:$0xff] }
 0x47f   :  { %v3057_v52 = vmul.f32 %v14742_v62, %v14741_v8  ;;  %v5209_v2 = vmul.f32 %v7457_v13, %v14743_v20  ;;  %v3052_v56 = vsel %vm12569_vm11, %v3051_v42, %v3047_v15  ;;  %vm12602_vm14 = vmor %vm3059_vm12, %vm3060_vm13  ;;  %v3063_v36 = vand.u32 2147483647, %v14744_v35  ;;  %v14750_v15 = vld [vmem:[#allocation421_spill] sm:$0xff] }
 0x480   :  { %v12597_v28 = vmul.f32 %v3890_v14, %v3052_v56  ;;  %5507 = vmatmul.bf16.gmra.mxu0 %v5260_v41  ;;  %5685 = vmatmul.bf16.gmra.mxu2 %v5260_v41  ;;  %4792 = vst [vmem:[#allocation6 + $0x510] sm:$0xff] %v4728_v4  ;;  %v3065_v13 = vand.u32 2147483648, %v14744_v35  ;;  %v3763_v34 = vmul.f32 %v14747_v58, %v203_v5  ;;  %v14748_v14 = vld [vmem:[#allocation419_spill] sm:$0xff]  ;;  %v14751_v8 = vld [vmem:[#allocation209_spill] sm:$0xff]  ;;  %v14754_v4 = vld [vmem:[#allocation188_spill] sm:$0xff] }
 0x481   :  { %v3058_v0 = vadd.f32 %v14742_v62, %v3057_v52  ;;  %v5261_v48 = vpack.c.bf16 %v5209_v2, %v5207_v1  ;;  %v3827_v43 = vmul.f32 %v14748_v14, %v1961_v51  ;;  %v4601_v16 = vmul.f32 %v14749_v45, %v203_v5  ;;  %v14753_v20 = vld [vmem:[#allocation201_spill] sm:$0xff] }
 0x482   :  { %v4665_v42 = vmul.f32 %v14750_v15, %v1961_v51  ;;  %vm3064_vm15 = vcmp.eq.f32.partialorder %v3063_v36, 8.507059e+37  ;;  %v3066_v22 = vor.u32 1.1754944e-38, %v3065_v13  ;;  %v1786_v1 = vadd.f32 %v12532_v55, %v12530_v49  ;;  %v14758_v55 = vld [vmem:[#allocation424_spill] sm:$0xff]  ;;  %v14759_v36 = vld [vmem:[#allocation425_spill] sm:$0xff]  ;;  %v12636_v45 = vpop.f32.mrf.mxu3 }
 0x483   :  { %v3062_v52 = vsel %vm12602_vm14, %v14742_v62, %v3058_v0  ;;  %5596 = vmatmul.bf16.gmra.mxu1 %v5261_v48  ;;  %5774 = vmatmul.bf16.gmra.mxu3 %v5261_v48  ;;  %v14752_v41 = vsub.f32 1.0, %v14751_v8  ;;  %v3891_v56 = vadd.f32 %v3827_v43, %v3763_v34  ;;  %vm3074_vm0 = vweird.f32 %v14754_v4  ;;  %v14760_v34 = vld [vmem:[#allocation422_spill] sm:$0xff]  ;;  %v12642_v8 = vpop.f32.mrf.mxu0 }
 0x484   :  { %v4729_v62 = vadd.f32 %v4665_v42, %v4601_v16  ;;  %vm3075_vm1 = vweird.f32 %v14753_v20  ;;  %v3067_v5 = vsel %vm3064_vm15, %v3066_v22, %v3062_v52  ;;  %v3078_v0 = vand.u32 2147483647, %v14754_v4  ;;  %v12634_v52 = vpop.f32.mrf.mxu2  ;;  %v14761_v42 = vld [vmem:[#allocation423_spill] sm:$0xff] }
 0x485   :  { %v3072_v2 = vmul.f32 %v14753_v20, %v14752_v41  ;;  %v3080_v35 = vand.u32 2147483648, %v14754_v4  ;;  %v12625_v48 = vmul.f32 %v3891_v56, %v3067_v5  ;;  %vm12627_vm2 = vmor %vm3074_vm0, %vm3075_vm1  ;;  %v3764_v50 = vmul.f32 %v14758_v55, %v208_v44  ;;  %v12644_v41 = vpop.f32.mrf.mxu1  ;;  %v7558_v56 = vld [vmem:[#allocation2 + $0x250] sm:$0xff]  ;;  %v7559_v4 = vld [vmem:[#allocation2 + $0x280] sm:$0xff] }
 0x486   :  { %4793 = vst [vmem:[#allocation6 + $0x518] sm:$0xff] %v4729_v62  ;;  %v3828_v13 = vmul.f32 %v14759_v36, %v1786_v1  ;;  %v4602_v43 = vmul.f32 %v14760_v34, %v208_v44  ;;  %vm3079_vm3 = vcmp.eq.f32.partialorder %v3078_v0, 8.507059e+37  ;;  %v4666_v22 = vmul.f32 %v14761_v42, %v1786_v1  ;;  %v14762_v62 = vld [vmem:[#allocation11_spill] sm:$0xff]  ;;  %v14763_v5 = vld [vmem:[#allocation316_spill] sm:$0xff]  ;;  %v7560_v36 = vld [vmem:[#allocation2 + $0x258] sm:$0xff] }
 0x487   :  { %v3073_v51 = vadd.f32 %v14753_v20, %v3072_v2  ;;  %14755 = vst [vmem:[#allocation63_spill] sm:$0xff] %v12625_v48  ;;  %v3081_v15 = vor.u32 1.1754944e-38, %v3080_v35  ;;  %v3924_v44 = vmul.f32 %v7558_v56, %v14762_v62  ;;  %v3926_v34 = vmul.f32 %v7559_v4, %v14763_v5  ;;  %v14764_v48 = vld [vmem:[#allocation312_spill] sm:$0xff]  ;;  %v14767_v42 = vld [vmem:[#allocation317_spill] sm:$0xff] }
 0x488   :  { %v3892_v2 = vadd.f32 %v3828_v13, %v3764_v50  ;;  %v3925_v55 = vmul.f32 %v7560_v36, %v14764_v48  ;;  %v1964_v1 = vadd.f32 %v12577_v17, %v12575_v37  ;;  %v14766_v50 = vld [vmem:[#allocation310_spill] sm:$0xff]  ;;  %v14768_v62 = vld [vmem:[#allocation313_spill] sm:$0xff]  ;;  %v209_v4 = vld [vmem:[#allocation2 + $0x548] sm:$0xff] }
 0x489   :  { %v3077_v16 = vsel %vm12627_vm2, %v14753_v20, %v3073_v51  ;;  %v4730_v20 = vadd.f32 %v4666_v22, %v4602_v43  ;;  %v7561_v51 = vld [vmem:[#allocation2 + $0x288] sm:$0xff]  ;;  %v3988_v13 = vadd.f32 %v14766_v50, %v3924_v44  ;;  %v3990_v56 = vadd.f32 %v14767_v42, %v3926_v34  ;;  %v14769_v36 = vld [vmem:[#allocation213_spill] sm:$0xff]  ;;  %v14773_v22 = vld [vmem:[#allocation426_spill] sm:$0xff] }
 0x48a   :  { %v3082_v49 = vsel %vm3079_vm3, %v3081_v15, %v3077_v16  ;;  %v3927_v0 = vmul.f32 %v7561_v51, %v14419_v3  ;;  %v3989_v14 = vadd.f32 %v14768_v62, %v3925_v55  ;;  %v14770_v43 = vsub.f32 1.0, %v14769_v36  ;;  %v14771_v16 = vld [vmem:[#allocation211_spill] sm:$0xff]  ;;  %v14772_v3 = vld [vmem:[#allocation197_spill] sm:$0xff]  ;;  %v14775_v5 = vld [vmem:[#allocation428_spill] sm:$0xff] }
 0x48b   :  { %v12652_v35 = vmul.f32 %v3892_v2, %v3082_v49  ;;  %4794 = vst [vmem:[#allocation6 + $0x540] sm:$0xff] %v4730_v20  ;;  %vm3089_vm4 = vweird.f32 %v14772_v3  ;;  %vm3090_vm5 = vweird.f32 %v14771_v16  ;;  %7458 = vrcp.f32 %v3988_v13  ;;  %v14774_v44 = vld [vmem:[#allocation427_spill] sm:$0xff]  ;;  %v14776_v20 = vld [vmem:[#allocation429_spill] sm:$0xff]  ;;  %v14777_v36 = vld [vmem:[#allocation28_spill] sm:$0xff] }
 0x48c   :  { %v3991_v48 = vadd.f32 %v14420_v59, %v3927_v0  ;;  %v3087_v15 = vmul.f32 %v14771_v16, %v14770_v43  ;;  %v3093_v37 = vand.u32 2147483647, %v14772_v3  ;;  %v3095_v17 = vand.u32 2147483648, %v14772_v3  ;;  %vm3091_vm6 = vmor %vm3089_vm4, %vm3090_vm5  ;;  %v214_v13 = vld [vmem:[#allocation2 + $0x570] sm:$0xff]  ;;  %v12677_v3 = vpop.f32.mrf.mxu2 }
 0x48d   :  { %14765 = vst [vmem:[#allocation53_spill] sm:$0xff] %v12652_v35  ;;  %v3765_v2 = vmul.f32 %v14773_v22, %v209_v4  ;;  %7460 = vrcp.f32 %v3990_v56  ;;  %v3829_v59 = vmul.f32 %v14774_v44, %v1964_v1  ;;  %v4603_v34 = vmul.f32 %v14775_v5, %v209_v4  ;;  %v14783_v5 = vld [vmem:[#allocation431_spill] sm:$0xff] }
 0x48e   :  { %v3088_v55 = vadd.f32 %v14771_v16, %v3087_v15  ;;  %7462 = vrcp.f32 %v3989_v14  ;;  %vm3094_vm7 = vcmp.eq.f32.partialorder %v3093_v37, 8.507059e+37  ;;  %v3096_v49 = vor.u32 1.1754944e-38, %v3095_v17  ;;  %v14779_v15 = vld [vmem:[#allocation212_spill] sm:$0xff]  ;;  %v12679_v37 = vpop.f32.mrf.mxu3 }
 0x48f   :  { %v4667_v51 = vmul.f32 %v14776_v20, %v1964_v1  ;;  %7464 = vrcp.f32 %v3991_v48  ;;  %v3893_v50 = vadd.f32 %v3829_v59, %v3765_v2  ;;  %v1788_v42 = vadd.f32 %v12586_v47, %v12584_v11  ;;  %v14780_v14 = vld [vmem:[#allocation200_spill] sm:$0xff]  ;;  %v12686_v11 = vpop.f32.mrf.mxu0 }
 0x490   :  { %v3092_v0 = vsel %vm3091_vm6, %v14771_v16, %v3088_v55  ;;  %v14778_v43 = vsub.f32 1.0, %v14777_v36  ;;  %vm3104_vm8 = vweird.f32 %v14780_v14  ;;  %vm3105_vm9 = vweird.f32 %v14779_v15  ;;  %v12688_v16 = vpop.f32.mrf.mxu1  ;;  %v14782_v55 = vld [vmem:[#allocation430_spill] sm:$0xff]  ;;  %v14786_v36 = vld [vmem:[#allocation433_spill] sm:$0xff] }
 0x491   :  { %v3097_v56 = vsel %vm3094_vm7, %v3096_v49, %v3092_v0  ;;  %v4731_v62 = vadd.f32 %v4667_v51, %v4603_v34  ;;  %v3108_v48 = vand.u32 2147483647, %v14780_v14  ;;  %v3110_v47 = vand.u32 2147483648, %v14780_v14  ;;  %v7459_v17 = vpop.eup %7458  ;;  %v14784_v49 = vld [vmem:[#allocation432_spill] sm:$0xff]  ;;  %vm3106_vm10 = vmor %vm3104_vm8, %vm3105_vm9  ;;  %v14788_v14 = vld [vmem:[#allocation217_spill] sm:$0xff] }
 0x492   :  { %v3102_v4 = vmul.f32 %v14779_v15, %v14778_v43  ;;  %v12681_v1 = vmul.f32 %v3893_v50, %v3097_v56  ;;  %v3766_v59 = vmul.f32 %v14782_v55, %v214_v13  ;;  %v3830_v34 = vmul.f32 %v14783_v5, %v1788_v42  ;;  %v14785_v0 = vld [vmem:[#allocation232_spill] sm:$0xff] }
 0x493   :  { %4795 = vst [vmem:[#allocation6 + $0x548] sm:$0xff] %v4731_v62  ;;  %v4604_v20 = vmul.f32 %v14784_v49, %v214_v13  ;;  %v7461_v51 = vpop.eup %7460  ;;  %v5210_v50 = vmul.f32 %v7459_v17, %v14785_v0  ;;  %vm3109_vm11 = vcmp.eq.f32.partialorder %v3108_v48, 8.507059e+37  ;;  %v3111_v56 = vor.u32 1.1754944e-38, %v3110_v47  ;;  %v14787_v49 = vld [vmem:[#allocation234_spill] sm:$0xff]  ;;  %v14790_v48 = vld [vmem:[#allocation27_spill] sm:$0xff] }
 0x494   :  { %14781 = vst [vmem:[#allocation245_spill] sm:$0xff] %v12681_v1  ;;  %v3103_v2 = vadd.f32 %v14779_v15, %v3102_v4  ;;  %v4668_v43 = vmul.f32 %v14786_v36, %v1788_v42  ;;  %v7463_v1 = vpop.eup %7462  ;;  %v5212_v62 = vmul.f32 %v7461_v51, %v11927_v26  ;;  %v3894_v35 = vadd.f32 %v3830_v34, %v3766_v59  ;;  %v215_v26 = vld [vmem:[#allocation2 + $0x578] sm:$0xff]  ;;  %v12721_v51 = vpop.f32.mrf.mxu2 }
 0x495   :  { %v1966_v44 = vadd.f32 %v12636_v45, %v12634_v52  ;;  %v7465_v13 = vpop.eup %7464  ;;  %v5211_v22 = vmul.f32 %v7463_v1, %v14787_v49  ;;  %v14789_v5 = vsub.f32 1.0, %v14788_v14  ;;  %vm3120_vm13 = vweird.f32 %v14790_v48  ;;  %v14798_v49 = vld [vmem:[#allocation437_spill] sm:$0xff]  ;;  %v14802_v59 = vld [vmem:[#allocation438_spill] sm:$0xff] }
 0x496   :  { %v3107_v4 = vsel %vm3106_vm10, %v14779_v15, %v3103_v2  ;;  %v4732_v0 = vadd.f32 %v4668_v43, %v4604_v20  ;;  %v5262_v55 = vpack.c.bf16 %v5212_v62, %v5210_v50  ;;  %v5213_v42 = vmul.f32 %v7465_v13, %v11946_v25  ;;  %v14791_v15 = vld [vmem:[#allocation205_spill] sm:$0xff]  ;;  %v14794_v25 = vld [vmem:[#allocation434_spill] sm:$0xff]  ;;  %v12723_v50 = vpop.f32.mrf.mxu3 }
 0x497   :  { %v3112_v17 = vsel %vm3109_vm11, %v3111_v56, %v3107_v4  ;;  %v3117_v47 = vmul.f32 %v14790_v48, %v14789_v5  ;;  %vm3119_vm12 = vweird.f32 %v14791_v15  ;;  %v3123_v45 = vand.u32 2147483647, %v14791_v15  ;;  %v14795_v5 = vld [vmem:[#allocation435_spill] sm:$0xff]  ;;  %v14796_v20 = vld [vmem:[#allocation210_spill] sm:$0xff]  ;;  %v12729_v62 = vpop.f32.mrf.mxu0 }
 0x498   :  { %v12707_v36 = vmul.f32 %v3894_v35, %v3112_v17  ;;  %4796 = vst [vmem:[#allocation6 + $0x570] sm:$0xff] %v4732_v0  ;;  %v3125_v1 = vand.u32 2147483648, %v14791_v15  ;;  %5512 = vmatmul.bf16.gmra.mxu0 %v5262_v55  ;;  %v5263_v2 = vpack.c.bf16 %v5213_v42, %v5211_v22  ;;  %5690 = vmatmul.bf16.gmra.mxu2 %v5262_v55  ;;  %vm12714_vm14 = vmor %vm3119_vm12, %vm3120_vm13  ;;  %vm3134_vm15 = vweird.f32 %v14796_v20  ;;  %v14797_v55 = vld [vmem:[#allocation436_spill] sm:$0xff]  ;;  %v12731_v4 = vpop.f32.mrf.mxu1  ;;  %v220_v0 = vld [vmem:[#allocation2 + $0x5a0] sm:$0xff] }
 0x499   :  { %v3118_v52 = vadd.f32 %v14790_v48, %v3117_v47  ;;  %v3767_v35 = vmul.f32 %v14794_v25, %v215_v26  ;;  %v3831_v34 = vmul.f32 %v14795_v5, %v1966_v44  ;;  %vm3124_vm0 = vcmp.eq.f32.partialorder %v3123_v45, 8.507059e+37  ;;  %v14799_v47 = vld [vmem:[#allocation215_spill] sm:$0xff]  ;;  %v14800_v42 = vld [vmem:[#allocation218_spill] sm:$0xff] }
 0x49a   :  { %v3126_v22 = vor.u32 1.1754944e-38, %v3125_v1  ;;  %v4605_v43 = vmul.f32 %v14797_v55, %v215_v26  ;;  %5601 = vmatmul.bf16.gmra.mxu1 %v5263_v2  ;;  %5779 = vmatmul.bf16.gmra.mxu3 %v5263_v2  ;;  %v4669_v17 = vmul.f32 %v14798_v49, %v1966_v44  ;;  %v1791_v14 = vadd.f32 %v12644_v41, %v12642_v8 }
 0x49b   :  { %v3122_v56 = vsel %vm12714_vm14, %v14790_v48, %v3118_v52  ;;  %v3895_v13 = vadd.f32 %v3831_v34, %v3767_v35  ;;  %vm3135_vm1 = vweird.f32 %v14799_v47  ;;  %v14801_v15 = vsub.f32 1.0, %v14800_v42  ;;  %v14803_v35 = vld [vmem:[#allocation439_spill] sm:$0xff] }
 0x49c   :  { %v3127_v48 = vsel %vm3124_vm0, %v3126_v22, %v3122_v56  ;;  %v3138_v52 = vand.u32 2147483647, %v14796_v20  ;;  %v3140_v45 = vand.u32 2147483648, %v14796_v20  ;;  %v4733_v1 = vadd.f32 %v4669_v17, %v4605_v43  ;;  %v14806_v22 = vld [vmem:[#allocation440_spill] sm:$0xff]  ;;  %vm3136_vm3 = vmor %vm3134_vm15, %vm3135_vm1  ;;  %v7562_v17 = vld [vmem:[#allocation2 + $0x2b0] sm:$0xff] }
 0x49d   :  { %v3132_v26 = vmul.f32 %v14799_v47, %v14801_v15  ;;  %v12742_v2 = vmul.f32 %v3895_v13, %v3127_v48  ;;  %v3768_v44 = vmul.f32 %v14802_v59, %v220_v0  ;;  %v3832_v34 = vmul.f32 %v14803_v35, %v1791_v14  ;;  %v14807_v13 = vld [vmem:[#allocation441_spill] sm:$0xff]  ;;  %v7563_v42 = vld [vmem:[#allocation2 + $0x2e0] sm:$0xff]  ;;  %v7565_v35 = vld [vmem:[#allocation2 + $0x2e8] sm:$0xff] }
 0x49e   :  { %vm12747_vm2 = vcmp.eq.f32.partialorder %v3138_v52, 8.507059e+37  ;;  %v3141_v56 = vor.u32 1.1754944e-38, %v3140_v45  ;;  %v4606_v55 = vmul.f32 %v14806_v22, %v220_v0  ;;  %4797 = vst [vmem:[#allocation6 + $0x578] sm:$0xff] %v4733_v1  ;;  %v4670_v49 = vmul.f32 %v14807_v13, %v1791_v14  ;;  %v7564_v52 = vld [vmem:[#allocation2 + $0x2b8] sm:$0xff]  ;;  %v221_v22 = vld [vmem:[#allocation2 + $0x5a8] sm:$0xff] }
 0x49f   :  { %v3133_v8 = vadd.f32 %v14799_v47, %v3132_v26  ;;  %v3896_v43 = vadd.f32 %v3832_v34, %v3768_v44  ;;  %v3928_v48 = vmul.f32 %v7562_v17, %v14427_v12  ;;  %v3930_v15 = vmul.f32 %v7563_v42, %v14447_v53  ;;  %v14811_v13 = vld [vmem:[#allocation222_spill] sm:$0xff]  ;;  %v14816_v42 = vld [vmem:[#allocation43_spill] sm:$0xff] }
 0x4a0   :  { %v3929_v45 = vmul.f32 %v7564_v52, %v14438_v9  ;;  %v3931_v0 = vmul.f32 %v7565_v35, %v14460_v57  ;;  %v1969_v20 = vadd.f32 %v12679_v37, %v12677_v3  ;;  %v4734_v1 = vadd.f32 %v4670_v49, %v4606_v55  ;;  %v14813_v35 = vld [vmem:[#allocation219_spill] sm:$0xff]  ;;  %v14814_v3 = vld [vmem:[#allocation214_spill] sm:$0xff]  ;;  %v12778_v37 = vpop.f32.mrf.mxu3  ;;  %v12783_v49 = vpop.f32.mrf.mxu0 }
 0x4a1   :  { %v3137_v26 = vsel %vm3136_vm3, %v14799_v47, %v3133_v8  ;;  %v3992_v12 = vadd.f32 %v14428_v46, %v3928_v48  ;;  %v3994_v44 = vadd.f32 %v14450_v6, %v3930_v15  ;;  %v14809_v47 = vld [vmem:[#allocation327_spill] sm:$0xff]  ;;  %v14810_v8 = vld [vmem:[#allocation333_spill] sm:$0xff]  ;;  %v14812_v57 = vsub.f32 1.0, %v14811_v13  ;;  %v12776_v6 = vpop.f32.mrf.mxu2  ;;  %v14815_v55 = vld [vmem:[#allocation442_spill] sm:$0xff]  ;;  %v12785_v48 = vpop.f32.mrf.mxu1 }
 0x4a2   :  { %v3142_v14 = vsel %vm12747_vm2, %v3141_v56, %v3137_v26  ;;  %v3993_v34 = vadd.f32 %v14809_v47, %v3929_v45  ;;  %v3995_v9 = vadd.f32 %v14810_v8, %v3931_v0  ;;  %4798 = vst [vmem:[#allocation6 + $0x5a0] sm:$0xff] %v4734_v1  ;;  %vm3149_vm4 = vweird.f32 %v14814_v3  ;;  %v14817_v26 = vld [vmem:[#allocation443_spill] sm:$0xff] }
 0x4a3   :  { %v12766_v53 = vmul.f32 %v3896_v43, %v3142_v14  ;;  %v3147_v17 = vmul.f32 %v14813_v35, %v14812_v57  ;;  %7466 = vrcp.f32 %v3992_v12  ;;  %vm3150_vm5 = vweird.f32 %v14813_v35  ;;  %v14818_v14 = vld [vmem:[#allocation444_spill] sm:$0xff]  ;;  %v14819_v8 = vld [vmem:[#allocation223_spill] sm:$0xff] }
 0x4a4   :  { %v3153_v46 = vand.u32 2147483647, %v14814_v3  ;;  %7468 = vrcp.f32 %v3994_v44  ;;  %v3155_v56 = vand.u32 2147483648, %v14814_v3  ;;  %v3769_v43 = vmul.f32 %v14815_v55, %v221_v22  ;;  %vm3151_vm6 = vmor %vm3149_vm4, %vm3150_vm5  ;;  %v226_v44 = vld [vmem:[#allocation2 + $0x5d0] sm:$0xff] }
 0x4a5   :  { %14808 = vst [vmem:[#allocation246_spill] sm:$0xff] %v12766_v53  ;;  %v3148_v41 = vadd.f32 %v14813_v35, %v3147_v17  ;;  %7470 = vrcp.f32 %v3993_v34  ;;  %v3833_v15 = vmul.f32 %v14816_v42, %v1969_v20  ;;  %v4607_v52 = vmul.f32 %v14817_v26, %v221_v22  ;;  %v14821_v34 = vld [vmem:[#allocation221_spill] sm:$0xff]  ;;  %v14822_v17 = vld [vmem:[#allocation216_spill] sm:$0xff] }
 0x4a6   :  { %vm3154_vm7 = vcmp.eq.f32.partialorder %v3153_v46, 8.507059e+37  ;;  %7472 = vrcp.f32 %v3995_v9  ;;  %v3156_v0 = vor.u32 1.1754944e-38, %v3155_v56  ;;  %v4671_v1 = vmul.f32 %v14818_v14, %v1969_v20  ;;  %v14831_v14 = vld [vmem:[#allocation445_spill] sm:$0xff] }
 0x4a7   :  { %v3152_v45 = vsel %vm3151_vm6, %v14813_v35, %v3148_v41  ;;  %v3897_v12 = vadd.f32 %v3833_v15, %v3769_v43  ;;  %v1793_v47 = vadd.f32 %v12688_v16, %v12686_v11  ;;  %v14820_v13 = vsub.f32 1.0, %v14819_v8  ;;  %v14824_v11 = vld [vmem:[#allocation446_spill] sm:$0xff]  ;;  %v14825_v43 = vld [vmem:[#allocation95_spill] sm:$0xff]  ;;  %v14837_v55 = vld [vmem:[#allocation29_spill] sm:$0xff] }
 0x4a8   :  { %vm3164_vm8 = vweird.f32 %v14822_v17  ;;  %v3157_v3 = vsel %vm3154_vm7, %v3156_v0, %v3152_v45  ;;  %v4735_v46 = vadd.f32 %v4671_v1, %v4607_v52  ;;  %vm3165_vm9 = vweird.f32 %v14821_v34  ;;  %v14830_v45 = vld [vmem:[#allocation447_spill] sm:$0xff]  ;;  %v14832_v8 = vld [vmem:[#allocation46_spill] sm:$0xff] }
 0x4a9   :  { %v3162_v57 = vmul.f32 %v14821_v34, %v14820_v13  ;;  %v3168_v9 = vand.u32 2147483647, %v14822_v17  ;;  %v7467_v22 = vpop.eup %7466  ;;  %v12799_v35 = vmul.f32 %v3897_v12, %v3157_v3  ;;  %v3170_v41 = vand.u32 2147483648, %v14822_v17  ;;  %vm12805_vm10 = vmor %vm3164_vm8, %vm3165_vm9  ;;  %v14833_v3 = vld [vmem:[#allocation87_spill] sm:$0xff] }
 0x4aa   :  { %v3770_v16 = vmul.f32 %v14824_v11, %v226_v44  ;;  %v7469_v56 = vpop.eup %7468  ;;  %v5214_v15 = vmul.f32 %v7467_v22, %v14825_v43  ;;  %4799 = vst [vmem:[#allocation6 + $0x5a8] sm:$0xff] %v4735_v46  ;;  %v3834_v0 = vmul.f32 %v14830_v45, %v1793_v47  ;;  %v4608_v1 = vmul.f32 %v14831_v14, %v226_v44  ;;  %v5663_v22 = vpop.f32.mrf.mxu2  ;;  %v14835_v44 = vld [vmem:[#allocation356_spill] sm:$0xff] }
 0x4ab   :  { %14823 = vst [vmem:[#allocation34_spill] sm:$0xff] %v12799_v35  ;;  %v3163_v20 = vadd.f32 %v14821_v34, %v3162_v57  ;;  %vm12809_vm11 = vcmp.eq.f32.partialorder %v3168_v9, 8.507059e+37  ;;  %v7471_v12 = vpop.eup %7470  ;;  %v5216_v13 = vmul.f32 %v7469_v56, %v14832_v8  ;;  %v3171_v17 = vor.u32 1.1754944e-38, %v3170_v41  ;;  %v5752_v43 = vpop.f32.mrf.mxu3  ;;  %v14834_v35 = vld [vmem:[#allocation52_spill] sm:$0xff] }
 0x4ac   :  { %v4672_v46 = vmul.f32 %v14833_v3, %v1793_v47  ;;  %v7473_v9 = vpop.eup %7472  ;;  %v5215_v53 = vmul.f32 %v7471_v12, %v14834_v35  ;;  %v3898_v42 = vadd.f32 %v3834_v0, %v3770_v16  ;;  %v1971_v45 = vadd.f32 %v12723_v50, %v12721_v51  ;;  %v5488_v8 = vpop.f32.mrf.mxu0  ;;  %v227_v3 = vld [vmem:[#allocation2 + $0x5d8] sm:$0xff]  ;;  %v14839_v16 = vld [vmem:[#allocation220_spill] sm:$0xff]  ;;  %v14848_v50 = vld [vmem:[#allocation345_spill] sm:$0xff] }
 0x4ad   :  { %v3167_v57 = vsel %vm12805_vm10, %v14821_v34, %v3163_v20  ;;  %v14836_v14 = vsub.f32 1.0, %v14835_v44  ;;  %v5577_v11 = vpop.f32.mrf.mxu1  ;;  %v5264_v26 = vpack.c.bf16 %v5216_v13, %v5214_v15  ;;  %v14838_v34 = vld [vmem:[#allocation233_spill] sm:$0xff]  ;;  %vm3179_vm12 = vweird.f32 %v14839_v16  ;;  %v14843_v12 = vld [vmem:[#allocation30_spill] sm:$0xff] }
 0x4ae   :  { %v5217_v20 = vmul.f32 %v7473_v9, %v14838_v34  ;;  %v3172_v47 = vsel %vm12809_vm11, %v3171_v17, %v3167_v57  ;;  %v4736_v41 = vadd.f32 %v4672_v46, %v4608_v1  ;;  %vm3180_vm13 = vweird.f32 %v14837_v55  ;;  %v14844_v57 = vld [vmem:[#allocation224_spill] sm:$0xff]  ;;  %v14845_v17 = vld [vmem:[#allocation226_spill] sm:$0xff] }
 0x4af   :  { %v3177_v56 = vmul.f32 %v14837_v55, %v14836_v14  ;;  %v12829_v59 = vmul.f32 %v3898_v42, %v3172_v47  ;;  %5517 = vmatmul.bf16.gmra.mxu0 %v5264_v26  ;;  %5695 = vmatmul.bf16.gmra.mxu2 %v5264_v26  ;;  %vm12834_vm14 = vmor %vm3179_vm12, %vm3180_vm13  ;;  %v3183_v15 = vand.u32 2147483647, %v14839_v16  ;;  %v3185_v52 = vand.u32 2147483648, %v14839_v16  ;;  %v14842_v42 = vld [vmem:[#allocation48_spill] sm:$0xff]  ;;  %v7566_v14 = vld [vmem:[#allocation2 + $0x310] sm:$0xff] }
 0x4b0   :  { %v5265_v51 = vpack.c.bf16 %v5217_v20, %v5215_v53  ;;  %4800 = vst [vmem:[#allocation6 + $0x5d0] sm:$0xff] %v4736_v41  ;;  %v3771_v0 = vmul.f32 %v14842_v42, %v227_v3  ;;  %v3835_v13 = vmul.f32 %v14843_v12, %v1971_v45  ;;  %v4609_v53 = vmul.f32 %v14844_v57, %v227_v3  ;;  %v7567_v47 = vld [vmem:[#allocation2 + $0x340] sm:$0xff]  ;;  %v7568_v41 = vld [vmem:[#allocation2 + $0x318] sm:$0xff]  ;;  %v14850_v57 = vld [vmem:[#allocation17_spill] sm:$0xff] }
 0x4b1   :  { %v3178_v35 = vadd.f32 %v14837_v55, %v3177_v56  ;;  %v4673_v46 = vmul.f32 %v14845_v17, %v1971_v45  ;;  %vm3184_vm15 = vcmp.eq.f32.partialorder %v3183_v15, 8.507059e+37  ;;  %v3186_v9 = vor.u32 1.1754944e-38, %v3185_v52  ;;  %v14846_v56 = vld [vmem:[#allocation336_spill] sm:$0xff]  ;;  %v14847_v45 = vld [vmem:[#allocation337_spill] sm:$0xff] }
 0x4b2   :  { %5606 = vmatmul.bf16.gmra.mxu1 %v5265_v51  ;;  %5784 = vmatmul.bf16.gmra.mxu3 %v5265_v51  ;;  %v5573_v44 = vadd.f32 %v12731_v4, %v12729_v62  ;;  %v3932_v26 = vmul.f32 %v7566_v14, %v14846_v56  ;;  %v3899_v34 = vadd.f32 %v3835_v13, %v3771_v0  ;;  %v7569_v51 = vld [vmem:[#allocation2 + $0x348] sm:$0xff]  ;;  %v5666_v4 = vpop.f32.mrf.mxu2  ;;  %v7571_v14 = vld [vmem:[#allocation2 + $0x3a0] sm:$0xff] }
 0x4b3   :  { %v3182_v1 = vsel %vm12834_vm14, %v14837_v55, %v3178_v35  ;;  %v4737_v20 = vadd.f32 %v4673_v46, %v4609_v53  ;;  %v3934_v55 = vmul.f32 %v7567_v47, %v14486_v61  ;;  %v3933_v3 = vmul.f32 %v7568_v41, %v14479_v39  ;;  %v5755_v52 = vpop.f32.mrf.mxu3  ;;  %v14849_v13 = vld [vmem:[#allocation340_spill] sm:$0xff]  ;;  %v7575_v47 = vld [vmem:[#allocation2 + $0x400] sm:$0xff] }
 0x4b4   :  { %v3187_v35 = vsel %vm3184_vm15, %v3186_v9, %v3182_v1  ;;  %5830 = vst [vmem:[#allocation5] sm:$0xff] %v5573_v44  ;;  %v3996_v16 = vadd.f32 %v14847_v45, %v3932_v26  ;;  %v3935_v15 = vmul.f32 %v7569_v51, %v14848_v50  ;;  %v5751_v62 = vadd.f32 %v12778_v37, %v12776_v6  ;;  %v5490_v1 = vpop.f32.mrf.mxu0  ;;  %v7570_v37 = vld [vmem:[#allocation2 + $0x370] sm:$0xff]  ;;  %v7572_v26 = vld [vmem:[#allocation2 + $0x378] sm:$0xff]  ;;  %v14852_v45 = vld [vmem:[#allocation235_spill] sm:$0xff] }
 0x4b5   :  { %4801 = vst [vmem:[#allocation6 + $0x5d8] sm:$0xff] %v4737_v20  ;;  %v12856_v0 = vmul.f32 %v3899_v34, %v3187_v35  ;;  %v3998_v61 = vadd.f32 %v14849_v13, %v3934_v55  ;;  %v3997_v53 = vadd.f32 %v14850_v57, %v3933_v3  ;;  %v5575_v39 = vadd.f32 %v12785_v48, %v12783_v49  ;;  %v5579_v17 = vpop.f32.mrf.mxu1  ;;  %v7573_v49 = vld [vmem:[#allocation2 + $0x3a8] sm:$0xff]  ;;  %v14853_v50 = vld [vmem:[#allocation37_spill] sm:$0xff] }
 0x4b6   :  { %7474 = vrcp.f32 %v3996_v16  ;;  %v3999_v46 = vadd.f32 %v14498_v24, %v3935_v15  ;;  %5831 = vst [vmem:[#allocation5 + $0x8] sm:$0xff] %v5751_v62  ;;  %v5753_v9 = vadd.f32 %v5752_v43, %v5663_v22  ;;  %v5578_v6 = vadd.f32 %v5577_v11, %v5488_v8  ;;  %v7574_v8 = vld [vmem:[#allocation2 + $0x3d0] sm:$0xff]  ;;  %v14854_v62 = vld [vmem:[#allocation236_spill] sm:$0xff]  ;;  %5919 = dma.vmem_to_hbm [thread:$0]  %s5912_s23, 24576, %s5914_s25, [#allocation7], %s7677_s26, %s7677_s26, %s7678_s27  }
 0x4b7   :  { %7476 = vrcp.f32 %v3998_v61  ;;  %5832 = vst [vmem:[#allocation5 + $0x10] sm:$0xff] %v5575_v39  ;;  %v3936_v44 = vmul.f32 %v7570_v37, %v14506_v19  ;;  %v3938_v56 = vmul.f32 %v7571_v14, %v14528_v60  ;;  %v3937_v34 = vmul.f32 %v7572_v26, %v14519_v27  ;;  %v14851_v19 = vld [vmem:[#allocation352_spill] sm:$0xff]  ;;  %v14857_v26 = vld [vmem:[#allocation55_spill] sm:$0xff]  ;;  %s5898_s26 = sshll.u32 %s7680_s6, 4  ;;  %s5899_s26 = int_to_ptr.vmem [resolvable:$true] %s5898_s26 }
 0x4b8   :  { %7478 = vrcp.f32 %v3997_v53  ;;  %5833 = vst [vmem:[#allocation5 + $0x18] sm:$0xff] %v5753_v9  ;;  %v3939_v48 = vmul.f32 %v7573_v49, %v14542_v63  ;;  %v5756_v24 = vadd.f32 %v5755_v52, %v5666_v4  ;;  %v5580_v20 = vadd.f32 %v5579_v17, %v5490_v1  ;;  %v14856_v1 = vld [vmem:[#allocation98_spill] sm:$0xff] }
 0x4b9   :  { %7480 = vrcp.f32 %v3999_v46  ;;  %5834 = vst [vmem:[#allocation5 + $0x20] sm:$0xff] %v5578_v6  ;;  %v4000_v11 = vadd.f32 %v14511_v21, %v3936_v44  ;;  %v4002_v22 = vadd.f32 %v14533_v32, %v3938_v56  ;;  %v4001_v43 = vadd.f32 %v14851_v19, %v3937_v34  ;;  %v7576_v46 = vld [vmem:[#allocation2 + $0x3d8] sm:$0xff]  ;;  %v7577_v44 = vld [vmem:[#allocation2 + $0x408] sm:$0xff] }
 0x4ba   :  { %v4003_v60 = vadd.f32 %v14543_v38, %v3939_v48  ;;  %5835 = vst [vmem:[#allocation5 + $0x28] sm:$0xff] %v5756_v24  ;;  %v3940_v27 = vmul.f32 %v7574_v8, %v10602_v40  ;;  %v3942_v55 = vmul.f32 %v7575_v47, %v14569_v23  ;;  %v5668_v41 = vpop.f32.mrf.mxu2  ;;  %v3941_v9 = vmul.f32 %v7576_v46, %v14560_v29  ;;  %v7578_v24 = vld [vmem:[#allocation2 + $0x430] sm:$0xff]  ;;  %v14858_v29 = vld [vmem:[#allocation47_spill] sm:$0xff] }
 0x4bb   :  { %7482 = vrcp.f32 %v4000_v11  ;;  %5836 = vst [vmem:[#allocation5 + $0x30] sm:$0xff] %v5580_v20  ;;  %v5757_v3 = vpop.f32.mrf.mxu3  ;;  %v3943_v14 = vmul.f32 %v7577_v44, %v14582_v18  ;;  %v3944_v20 = vmul.f32 %v7578_v24, %v14591_v33  ;;  %v7579_v18 = vld [vmem:[#allocation2 + $0x460] sm:$0xff]  ;;  %v14863_v33 = vld [vmem:[#allocation240_spill] sm:$0xff] }
 0x4bc   :  { %v7475_v63 = vpop.eup %7474  ;;  %7484 = vrcp.f32 %v4002_v22  ;;  %v4004_v21 = vadd.f32 %v14552_v7, %v3940_v27  ;;  %v4006_v32 = vadd.f32 %v14570_v54, %v3942_v55  ;;  %v5758_v16 = vadd.f32 %v5757_v3, %v5668_v41  ;;  %v5493_v51 = vpop.f32.mrf.mxu0  ;;  %v14855_v7 = vld [vmem:[#allocation237_spill] sm:$0xff]  ;;  %v14860_v27 = vld [vmem:[#allocation383_spill] sm:$0xff]  ;;  %v7581_v44 = vld [vmem:[#allocation2 + $0x468] sm:$0xff] }
 0x4bd   :  { %v7477_v35 = vpop.eup %7476  ;;  %v5218_v38 = vmul.f32 %v7475_v63, %v14852_v45  ;;  %7486 = vrcp.f32 %v4001_v43  ;;  %v5582_v52 = vpop.f32.mrf.mxu1  ;;  %v4005_v49 = vadd.f32 %v14561_v30, %v3941_v9  ;;  %v14859_v43 = vld [vmem:[#allocation371_spill] sm:$0xff]  ;;  %v3946_v47 = vmul.f32 %v7579_v18, %v14860_v27  ;;  %v14861_v63 = vld [vmem:[#allocation38_spill] sm:$0xff] }
 0x4be   :  { %v7479_v40 = vpop.eup %7478  ;;  %v5220_v15 = vmul.f32 %v7477_v35, %v14853_v50  ;;  %7488 = vrcp.f32 %v4003_v60  ;;  %5837 = vst [vmem:[#allocation5 + $0x38] sm:$0xff] %v5758_v16  ;;  %v5583_v54 = vadd.f32 %v5582_v52, %v5493_v51  ;;  %v14862_v3 = vld [vmem:[#allocation375_spill] sm:$0xff]  ;;  %v7580_v9 = vld [vmem:[#allocation2 + $0x438] sm:$0xff] }
 0x4bf   :  { %v7481_v23 = vpop.eup %7480  ;;  %v5219_v4 = vmul.f32 %v7479_v40, %v14854_v62  ;;  %7490 = vrcp.f32 %v4004_v21  ;;  %v4008_v21 = vadd.f32 %v14862_v3, %v3944_v20  ;;  %v14865_v62 = vld [vmem:[#allocation239_spill] sm:$0xff]  ;;  %v7582_v20 = vld [vmem:[#allocation2 + $0x490] sm:$0xff] }
 0x4c0   :  { %v5266_v13 = vpack.c.bf16 %v5220_v15, %v5218_v38  ;;  %v5221_v61 = vmul.f32 %v7481_v23, %v14855_v7  ;;  %7492 = vrcp.f32 %v4006_v32  ;;  %5838 = vst [vmem:[#allocation5 + $0x40] sm:$0xff] %v5583_v54  ;;  %v14864_v38 = vld [vmem:[#allocation384_spill] sm:$0xff]  ;;  %v14866_v7 = vld [vmem:[#allocation238_spill] sm:$0xff]  ;;  %v14875_v18 = vld [vmem:[#allocation399_spill] sm:$0xff] }
 0x4c1   :  { %v7483_v57 = vpop.eup %7482  ;;  %7494 = vrcp.f32 %v4005_v49  ;;  %v4010_v16 = vadd.f32 %v14864_v38, %v3946_v47 }
 0x4c2   :  { %v7485_v53 = vpop.eup %7484  ;;  %5522 = vmatmul.bf16.gmra.mxu0 %v5266_v13  ;;  %v5267_v39 = vpack.c.bf16 %v5221_v61, %v5219_v4  ;;  %5700 = vmatmul.bf16.gmra.mxu2 %v5266_v13  ;;  %v5222_v17 = vmul.f32 %v7483_v57, %v14856_v1  ;;  %v5671_v48 = vpop.f32.mrf.mxu2 }
 0x4c3   :  { %v7487_v6 = vpop.eup %7486  ;;  %v5224_v37 = vmul.f32 %v7485_v53, %v12176_v10  ;;  %v4007_v10 = vadd.f32 %v14859_v43, %v3943_v14  ;;  %v5760_v60 = vpop.f32.mrf.mxu3  ;;  %v14867_v53 = vld [vmem:[#allocation241_spill] sm:$0xff]  ;;  %v14869_v14 = vld [vmem:[#allocation386_spill] sm:$0xff] }
 0x4c4   :  { %v7489_v56 = vpop.eup %7488  ;;  %5611 = vmatmul.bf16.gmra.mxu1 %v5267_v39  ;;  %5789 = vmatmul.bf16.gmra.mxu3 %v5267_v39  ;;  %v5223_v34 = vmul.f32 %v7487_v6, %v14857_v26  ;;  %v5495_v8 = vpop.f32.mrf.mxu0  ;;  %v5761_v30 = vadd.f32 %v5760_v60, %v5671_v48  ;;  %v14868_v6 = vld [vmem:[#allocation378_spill] sm:$0xff]  ;;  %v14871_v48 = vld [vmem:[#allocation387_spill] sm:$0xff] }
 0x4c5   :  { %v7491_v11 = vpop.eup %7490  ;;  %v5268_v22 = vpack.c.bf16 %v5224_v37, %v5222_v17  ;;  %v5225_v19 = vmul.f32 %v7489_v56, %v14858_v29  ;;  %7496 = vrcp.f32 %v4007_v10  ;;  %v5584_v45 = vpop.f32.mrf.mxu1  ;;  %v3945_v37 = vmul.f32 %v7580_v9, %v14868_v6  ;;  %v14874_v60 = vld [vmem:[#allocation391_spill] sm:$0xff] }
 0x4c6   :  { %v7493_v55 = vpop.eup %7492  ;;  %v5226_v41 = vmul.f32 %v7491_v11, %v14861_v63  ;;  %5839 = vst [vmem:[#allocation5 + $0x48] sm:$0xff] %v5761_v30  ;;  %v5585_v51 = vadd.f32 %v5584_v45, %v5495_v8  ;;  %7498 = vrcp.f32 %v4008_v21  ;;  %v3947_v56 = vmul.f32 %v7581_v44, %v14869_v14  ;;  %v14872_v11 = vld [vmem:[#allocation390_spill] sm:$0xff]  ;;  %v14876_v21 = vld [vmem:[#allocation103_spill] sm:$0xff] }
 0x4c7   :  { %v5269_v32 = vpack.c.bf16 %v5225_v19, %v5223_v34  ;;  %v5228_v35 = vmul.f32 %v7493_v55, %v14863_v33  ;;  %7500 = vrcp.f32 %v4010_v16  ;;  %v7495_v50 = vpop.eup %7494  ;;  %v14870_v34 = vld [vmem:[#allocation379_spill] sm:$0xff]  ;;  %v14873_v19 = vld [vmem:[#allocation398_spill] sm:$0xff] }
 0x4c8   :  { %5840 = vst [vmem:[#allocation5 + $0x50] sm:$0xff] %v5585_v51  ;;  %v5227_v4 = vmul.f32 %v7495_v50, %v14865_v62  ;;  %v4009_v49 = vadd.f32 %v14870_v34, %v3945_v37  ;;  %v4011_v24 = vadd.f32 %v14871_v48, %v3947_v56  ;;  %v14877_v45 = vld [vmem:[#allocation58_spill] sm:$0xff]  ;;  %v14879_v62 = vld [vmem:[#allocation243_spill] sm:$0xff]  ;;  %v7586_v56 = vld [vmem:[#allocation2 + $0x4f0] sm:$0xff] }
 0x4c9   :  { %v5270_v40 = vpack.c.bf16 %v5228_v35, %v5226_v41  ;;  %v14878_v50 = vld [vmem:[#allocation50_spill] sm:$0xff]  ;;  %v14882_v6 = vld [vmem:[#allocation395_spill] sm:$0xff] }
 0x4ca   :  { %v5673_v15 = vpop.f32.mrf.mxu2  ;;  %7502 = vrcp.f32 %v4009_v49  ;;  %v14883_v44 = vld [vmem:[#allocation403_spill] sm:$0xff] }
 0x4cb   :  { %v7497_v23 = vpop.eup %7496  ;;  %v5762_v52 = vpop.f32.mrf.mxu3  ;;  %7504 = vrcp.f32 %v4011_v24  ;;  %v14885_v49 = vld [vmem:[#allocation415_spill] sm:$0xff]  ;;  %v14886_v24 = vld [vmem:[#allocation408_spill] sm:$0xff] }
 0x4cc   :  { %v7499_v13 = vpop.eup %7498  ;;  %v5229_v61 = vmul.f32 %v7497_v23, %v14866_v7  ;;  %v5763_v54 = vadd.f32 %v5762_v52, %v5673_v15  ;;  %v7584_v7 = vld [vmem:[#allocation2 + $0x498] sm:$0xff] }
 0x4cd   :  { %v7501_v57 = vpop.eup %7500  ;;  %v5230_v39 = vmul.f32 %v7499_v13, %v14867_v53  ;;  %v5498_v26 = vpop.f32.mrf.mxu0  ;;  %v14881_v53 = vld [vmem:[#allocation402_spill] sm:$0xff] }
 0x4ce   :  { %v5271_v1 = vpack.c.bf16 %v5229_v61, %v5227_v4  ;;  %5841 = vst [vmem:[#allocation5 + $0x58] sm:$0xff] %v5763_v54  ;;  %v5232_v17 = vmul.f32 %v7501_v57, %v12370_v31  ;;  %v3948_v31 = vmul.f32 %v7582_v20, %v14872_v11  ;;  %v14880_v61 = vld [vmem:[#allocation394_spill] sm:$0xff]  ;;  %v7585_v57 = vld [vmem:[#allocation2 + $0x4c8] sm:$0xff]  ;;  %v14887_v11 = vld [vmem:[#allocation417_spill] sm:$0xff] }
 0x4cf   :  { %v3949_v54 = vmul.f32 %v7584_v7, %v14880_v61 }
 0x4d0   :  { %v12897_v46 = vpack.c.bf16 %v5232_v17, %v5230_v39  ;;  %v5587_v29 = vpop.f32.mrf.mxu1  ;;  %v4012_v8 = vadd.f32 %v14874_v60, %v3948_v31  ;;  %v7503_v41 = vpop.eup %7502  ;;  %v3951_v39 = vmul.f32 %v7585_v57, %v14881_v53  ;;  %v14894_v53 = vld [vmem:[#allocation424_spill] sm:$0xff] }
 0x4d1   :  { %v5588_v10 = vadd.f32 %v5587_v29, %v5498_v26  ;;  %v7505_v3 = vpop.eup %7504  ;;  %v4013_v37 = vadd.f32 %v14882_v6, %v3949_v54  ;;  %v14884_v26 = vld [vmem:[#allocation407_spill] sm:$0xff] }
 0x4d2   :  { %5527 = vmatmul.bf16.gmra.mxu0 %v5268_v22  ;;  %5705 = vmatmul.bf16.gmra.mxu2 %v5268_v22  ;;  %v7583_v22 = vld [vmem:[#allocation2 + $0x4c0] sm:$0xff]  ;;  %7506 = vrcp.f32 %v4012_v8  ;;  %v5233_v38 = vmul.f32 %v7505_v3, %v14877_v45  ;;  %v4015_v14 = vadd.f32 %v14883_v44, %v3951_v39  ;;  %v3952_v34 = vmul.f32 %v7586_v56, %v14884_v26  ;;  %v14889_v8 = vld [vmem:[#allocation244_spill] sm:$0xff]  ;;  %v14898_v26 = vld [vmem:[#allocation425_spill] sm:$0xff] }
 0x4d3   :  { %v3950_v43 = vmul.f32 %v7583_v22, %v14873_v19  ;;  %5842 = vst [vmem:[#allocation5 + $0x60] sm:$0xff] %v5588_v10  ;;  %v5676_v47 = vpop.f32.mrf.mxu2  ;;  %v14888_v10 = vld [vmem:[#allocation242_spill] sm:$0xff] }
 0x4d4   :  { %5616 = vmatmul.bf16.gmra.mxu1 %v5269_v32  ;;  %5794 = vmatmul.bf16.gmra.mxu3 %v5269_v32  ;;  %v5231_v32 = vmul.f32 %v7503_v41, %v14876_v21  ;;  %v4016_v20 = vadd.f32 %v14886_v24, %v3952_v34  ;;  %v14890_v41 = vld [vmem:[#allocation33_spill] sm:$0xff] }
 0x4d5   :  { %v4014_v27 = vadd.f32 %v14875_v18, %v3950_v43  ;;  %v5500_v63 = vpop.f32.mrf.mxu0 }
 0x4d6   :  { %v5765_v55 = vpop.f32.mrf.mxu3  ;;  %v5273_v23 = vpack.c.bf16 %v5233_v38, %v5231_v32  ;;  %v7589_v38 = vld [vmem:[#allocation2 + $0x528] sm:$0xff] }
 0x4d7   :  { %7508 = vrcp.f32 %v4014_v27  ;;  %v5766_v30 = vadd.f32 %v5765_v55, %v5676_v47 }
 0x4d8   :  { %v5589_v33 = vpop.f32.mrf.mxu1  ;;  %v7507_v35 = vpop.eup %7506  ;;  %7510 = vrcp.f32 %v4013_v37  ;;  %v14896_v37 = vld [vmem:[#allocation111_spill] sm:$0xff] }
 0x4d9   :  { %5843 = vst [vmem:[#allocation5 + $0x68] sm:$0xff] %v5766_v30  ;;  %v5590_v16 = vadd.f32 %v5589_v33, %v5500_v63  ;;  %v5234_v15 = vmul.f32 %v7507_v35, %v14878_v50  ;;  %7512 = vrcp.f32 %v4015_v14  ;;  %v7588_v33 = vld [vmem:[#allocation2 + $0x4f8] sm:$0xff]  ;;  %v14897_v14 = vld [vmem:[#allocation63_spill] sm:$0xff] }
 0x4da   :  { %7514 = vrcp.f32 %v4016_v20  ;;  %v14891_v35 = vld [vmem:[#allocation410_spill] sm:$0xff] }
 0x4db   :  { %5844 = vst [vmem:[#allocation5 + $0x70] sm:$0xff] %v5590_v16  ;;  %v5678_v52 = vpop.f32.mrf.mxu2  ;;  %v3953_v45 = vmul.f32 %v7588_v33, %v14891_v35  ;;  %v3955_v16 = vmul.f32 %v7589_v38, %v14747_v58  ;;  %v7590_v58 = vld [vmem:[#allocation2 + $0x550] sm:$0xff] }
 0x4dc   :  { %v3956_v39 = vmul.f32 %v7590_v58, %v14894_v53  ;;  %v14907_v58 = vld [vmem:[#allocation439_spill] sm:$0xff] }
 0x4dd   :  { %v7509_v51 = vpop.eup %7508 }
 0x4de   :  { %v5236_v4 = vmul.f32 %v7509_v51, %v14879_v62  ;;  %v5767_v17 = vpop.f32.mrf.mxu3  ;;  %v7511_v29 = vpop.eup %7510  ;;  %v14892_v62 = vld [vmem:[#allocation414_spill] sm:$0xff]  ;;  %v4020_v34 = vadd.f32 %v14898_v26, %v3956_v39  ;;  %v14908_v39 = vld [vmem:[#allocation447_spill] sm:$0xff] }
 0x4df   :  { %v5768_v9 = vadd.f32 %v5767_v17, %v5678_v52  ;;  %v7513_v19 = vpop.eup %7512  ;;  %v5235_v60 = vmul.f32 %v7511_v29, %v14888_v10  ;;  %v7591_v17 = vld [vmem:[#allocation2 + $0x580] sm:$0xff]  ;;  %v7593_v29 = vld [vmem:[#allocation2 + $0x588] sm:$0xff]  ;;  %v14910_v26 = vld [vmem:[#allocation246_spill] sm:$0xff] }
 0x4e0   :  { %v12911_v13 = vpack.c.bf16 %v5236_v4, %v5234_v15  ;;  %v5237_v18 = vmul.f32 %v7513_v19, %v14889_v8  ;;  %v7515_v27 = vpop.eup %7514  ;;  %v14893_v4 = vld [vmem:[#allocation419_spill] sm:$0xff] }
 0x4e1   :  { %5845 = vst [vmem:[#allocation5 + $0x78] sm:$0xff] %v5768_v9  ;;  %v5238_v30 = vmul.f32 %v7515_v27, %v14890_v41  ;;  %v4019_v52 = vadd.f32 %v14893_v4, %v3955_v16  ;;  %v14895_v9 = vld [vmem:[#allocation430_spill] sm:$0xff]  ;;  %v7595_v4 = vld [vmem:[#allocation2 + $0x5e0] sm:$0xff] }
 0x4e2   :  { %5532 = vmatmul.bf16.gmra.mxu0 %v5270_v40  ;;  %5710 = vmatmul.bf16.gmra.mxu2 %v5270_v40  ;;  %v7587_v40 = vld [vmem:[#allocation2 + $0x520] sm:$0xff]  ;;  %v5275_v55 = vpack.c.bf16 %v5237_v18, %v5235_v60 }
 0x4e3   :  { %v3954_v48 = vmul.f32 %v7587_v40, %v14885_v49  ;;  %v14899_v40 = vld [vmem:[#allocation431_spill] sm:$0xff] }
 0x4e4   :  { %5621 = vmatmul.bf16.gmra.mxu1 %v5271_v1  ;;  %5799 = vmatmul.bf16.gmra.mxu3 %v5271_v1 }
 0x4e5   :  { %v4018_v31 = vadd.f32 %v14887_v11, %v3954_v48  ;;  %v7592_v11 = vld [vmem:[#allocation2 + $0x558] sm:$0xff] }
 0x4e6   :  { %v5503_v1 = vpop.f32.mrf.mxu0 }
 0x4e7   :  { %7516 = vrcp.f32 %v4018_v31  ;;  %v14900_v31 = vld [vmem:[#allocation426_spill] sm:$0xff] }
 0x4e8   :  { %v5592_v22 = vpop.f32.mrf.mxu1 }
 0x4e9   :  { %v5593_v43 = vadd.f32 %v5592_v22, %v5503_v1  ;;  %v3957_v1 = vmul.f32 %v7592_v11, %v14900_v31  ;;  %v3959_v22 = vmul.f32 %v7593_v29, %v14794_v25 }
 0x4eb   :  { %5846 = vst [vmem:[#allocation5 + $0x80] sm:$0xff] %v5593_v43  ;;  %v14901_v43 = vld [vmem:[#allocation427_spill] sm:$0xff]  ;;  %v4023_v60 = vadd.f32 %v14795_v5, %v3959_v22  ;;  %v14903_v5 = vld [vmem:[#allocation245_spill] sm:$0xff] }
 0x4ec   :  { %v5681_v63 = vpop.f32.mrf.mxu2  ;;  %v4021_v10 = vadd.f32 %v14901_v43, %v3957_v1 }
 0x4ed   :  { %v7517_v47 = vpop.eup %7516 }
 0x4ee   :  { %v5240_v3 = vmul.f32 %v7517_v47, %v12597_v28  ;;  %v5770_v21 = vpop.f32.mrf.mxu3  ;;  %v5505_v32 = vpop.f32.mrf.mxu0  ;;  %v4017_v28 = vadd.f32 %v14892_v62, %v3953_v45  ;;  %v14904_v62 = vld [vmem:[#allocation438_spill] sm:$0xff] }
 0x4ef   :  { %v5771_v51 = vadd.f32 %v5770_v21, %v5681_v63 }
 0x4f0   :  { %v12929_v50 = vpack.c.bf16 %v5240_v3, %v5238_v30  ;;  %v5594_v15 = vpop.f32.mrf.mxu1  ;;  %7518 = vrcp.f32 %v4017_v28 }
 0x4f1   :  { %5847 = vst [vmem:[#allocation5 + $0x88] sm:$0xff] %v5771_v51  ;;  %7520 = vrcp.f32 %v4019_v52  ;;  %v14905_v52 = vld [vmem:[#allocation446_spill] sm:$0xff] }
 0x4f2   :  { %5537 = vmatmul.bf16.gmra.mxu0 %v12897_v46  ;;  %5715 = vmatmul.bf16.gmra.mxu2 %v12897_v46  ;;  %v5595_v46 = vadd.f32 %v5594_v15, %v5505_v32  ;;  %7522 = vrcp.f32 %v4020_v34 }
 0x4f4   :  { %5626 = vmatmul.bf16.gmra.mxu1 %v5273_v23  ;;  %5804 = vmatmul.bf16.gmra.mxu3 %v5273_v23  ;;  %5848 = vst [vmem:[#allocation5 + $0x90] sm:$0xff] %v5595_v46  ;;  %v5683_v7 = vpop.f32.mrf.mxu2  ;;  %v3958_v23 = vmul.f32 %v7591_v17, %v14895_v9  ;;  %v3962_v46 = vmul.f32 %v7595_v4, %v14905_v52 }
 0x4f6   :  { %v5772_v61 = vpop.f32.mrf.mxu3  ;;  %v7519_v57 = vpop.eup %7518  ;;  %v4022_v49 = vadd.f32 %v14899_v40, %v3958_v23  ;;  %v4026_v17 = vadd.f32 %v14908_v39, %v3962_v46 }
 0x4f7   :  { %v5773_v54 = vadd.f32 %v5772_v61, %v5683_v7  ;;  %v7521_v6 = vpop.eup %7520  ;;  %v5239_v44 = vmul.f32 %v7519_v57, %v14896_v37  ;;  %v7596_v7 = vld [vmem:[#allocation2 + $0x5b8] sm:$0xff]  ;;  %v7597_v57 = vld [vmem:[#allocation2 + $0x5e8] sm:$0xff] }
 0x4f8   :  { %v5241_v56 = vmul.f32 %v7521_v6, %v14897_v14  ;;  %7524 = vrcp.f32 %v4022_v49  ;;  %v7523_v8 = vpop.eup %7522  ;;  %v14906_v61 = vld [vmem:[#allocation442_spill] sm:$0xff] }
 0x4f9   :  { %5849 = vst [vmem:[#allocation5 + $0x98] sm:$0xff] %v5773_v54  ;;  %7526 = vrcp.f32 %v4021_v10  ;;  %v3961_v54 = vmul.f32 %v7596_v7, %v14906_v61 }
 0x4fa   :  { %v5277_v24 = vpack.c.bf16 %v5241_v56, %v5239_v44  ;;  %7528 = vrcp.f32 %v4023_v60 }
 0x4fd   :  { %v5508_v48 = vpop.f32.mrf.mxu0 }
 0x4fe   :  { %v7525_v27 = vpop.eup %7524 }
 0x4ff   :  { %v5244_v30 = vmul.f32 %v7525_v27, %v12707_v36  ;;  %v7527_v32 = vpop.eup %7526  ;;  %v7594_v36 = vld [vmem:[#allocation2 + $0x5b0] sm:$0xff] }
 0x500   :  { %v5597_v20 = vpop.f32.mrf.mxu1  ;;  %v7529_v33 = vpop.eup %7528  ;;  %v5243_v35 = vmul.f32 %v7527_v32, %v14903_v5  ;;  %v3960_v28 = vmul.f32 %v7594_v36, %v14904_v62 }
 0x501   :  { %v5598_v19 = vadd.f32 %v5597_v20, %v5508_v48  ;;  %v5245_v38 = vmul.f32 %v7529_v33, %v12742_v2  ;;  %v3963_v2 = vmul.f32 %v7597_v57, %v14842_v42 }
 0x502   :  { %5542 = vmatmul.bf16.gmra.mxu0 %v12911_v13  ;;  %5720 = vmatmul.bf16.gmra.mxu2 %v12911_v13  ;;  %v14902_v13 = vld [vmem:[#allocation53_spill] sm:$0xff]  ;;  %v4024_v53 = vadd.f32 %v14907_v58, %v3960_v28 }
 0x503   :  { %5850 = vst [vmem:[#allocation5 + $0xa0] sm:$0xff] %v5598_v19  ;;  %v5686_v18 = vpop.f32.mrf.mxu2  ;;  %v5242_v47 = vmul.f32 %v7523_v8, %v14902_v13  ;;  %v5279_v51 = vpack.c.bf16 %v5245_v38, %v5243_v35  ;;  %v4027_v23 = vadd.f32 %v14843_v12, %v3963_v2  ;;  %v14911_v12 = vld [vmem:[#allocation34_spill] sm:$0xff] }
 0x504   :  { %5631 = vmatmul.bf16.gmra.mxu1 %v5275_v55  ;;  %5809 = vmatmul.bf16.gmra.mxu3 %v5275_v55  ;;  %7530 = vrcp.f32 %v4024_v53 }
 0x505   :  { %v5510_v41 = vpop.f32.mrf.mxu0  ;;  %v5278_v21 = vpack.c.bf16 %v5244_v30, %v5242_v47  ;;  %7532 = vrcp.f32 %v4026_v17 }
 0x506   :  { %v5775_v63 = vpop.f32.mrf.mxu3 }
 0x507   :  { %v5776_v25 = vadd.f32 %v5775_v63, %v5686_v18 }
 0x508   :  { %v5599_v3 = vpop.f32.mrf.mxu1 }
 0x509   :  { %5851 = vst [vmem:[#allocation5 + $0xa8] sm:$0xff] %v5776_v25  ;;  %v5600_v55 = vadd.f32 %v5599_v3, %v5510_v41 }
 0x50a   :  { %v7531_v14 = vpop.eup %7530 }
 0x50b   :  { %5852 = vst [vmem:[#allocation5 + $0xb0] sm:$0xff] %v5600_v55  ;;  %v5688_v45 = vpop.f32.mrf.mxu2  ;;  %v7533_v42 = vpop.eup %7532  ;;  %v5246_v34 = vmul.f32 %v7531_v14, %v14910_v26 }
 0x50c   :  { %v5248_v49 = vmul.f32 %v7533_v42, %v12829_v59 }
 0x50e   :  { %v5777_v16 = vpop.f32.mrf.mxu3  ;;  %v5280_v1 = vpack.c.bf16 %v5248_v49, %v5246_v34 }
 0x50f   :  { %v5778_v15 = vadd.f32 %v5777_v16, %v5688_v45 }
 0x511   :  { %5853 = vst [vmem:[#allocation5 + $0xb8] sm:$0xff] %v5778_v15 }
 0x512   :  { %5547 = vmatmul.bf16.gmra.mxu0 %v12929_v50  ;;  %5725 = vmatmul.bf16.gmra.mxu2 %v12929_v50  ;;  %v14909_v50 = vld [vmem:[#allocation43_spill] sm:$0xff] }
 0x513   :  { %v4025_v9 = vadd.f32 %v14909_v50, %v3961_v54 }
 0x514   :  { %5636 = vmatmul.bf16.gmra.mxu1 %v5277_v24  ;;  %5814 = vmatmul.bf16.gmra.mxu3 %v5277_v24 }
 0x515   :  { %v5513_v6 = vpop.f32.mrf.mxu0  ;;  %7534 = vrcp.f32 %v4025_v9 }
 0x516   :  { %7536 = vrcp.f32 %v4027_v23 }
 0x517   :  { %v5602_v37 = vpop.f32.mrf.mxu1 }
 0x518   :  { %v5603_v44 = vadd.f32 %v5602_v37, %v5513_v6 }
 0x51a   :  { %5854 = vst [vmem:[#allocation5 + $0xc0] sm:$0xff] %v5603_v44 }
 0x51b   :  { %v5691_v56 = vpop.f32.mrf.mxu2  ;;  %v7535_v40 = vpop.eup %7534 }
 0x51c   :  { %v7537_v48 = vpop.eup %7536  ;;  %v5247_v11 = vmul.f32 %v7535_v40, %v14911_v12 }
 0x51d   :  { %v5780_v24 = vpop.f32.mrf.mxu3  ;;  %v5515_v20 = vpop.f32.mrf.mxu0  ;;  %v5249_v29 = vmul.f32 %v7537_v48, %v12856_v0 }
 0x51e   :  { %v5781_v31 = vadd.f32 %v5780_v24, %v5691_v56 }
 0x51f   :  { %v5604_v22 = vpop.f32.mrf.mxu1  ;;  %v5281_v43 = vpack.c.bf16 %v5249_v29, %v5247_v11 }
 0x520   :  { %5855 = vst [vmem:[#allocation5 + $0xc8] sm:$0xff] %v5781_v31  ;;  %v5605_v19 = vadd.f32 %v5604_v22, %v5515_v20 }
 0x522   :  { %5552 = vmatmul.bf16.gmra.mxu0 %v5278_v21  ;;  %5730 = vmatmul.bf16.gmra.mxu2 %v5278_v21  ;;  %5856 = vst [vmem:[#allocation5 + $0xd0] sm:$0xff] %v5605_v19 }
 0x523   :  { %v5693_v10 = vpop.f32.mrf.mxu2 }
 0x524   :  { %5641 = vmatmul.bf16.gmra.mxu1 %v5279_v51  ;;  %5819 = vmatmul.bf16.gmra.mxu3 %v5279_v51 }
 0x525   :  { %v5782_v59 = vpop.f32.mrf.mxu3 }
 0x526   :  { %v5783_v60 = vadd.f32 %v5782_v59, %v5693_v10 }
 0x528   :  { %5857 = vst [vmem:[#allocation5 + $0xd8] sm:$0xff] %v5783_v60 }
 0x52c   :  { %v5518_v8 = vpop.f32.mrf.mxu0 }
 0x52f   :  { %v5607_v18 = vpop.f32.mrf.mxu1 }
 0x530   :  { %v5608_v27 = vadd.f32 %v5607_v18, %v5518_v8 }
 0x532   :  { %5858 = vst [vmem:[#allocation5 + $0xe0] sm:$0xff] %v5608_v27  ;;  %5557 = vmatmul.bf16.gmra.mxu0 %v5280_v1  ;;  %5735 = vmatmul.bf16.gmra.mxu2 %v5280_v1  ;;  %v5696_v0 = vpop.f32.mrf.mxu2 }
 0x534   :  { %5646 = vmatmul.bf16.gmra.mxu1 %v5281_v43  ;;  %5824 = vmatmul.bf16.gmra.mxu3 %v5281_v43  ;;  %v5520_v47 = vpop.f32.mrf.mxu0 }
 0x535   :  { %v5785_v13 = vpop.f32.mrf.mxu3 }
 0x536   :  { %v5786_v63 = vadd.f32 %v5785_v13, %v5696_v0 }
 0x537   :  { %v5609_v41 = vpop.f32.mrf.mxu1 }
 0x538   :  { %5859 = vst [vmem:[#allocation5 + $0xe8] sm:$0xff] %v5786_v63  ;;  %v5610_v30 = vadd.f32 %v5609_v41, %v5520_v47 }
 0x53a   :  { %5860 = vst [vmem:[#allocation5 + $0xf0] sm:$0xff] %v5610_v30  ;;  %v5698_v25 = vpop.f32.mrf.mxu2 }
 0x53d   :  { %v5787_v3 = vpop.f32.mrf.mxu3 }
 0x53e   :  { %v5788_v21 = vadd.f32 %v5787_v3, %v5698_v25 }
 0x53f   :  { %v5523_v55 = vpop.f32.mrf.mxu0 }
 0x540   :  { %5861 = vst [vmem:[#allocation5 + $0xf8] sm:$0xff] %v5788_v21 }
 0x541   :  { %v5612_v32 = vpop.f32.mrf.mxu1 }
 0x542   :  { %v5613_v33 = vadd.f32 %v5612_v32, %v5523_v55 }
 0x544   :  { %5862 = vst [vmem:[#allocation5 + $0x100] sm:$0xff] %v5613_v33 }
 0x545   :  { %v5701_v5 = vpop.f32.mrf.mxu2 }
 0x547   :  { %v5790_v35 = vpop.f32.mrf.mxu3  ;;  %v5525_v45 = vpop.f32.mrf.mxu0 }
 0x548   :  { %v5791_v38 = vadd.f32 %v5790_v35, %v5701_v5 }
 0x549   :  { %v5614_v16 = vpop.f32.mrf.mxu1 }
 0x54a   :  { %5863 = vst [vmem:[#allocation5 + $0x108] sm:$0xff] %v5791_v38  ;;  %v5615_v51 = vadd.f32 %v5614_v16, %v5525_v45 }
 0x54c   :  { %5864 = vst [vmem:[#allocation5 + $0x110] sm:$0xff] %v5615_v51 }
 0x54d   :  { %v5703_v15 = vpop.f32.mrf.mxu2 }
 0x54f   :  { %v5792_v36 = vpop.f32.mrf.mxu3  ;;  %v5528_v62 = vpop.f32.mrf.mxu0 }
 0x550   :  { %v5793_v28 = vadd.f32 %v5792_v36, %v5703_v15 }
 0x551   :  { %v5617_v4 = vpop.f32.mrf.mxu1 }
 0x552   :  { %5865 = vst [vmem:[#allocation5 + $0x118] sm:$0xff] %v5793_v28  ;;  %v5618_v52 = vadd.f32 %v5617_v4, %v5528_v62 }
 0x554   :  { %5866 = vst [vmem:[#allocation5 + $0x120] sm:$0xff] %v5618_v52 }
 0x555   :  { %v5706_v46 = vpop.f32.mrf.mxu2 }
 0x557   :  { %v5795_v7 = vpop.f32.mrf.mxu3  ;;  %v5530_v61 = vpop.f32.mrf.mxu0 }
 0x558   :  { %v5796_v54 = vadd.f32 %v5795_v7, %v5706_v46 }
 0x559   :  { %v5619_v57 = vpop.f32.mrf.mxu1 }
 0x55a   :  { %5867 = vst [vmem:[#allocation5 + $0x128] sm:$0xff] %v5796_v54  ;;  %v5620_v2 = vadd.f32 %v5619_v57, %v5530_v61 }
 0x55c   :  { %5868 = vst [vmem:[#allocation5 + $0x130] sm:$0xff] %v5620_v2 }
 0x55d   :  { %v5708_v58 = vpop.f32.mrf.mxu2 }
 0x55f   :  { %v5797_v53 = vpop.f32.mrf.mxu3  ;;  %v5533_v39 = vpop.f32.mrf.mxu0 }
 0x560   :  { %v5798_v17 = vadd.f32 %v5797_v53, %v5708_v58 }
 0x561   :  { %v5622_v50 = vpop.f32.mrf.mxu1 }
 0x562   :  { %5869 = vst [vmem:[#allocation5 + $0x138] sm:$0xff] %v5798_v17  ;;  %v5623_v9 = vadd.f32 %v5622_v50, %v5533_v39 }
 0x564   :  { %5870 = vst [vmem:[#allocation5 + $0x140] sm:$0xff] %v5623_v9 }
 0x565   :  { %v5711_v23 = vpop.f32.mrf.mxu2 }
 0x567   :  { %v5800_v6 = vpop.f32.mrf.mxu3  ;;  %v5535_v37 = vpop.f32.mrf.mxu0 }
 0x568   :  { %v5801_v44 = vadd.f32 %v5800_v6, %v5711_v23 }
 0x569   :  { %v5624_v14 = vpop.f32.mrf.mxu1 }
 0x56a   :  { %5871 = vst [vmem:[#allocation5 + $0x148] sm:$0xff] %v5801_v44  ;;  %v5625_v42 = vadd.f32 %v5624_v14, %v5535_v37 }
 0x56c   :  { %5872 = vst [vmem:[#allocation5 + $0x150] sm:$0xff] %v5625_v42 }
 0x56d   :  { %v5713_v56 = vpop.f32.mrf.mxu2 }
 0x56f   :  { %v5802_v26 = vpop.f32.mrf.mxu3  ;;  %v5538_v34 = vpop.f32.mrf.mxu0 }
 0x570   :  { %v5803_v40 = vadd.f32 %v5802_v26, %v5713_v56 }
 0x571   :  { %v5627_v49 = vpop.f32.mrf.mxu1 }
 0x572   :  { %5873 = vst [vmem:[#allocation5 + $0x158] sm:$0xff] %v5803_v40  ;;  %v5628_v48 = vadd.f32 %v5627_v49, %v5538_v34 }
 0x574   :  { %5874 = vst [vmem:[#allocation5 + $0x160] sm:$0xff] %v5628_v48 }
 0x575   :  { %v5716_v24 = vpop.f32.mrf.mxu2 }
 0x577   :  { %v5805_v20 = vpop.f32.mrf.mxu3  ;;  %v5540_v12 = vpop.f32.mrf.mxu0 }
 0x578   :  { %v5806_v11 = vadd.f32 %v5805_v20, %v5716_v24 }
 0x579   :  { %v5629_v31 = vpop.f32.mrf.mxu1 }
 0x57a   :  { %5875 = vst [vmem:[#allocation5 + $0x168] sm:$0xff] %v5806_v11  ;;  %v5630_v1 = vadd.f32 %v5629_v31, %v5540_v12 }
 0x57c   :  { %5876 = vst [vmem:[#allocation5 + $0x170] sm:$0xff] %v5630_v1 }
 0x57d   :  { %v5718_v29 = vpop.f32.mrf.mxu2 }
 0x57f   :  { %v5807_v22 = vpop.f32.mrf.mxu3  ;;  %v5543_v19 = vpop.f32.mrf.mxu0 }
 0x580   :  { %v5808_v43 = vadd.f32 %v5807_v22, %v5718_v29 }
 0x581   :  { %v5632_v10 = vpop.f32.mrf.mxu1 }
 0x582   :  { %5877 = vst [vmem:[#allocation5 + $0x178] sm:$0xff] %v5808_v43  ;;  %v5633_v59 = vadd.f32 %v5632_v10, %v5543_v19 }
 0x584   :  { %5878 = vst [vmem:[#allocation5 + $0x180] sm:$0xff] %v5633_v59 }
 0x585   :  { %v5721_v60 = vpop.f32.mrf.mxu2 }
 0x587   :  { %v5810_v8 = vpop.f32.mrf.mxu3  ;;  %v5545_v18 = vpop.f32.mrf.mxu0 }
 0x588   :  { %v5811_v27 = vadd.f32 %v5810_v8, %v5721_v60 }
 0x589   :  { %v5634_v0 = vpop.f32.mrf.mxu1 }
 0x58a   :  { %5879 = vst [vmem:[#allocation5 + $0x188] sm:$0xff] %v5811_v27  ;;  %v5635_v13 = vadd.f32 %v5634_v0, %v5545_v18 }
 0x58c   :  { %5880 = vst [vmem:[#allocation5 + $0x190] sm:$0xff] %v5635_v13 }
 0x58d   :  { %v5723_v47 = vpop.f32.mrf.mxu2 }
 0x58f   :  { %v5812_v63 = vpop.f32.mrf.mxu3  ;;  %v5548_v41 = vpop.f32.mrf.mxu0 }
 0x590   :  { %v5813_v30 = vadd.f32 %v5812_v63, %v5723_v47 }
 0x591   :  { %v5637_v25 = vpop.f32.mrf.mxu1 }
 0x592   :  { %5881 = vst [vmem:[#allocation5 + $0x198] sm:$0xff] %v5813_v30  ;;  %v5638_v3 = vadd.f32 %v5637_v25, %v5548_v41 }
 0x594   :  { %5882 = vst [vmem:[#allocation5 + $0x1a0] sm:$0xff] %v5638_v3 }
 0x595   :  { %v5726_v21 = vpop.f32.mrf.mxu2 }
 0x597   :  { %v5815_v55 = vpop.f32.mrf.mxu3  ;;  %v5550_v32 = vpop.f32.mrf.mxu0 }
 0x598   :  { %v5816_v33 = vadd.f32 %v5815_v55, %v5726_v21 }
 0x599   :  { %v5639_v5 = vpop.f32.mrf.mxu1 }
 0x59a   :  { %5883 = vst [vmem:[#allocation5 + $0x1a8] sm:$0xff] %v5816_v33  ;;  %v5640_v35 = vadd.f32 %v5639_v5, %v5550_v32 }
 0x59c   :  { %5884 = vst [vmem:[#allocation5 + $0x1b0] sm:$0xff] %v5640_v35 }
 0x59d   :  { %v5728_v45 = vpop.f32.mrf.mxu2 }
 0x59f   :  { %v5817_v38 = vpop.f32.mrf.mxu3  ;;  %v5553_v16 = vpop.f32.mrf.mxu0 }
 0x5a0   :  { %v5818_v51 = vadd.f32 %v5817_v38, %v5728_v45 }
 0x5a1   :  { %v5642_v15 = vpop.f32.mrf.mxu1 }
 0x5a2   :  { %5885 = vst [vmem:[#allocation5 + $0x1b8] sm:$0xff] %v5818_v51  ;;  %v5643_v36 = vadd.f32 %v5642_v15, %v5553_v16 }
 0x5a4   :  { %5886 = vst [vmem:[#allocation5 + $0x1c0] sm:$0xff] %v5643_v36 }
 0x5a5   :  { %v5731_v62 = vpop.f32.mrf.mxu2 }
 0x5a7   :  { %v5820_v28 = vpop.f32.mrf.mxu3  ;;  %v5555_v4 = vpop.f32.mrf.mxu0 }
 0x5a8   :  { %v5821_v52 = vadd.f32 %v5820_v28, %v5731_v62 }
 0x5a9   :  { %v5644_v46 = vpop.f32.mrf.mxu1 }
 0x5aa   :  { %5887 = vst [vmem:[#allocation5 + $0x1c8] sm:$0xff] %v5821_v52  ;;  %v5645_v7 = vadd.f32 %v5644_v46, %v5555_v4 }
 0x5ac   :  { %5888 = vst [vmem:[#allocation5 + $0x1d0] sm:$0xff] %v5645_v7 }
 0x5ad   :  { %v5733_v61 = vpop.f32.mrf.mxu2 }
 0x5af   :  { %v5822_v54 = vpop.f32.mrf.mxu3  ;;  %v5558_v57 = vpop.f32.mrf.mxu0 }
 0x5b0   :  { %v5823_v2 = vadd.f32 %v5822_v54, %v5733_v61 }
 0x5b1   :  { %v5647_v58 = vpop.f32.mrf.mxu1 }
 0x5b2   :  { %5889 = vst [vmem:[#allocation5 + $0x1d8] sm:$0xff] %v5823_v2  ;;  %v5648_v53 = vadd.f32 %v5647_v58, %v5558_v57 }
 0x5b4   :  { %5890 = vst [vmem:[#allocation5 + $0x1e0] sm:$0xff] %v5648_v53 }
 0x5b5   :  { %v5736_v39 = vpop.f32.mrf.mxu2 }
 0x5b7   :  { %v5825_v17 = vpop.f32.mrf.mxu3  ;;  %v5560_v50 = vpop.f32.mrf.mxu0 }
 0x5b8   :  { %v5826_v9 = vadd.f32 %v5825_v17, %v5736_v39 }
 0x5b9   :  { %v5649_v23 = vpop.f32.mrf.mxu1 }
 0x5ba   :  { %5891 = vst [vmem:[#allocation5 + $0x1e8] sm:$0xff] %v5826_v9  ;;  %v5650_v6 = vadd.f32 %v5649_v23, %v5560_v50 }
 0x5bc   :  { %5892 = vst [vmem:[#allocation5 + $0x1f0] sm:$0xff] %v5650_v6 }
 0x5bd   :  { %v5738_v37 = vpop.f32.mrf.mxu2 }
 0x5bf   :  { %v5827_v44 = vpop.f32.mrf.mxu3 }
 0x5c0   :  { %v5828_v14 = vadd.f32 %v5827_v44, %v5738_v37 }
 0x5c2   :  { %5893 = vst [vmem:[#allocation5 + $0x1f8] sm:$0xff] %v5828_v14 }
 0x5c3   :  { %5906 = dma.vmem_to_hbm [thread:$0]  %s5899_s26, 8192, %s5901_s29, [#allocation4], %s7681_s30, %s7681_s30, %s7682_s7  }
 0x5c4   :  { %7672 = dma.done.wait [#allocation4], 8192  }
 0x5c5   :  { %7673 = vsyncadd [#allocation4], 4294959104 }
 0x5c6   :  { %7674 = dma.done.wait [#allocation7], 24576  }
 0x5c7   :  { %7675 = vsyncadd [#allocation7], 4294942720 }
 0x5c8   :  { %5928 = vsyncpa [#allocation3], 1 }
 0x5c9   :  { %5929 = vsyncpa [#allocation4], 1 }
 0x5ca   :  { %5930 = vsyncpa [#allocation7], 1 }

</bundles_post_ra>
